<compile_context>
chip_gen: v7x
topology: tpu7x:2x2x1
jax: 0.10.0
libtpu: 0.0.40
codegen_flags: <defaults>
</compile_context>

<pallas_src>
import jax
import jax.numpy as jnp
import numpy as np
from jax.experimental import pallas as pl
from jax.experimental.pallas import tpu as pltpu

GROUPS = 8                      # conv1 / conv2 groups (from the module)
C1, C2, C3, C4 = 4096, 2048, 1024, 512
BN_EPS = 1e-5


def _round_up(n, m):
    return ((n + m - 1) // m) * m


# -----------------------------------------------------------------------------
# Pallas kernel: fused conv1..conv4 (1x1, BN folded) + ReLU + Linear + sigmoid
# -----------------------------------------------------------------------------
def ranknet_kernel(x_ref,                       # (tb, Cin)        bf16 (shuffle folded into w1)
                   w1_ref, b1_ref,              # (Cin, 4096) bf16, (1, 4096) f32
                   w2_ref, b2_ref,              # (G, 512, 256) bf16, (1, 2048) f32
                   w3_ref, b3_ref,              # (G, 256, 1024) bf16, (1, 1024) f32
                   w4_ref, b4_ref,              # (1024, 512) bf16, (1, 512) f32
                   wm_ref, bm_ref,              # (1, 512) f32,   (1, 1) f32
                   out_ref):                    # (tb, 1) f32
    f32, bf16 = jnp.float32, jnp.bfloat16
    tb = x_ref.shape[0]
    g1o, g2o = C1 // GROUPS, C2 // GROUPS       # 512, 256

    # conv1 (+BN; block-diag grouped weight with channel_shuffle absorbed) + ReLU
    h1 = jnp.dot(x_ref[...], w1_ref[...], preferred_element_type=f32) + b1_ref[...]
    h1 = jnp.maximum(h1, 0.0)

    # conv2 (grouped, +BN) + ReLU, fused straight into conv3's K-reduction so
    # the (tb, 2048) intermediate activation is never materialized in VMEM.
    acc3 = jnp.zeros((tb, C3), f32)
    for g in range(GROUPS):
        h1g = h1[:, g * g1o:(g + 1) * g1o].astype(bf16)
        h2g = jnp.dot(h1g, w2_ref[g], preferred_element_type=f32) \
            + b2_ref[:, g * g2o:(g + 1) * g2o]
        h2g = jnp.maximum(h2g, 0.0).astype(bf16)
        acc3 = acc3 + jnp.dot(h2g, w3_ref[g], preferred_element_type=f32)

    # conv3 (+BN) + ReLU  /  conv4 (+BN) + ReLU
    h3 = jnp.maximum(acc3 + b3_ref[...], 0.0)
    h4 = jnp.maximum(
        jnp.dot(h3.astype(bf16), w4_ref[...], preferred_element_type=f32)
        + b4_ref[...], 0.0)

    # mlp1 + sigmoid: the N=1 matmul is a VPU multiply + lane reduction instead
    # of an MXU push that would fill a single column and emit a masked store.
    logits = jnp.sum(h4 * wm_ref[...], axis=-1, keepdims=True) + bm_ref[...]
    out_ref[...] = jax.nn.sigmoid(logits)


# -----------------------------------------------------------------------------
# Wrapper: batch grid (weights VMEM-resident), bf16 input cast, pallas_call
# -----------------------------------------------------------------------------
@jax.jit
def ranknet_forward(x_nchw, w1, b1, w2, b2, w3, b3, w4, b4, wm, bm):
    B, C, H, W = x_nchw.shape
    assert H == 1 and W == 1, "Linear(512,1) after flatten requires H=W=1"
    x = x_nchw.reshape(B, C).astype(jnp.bfloat16)

    # Batch tile: 8-sublane aligned, capped at 256 to match the 256x256 MXU on
    # v6e/v7x while keeping per-step VMEM modest (also fine on v5e's 128x128).
    tile_b = min(256, _round_up(B, 8))
    b_pad = _round_up(B, tile_b)
    if b_pad != B:
        x = jnp.pad(x, ((0, b_pad - B), (0, 0)))

    c2 = lambda i: (0, 0)
    c3 = lambda i: (0, 0, 0)
    out = pl.pallas_call(
        ranknet_kernel,
        out_shape=jax.ShapeDtypeStruct((b_pad, 1), jnp.float32),
        grid=(b_pad // tile_b,),
        in_specs=[
            pl.BlockSpec((tile_b, C), lambda i: (i, 0)),   # x: streamed per batch tile
            pl.BlockSpec(w1.shape, c2),                    # weights/biases: constant index
            pl.BlockSpec(b1.shape, c2),                    #   -> loaded once, VMEM resident
            pl.BlockSpec(w2.shape, c3),
            pl.BlockSpec(b2.shape, c2),
            pl.BlockSpec(w3.shape, c3),
            pl.BlockSpec(b3.shape, c2),
            pl.BlockSpec(w4.shape, c2),
            pl.BlockSpec(b4.shape, c2),
            pl.BlockSpec(wm.shape, c2),
            pl.BlockSpec(bm.shape, c2),
        ],
        out_specs=pl.BlockSpec((tile_b, 1), lambda i: (i, 0)),
        compiler_params=pltpu.CompilerParams(
            dimension_semantics=("parallel",),
            # ~7.6 MiB bf16 weights (double-buffered) + activation tiles; well
            # under v7x's 64 MiB physical VMEM (and v5e/v6e's 128 MiB).
            vmem_limit_bytes=40 * 1024 * 1024),
    )(x, w1, b1, w2, b2, w3, b3, w4, b4, wm, bm)
    return out[:B]


# -----------------------------------------------------------------------------
# Deterministic parameter init + BN folding + layout prep (plain JAX glue)
# -----------------------------------------------------------------------------
def init_params(key, input_size):
    cin_g = input_size // GROUPS
    ks = jax.random.split(key, 18)
    rn = lambda k, shape, s: s * jax.random.normal(k, shape, jnp.float32)
    p = {}
    # conv weights: (out_channels, in_channels_per_group)
    p["w1"], p["b1"] = rn(ks[0], (C1, cin_g), 0.10), rn(ks[1], (C1,), 0.10)
    p["w2"], p["b2"] = rn(ks[2], (C2, C1 // GROUPS), 0.02), rn(ks[3], (C2,), 0.05)
    p["w3"], p["b3"] = rn(ks[4], (C3, C2), 0.02), rn(ks[5], (C3,), 0.05)
    p["w4"], p["b4"] = rn(ks[6], (C4, C3), 0.02), rn(ks[7], (C4,), 0.05)
    # BN affine params (running stats are fresh: mean=0, var=1)
    p["g1"], p["be1"] = 1.0 + rn(ks[8], (C1,), 0.1), rn(ks[9], (C1,), 0.1)
    p["g2"], p["be2"] = 1.0 + rn(ks[10], (C2,), 0.1), rn(ks[11], (C2,), 0.1)
    p["g3"], p["be3"] = 1.0 + rn(ks[12], (C3,), 0.1), rn(ks[13], (C3,), 0.1)
    p["g4"], p["be4"] = 1.0 + rn(ks[14], (C4,), 0.1), rn(ks[15], (C4,), 0.1)
    # mlp1
    p["wm"], p["bm"] = rn(ks[16], (1, C4), 0.05), rn(ks[17], (1,), 0.05)
    return p


def _fold_bn(w, b, gamma, beta, mean=0.0, var=1.0, eps=BN_EPS):
    scale = gamma / jnp.sqrt(var + eps)
    return w * scale[:, None], (b - mean) * scale + beta


def prepare(p, input_size):
    """Fold BN, absorb channel_shuffle into conv1, lay weights out input-major (f32)."""
    cin_g = input_size // GROUPS
    g1o, g2o = C1 // GROUPS, C2 // GROUPS
    w1f, b1f = _fold_bn(p["w1"], p["b1"], p["g1"], p["be1"])
    w2f, b2f = _fold_bn(p["w2"], p["b2"], p["g2"], p["be2"])
    w3f, b3f = _fold_bn(p["w3"], p["b3"], p["g3"], p["be3"])
    w4f, b4f = _fold_bn(p["w4"], p["b4"], p["g4"], p["be4"])

    # conv1 -> one dense (Cin, 4096) weight: block-diagonal grouped weight in
    # shuffled-input space, then scatter rows by the shuffle permutation so
    # x @ w1_dense == channel_shuffle(x, 2) -> grouped conv1.
    blocks = w1f.reshape(GROUPS, g1o, cin_g)               # (G, 512, Cin/G)
    w1_shuf = jnp.zeros((input_size, C1), jnp.float32)
    for g in range(GROUPS):
        w1_shuf = w1_shuf.at[g * cin_g:(g + 1) * cin_g,
                             g * g1o:(g + 1) * g1o].set(blocks[g].T)
    j = jnp.arange(input_size)
    perm = (j % 2) * (input_size // 2) + (j // 2)          # x_shuf[:, j] = x[:, perm[j]]
    w1d = jnp.zeros_like(w1_shuf).at[perm].set(w1_shuf)    # x_shuf @ w1_shuf == x @ w1d

    w2t = w2f.reshape(GROUPS, g2o, g1o).transpose(0, 2, 1)     # (G, 512, 256)
    w3t = w3f.T.reshape(GROUPS, g2o, C3)                       # (G, 256, 1024) row blocks
    w4t = w4f.T                                                # (1024, 512)
    return (w1d, b1f.reshape(1, C1), w2t, b2f.reshape(1, C2),
            w3t, b3f.reshape(1, C3), w4t, b4f.reshape(1, C4),
            p["wm"].reshape(1, C4), p["bm"].reshape(1, 1))


def to_kernel_dtypes(flat):
    """Cast the large conv weights to bf16 (biases / mlp row stay f32)."""
    w1, b1, w2, b2, w3, b3, w4, b4, wm, bm = flat
    bf = jnp.bfloat16
    return (w1.astype(bf), b1, w2.astype(bf), b2, w3.astype(bf), b3,
            w4.astype(bf), b4, wm, bm)


# -----------------------------------------------------------------------------
# Pure-JAX references for correctness checks
# -----------------------------------------------------------------------------
def ref_forward(x_nchw, flat, compute_dtype):
    """Same math as the kernel (folded params), pure JAX, chosen compute dtype."""
    w1, b1, w2, b2, w3, b3, w4, b4, wm, bm = flat
    hi = jax.lax.Precision.HIGHEST
    B, C, _, _ = x_nchw.shape
    x = x_nchw.reshape(B, C).astype(compute_dtype)
    g1o, g2o = C1 // GROUPS, C2 // GROUPS

    h1 = jnp.maximum(
        jnp.dot(x, w1, preferred_element_type=jnp.float32, precision=hi) + b1, 0.0)
    acc3 = jnp.zeros((B, C3), jnp.float32)
    for g in range(GROUPS):
        h2g = jnp.dot(h1[:, g * g1o:(g + 1) * g1o].astype(compute_dtype), w2[g],
                      preferred_element_type=jnp.float32, precision=hi) \
            + b2[:, g * g2o:(g + 1) * g2o]
        h2g = jnp.maximum(h2g, 0.0).astype(compute_dtype)
        acc3 = acc3 + jnp.dot(h2g, w3[g], preferred_element_type=jnp.float32,
                              precision=hi)
    h3 = jnp.maximum(acc3 + b3, 0.0)
    h4 = jnp.maximum(
        jnp.dot(h3.astype(compute_dtype), w4, preferred_element_type=jnp.float32,
                precision=hi) + b4, 0.0)
    logits = jnp.sum(h4 * wm, axis=-1, keepdims=True) + bm
    return jax.nn.sigmoid(logits)


def torch_semantics_ref(x_nchw, p):
    """Literal module forward (eval-mode BN), f32, explicit shuffle + groups."""
    hi = jax.lax.Precision.HIGHEST
    B, C, _, _ = x_nchw.shape
    x = x_nchw.reshape(B, C)
    x = x.reshape(B, 2, C // 2).transpose(0, 2, 1).reshape(B, C)   # channel_shuffle(2)

    def gconv(h, w, b, groups):
        cin_g = h.shape[1] // groups
        cout_g = w.shape[0] // groups
        outs = []
        for g in range(groups):
            outs.append(jnp.dot(h[:, g * cin_g:(g + 1) * cin_g],
                                w[g * cout_g:(g + 1) * cout_g].T, precision=hi)
                        + b[g * cout_g:(g + 1) * cout_g])
        return jnp.concatenate(outs, axis=-1)

    def bn(h, gamma, beta):                 # eval mode: mean=0, var=1
        return h * (gamma / jnp.sqrt(1.0 + BN_EPS)) + beta

    h = jnp.maximum(bn(gconv(x, p["w1"], p["b1"], GROUPS), p["g1"], p["be1"]), 0.0)
    h = jnp.maximum(bn(gconv(h, p["w2"], p["b2"], GROUPS), p["g2"], p["be2"]), 0.0)
    h = jnp.maximum(bn(jnp.dot(h, p["w3"].T, precision=hi) + p["b3"],
                       p["g3"], p["be3"]), 0.0)
    h = jnp.maximum(bn(jnp.dot(h, p["w4"].T, precision=hi) + p["b4"],
                       p["g4"], p["be4"]), 0.0)
    return jax.nn.sigmoid(jnp.dot(h, p["wm"].T, precision=hi) + p["bm"])


if __name__ == "__main__":
    B, input_size = 2, 64        # input_size divisible by 8 (groups) and 2 (shuffle)
    key = jax.random.PRNGKey(0)
    k_x, k_p = jax.random.split(key)
    x = jax.random.normal(k_x, (B, input_size, 1, 1), jnp.float32)   # NCHW, H=W=1
    params = init_params(k_p, input_size)

    flat_f32 = prepare(params, input_size)
    flat = to_kernel_dtypes(flat_f32)

    out = ranknet_forward(x, *flat)
    out = jax.block_until_ready(out)
    assert out.shape == (B, 1)

    # 1) Validate the parameter algebra (shuffle absorption, block-diag conv1,
    #    BN folding) against the literal module semantics, both in f32.
    ref_fold = ref_forward(x, flat_f32, jnp.float32)
    ref_orig = torch_semantics_ref(x, params)
    np.testing.assert_allclose(np.asarray(ref_fold), np.asarray(ref_orig),
                               rtol=1e-3, atol=1e-3)

    # 2) Validate the kernel against a bf16-matched pure-JAX reference.
    ref_bf16 = ref_forward(x, flat, jnp.bfloat16)
    np.testing.assert_allclose(np.asarray(out), np.asarray(ref_bf16),
                               rtol=2e-3, atol=2e-3)

    print("KERNEL_OK")
</pallas_src>

<mosaic_0001>
module attributes {stable_mosaic.version = 11 : i64} {
  func.func @ranknet_kernel(%arg0: i32, %arg1: memref<8x64xbf16, #tpu.memory_space<vmem>>, %arg2: memref<64x4096xbf16, #tpu.memory_space<vmem>>, %arg3: memref<1x4096xf32, #tpu.memory_space<vmem>>, %arg4: memref<8x512x256xbf16, #tpu.memory_space<vmem>>, %arg5: memref<1x2048xf32, #tpu.memory_space<vmem>>, %arg6: memref<8x256x1024xbf16, #tpu.memory_space<vmem>>, %arg7: memref<1x1024xf32, #tpu.memory_space<vmem>>, %arg8: memref<1024x512xbf16, #tpu.memory_space<vmem>>, %arg9: memref<1x512xf32, #tpu.memory_space<vmem>>, %arg10: memref<1x512xf32, #tpu.memory_space<vmem>>, %arg11: memref<1x1xf32, #tpu.memory_space<vmem>>, %arg12: memref<8x1xf32, #tpu.memory_space<vmem>>) attributes {dimension_semantics = [#tpu.dimension_semantics<parallel>], iteration_bounds = array<i64: 1>, scalar_prefetch = 0 : i64, scratch_operands = 0 : i64, tpu.core_type = #tpu.core_type<tc>, window_params = [{transform_indices = @transform_0, window_bounds = array<i64: 8, 64>}, {pipeline_mode = #tpu.pipeline_mode<synchronous>, transform_indices = @transform_1, window_bounds = array<i64: 64, 4096>}, {pipeline_mode = #tpu.pipeline_mode<synchronous>, transform_indices = @transform_2, window_bounds = array<i64: 1, 4096>}, {pipeline_mode = #tpu.pipeline_mode<synchronous>, transform_indices = @transform_3, window_bounds = array<i64: 8, 512, 256>}, {pipeline_mode = #tpu.pipeline_mode<synchronous>, transform_indices = @transform_4, window_bounds = array<i64: 1, 2048>}, {pipeline_mode = #tpu.pipeline_mode<synchronous>, transform_indices = @transform_5, window_bounds = array<i64: 8, 256, 1024>}, {pipeline_mode = #tpu.pipeline_mode<synchronous>, transform_indices = @transform_6, window_bounds = array<i64: 1, 1024>}, {pipeline_mode = #tpu.pipeline_mode<synchronous>, transform_indices = @transform_7, window_bounds = array<i64: 1024, 512>}, {pipeline_mode = #tpu.pipeline_mode<synchronous>, transform_indices = @transform_8, window_bounds = array<i64: 1, 512>}, {pipeline_mode = #tpu.pipeline_mode<synchronous>, transform_indices = @transform_9, window_bounds = array<i64: 1, 512>}, {pipeline_mode = #tpu.pipeline_mode<synchronous>, transform_indices = @transform_10, window_bounds = array<i64: 1, 1>}, {transform_indices = @transform_11, window_bounds = array<i64: 8, 1>}]} {
    %c0 = arith.constant 0 : index
    %c0_0 = arith.constant 0 : index
    %0 = vector.load %arg1[%c0, %c0_0] : memref<8x64xbf16, #tpu.memory_space<vmem>>, vector<8x64xbf16>
    %c0_1 = arith.constant 0 : index
    %c0_2 = arith.constant 0 : index
    %1 = vector.load %arg2[%c0_1, %c0_2] : memref<64x4096xbf16, #tpu.memory_space<vmem>>, vector<64x4096xbf16>
    %cst = arith.constant dense<0.000000e+00> : vector<8x4096xf32>
    %2 = tpu.matmul %0, %1, %cst {dimension_numbers = #tpu.dot_dimension_numbers<[1], [0], [0], [1], [0, 0, 1, 1], [], []>} : vector<8x64xbf16>, vector<64x4096xbf16>, vector<8x4096xf32> -> vector<8x4096xf32>
    %c0_3 = arith.constant 0 : index
    %c0_4 = arith.constant 0 : index
    %3 = vector.load %arg3[%c0_3, %c0_4] : memref<1x4096xf32, #tpu.memory_space<vmem>>, vector<1x4096xf32>
    %4 = vector.broadcast %3 : vector<1x4096xf32> to vector<8x4096xf32>
    %5 = arith.addf %2, %4 : vector<8x4096xf32>
    %cst_5 = arith.constant 0.000000e+00 : f32
    %6 = vector.broadcast %cst_5 : f32 to vector<8x4096xf32>
    %7 = arith.maximumf %5, %6 : vector<8x4096xf32>
    %cst_6 = arith.constant 0.000000e+00 : f32
    %8 = vector.broadcast %cst_6 : f32 to vector<8x1024xf32>
    %9 = vector.extract_strided_slice %7 {offsets = [0, 0], sizes = [8, 512], strides = [1, 1]} : vector<8x4096xf32> to vector<8x512xf32>
    %10 = arith.truncf %9 : vector<8x512xf32> to vector<8x512xbf16>
    %c0_7 = arith.constant 0 : index
    %c0_8 = arith.constant 0 : index
    %c0_9 = arith.constant 0 : index
    %11 = vector.load %arg4[%c0_7, %c0_8, %c0_9] : memref<8x512x256xbf16, #tpu.memory_space<vmem>>, vector<1x512x256xbf16>
    %12 = vector.shape_cast %11 : vector<1x512x256xbf16> to vector<512x256xbf16>
    %cst_10 = arith.constant dense<0.000000e+00> : vector<8x256xf32>
    %13 = tpu.matmul %10, %12, %cst_10 {dimension_numbers = #tpu.dot_dimension_numbers<[1], [0], [0], [1], [0, 0, 1, 1], [], []>} : vector<8x512xbf16>, vector<512x256xbf16>, vector<8x256xf32> -> vector<8x256xf32>
    %c0_11 = arith.constant 0 : index
    %c0_12 = arith.constant 0 : index
    %14 = vector.load %arg5[%c0_11, %c0_12] : memref<1x2048xf32, #tpu.memory_space<vmem>>, vector<1x256xf32>
    %15 = vector.broadcast %14 : vector<1x256xf32> to vector<8x256xf32>
    %16 = arith.addf %13, %15 : vector<8x256xf32>
    %cst_13 = arith.constant 0.000000e+00 : f32
    %17 = vector.broadcast %cst_13 : f32 to vector<8x256xf32>
    %18 = arith.maximumf %16, %17 : vector<8x256xf32>
    %19 = arith.truncf %18 : vector<8x256xf32> to vector<8x256xbf16>
    %c0_14 = arith.constant 0 : index
    %c0_15 = arith.constant 0 : index
    %c0_16 = arith.constant 0 : index
    %20 = vector.load %arg6[%c0_14, %c0_15, %c0_16] : memref<8x256x1024xbf16, #tpu.memory_space<vmem>>, vector<1x256x1024xbf16>
    %21 = vector.shape_cast %20 : vector<1x256x1024xbf16> to vector<256x1024xbf16>
    %cst_17 = arith.constant dense<0.000000e+00> : vector<8x1024xf32>
    %22 = tpu.matmul %19, %21, %cst_17 {dimension_numbers = #tpu.dot_dimension_numbers<[1], [0], [0], [1], [0, 0, 1, 1], [], []>} : vector<8x256xbf16>, vector<256x1024xbf16>, vector<8x1024xf32> -> vector<8x1024xf32>
    %23 = arith.addf %8, %22 : vector<8x1024xf32>
    %24 = vector.extract_strided_slice %7 {offsets = [0, 512], sizes = [8, 512], strides = [1, 1]} : vector<8x4096xf32> to vector<8x512xf32>
    %25 = arith.truncf %24 : vector<8x512xf32> to vector<8x512xbf16>
    %c1 = arith.constant 1 : index
    %c0_18 = arith.constant 0 : index
    %c0_19 = arith.constant 0 : index
    %26 = vector.load %arg4[%c1, %c0_18, %c0_19] : memref<8x512x256xbf16, #tpu.memory_space<vmem>>, vector<1x512x256xbf16>
    %27 = vector.shape_cast %26 : vector<1x512x256xbf16> to vector<512x256xbf16>
    %cst_20 = arith.constant dense<0.000000e+00> : vector<8x256xf32>
    %28 = tpu.matmul %25, %27, %cst_20 {dimension_numbers = #tpu.dot_dimension_numbers<[1], [0], [0], [1], [0, 0, 1, 1], [], []>} : vector<8x512xbf16>, vector<512x256xbf16>, vector<8x256xf32> -> vector<8x256xf32>
    %c0_21 = arith.constant 0 : index
    %c256 = arith.constant 256 : index
    %29 = vector.load %arg5[%c0_21, %c256] : memref<1x2048xf32, #tpu.memory_space<vmem>>, vector<1x256xf32>
    %30 = vector.broadcast %29 : vector<1x256xf32> to vector<8x256xf32>
    %31 = arith.addf %28, %30 : vector<8x256xf32>
    %cst_22 = arith.constant 0.000000e+00 : f32
    %32 = vector.broadcast %cst_22 : f32 to vector<8x256xf32>
    %33 = arith.maximumf %31, %32 : vector<8x256xf32>
    %34 = arith.truncf %33 : vector<8x256xf32> to vector<8x256xbf16>
    %c1_23 = arith.constant 1 : index
    %c0_24 = arith.constant 0 : index
    %c0_25 = arith.constant 0 : index
    %35 = vector.load %arg6[%c1_23, %c0_24, %c0_25] : memref<8x256x1024xbf16, #tpu.memory_space<vmem>>, vector<1x256x1024xbf16>
    %36 = vector.shape_cast %35 : vector<1x256x1024xbf16> to vector<256x1024xbf16>
    %cst_26 = arith.constant dense<0.000000e+00> : vector<8x1024xf32>
    %37 = tpu.matmul %34, %36, %cst_26 {dimension_numbers = #tpu.dot_dimension_numbers<[1], [0], [0], [1], [0, 0, 1, 1], [], []>} : vector<8x256xbf16>, vector<256x1024xbf16>, vector<8x1024xf32> -> vector<8x1024xf32>
    %38 = arith.addf %23, %37 : vector<8x1024xf32>
    %39 = vector.extract_strided_slice %7 {offsets = [0, 1024], sizes = [8, 512], strides = [1, 1]} : vector<8x4096xf32> to vector<8x512xf32>
    %40 = arith.truncf %39 : vector<8x512xf32> to vector<8x512xbf16>
    %c2 = arith.constant 2 : index
    %c0_27 = arith.constant 0 : index
    %c0_28 = arith.constant 0 : index
    %41 = vector.load %arg4[%c2, %c0_27, %c0_28] : memref<8x512x256xbf16, #tpu.memory_space<vmem>>, vector<1x512x256xbf16>
    %42 = vector.shape_cast %41 : vector<1x512x256xbf16> to vector<512x256xbf16>
    %cst_29 = arith.constant dense<0.000000e+00> : vector<8x256xf32>
    %43 = tpu.matmul %40, %42, %cst_29 {dimension_numbers = #tpu.dot_dimension_numbers<[1], [0], [0], [1], [0, 0, 1, 1], [], []>} : vector<8x512xbf16>, vector<512x256xbf16>, vector<8x256xf32> -> vector<8x256xf32>
    %c0_30 = arith.constant 0 : index
    %c512 = arith.constant 512 : index
    %44 = vector.load %arg5[%c0_30, %c512] : memref<1x2048xf32, #tpu.memory_space<vmem>>, vector<1x256xf32>
    %45 = vector.broadcast %44 : vector<1x256xf32> to vector<8x256xf32>
    %46 = arith.addf %43, %45 : vector<8x256xf32>
    %cst_31 = arith.constant 0.000000e+00 : f32
    %47 = vector.broadcast %cst_31 : f32 to vector<8x256xf32>
    %48 = arith.maximumf %46, %47 : vector<8x256xf32>
    %49 = arith.truncf %48 : vector<8x256xf32> to vector<8x256xbf16>
    %c2_32 = arith.constant 2 : index
    %c0_33 = arith.constant 0 : index
    %c0_34 = arith.constant 0 : index
    %50 = vector.load %arg6[%c2_32, %c0_33, %c0_34] : memref<8x256x1024xbf16, #tpu.memory_space<vmem>>, vector<1x256x1024xbf16>
    %51 = vector.shape_cast %50 : vector<1x256x1024xbf16> to vector<256x1024xbf16>
    %cst_35 = arith.constant dense<0.000000e+00> : vector<8x1024xf32>
    %52 = tpu.matmul %49, %51, %cst_35 {dimension_numbers = #tpu.dot_dimension_numbers<[1], [0], [0], [1], [0, 0, 1, 1], [], []>} : vector<8x256xbf16>, vector<256x1024xbf16>, vector<8x1024xf32> -> vector<8x1024xf32>
    %53 = arith.addf %38, %52 : vector<8x1024xf32>
    %54 = vector.extract_strided_slice %7 {offsets = [0, 1536], sizes = [8, 512], strides = [1, 1]} : vector<8x4096xf32> to vector<8x512xf32>
    %55 = arith.truncf %54 : vector<8x512xf32> to vector<8x512xbf16>
    %c3 = arith.constant 3 : index
    %c0_36 = arith.constant 0 : index
    %c0_37 = arith.constant 0 : index
    %56 = vector.load %arg4[%c3, %c0_36, %c0_37] : memref<8x512x256xbf16, #tpu.memory_space<vmem>>, vector<1x512x256xbf16>
    %57 = vector.shape_cast %56 : vector<1x512x256xbf16> to vector<512x256xbf16>
    %cst_38 = arith.constant dense<0.000000e+00> : vector<8x256xf32>
    %58 = tpu.matmul %55, %57, %cst_38 {dimension_numbers = #tpu.dot_dimension_numbers<[1], [0], [0], [1], [0, 0, 1, 1], [], []>} : vector<8x512xbf16>, vector<512x256xbf16>, vector<8x256xf32> -> vector<8x256xf32>
    %c0_39 = arith.constant 0 : index
    %c768 = arith.constant 768 : index
    %59 = vector.load %arg5[%c0_39, %c768] : memref<1x2048xf32, #tpu.memory_space<vmem>>, vector<1x256xf32>
    %60 = vector.broadcast %59 : vector<1x256xf32> to vector<8x256xf32>
    %61 = arith.addf %58, %60 : vector<8x256xf32>
    %cst_40 = arith.constant 0.000000e+00 : f32
    %62 = vector.broadcast %cst_40 : f32 to vector<8x256xf32>
    %63 = arith.maximumf %61, %62 : vector<8x256xf32>
    %64 = arith.truncf %63 : vector<8x256xf32> to vector<8x256xbf16>
    %c3_41 = arith.constant 3 : index
    %c0_42 = arith.constant 0 : index
    %c0_43 = arith.constant 0 : index
    %65 = vector.load %arg6[%c3_41, %c0_42, %c0_43] : memref<8x256x1024xbf16, #tpu.memory_space<vmem>>, vector<1x256x1024xbf16>
    %66 = vector.shape_cast %65 : vector<1x256x1024xbf16> to vector<256x1024xbf16>
    %cst_44 = arith.constant dense<0.000000e+00> : vector<8x1024xf32>
    %67 = tpu.matmul %64, %66, %cst_44 {dimension_numbers = #tpu.dot_dimension_numbers<[1], [0], [0], [1], [0, 0, 1, 1], [], []>} : vector<8x256xbf16>, vector<256x1024xbf16>, vector<8x1024xf32> -> vector<8x1024xf32>
    %68 = arith.addf %53, %67 : vector<8x1024xf32>
    %69 = vector.extract_strided_slice %7 {offsets = [0, 2048], sizes = [8, 512], strides = [1, 1]} : vector<8x4096xf32> to vector<8x512xf32>
    %70 = arith.truncf %69 : vector<8x512xf32> to vector<8x512xbf16>
    %c4 = arith.constant 4 : index
    %c0_45 = arith.constant 0 : index
    %c0_46 = arith.constant 0 : index
    %71 = vector.load %arg4[%c4, %c0_45, %c0_46] : memref<8x512x256xbf16, #tpu.memory_space<vmem>>, vector<1x512x256xbf16>
    %72 = vector.shape_cast %71 : vector<1x512x256xbf16> to vector<512x256xbf16>
    %cst_47 = arith.constant dense<0.000000e+00> : vector<8x256xf32>
    %73 = tpu.matmul %70, %72, %cst_47 {dimension_numbers = #tpu.dot_dimension_numbers<[1], [0], [0], [1], [0, 0, 1, 1], [], []>} : vector<8x512xbf16>, vector<512x256xbf16>, vector<8x256xf32> -> vector<8x256xf32>
    %c0_48 = arith.constant 0 : index
    %c1024 = arith.constant 1024 : index
    %74 = vector.load %arg5[%c0_48, %c1024] : memref<1x2048xf32, #tpu.memory_space<vmem>>, vector<1x256xf32>
    %75 = vector.broadcast %74 : vector<1x256xf32> to vector<8x256xf32>
    %76 = arith.addf %73, %75 : vector<8x256xf32>
    %cst_49 = arith.constant 0.000000e+00 : f32
    %77 = vector.broadcast %cst_49 : f32 to vector<8x256xf32>
    %78 = arith.maximumf %76, %77 : vector<8x256xf32>
    %79 = arith.truncf %78 : vector<8x256xf32> to vector<8x256xbf16>
    %c4_50 = arith.constant 4 : index
    %c0_51 = arith.constant 0 : index
    %c0_52 = arith.constant 0 : index
    %80 = vector.load %arg6[%c4_50, %c0_51, %c0_52] : memref<8x256x1024xbf16, #tpu.memory_space<vmem>>, vector<1x256x1024xbf16>
    %81 = vector.shape_cast %80 : vector<1x256x1024xbf16> to vector<256x1024xbf16>
    %cst_53 = arith.constant dense<0.000000e+00> : vector<8x1024xf32>
    %82 = tpu.matmul %79, %81, %cst_53 {dimension_numbers = #tpu.dot_dimension_numbers<[1], [0], [0], [1], [0, 0, 1, 1], [], []>} : vector<8x256xbf16>, vector<256x1024xbf16>, vector<8x1024xf32> -> vector<8x1024xf32>
    %83 = arith.addf %68, %82 : vector<8x1024xf32>
    %84 = vector.extract_strided_slice %7 {offsets = [0, 2560], sizes = [8, 512], strides = [1, 1]} : vector<8x4096xf32> to vector<8x512xf32>
    %85 = arith.truncf %84 : vector<8x512xf32> to vector<8x512xbf16>
    %c5 = arith.constant 5 : index
    %c0_54 = arith.constant 0 : index
    %c0_55 = arith.constant 0 : index
    %86 = vector.load %arg4[%c5, %c0_54, %c0_55] : memref<8x512x256xbf16, #tpu.memory_space<vmem>>, vector<1x512x256xbf16>
    %87 = vector.shape_cast %86 : vector<1x512x256xbf16> to vector<512x256xbf16>
    %cst_56 = arith.constant dense<0.000000e+00> : vector<8x256xf32>
    %88 = tpu.matmul %85, %87, %cst_56 {dimension_numbers = #tpu.dot_dimension_numbers<[1], [0], [0], [1], [0, 0, 1, 1], [], []>} : vector<8x512xbf16>, vector<512x256xbf16>, vector<8x256xf32> -> vector<8x256xf32>
    %c0_57 = arith.constant 0 : index
    %c1280 = arith.constant 1280 : index
    %89 = vector.load %arg5[%c0_57, %c1280] : memref<1x2048xf32, #tpu.memory_space<vmem>>, vector<1x256xf32>
    %90 = vector.broadcast %89 : vector<1x256xf32> to vector<8x256xf32>
    %91 = arith.addf %88, %90 : vector<8x256xf32>
    %cst_58 = arith.constant 0.000000e+00 : f32
    %92 = vector.broadcast %cst_58 : f32 to vector<8x256xf32>
    %93 = arith.maximumf %91, %92 : vector<8x256xf32>
    %94 = arith.truncf %93 : vector<8x256xf32> to vector<8x256xbf16>
    %c5_59 = arith.constant 5 : index
    %c0_60 = arith.constant 0 : index
    %c0_61 = arith.constant 0 : index
    %95 = vector.load %arg6[%c5_59, %c0_60, %c0_61] : memref<8x256x1024xbf16, #tpu.memory_space<vmem>>, vector<1x256x1024xbf16>
    %96 = vector.shape_cast %95 : vector<1x256x1024xbf16> to vector<256x1024xbf16>
    %cst_62 = arith.constant dense<0.000000e+00> : vector<8x1024xf32>
    %97 = tpu.matmul %94, %96, %cst_62 {dimension_numbers = #tpu.dot_dimension_numbers<[1], [0], [0], [1], [0, 0, 1, 1], [], []>} : vector<8x256xbf16>, vector<256x1024xbf16>, vector<8x1024xf32> -> vector<8x1024xf32>
    %98 = arith.addf %83, %97 : vector<8x1024xf32>
    %99 = vector.extract_strided_slice %7 {offsets = [0, 3072], sizes = [8, 512], strides = [1, 1]} : vector<8x4096xf32> to vector<8x512xf32>
    %100 = arith.truncf %99 : vector<8x512xf32> to vector<8x512xbf16>
    %c6 = arith.constant 6 : index
    %c0_63 = arith.constant 0 : index
    %c0_64 = arith.constant 0 : index
    %101 = vector.load %arg4[%c6, %c0_63, %c0_64] : memref<8x512x256xbf16, #tpu.memory_space<vmem>>, vector<1x512x256xbf16>
    %102 = vector.shape_cast %101 : vector<1x512x256xbf16> to vector<512x256xbf16>
    %cst_65 = arith.constant dense<0.000000e+00> : vector<8x256xf32>
    %103 = tpu.matmul %100, %102, %cst_65 {dimension_numbers = #tpu.dot_dimension_numbers<[1], [0], [0], [1], [0, 0, 1, 1], [], []>} : vector<8x512xbf16>, vector<512x256xbf16>, vector<8x256xf32> -> vector<8x256xf32>
    %c0_66 = arith.constant 0 : index
    %c1536 = arith.constant 1536 : index
    %104 = vector.load %arg5[%c0_66, %c1536] : memref<1x2048xf32, #tpu.memory_space<vmem>>, vector<1x256xf32>
    %105 = vector.broadcast %104 : vector<1x256xf32> to vector<8x256xf32>
    %106 = arith.addf %103, %105 : vector<8x256xf32>
    %cst_67 = arith.constant 0.000000e+00 : f32
    %107 = vector.broadcast %cst_67 : f32 to vector<8x256xf32>
    %108 = arith.maximumf %106, %107 : vector<8x256xf32>
    %109 = arith.truncf %108 : vector<8x256xf32> to vector<8x256xbf16>
    %c6_68 = arith.constant 6 : index
    %c0_69 = arith.constant 0 : index
    %c0_70 = arith.constant 0 : index
    %110 = vector.load %arg6[%c6_68, %c0_69, %c0_70] : memref<8x256x1024xbf16, #tpu.memory_space<vmem>>, vector<1x256x1024xbf16>
    %111 = vector.shape_cast %110 : vector<1x256x1024xbf16> to vector<256x1024xbf16>
    %cst_71 = arith.constant dense<0.000000e+00> : vector<8x1024xf32>
    %112 = tpu.matmul %109, %111, %cst_71 {dimension_numbers = #tpu.dot_dimension_numbers<[1], [0], [0], [1], [0, 0, 1, 1], [], []>} : vector<8x256xbf16>, vector<256x1024xbf16>, vector<8x1024xf32> -> vector<8x1024xf32>
    %113 = arith.addf %98, %112 : vector<8x1024xf32>
    %114 = vector.extract_strided_slice %7 {offsets = [0, 3584], sizes = [8, 512], strides = [1, 1]} : vector<8x4096xf32> to vector<8x512xf32>
    %115 = arith.truncf %114 : vector<8x512xf32> to vector<8x512xbf16>
    %c7 = arith.constant 7 : index
    %c0_72 = arith.constant 0 : index
    %c0_73 = arith.constant 0 : index
    %116 = vector.load %arg4[%c7, %c0_72, %c0_73] : memref<8x512x256xbf16, #tpu.memory_space<vmem>>, vector<1x512x256xbf16>
    %117 = vector.shape_cast %116 : vector<1x512x256xbf16> to vector<512x256xbf16>
    %cst_74 = arith.constant dense<0.000000e+00> : vector<8x256xf32>
    %118 = tpu.matmul %115, %117, %cst_74 {dimension_numbers = #tpu.dot_dimension_numbers<[1], [0], [0], [1], [0, 0, 1, 1], [], []>} : vector<8x512xbf16>, vector<512x256xbf16>, vector<8x256xf32> -> vector<8x256xf32>
    %c0_75 = arith.constant 0 : index
    %c1792 = arith.constant 1792 : index
    %119 = vector.load %arg5[%c0_75, %c1792] : memref<1x2048xf32, #tpu.memory_space<vmem>>, vector<1x256xf32>
    %120 = vector.broadcast %119 : vector<1x256xf32> to vector<8x256xf32>
    %121 = arith.addf %118, %120 : vector<8x256xf32>
    %cst_76 = arith.constant 0.000000e+00 : f32
    %122 = vector.broadcast %cst_76 : f32 to vector<8x256xf32>
    %123 = arith.maximumf %121, %122 : vector<8x256xf32>
    %124 = arith.truncf %123 : vector<8x256xf32> to vector<8x256xbf16>
    %c7_77 = arith.constant 7 : index
    %c0_78 = arith.constant 0 : index
    %c0_79 = arith.constant 0 : index
    %125 = vector.load %arg6[%c7_77, %c0_78, %c0_79] : memref<8x256x1024xbf16, #tpu.memory_space<vmem>>, vector<1x256x1024xbf16>
    %126 = vector.shape_cast %125 : vector<1x256x1024xbf16> to vector<256x1024xbf16>
    %cst_80 = arith.constant dense<0.000000e+00> : vector<8x1024xf32>
    %127 = tpu.matmul %124, %126, %cst_80 {dimension_numbers = #tpu.dot_dimension_numbers<[1], [0], [0], [1], [0, 0, 1, 1], [], []>} : vector<8x256xbf16>, vector<256x1024xbf16>, vector<8x1024xf32> -> vector<8x1024xf32>
    %128 = arith.addf %113, %127 : vector<8x1024xf32>
    %c0_81 = arith.constant 0 : index
    %c0_82 = arith.constant 0 : index
    %129 = vector.load %arg7[%c0_81, %c0_82] : memref<1x1024xf32, #tpu.memory_space<vmem>>, vector<1x1024xf32>
    %130 = vector.broadcast %129 : vector<1x1024xf32> to vector<8x1024xf32>
    %131 = arith.addf %128, %130 : vector<8x1024xf32>
    %cst_83 = arith.constant 0.000000e+00 : f32
    %132 = vector.broadcast %cst_83 : f32 to vector<8x1024xf32>
    %133 = arith.maximumf %131, %132 : vector<8x1024xf32>
    %134 = arith.truncf %133 : vector<8x1024xf32> to vector<8x1024xbf16>
    %c0_84 = arith.constant 0 : index
    %c0_85 = arith.constant 0 : index
    %135 = vector.load %arg8[%c0_84, %c0_85] : memref<1024x512xbf16, #tpu.memory_space<vmem>>, vector<1024x512xbf16>
    %cst_86 = arith.constant dense<0.000000e+00> : vector<8x512xf32>
    %136 = tpu.matmul %134, %135, %cst_86 {dimension_numbers = #tpu.dot_dimension_numbers<[1], [0], [0], [1], [0, 0, 1, 1], [], []>} : vector<8x1024xbf16>, vector<1024x512xbf16>, vector<8x512xf32> -> vector<8x512xf32>
    %c0_87 = arith.constant 0 : index
    %c0_88 = arith.constant 0 : index
    %137 = vector.load %arg9[%c0_87, %c0_88] : memref<1x512xf32, #tpu.memory_space<vmem>>, vector<1x512xf32>
    %138 = vector.broadcast %137 : vector<1x512xf32> to vector<8x512xf32>
    %139 = arith.addf %136, %138 : vector<8x512xf32>
    %cst_89 = arith.constant 0.000000e+00 : f32
    %140 = vector.broadcast %cst_89 : f32 to vector<8x512xf32>
    %141 = arith.maximumf %139, %140 : vector<8x512xf32>
    %c0_90 = arith.constant 0 : index
    %c0_91 = arith.constant 0 : index
    %142 = vector.load %arg10[%c0_90, %c0_91] : memref<1x512xf32, #tpu.memory_space<vmem>>, vector<1x512xf32>
    %143 = vector.broadcast %142 : vector<1x512xf32> to vector<8x512xf32>
    %144 = arith.mulf %141, %143 : vector<8x512xf32>
    %cst_92 = arith.constant dense<0.000000e+00> : vector<8xf32>
    %145 = vector.multi_reduction <add>, %144, %cst_92 [1] : vector<8x512xf32> to vector<8xf32>
    %146 = vector.shape_cast %145 : vector<8xf32> to vector<8x1xf32>
    %c0_93 = arith.constant 0 : index
    %c0_94 = arith.constant 0 : index
    %147 = vector.load %arg11[%c0_93, %c0_94] : memref<1x1xf32, #tpu.memory_space<vmem>>, vector<1x1xf32>
    %148 = vector.broadcast %147 : vector<1x1xf32> to vector<8x1xf32>
    %149 = arith.addf %146, %148 : vector<8x1xf32>
    %150 = arith.negf %149 : vector<8x1xf32>
    %151 = math.exp %150 : vector<8x1xf32>
    %cst_95 = arith.constant 1.000000e+00 : f32
    %152 = vector.broadcast %cst_95 : f32 to vector<8x1xf32>
    %153 = arith.addf %152, %151 : vector<8x1xf32>
    %154 = arith.divf %152, %153 : vector<8x1xf32>
    %c0_96 = arith.constant 0 : index
    %c0_97 = arith.constant 0 : index
    %155 = vector.load %arg12[%c0_96, %c0_97] : memref<8x1xf32, #tpu.memory_space<vmem>>, vector<8x1xf32>
    tpu.vector_store %arg12[%c0_96, %c0_97], %154 {strides = array<i32>} : memref<8x1xf32, #tpu.memory_space<vmem>>, vector<8x1xf32>,
    return
  }
  func.func @transform_0(%arg0: i32) -> (i32, i32) {
    %c0_i32 = arith.constant 0 : i32
    %c0_i32_0 = arith.constant 0 : i32
    return %arg0, %c0_i32 : i32, i32
  }
  func.func @transform_1(%arg0: i32) -> (i32, i32) {
    %c0_i32 = arith.constant 0 : i32
    %c0_i32_0 = arith.constant 0 : i32
    %c0_i32_1 = arith.constant 0 : i32
    return %c0_i32, %c0_i32_0 : i32, i32
  }
  func.func @transform_2(%arg0: i32) -> (i32, i32) {
    %c0_i32 = arith.constant 0 : i32
    %c0_i32_0 = arith.constant 0 : i32
    %c0_i32_1 = arith.constant 0 : i32
    return %c0_i32, %c0_i32_0 : i32, i32
  }
  func.func @transform_3(%arg0: i32) -> (i32, i32, i32) {
    %c0_i32 = arith.constant 0 : i32
    %c0_i32_0 = arith.constant 0 : i32
    %c0_i32_1 = arith.constant 0 : i32
    %c0_i32_2 = arith.constant 0 : i32
    return %c0_i32, %c0_i32_0, %c0_i32_1 : i32, i32, i32
  }
  func.func @transform_4(%arg0: i32) -> (i32, i32) {
    %c0_i32 = arith.constant 0 : i32
    %c0_i32_0 = arith.constant 0 : i32
    %c0_i32_1 = arith.constant 0 : i32
    return %c0_i32, %c0_i32_0 : i32, i32
  }
  func.func @transform_5(%arg0: i32) -> (i32, i32, i32) {
    %c0_i32 = arith.constant 0 : i32
    %c0_i32_0 = arith.constant 0 : i32
    %c0_i32_1 = arith.constant 0 : i32
    %c0_i32_2 = arith.constant 0 : i32
    return %c0_i32, %c0_i32_0, %c0_i32_1 : i32, i32, i32
  }
  func.func @transform_6(%arg0: i32) -> (i32, i32) {
    %c0_i32 = arith.constant 0 : i32
    %c0_i32_0 = arith.constant 0 : i32
    %c0_i32_1 = arith.constant 0 : i32
    return %c0_i32, %c0_i32_0 : i32, i32
  }
  func.func @transform_7(%arg0: i32) -> (i32, i32) {
    %c0_i32 = arith.constant 0 : i32
    %c0_i32_0 = arith.constant 0 : i32
    %c0_i32_1 = arith.constant 0 : i32
    return %c0_i32, %c0_i32_0 : i32, i32
  }
  func.func @transform_8(%arg0: i32) -> (i32, i32) {
    %c0_i32 = arith.constant 0 : i32
    %c0_i32_0 = arith.constant 0 : i32
    %c0_i32_1 = arith.constant 0 : i32
    return %c0_i32, %c0_i32_0 : i32, i32
  }
  func.func @transform_9(%arg0: i32) -> (i32, i32) {
    %c0_i32 = arith.constant 0 : i32
    %c0_i32_0 = arith.constant 0 : i32
    %c0_i32_1 = arith.constant 0 : i32
    return %c0_i32, %c0_i32_0 : i32, i32
  }
  func.func @transform_10(%arg0: i32) -> (i32, i32) {
    %c0_i32 = arith.constant 0 : i32
    %c0_i32_0 = arith.constant 0 : i32
    %c0_i32_1 = arith.constant 0 : i32
    return %c0_i32, %c0_i32_0 : i32, i32
  }
  func.func @transform_11(%arg0: i32) -> (i32, i32) {
    %c0_i32 = arith.constant 0 : i32
    %c0_i32_0 = arith.constant 0 : i32
    return %arg0, %c0_i32 : i32, i32
  }
}

</mosaic_0001>

<bundles_post_ra>
// kernel: ranknet_forward.1
= control target key start
LH: loop header
LB: loop body
LE: loop exit
PB: predicated region body
PF: predicated region fallthrough
CT: control target
= control target key end

     0   :  { %s19345_s0 = inlined_call_operand.vmem [shape: bf16[8,64], index: 0, kind: input, shape index: {}]   ;;  %s19346_s1 = inlined_call_operand.hbm [shape: bf16[64,4096], index: 1, kind: input, shape index: {}]   ;;  %s19347_s2 = inlined_call_operand.hbm [shape: f32[1,4096], index: 2, kind: input, shape index: {}]   ;;  %s19348_s3 = inlined_call_operand.hbm [shape: bf16[8,512,256], index: 3, kind: input, shape index: {}]   ;;  %s19349_s4 = inlined_call_operand.hbm [shape: f32[1,2048], index: 4, kind: input, shape index: {}]   ;;  %s19350_s5 = inlined_call_operand.hbm [shape: bf16[8,256,1024], index: 5, kind: input, shape index: {}]   ;;  %s19351_s6 = inlined_call_operand.hbm [shape: f32[1,1024], index: 6, kind: input, shape index: {}]   ;;  %s19352_s7 = inlined_call_operand.hbm [shape: bf16[1024,512], index: 7, kind: input, shape index: {}]   ;;  %s19353_s8 = inlined_call_operand.hbm [shape: f32[1,512], index: 8, kind: input, shape index: {}]   ;;  %s19354_s9 = inlined_call_operand.hbm [shape: f32[1,512], index: 9, kind: input, shape index: {}]   ;;  %s19355_s10 = inlined_call_operand.<no memory space> [shape: f32[1,1], index: 10, kind: input, shape index: {}]   ;;  %s19356_s11 = inlined_call_operand.vmem [shape: f32[8,1], index: 11, kind: output, shape index: {}]  }
   0x1   :  { %v16_v0 = vstv %s19355_s10 }
   0x2   :  { %17 = vst [vmem:[#allocation2] sm:$0x1] %v16_v0 }
   0x3   :  { %18 = vsyncpa [#allocation4], 0 }
   0x4   :  { %19 = vsyncpa [#allocation6], 0 }
   0x5   :  { %20 = vsyncpa [#allocation9], 0 }
   0x6   :  { %21 = vsyncpa [#allocation12], 0 }
   0x7   :  { %22 = vsyncpa [#allocation15], 0  ;;  %s18599_s19 = smov [#allocation5]   ;;  %s18600_s21 = smov [#allocation8]  }
   0x8   :  { %s43_s20 = sshll.u32 %s18599_s19, 4  ;;  %s65_s22 = sshll.u32 %s18600_s21, 4  ;;  %s44_s20 = int_to_ptr.vmem [resolvable:$true] %s43_s20  ;;  %s66_s22 = int_to_ptr.vmem [resolvable:$true] %s65_s22 }
   0x9   :  { %s18391_s25 = scalar_lea.hbm %s19347_s2, 512 }
   0xa   :  { %p18392_p0 = scmp.ne.s32.totalorder %s19347_s2, %s18391_s25  ;;  %p18395_p1 = scmp.lt.u32.totalorder %s18391_s25, %s19347_s2 }
   0xc   :  { %p18397_p2 = pnand %p18395_p1, %p18392_p0 }
   0xe   :  { %18400 = shalt.err (!%p18397_p2)
}
   0xf   :  { %s18401_s29 = scalar_lea.vmem %s44_s20, 512  ;;  %p18406_p4 = scmp.lt.s32.totalorder %s44_s20, %s44_s20 }
  0x10   :  { %p18402_p3 = scmp.ne.s32.totalorder %s44_s20, %s18401_s29  ;;  %p18407_p5 = scmp.lt.s32.totalorder %s18401_s29, %s18401_s29 }
  0x12   :  { %p18408_p6 = por %p18407_p5, %p18406_p4 }
  0x14   :  { %p18409_p7 = pnand %p18408_p6, %p18402_p3 }
  0x16   :  { %18412 = shalt.err (!%p18409_p7)
}
  0x17   :  { %46 = dma.hbm_to_vmem [thread:$0]  %s19347_s2, 512, %s44_s20, [#allocation6]  }
  0x18   :  { %s18413_s15 = scalar_lea.hbm %s19349_s4, 256 }
  0x19   :  { %p18414_p8 = scmp.ne.s32.totalorder %s19349_s4, %s18413_s15  ;;  %p18417_p9 = scmp.lt.u32.totalorder %s18413_s15, %s19349_s4 }
  0x1b   :  { %p18419_p10 = pnand %p18417_p9, %p18414_p8 }
  0x1d   :  { %18422 = shalt.err (!%p18419_p10)
}
  0x1e   :  { %s18423_s21 = scalar_lea.vmem %s66_s22, 256  ;;  %p18428_p12 = scmp.lt.s32.totalorder %s66_s22, %s66_s22 }
  0x1f   :  { %p18424_p11 = scmp.ne.s32.totalorder %s66_s22, %s18423_s21  ;;  %p18429_p13 = scmp.lt.s32.totalorder %s18423_s21, %s18423_s21 }
  0x21   :  { %p18430_p0 = por %p18429_p13, %p18428_p12 }
  0x23   :  { %p18431_p1 = pnand %p18430_p0, %p18424_p11 }
  0x25   :  { %18434 = shalt.err (!%p18431_p1)
}
  0x26   :  { %68 = dma.hbm_to_vmem [thread:$0]  %s19349_s4, 256, %s66_s22, [#allocation9]  }
  0x27   :  { %s18601_s23 = smov [#allocation11]   ;;  %s18602_s25 = smov [#allocation14]  }
  0x28   :  { %s87_s24 = sshll.u32 %s18601_s23, 4  ;;  %s109_s26 = sshll.u32 %s18602_s25, 4  ;;  %s88_s24 = int_to_ptr.vmem [resolvable:$true] %s87_s24  ;;  %s110_s26 = int_to_ptr.vmem [resolvable:$true] %s109_s26 }
  0x29   :  { %s18435_s28 = scalar_lea.hbm %s19351_s6, 128 }
  0x2a   :  { %p18436_p2 = scmp.ne.s32.totalorder %s19351_s6, %s18435_s28  ;;  %p18439_p3 = scmp.lt.u32.totalorder %s18435_s28, %s19351_s6 }
  0x2c   :  { %p18441_p4 = pnand %p18439_p3, %p18436_p2 }
  0x2e   :  { %18444 = shalt.err (!%p18441_p4)
}
  0x2f   :  { %s18445_s4 = scalar_lea.vmem %s88_s24, 128  ;;  %p18450_p6 = scmp.lt.s32.totalorder %s88_s24, %s88_s24 }
  0x30   :  { %p18446_p5 = scmp.ne.s32.totalorder %s88_s24, %s18445_s4  ;;  %p18451_p7 = scmp.lt.s32.totalorder %s18445_s4, %s18445_s4 }
  0x32   :  { %p18452_p8 = por %p18451_p7, %p18450_p6 }
  0x34   :  { %p18453_p9 = pnand %p18452_p8, %p18446_p5 }
  0x36   :  { %18456 = shalt.err (!%p18453_p9)
}
  0x37   :  { %90 = dma.hbm_to_vmem [thread:$0]  %s19351_s6, 128, %s88_s24, [#allocation12]  }
  0x38   :  { %s18457_s17 = scalar_lea.hbm %s19353_s8, 64 }
  0x39   :  { %p18458_p10 = scmp.ne.s32.totalorder %s19353_s8, %s18457_s17  ;;  %p18461_p11 = scmp.lt.u32.totalorder %s18457_s17, %s19353_s8 }
  0x3b   :  { %p18463_p12 = pnand %p18461_p11, %p18458_p10 }
  0x3d   :  { %18466 = shalt.err (!%p18463_p12)
}
  0x3e   :  { %s18467_s20 = scalar_lea.vmem %s110_s26, 64  ;;  %p18472_p0 = scmp.lt.s32.totalorder %s110_s26, %s110_s26 }
  0x3f   :  { %p18468_p13 = scmp.ne.s32.totalorder %s110_s26, %s18467_s20  ;;  %p18473_p1 = scmp.lt.s32.totalorder %s18467_s20, %s18467_s20 }
  0x41   :  { %p18474_p2 = por %p18473_p1, %p18472_p0 }
  0x43   :  { %p18475_p3 = pnand %p18474_p2, %p18468_p13 }
  0x45   :  { %18478 = shalt.err (!%p18475_p3)
}
  0x46   :  { %112 = dma.hbm_to_vmem [thread:$0]  %s19353_s8, 64, %s110_s26, [#allocation15]  }
  0x47   :  { %s18603_s24 = smov [#allocation3]   ;;  %s18479_s28 = scalar_lea.hbm %s19346_s1, 16384 }
  0x48   :  { %s30_s25 = sshll.u32 %s18603_s24, 4  ;;  %p18480_p4 = scmp.ne.s32.totalorder %s19346_s1, %s18479_s28  ;;  %s31_s25 = int_to_ptr.vmem [resolvable:$true] %s30_s25 }
  0x49   :  { %p18483_p5 = scmp.lt.u32.totalorder %s18479_s28, %s19346_s1 }
  0x4b   :  { %p18485_p6 = pnand %p18483_p5, %p18480_p4 }
  0x4d   :  { %18488 = shalt.err (!%p18485_p6)
}
  0x4e   :  { %s18489_s4 = scalar_lea.vmem %s31_s25, 16384  ;;  %p18494_p8 = scmp.lt.s32.totalorder %s31_s25, %s31_s25 }
  0x4f   :  { %p18490_p7 = scmp.ne.s32.totalorder %s31_s25, %s18489_s4  ;;  %p18495_p9 = scmp.lt.s32.totalorder %s18489_s4, %s18489_s4 }
  0x51   :  { %p18496_p10 = por %p18495_p9, %p18494_p8 }
  0x53   :  { %p18497_p11 = pnand %p18496_p10, %p18490_p7 }
  0x55   :  { %18500 = shalt.err (!%p18497_p11)
}
  0x56   :  { %s18604_s8 = smov 2048   ;;  %s18605_s26 = smov 128  }
  0x57   :  { %36 = dma.hbm_to_vmem [thread:$0]  %s19346_s1, 16384, %s31_s25, [#allocation4], %s18604_s8, %s18604_s8, %s18605_s26  }
  0x58   :  { %s18606_s15 = smov [#allocation7]   ;;  %s18501_s19 = scalar_lea.hbm %s19348_s3, 65536 }
  0x59   :  { %s52_s16 = sshll.u32 %s18606_s15, 4  ;;  %p18502_p12 = scmp.ne.s32.totalorder %s19348_s3, %s18501_s19  ;;  %s53_s16 = int_to_ptr.vmem [resolvable:$true] %s52_s16 }
  0x5a   :  { %p18505_p13 = scmp.lt.u32.totalorder %s18501_s19, %s19348_s3 }
  0x5c   :  { %p18507_p0 = pnand %p18505_p13, %p18502_p12 }
  0x5e   :  { %18510 = shalt.err (!%p18507_p0)
}
  0x5f   :  { %s18511_s23 = scalar_lea.vmem %s53_s16, 65536  ;;  %p18516_p2 = scmp.lt.s32.totalorder %s53_s16, %s53_s16 }
  0x60   :  { %p18512_p1 = scmp.ne.s32.totalorder %s53_s16, %s18511_s23  ;;  %p18517_p3 = scmp.lt.s32.totalorder %s18511_s23, %s18511_s23 }
  0x62   :  { %p18518_p4 = por %p18517_p3, %p18516_p2 }
  0x64   :  { %p18519_p5 = pnand %p18518_p4, %p18512_p1 }
  0x66   :  { %18522 = shalt.err (!%p18519_p5)
}
  0x67   :  { %s18607_s1 = smov 8   ;;  %s18608_s27 = smov [#allocation10]  }
  0x68   :  { %58 = dma.hbm_to_vmem [thread:$0]  %s19348_s3, 65536, %s53_s16, [#allocation6], %s18605_s26, %s18605_s26, %s18607_s1  }
  0x69   :  { %s74_s10 = sshll.u32 %s18608_s27, 4  ;;  %s18523_s30 = scalar_lea.hbm %s19350_s5, 131072  ;;  %s75_s10 = int_to_ptr.vmem [resolvable:$true] %s74_s10 }
  0x6a   :  { %p18524_p6 = scmp.ne.s32.totalorder %s19350_s5, %s18523_s30  ;;  %p18527_p7 = scmp.lt.u32.totalorder %s18523_s30, %s19350_s5 }
  0x6c   :  { %p18529_p8 = pnand %p18527_p7, %p18524_p6 }
  0x6e   :  { %18532 = shalt.err (!%p18529_p8)
}
  0x6f   :  { %s18533_s22 = scalar_lea.vmem %s75_s10, 131072  ;;  %p18538_p10 = scmp.lt.s32.totalorder %s75_s10, %s75_s10 }
  0x70   :  { %p18534_p9 = scmp.ne.s32.totalorder %s75_s10, %s18533_s22  ;;  %p18539_p11 = scmp.lt.s32.totalorder %s18533_s22, %s18533_s22 }
  0x72   :  { %p18540_p12 = por %p18539_p11, %p18538_p10 }
  0x74   :  { %p18541_p13 = pnand %p18540_p12, %p18534_p9 }
  0x76   :  { %18544 = shalt.err (!%p18541_p13)
}
  0x77   :  { %s18609_s3 = smov 512   ;;  %s18610_s26 = smov 32  }
  0x78   :  { %80 = dma.hbm_to_vmem [thread:$0]  %s19350_s5, 131072, %s75_s10, [#allocation9], %s18609_s3, %s18609_s3, %s18610_s26  }
  0x79   :  { %s18611_s16 = smov [#allocation13]   ;;  %s18545_s21 = scalar_lea.hbm %s19352_s7, 32768 }
  0x7a   :  { %s96_s17 = sshll.u32 %s18611_s16, 4  ;;  %p18546_p0 = scmp.ne.s32.totalorder %s19352_s7, %s18545_s21  ;;  %s97_s17 = int_to_ptr.vmem [resolvable:$true] %s96_s17 }
  0x7b   :  { %p18549_p1 = scmp.lt.u32.totalorder %s18545_s21, %s19352_s7 }
  0x7d   :  { %p18551_p2 = pnand %p18549_p1, %p18546_p0 }
  0x7f   :  { %18554 = shalt.err (!%p18551_p2)
}
  0x80   :  { %s18555_s1 = scalar_lea.vmem %s97_s17, 32768  ;;  %p18560_p4 = scmp.lt.s32.totalorder %s97_s17, %s97_s17 }
  0x81   :  { %p18556_p3 = scmp.ne.s32.totalorder %s97_s17, %s18555_s1  ;;  %p18561_p5 = scmp.lt.s32.totalorder %s18555_s1, %s18555_s1 }
  0x83   :  { %p18562_p6 = por %p18561_p5, %p18560_p4 }
  0x85   :  { %p18563_p7 = pnand %p18562_p6, %p18556_p3 }
  0x87   :  { %18566 = shalt.err (!%p18563_p7)
}
  0x88   :  { %s18612_s5 = smov 256   ;;  %s18613_s24 = smov 16  }
  0x89   :  { %102 = dma.hbm_to_vmem [thread:$0]  %s19352_s7, 32768, %s97_s17, [#allocation12], %s18612_s5, %s18612_s5, %s18613_s24  }
  0x8a   :  { %s18614_s10 = smov [#allocation16]   ;;  %s18567_s12 = scalar_lea.hbm %s19354_s9, 64 }
  0x8b   :  { %s119_s28 = sshll.u32 %s18614_s10, 4  ;;  %p18568_p8 = scmp.ne.s32.totalorder %s19354_s9, %s18567_s12  ;;  %s120_s28 = int_to_ptr.vmem [resolvable:$true] %s119_s28 }
  0x8c   :  { %p18571_p9 = scmp.lt.u32.totalorder %s18567_s12, %s19354_s9 }
  0x8e   :  { %p18573_p10 = pnand %p18571_p9, %p18568_p8 }
  0x90   :  { %18576 = shalt.err (!%p18573_p10)
}
  0x91   :  { %s18577_s3 = scalar_lea.vmem %s120_s28, 64  ;;  %p18582_p12 = scmp.lt.s32.totalorder %s120_s28, %s120_s28 }
  0x92   :  { %p18578_p11 = scmp.ne.s32.totalorder %s120_s28, %s18577_s3  ;;  %p18583_p13 = scmp.lt.s32.totalorder %s18577_s3, %s18577_s3 }
  0x94   :  { %p18584_p0 = por %p18583_p13, %p18582_p12 }
  0x96   :  { %p18585_p1 = pnand %p18584_p0, %p18578_p11 }
  0x98   :  { %18588 = shalt.err (!%p18585_p1)
}
  0x99   :  { %122 = dma.hbm_to_vmem [thread:$0]  %s19354_s9, 64, %s120_s28, [#allocation15]  }
  0x9a   :  { %18589 = dma.done.wait [#allocation4], 16384  }
  0x9b   :  { %18590 = vsyncadd [#allocation4], 4294950912 }
  0x9c   :  { %18591 = dma.done.wait [#allocation6], 66048  }
  0x9d   :  { %18592 = vsyncadd [#allocation6], 4294901248 }
  0x9e   :  { %18593 = dma.done.wait [#allocation9], 131328  }
  0x9f   :  { %18594 = vsyncadd [#allocation9], 4294835968 }
  0xa0   :  { %18595 = dma.done.wait [#allocation12], 32896  }
  0xa1   :  { %18596 = vsyncadd [#allocation12], 4294934400 }
  0xa2   :  { %18597 = dma.done.wait [#allocation15], 128  }
  0xa3   :  { %18598 = vsyncadd [#allocation15], 4294967168  ;;  %v18615_v1 = vmov 0   ;;  %v154_v2 = vld [vmem:[#allocation3] sm:$0xff]  ;;  %v155_v15 = vld [vmem:[#allocation3 + $0x8] sm:$0xff]  ;;  %vm1090_vm0 = vcmask 523264  }
  0xa4   :  { %1126 = vmatprep.mubr.bf16.mxu0 %v18615_v1  ;;  %1167 = vmatprep.mubr.bf16.mxu1 %v18615_v1  ;;  %v170_v3 = vld [vmem:[#allocation3 + $0x80] sm:$0xff]  ;;  %v171_v16 = vld [vmem:[#allocation3 + $0x88] sm:$0xff]  ;;  %v156_v26 = vld [vmem:[#allocation3 + $0x10] sm:$0xff]  ;;  %vm15189_vm1 = vcmask 7168  }
  0xa5   :  { %v186_v4 = vld [vmem:[#allocation3 + $0x100] sm:$0xff]  ;;  %v15201_v5 = vcombine.high %v154_v2, %v170_v3  ;;  %v15200_v6 = vcombine.low %v154_v2, %v170_v3  ;;  %v187_v17 = vld [vmem:[#allocation3 + $0x108] sm:$0xff]  ;;  %v15203_v19 = vcombine.high %v155_v15, %v171_v16  ;;  %v15202_v20 = vcombine.low %v155_v15, %v171_v16  ;;  %v172_v27 = vld [vmem:[#allocation3 + $0x90] sm:$0xff] }
  0xa6   :  { %v202_v7 = vld [vmem:[#allocation3 + $0x180] sm:$0xff]  ;;  %v203_v18 = vld [vmem:[#allocation3 + $0x188] sm:$0xff]  ;;  %v15205_v33 = vcombine.high %v156_v26, %v172_v27  ;;  %v188_v34 = vld [vmem:[#allocation3 + $0x110] sm:$0xff]  ;;  %v15204_v39 = vcombine.low %v156_v26, %v172_v27 }
  0xa7   :  { %v15233_v8 = vcombine.high %v186_v4, %v202_v7  ;;  %v218_v9 = vld [vmem:[#allocation3 + $0x200] sm:$0xff]  ;;  %1094 = vmatprep.subr.bf16.mxu0 %v15201_v5  ;;  %v15232_v11 = vcombine.low %v186_v4, %v202_v7  ;;  %v15235_v21 = vcombine.high %v187_v17, %v203_v18  ;;  %v219_v23 = vld [vmem:[#allocation3 + $0x208] sm:$0xff]  ;;  %1135 = vmatprep.subr.bf16.mxu1 %v15203_v19  ;;  %v204_v35 = vld [vmem:[#allocation3 + $0x190] sm:$0xff] }
  0xa8   :  { %v234_v10 = vld [vmem:[#allocation3 + $0x280] sm:$0xff]  ;;  %1095 = vmatpush1.bf16.msra.mxu0 %v15200_v6  ;;  %v235_v24 = vld [vmem:[#allocation3 + $0x288] sm:$0xff]  ;;  %1136 = vmatpush1.bf16.msra.mxu1 %v15202_v20  ;;  %v15234_v28 = vcombine.low %v187_v17, %v203_v18  ;;  %v157_v40 = vld [vmem:[#allocation3 + $0x18] sm:$0xff]  ;;  %v15237_v42 = vcombine.high %v188_v34, %v204_v35  ;;  %v15236_v47 = vcombine.low %v188_v34, %v204_v35 }
  0xa9   :  { %1096 = vmatprep.subr.bf16.mxu0 %v15233_v8  ;;  %v15265_v12 = vcombine.high %v218_v9, %v234_v10  ;;  %v250_v13 = vld [vmem:[#allocation3 + $0x300] sm:$0xff]  ;;  %v15264_v22 = vcombine.low %v218_v9, %v234_v10  ;;  %1137 = vmatprep.subr.bf16.mxu1 %v15235_v21  ;;  %v15267_v29 = vcombine.high %v219_v23, %v235_v24  ;;  %v251_v31 = vld [vmem:[#allocation3 + $0x308] sm:$0xff]  ;;  %v173_v41 = vld [vmem:[#allocation3 + $0x98] sm:$0xff] }
  0xaa   :  { %v266_v14 = vld [vmem:[#allocation3 + $0x380] sm:$0xff]  ;;  %v267_v32 = vld [vmem:[#allocation3 + $0x388] sm:$0xff]  ;;  %v15266_v36 = vcombine.low %v219_v23, %v235_v24  ;;  %v220_v43 = vld [vmem:[#allocation3 + $0x210] sm:$0xff]  ;;  %v15207_v46 = vcombine.high %v157_v40, %v173_v41  ;;  %v15206_v53 = vcombine.low %v157_v40, %v173_v41 }
  0xab   :  { %v15297_v25 = vcombine.high %v250_v13, %v266_v14  ;;  %v15296_v30 = vcombine.low %v250_v13, %v266_v14  ;;  %v15299_v37 = vcombine.high %v251_v31, %v267_v32  ;;  %v18792_v38 = vld [vmem:[%s19345_s0] sm:$0xf]  ;;  %v236_v44 = vld [vmem:[#allocation3 + $0x290] sm:$0xff]  ;;  %v15298_v45 = vcombine.low %v251_v31, %v267_v32  ;;  %v159_v9 = vld [vmem:[#allocation3 + $0x28] sm:$0xff] }
  0xac   :  { %1097 = vmatpush1.bf16.msra.mxu0 %v15232_v11  ;;  %1138 = vmatpush1.bf16.msra.mxu1 %v15234_v28  ;;  %v189_v48 = vld [vmem:[#allocation3 + $0x118] sm:$0xff]  ;;  %v15269_v50 = vcombine.high %v220_v43, %v236_v44  ;;  %v252_v51 = vld [vmem:[#allocation3 + $0x310] sm:$0xff]  ;;  %v15268_v55 = vcombine.low %v220_v43, %v236_v44  ;;  %v158_v59 = vld [vmem:[#allocation3 + $0x20] sm:$0xff] }
  0xad   :  { %1098 = vmatprep.subr.bf16.mxu0 %v15265_v12  ;;  %1139 = vmatprep.subr.bf16.mxu1 %v15267_v29  ;;  %v205_v49 = vld [vmem:[#allocation3 + $0x198] sm:$0xff]  ;;  %v268_v52 = vld [vmem:[#allocation3 + $0x390] sm:$0xff]  ;;  %v174_v60 = vld [vmem:[#allocation3 + $0xa0] sm:$0xff] }
  0xae   :  { %v15239_v54 = vcombine.high %v189_v48, %v205_v49  ;;  %v221_v56 = vld [vmem:[#allocation3 + $0x218] sm:$0xff]  ;;  %v15301_v58 = vcombine.high %v252_v51, %v268_v52  ;;  %v15238_v61 = vcombine.low %v189_v48, %v205_v49  ;;  %v15300_v63 = vcombine.low %v252_v51, %v268_v52  ;;  %v190_v4 = vld [vmem:[#allocation3 + $0x120] sm:$0xff]  ;;  %v175_v10 = vld [vmem:[#allocation3 + $0xa8] sm:$0xff] }
  0xaf   :  { %v237_v57 = vld [vmem:[#allocation3 + $0x298] sm:$0xff]  ;;  %v15209_v3 = vcombine.high %v158_v59, %v174_v60  ;;  %v206_v5 = vld [vmem:[#allocation3 + $0x1a0] sm:$0xff]  ;;  %v15208_v8 = vcombine.low %v158_v59, %v174_v60  ;;  %v15211_v15 = vcombine.high %v159_v9, %v175_v10  ;;  %v191_v17 = vld [vmem:[#allocation3 + $0x128] sm:$0xff] }
  0xb0   :  { %1099 = vmatpush1.bf16.msra.mxu0 %v15264_v22  ;;  %1140 = vmatpush1.bf16.msra.mxu1 %v15266_v36  ;;  %v15271_v62 = vcombine.high %v221_v56, %v237_v57  ;;  %v253_v0 = vld [vmem:[#allocation3 + $0x318] sm:$0xff]  ;;  %v15270_v6 = vcombine.low %v221_v56, %v237_v57  ;;  %v15241_v11 = vcombine.high %v190_v4, %v206_v5  ;;  %v222_v12 = vld [vmem:[#allocation3 + $0x220] sm:$0xff]  ;;  %v207_v18 = vld [vmem:[#allocation3 + $0x1a8] sm:$0xff] }
  0xb1   :  { %1100 = vmatprep.subr.bf16.mxu0 %v15297_v25  ;;  %1141 = vmatprep.subr.bf16.mxu1 %v15299_v37  ;;  %v269_v2 = vld [vmem:[#allocation3 + $0x398] sm:$0xff]  ;;  %v238_v13 = vld [vmem:[#allocation3 + $0x2a0] sm:$0xff]  ;;  %v15240_v16 = vcombine.low %v190_v4, %v206_v5  ;;  %v15210_v22 = vcombine.low %v159_v9, %v175_v10  ;;  %v15243_v23 = vcombine.high %v191_v17, %v207_v18  ;;  %v223_v25 = vld [vmem:[#allocation3 + $0x228] sm:$0xff] }
  0xb2   :  { %v15303_v7 = vcombine.high %v253_v0, %v269_v2  ;;  %v15302_v14 = vcombine.low %v253_v0, %v269_v2  ;;  %v15273_v19 = vcombine.high %v222_v12, %v238_v13  ;;  %v254_v20 = vld [vmem:[#allocation3 + $0x320] sm:$0xff]  ;;  %v15272_v24 = vcombine.low %v222_v12, %v238_v13  ;;  %v239_v26 = vld [vmem:[#allocation3 + $0x2a8] sm:$0xff]  ;;  %v160_v28 = vld [vmem:[#allocation3 + $0x30] sm:$0xff] }
  0xb3   :  { %v270_v21 = vld [vmem:[#allocation3 + $0x3a0] sm:$0xff]  ;;  %v176_v29 = vld [vmem:[#allocation3 + $0xb0] sm:$0xff]  ;;  %v15275_v31 = vcombine.high %v223_v25, %v239_v26  ;;  %v271_v34 = vld [vmem:[#allocation3 + $0x3a8] sm:$0xff] }
  0xb4   :  { %1101 = vmatpush1.bf16.msra.mxu0 %v15296_v30  ;;  %1142 = vmatpush1.bf16.msra.mxu1 %v15298_v45  ;;  %v15305_v27 = vcombine.high %v254_v20, %v270_v21  ;;  %v15242_v30 = vcombine.low %v191_v17, %v207_v18  ;;  %v15304_v32 = vcombine.low %v254_v20, %v270_v21  ;;  %v192_v36 = vld [vmem:[#allocation3 + $0x130] sm:$0xff]  ;;  %v161_v41 = vld [vmem:[#allocation3 + $0x38] sm:$0xff]  ;;  %v163_v10 = vld [vmem:[#allocation3 + $0x48] sm:$0xff] }
  0xb5   :  { %1176 = vmatprep.subr.bf16.mxu0 %v15205_v33  ;;  %1217 = vmatprep.subr.bf16.mxu1 %v15207_v46  ;;  %v255_v33 = vld [vmem:[#allocation3 + $0x328] sm:$0xff]  ;;  %v15213_v35 = vcombine.high %v160_v28, %v176_v29  ;;  %v208_v37 = vld [vmem:[#allocation3 + $0x1b0] sm:$0xff]  ;;  %v177_v43 = vld [vmem:[#allocation3 + $0xb8] sm:$0xff] }
  0xb6   :  { %v15307_v40 = vcombine.high %v255_v33, %v271_v34  ;;  %v15245_v44 = vcombine.high %v192_v36, %v208_v37  ;;  %v224_v45 = vld [vmem:[#allocation3 + $0x230] sm:$0xff]  ;;  %v15215_v48 = vcombine.high %v161_v41, %v177_v43  ;;  %v193_v49 = vld [vmem:[#allocation3 + $0x138] sm:$0xff]  ;;  %v179_v12 = vld [vmem:[#allocation3 + $0xc8] sm:$0xff] }
  0xb7   :  { %15328 = vmatmul.mubr.msk.bf16.vlgmr.msra.gmra.mrb[0].mxu0 %vm1090_vm0, %v18792_v38  ;;  %15329 = vmatmul.mubr.msk.bf16.vlgmr.msra.gmra.mrb[0].mxu1 %vm1090_vm0, %v18792_v38  ;;  %v240_v46 = vld [vmem:[#allocation3 + $0x2b0] sm:$0xff]  ;;  %v209_v51 = vld [vmem:[#allocation3 + $0x1b8] sm:$0xff]  ;;  %v15219_v17 = vcombine.high %v163_v10, %v179_v12  ;;  %v195_v18 = vld [vmem:[#allocation3 + $0x148] sm:$0xff] }
  0xb8   :  { %1177 = vmatpush1.bf16.msra.mxu0 %v15204_v39  ;;  %1208 = vmatprep.mubr.bf16.mxu0 %v18615_v1  ;;  %v15274_v39 = vcombine.low %v223_v25, %v239_v26  ;;  %v15277_v52 = vcombine.high %v224_v45, %v240_v46  ;;  %v15247_v56 = vcombine.high %v193_v49, %v209_v51  ;;  %v225_v57 = vld [vmem:[#allocation3 + $0x238] sm:$0xff]  ;;  %v211_v20 = vld [vmem:[#allocation3 + $0x1c8] sm:$0xff] }
  0xb9   :  { %1178 = vmatprep.subr.bf16.mxu0 %v15237_v42  ;;  %1218 = vmatpush1.bf16.msra.mxu1 %v15206_v53  ;;  %v15212_v42 = vcombine.low %v160_v28, %v176_v29  ;;  %v256_v53 = vld [vmem:[#allocation3 + $0x330] sm:$0xff]  ;;  %v241_v59 = vld [vmem:[#allocation3 + $0x2b8] sm:$0xff]  ;;  %v15251_v25 = vcombine.high %v195_v18, %v211_v20  ;;  %v227_v26 = vld [vmem:[#allocation3 + $0x248] sm:$0xff] }
  0xba   :  { %1249 = vmatprep.mubr.bf16.mxu1 %v18615_v1  ;;  %1219 = vmatprep.subr.bf16.mxu1 %v15239_v54  ;;  %v272_v54 = vld [vmem:[#allocation3 + $0x3b0] sm:$0xff]  ;;  %v15279_v0 = vcombine.high %v225_v57, %v241_v59  ;;  %v257_v2 = vld [vmem:[#allocation3 + $0x338] sm:$0xff]  ;;  %v243_v28 = vld [vmem:[#allocation3 + $0x2c8] sm:$0xff] }
  0xbb   :  { %v15309_v60 = vcombine.high %v256_v53, %v272_v54  ;;  %v273_v4 = vld [vmem:[#allocation3 + $0x3b8] sm:$0xff] }
  0xbc   :  { %1179 = vmatpush1.bf16.msra.mxu0 %v15236_v47  ;;  %v15306_v47 = vcombine.low %v255_v33, %v271_v34  ;;  %v15311_v9 = vcombine.high %v257_v2, %v273_v4  ;;  %v259_v33 = vld [vmem:[#allocation3 + $0x348] sm:$0xff]  ;;  %v15283_v34 = vcombine.high %v227_v26, %v243_v28 }
  0xbd   :  { %1180 = vmatprep.subr.bf16.mxu0 %v15269_v50  ;;  %1220 = vmatpush1.bf16.msra.mxu1 %v15238_v61  ;;  %v15244_v50 = vcombine.low %v192_v36, %v208_v37  ;;  %v162_v61 = vld [vmem:[#allocation3 + $0x40] sm:$0xff]  ;;  %v196_v37 = vld [vmem:[#allocation3 + $0x150] sm:$0xff] }
  0xbe   :  { %1221 = vmatprep.subr.bf16.mxu1 %v15271_v62  ;;  %v178_v62 = vld [vmem:[#allocation3 + $0xc0] sm:$0xff] }
  0xbf   :  { %v15217_v5 = vcombine.high %v162_v61, %v178_v62 }
  0xc0   :  { %1181 = vmatpush1.bf16.msra.mxu0 %v15268_v55  ;;  %v15214_v55 = vcombine.low %v161_v41, %v177_v43  ;;  %v15282_v41 = vcombine.low %v227_v26, %v243_v28  ;;  %v181_v43 = vld [vmem:[#allocation3 + $0xd8] sm:$0xff] }
  0xc1   :  { %1182 = vmatprep.subr.bf16.mxu0 %v15301_v58  ;;  %1222 = vmatpush1.bf16.msra.mxu1 %v15270_v6  ;;  %v15276_v58 = vcombine.low %v224_v45, %v240_v46  ;;  %v194_v6 = vld [vmem:[#allocation3 + $0x140] sm:$0xff]  ;;  %v228_v46 = vld [vmem:[#allocation3 + $0x250] sm:$0xff] }
  0xc2   :  { %1223 = vmatprep.subr.bf16.mxu1 %v15303_v7  ;;  %v210_v7 = vld [vmem:[#allocation3 + $0x1c0] sm:$0xff] }
  0xc3   :  { %v15249_v13 = vcombine.high %v194_v6, %v210_v7 }
  0xc4   :  { %1183 = vmatpush1.bf16.msra.mxu0 %v15300_v63  ;;  %v15246_v63 = vcombine.low %v193_v49, %v209_v51  ;;  %v213_v51 = vld [vmem:[#allocation3 + $0x1d8] sm:$0xff] }
  0xc5   :  { %1258 = vmatprep.subr.bf16.mxu0 %v15209_v3  ;;  %1224 = vmatpush1.bf16.msra.mxu1 %v15302_v14  ;;  %v15308_v3 = vcombine.low %v256_v53, %v272_v54  ;;  %v226_v14 = vld [vmem:[#allocation3 + $0x240] sm:$0xff]  ;;  %v260_v54 = vld [vmem:[#allocation3 + $0x350] sm:$0xff] }
  0xc6   :  { %1299 = vmatprep.subr.bf16.mxu1 %v15211_v15  ;;  %v242_v15 = vld [vmem:[#allocation3 + $0x2c0] sm:$0xff] }
  0xc7   :  { %15330 = vmatmul.mubr.msk.bf16.vlgmr.msra.gmra.mrb[4].mxu0 %vm1090_vm0, %v18792_v38  ;;  %v15281_v21 = vcombine.high %v226_v14, %v242_v15 }
  0xc8   :  { %1259 = vmatpush1.bf16.msra.mxu0 %v15208_v8  ;;  %1290 = vmatprep.mubr.bf16.mxu0 %v18615_v1  ;;  %v15278_v8 = vcombine.low %v225_v57, %v241_v59  ;;  %v245_v59 = vld [vmem:[#allocation3 + $0x2d8] sm:$0xff] }
  0xc9   :  { %1260 = vmatprep.subr.bf16.mxu0 %v15241_v11  ;;  %15331 = vmatmul.mubr.msk.bf16.vlgmr.msra.gmra.mrb[4].mxu1 %vm1090_vm0, %v18792_v38  ;;  %v15216_v11 = vcombine.low %v162_v61, %v178_v62  ;;  %v166_v62 = vld [vmem:[#allocation3 + $0x60] sm:$0xff] }
  0xca   :  { %1300 = vmatpush1.bf16.msra.mxu1 %v15210_v22  ;;  %1331 = vmatprep.mubr.bf16.mxu1 %v18615_v1  ;;  %v258_v22 = vld [vmem:[#allocation3 + $0x340] sm:$0xff] }
  0xcb   :  { %1301 = vmatprep.subr.bf16.mxu1 %v15243_v23  ;;  %v274_v23 = vld [vmem:[#allocation3 + $0x3c0] sm:$0xff] }
  0xcc   :  { %1261 = vmatpush1.bf16.msra.mxu0 %v15240_v16  ;;  %v15310_v16 = vcombine.low %v257_v2, %v273_v4  ;;  %v15313_v29 = vcombine.high %v258_v22, %v274_v23  ;;  %v15312_v36 = vcombine.low %v258_v22, %v274_v23  ;;  %v277_v4 = vld [vmem:[#allocation3 + $0x3d8] sm:$0xff]  ;;  %v215_v22 = vld [vmem:[#allocation3 + $0x1e8] sm:$0xff] }
  0xcd   :  { %1262 = vmatprep.subr.bf16.mxu0 %v15273_v19  ;;  %v15248_v19 = vcombine.low %v194_v6, %v210_v7  ;;  %v198_v7 = vld [vmem:[#allocation3 + $0x160] sm:$0xff] }
  0xce   :  { %1302 = vmatpush1.bf16.msra.mxu1 %v15242_v30  ;;  %v164_v30 = vld [vmem:[#allocation3 + $0x50] sm:$0xff] }
  0xcf   :  { %1303 = vmatprep.subr.bf16.mxu1 %v15275_v31  ;;  %v180_v31 = vld [vmem:[#allocation3 + $0xd0] sm:$0xff] }
  0xd0   :  { %1263 = vmatpush1.bf16.msra.mxu0 %v15272_v24  ;;  %v15218_v24 = vcombine.low %v163_v10, %v179_v12  ;;  %v15220_v45 = vcombine.low %v164_v30, %v180_v31  ;;  %v183_v12 = vld [vmem:[#allocation3 + $0xe8] sm:$0xff] }
  0xd1   :  { %1264 = vmatprep.subr.bf16.mxu0 %v15305_v27  ;;  %v15280_v27 = vcombine.low %v226_v14, %v242_v15  ;;  %v230_v15 = vld [vmem:[#allocation3 + $0x260] sm:$0xff] }
  0xd2   :  { %1304 = vmatpush1.bf16.msra.mxu1 %v15274_v39  ;;  %v212_v39 = vld [vmem:[#allocation3 + $0x1d0] sm:$0xff] }
  0xd3   :  { %1305 = vmatprep.subr.bf16.mxu1 %v15307_v40  ;;  %v15221_v40 = vcombine.high %v164_v30, %v180_v31  ;;  %v15252_v53 = vcombine.low %v196_v37, %v212_v39  ;;  %v247_v30 = vld [vmem:[#allocation3 + $0x2e8] sm:$0xff] }
  0xd4   :  { %1265 = vmatpush1.bf16.msra.mxu0 %v15304_v32  ;;  %v15250_v32 = vcombine.low %v195_v18, %v211_v20 }
  0xd5   :  { %1340 = vmatprep.subr.bf16.mxu0 %v15213_v35  ;;  %v275_v35 = vld [vmem:[#allocation3 + $0x3c8] sm:$0xff] }
  0xd6   :  { %1306 = vmatpush1.bf16.msra.mxu1 %v15306_v47  ;;  %v244_v47 = vld [vmem:[#allocation3 + $0x2d0] sm:$0xff]  ;;  %v15314_v49 = vcombine.low %v259_v33, %v275_v35 }
  0xd7   :  { %15332 = vmatmul.mubr.msk.bf16.vlgmr.msra.gmra.mrb[8].mxu0 %vm1090_vm0, %v18792_v38  ;;  %1381 = vmatprep.subr.bf16.mxu1 %v15215_v48  ;;  %v15253_v48 = vcombine.high %v196_v37, %v212_v39  ;;  %v15284_v61 = vcombine.low %v228_v46, %v244_v47  ;;  %v263_v37 = vld [vmem:[#allocation3 + $0x368] sm:$0xff] }
  0xd8   :  { %1341 = vmatpush1.bf16.msra.mxu0 %v15212_v42  ;;  %1372 = vmatprep.mubr.bf16.mxu0 %v18615_v1  ;;  %v165_v42 = vld [vmem:[#allocation3 + $0x58] sm:$0xff]  ;;  %v279_v39 = vld [vmem:[#allocation3 + $0x3e8] sm:$0xff] }
  0xd9   :  { %1342 = vmatprep.subr.bf16.mxu0 %v15245_v44  ;;  %15333 = vmatmul.mubr.msk.bf16.vlgmr.msra.gmra.mrb[8].mxu1 %vm1090_vm0, %v18792_v38  ;;  %v15315_v44 = vcombine.high %v259_v33, %v275_v35  ;;  %v15222_v57 = vcombine.low %v165_v42, %v181_v43  ;;  %v184_v33 = vld [vmem:[#allocation3 + $0xf0] sm:$0xff] }
  0xda   :  { %1382 = vmatpush1.bf16.msra.mxu1 %v15214_v55  ;;  %1413 = vmatprep.mubr.bf16.mxu1 %v18615_v1  ;;  %v276_v55 = vld [vmem:[#allocation3 + $0x3d0] sm:$0xff] }
  0xdb   :  { %1383 = vmatprep.subr.bf16.mxu1 %v15247_v56  ;;  %v15285_v56 = vcombine.high %v228_v46, %v244_v47  ;;  %v15316_v6 = vcombine.low %v260_v54, %v276_v55  ;;  %v169_v46 = vld [vmem:[#allocation3 + $0x78] sm:$0xff] }
  0xdc   :  { %1343 = vmatpush1.bf16.msra.mxu0 %v15244_v50  ;;  %v197_v50 = vld [vmem:[#allocation3 + $0x158] sm:$0xff] }
  0xdd   :  { %1344 = vmatprep.subr.bf16.mxu0 %v15277_v52  ;;  %v15223_v52 = vcombine.high %v165_v42, %v181_v43  ;;  %v15254_v2 = vcombine.low %v197_v50, %v213_v51  ;;  %v216_v42 = vld [vmem:[#allocation3 + $0x1f0] sm:$0xff]  ;;  %v185_v47 = vld [vmem:[#allocation3 + $0xf8] sm:$0xff] }
  0xde   :  { %1384 = vmatpush1.bf16.msra.mxu1 %v15246_v63  ;;  %v182_v63 = vld [vmem:[#allocation3 + $0xe0] sm:$0xff] }
  0xdf   :  { %1385 = vmatprep.subr.bf16.mxu1 %v15279_v0  ;;  %v15317_v0 = vcombine.high %v260_v54, %v276_v55  ;;  %v15224_v14 = vcombine.low %v166_v62, %v182_v63  ;;  %v15231_v54 = vcombine.high %v169_v46, %v185_v47 }
  0xe0   :  { %1345 = vmatpush1.bf16.msra.mxu0 %v15276_v58  ;;  %v229_v58 = vld [vmem:[#allocation3 + $0x258] sm:$0xff] }
  0xe1   :  { %1346 = vmatprep.subr.bf16.mxu0 %v15309_v60  ;;  %v15255_v60 = vcombine.high %v197_v50, %v213_v51  ;;  %v15286_v10 = vcombine.low %v229_v58, %v245_v59  ;;  %v248_v50 = vld [vmem:[#allocation3 + $0x2f0] sm:$0xff]  ;;  %v15322_v51 = vcombine.low %v263_v37, %v279_v39 }
  0xe2   :  { %1386 = vmatpush1.bf16.msra.mxu1 %v15278_v8  ;;  %v214_v8 = vld [vmem:[#allocation3 + $0x1e0] sm:$0xff] }
  0xe3   :  { %1387 = vmatprep.subr.bf16.mxu1 %v15311_v9  ;;  %v15225_v9 = vcombine.high %v166_v62, %v182_v63  ;;  %v15256_v20 = vcombine.low %v198_v7, %v214_v8 }
  0xe4   :  { %1347 = vmatpush1.bf16.msra.mxu0 %v15308_v3  ;;  %v261_v3 = vld [vmem:[#allocation3 + $0x358] sm:$0xff] }
  0xe5   :  { %1422 = vmatprep.subr.bf16.mxu0 %v15217_v5  ;;  %v15287_v5 = vcombine.high %v229_v58, %v245_v59  ;;  %v15318_v18 = vcombine.low %v261_v3, %v277_v4  ;;  %v280_v58 = vld [vmem:[#allocation3 + $0x3f0] sm:$0xff]  ;;  %v15230_v59 = vcombine.low %v169_v46, %v185_v47  ;;  %v17281_v47 = vld [vmem:[#allocation7 + $0xa4] ss:$8 sps:$4 sm:$0xff]  }
  0xe6   :  { %1388 = vmatpush1.bf16.msra.mxu1 %v15310_v16  ;;  %v246_v16 = vld [vmem:[#allocation3 + $0x2e0] sm:$0xff]  ;;  %v17273_v46 = vld [vmem:[#allocation7 + $0x90] ss:$8 sps:$4 sm:$0xff]  }
  0xe7   :  { %15334 = vmatmul.mubr.msk.bf16.vlgmr.msra.gmra.mrb[12].mxu0 %vm1090_vm0, %v18792_v38  ;;  %1463 = vmatprep.subr.bf16.mxu1 %v15219_v17  ;;  %v15257_v17 = vcombine.high %v198_v7, %v214_v8  ;;  %v15289_v23 = vcombine.high %v230_v15, %v246_v16  ;;  %v15288_v28 = vcombine.low %v230_v15, %v246_v16  ;;  %v17233_v7 = vld [vmem:[#allocation7 + $0x4] ss:$8 sps:$4 sm:$0xff]   ;;  %v17246_v15 = vld [vmem:[#allocation7 + $0x200] ss:$8 sps:$4 sm:$0xff]   ;;  %v17254_v16 = vld [vmem:[#allocation7 + $0x214] ss:$8 sps:$4 sm:$0xff]  }
  0xe8   :  { %1423 = vmatpush1.bf16.msra.mxu0 %v15216_v11  ;;  %1454 = vmatprep.mubr.bf16.mxu0 %v18615_v1  ;;  %v167_v11 = vld [vmem:[#allocation3 + $0x68] sm:$0xff] }
  0xe9   :  { %1424 = vmatprep.subr.bf16.mxu0 %v15249_v13  ;;  %15335 = vmatmul.mubr.msk.bf16.vlgmr.msra.gmra.mrb[12].mxu1 %vm1090_vm0, %v18792_v38  ;;  %v15319_v13 = vcombine.high %v261_v3, %v277_v4  ;;  %v15226_v26 = vcombine.low %v167_v11, %v183_v12 }
  0xea   :  { %1464 = vmatpush1.bf16.msra.mxu1 %v15218_v24  ;;  %1495 = vmatprep.mubr.bf16.mxu1 %v18615_v1  ;;  %v262_v24 = vld [vmem:[#allocation3 + $0x360] sm:$0xff] }
  0xeb   :  { %1465 = vmatprep.subr.bf16.mxu1 %v15251_v25  ;;  %v278_v25 = vld [vmem:[#allocation3 + $0x3e0] sm:$0xff] }
  0xec   :  { %1425 = vmatpush1.bf16.msra.mxu0 %v15248_v19  ;;  %v15227_v19 = vcombine.high %v167_v11, %v183_v12  ;;  %v15321_v31 = vcombine.high %v262_v24, %v278_v25  ;;  %v17248_v11 = vld [vmem:[#allocation7 + $0x204] ss:$8 sps:$4 sm:$0xff]  }
  0xed   :  { %1426 = vmatprep.subr.bf16.mxu0 %v15281_v21  ;;  %v199_v21 = vld [vmem:[#allocation3 + $0x168] sm:$0xff] }
  0xee   :  { %1466 = vmatpush1.bf16.msra.mxu1 %v15250_v32  ;;  %v168_v32 = vld [vmem:[#allocation3 + $0x70] sm:$0xff] }
  0xef   :  { %1467 = vmatprep.subr.bf16.mxu1 %v15283_v34  ;;  %v15258_v34 = vcombine.low %v199_v21, %v215_v22 }
  0xf0   :  { %1427 = vmatpush1.bf16.msra.mxu0 %v15280_v27  ;;  %v15259_v27 = vcombine.high %v199_v21, %v215_v22  ;;  %v17240_v21 = vld [vmem:[#allocation7 + $0x30] ss:$8 sps:$4 sm:$0xff]   ;;  %v17245_v22 = vld [vmem:[#allocation7 + $0x44] ss:$8 sps:$4 sm:$0xff]  }
  0xf1   :  { %1428 = vmatprep.subr.bf16.mxu0 %v15313_v29  ;;  %v231_v29 = vld [vmem:[#allocation3 + $0x268] sm:$0xff] }
  0xf2   :  { %1468 = vmatpush1.bf16.msra.mxu1 %v15282_v41  ;;  %v15291_v35 = vcombine.high %v231_v29, %v247_v30  ;;  %v200_v41 = vld [vmem:[#allocation3 + $0x170] sm:$0xff]  ;;  %v15290_v43 = vcombine.low %v231_v29, %v247_v30  ;;  %v17257_v30 = vld [vmem:[#allocation7 + $0x64] ss:$8 sps:$4 sm:$0xff]  }
  0xf3   :  { %1469 = vmatprep.subr.bf16.mxu1 %v15315_v44  ;;  %v15323_v44 = vcombine.high %v263_v37, %v279_v39  ;;  %v15260_v55 = vcombine.low %v200_v41, %v216_v42  ;;  %v17249_v29 = vld [vmem:[#allocation7 + $0x50] ss:$8 sps:$4 sm:$0xff]   ;;  %v17269_v39 = vld [vmem:[#allocation7 + $0x84] ss:$8 sps:$4 sm:$0xff]  }
  0xf4   :  { %1429 = vmatpush1.bf16.msra.mxu0 %v15312_v36  ;;  %v15320_v36 = vcombine.low %v262_v24, %v278_v25  ;;  %v17266_v24 = vld [vmem:[#allocation7 + $0x234] ss:$8 sps:$4 sm:$0xff]   ;;  %v17243_v25 = vld [vmem:[#allocation7 + $0x40] ss:$8 sps:$4 sm:$0xff]   ;;  %v17261_v37 = vld [vmem:[#allocation7 + $0x70] ss:$8 sps:$4 sm:$0xff]  }
  0xf5   :  { %1504 = vmatprep.subr.bf16.mxu0 %v15221_v40  ;;  %v15229_v40 = vcombine.high %v168_v32, %v184_v33 }
  0xf6   :  { %1470 = vmatpush1.bf16.msra.mxu1 %v15314_v49  ;;  %v232_v49 = vld [vmem:[#allocation3 + $0x270] sm:$0xff] }
  0xf7   :  { %15336 = vmatmul.mubr.msk.bf16.vlgmr.msra.gmra.mrb[16].mxu0 %vm1090_vm0, %v18792_v38  ;;  %1545 = vmatprep.subr.bf16.mxu1 %v15223_v52  ;;  %v201_v52 = vld [vmem:[#allocation3 + $0x178] sm:$0xff]  ;;  %v15292_v63 = vcombine.low %v232_v49, %v248_v50 }
  0xf8   :  { %1505 = vmatpush1.bf16.msra.mxu0 %v15220_v45  ;;  %1536 = vmatprep.mubr.bf16.mxu0 %v18615_v1  ;;  %v15228_v45 = vcombine.low %v168_v32, %v184_v33  ;;  %v17278_v32 = vld [vmem:[#allocation7 + $0x254] ss:$8 sps:$4 sm:$0xff]   ;;  %v17255_v33 = vld [vmem:[#allocation7 + $0x60] ss:$8 sps:$4 sm:$0xff]  }
  0xf9   :  { %1506 = vmatprep.subr.bf16.mxu0 %v15253_v48  ;;  %15337 = vmatmul.mubr.msk.bf16.vlgmr.msra.gmra.mrb[16].mxu1 %vm1090_vm0, %v18792_v38  ;;  %v15261_v48 = vcombine.high %v200_v41, %v216_v42  ;;  %v17290_v41 = vld [vmem:[#allocation7 + $0x274] ss:$8 sps:$4 sm:$0xff]   ;;  %v17267_v42 = vld [vmem:[#allocation7 + $0x80] ss:$8 sps:$4 sm:$0xff]  }
  0xfa   :  { %1546 = vmatpush1.bf16.msra.mxu1 %v15222_v57  ;;  %1577 = vmatprep.mubr.bf16.mxu1 %v18615_v1  ;;  %v264_v57 = vld [vmem:[#allocation3 + $0x370] sm:$0xff] }
  0xfb   :  { %1547 = vmatprep.subr.bf16.mxu1 %v15255_v60  ;;  %v233_v60 = vld [vmem:[#allocation3 + $0x278] sm:$0xff]  ;;  %v15324_v4 = vcombine.low %v264_v57, %v280_v58 }
  0xfc   :  { %1507 = vmatpush1.bf16.msra.mxu0 %v15252_v53  ;;  %v217_v53 = vld [vmem:[#allocation3 + $0x1f8] sm:$0xff] }
  0xfd   :  { %1508 = vmatprep.subr.bf16.mxu0 %v15285_v56  ;;  %v15293_v56 = vcombine.high %v232_v49, %v248_v50  ;;  %v15263_v62 = vcombine.high %v201_v52, %v217_v53  ;;  %v17302_v49 = vld [vmem:[#allocation7 + $0x294] ss:$8 sps:$4 sm:$0xff]   ;;  %v17279_v50 = vld [vmem:[#allocation7 + $0xa0] ss:$8 sps:$4 sm:$0xff]  }
  0xfe   :  { %1548 = vmatpush1.bf16.msra.mxu1 %v15254_v2  ;;  %v15262_v2 = vcombine.low %v201_v52, %v217_v53  ;;  %v17300_v52 = vld [vmem:[#allocation7 + $0x290] ss:$8 sps:$4 sm:$0xff]   ;;  %v17308_v53 = vld [vmem:[#allocation7 + $0x2a4] ss:$8 sps:$4 sm:$0xff]  }
  0xff   :  { %1549 = vmatprep.subr.bf16.mxu1 %v15287_v5  ;;  %v265_v5 = vld [vmem:[#allocation3 + $0x378] sm:$0xff] }
 0x100   :  { %1509 = vmatpush1.bf16.msra.mxu0 %v15284_v61  ;;  %v249_v61 = vld [vmem:[#allocation3 + $0x2f8] sm:$0xff] }
 0x101   :  { %1510 = vmatprep.subr.bf16.mxu0 %v15317_v0  ;;  %v15325_v0 = vcombine.high %v264_v57, %v280_v58  ;;  %v15295_v3 = vcombine.high %v233_v60, %v249_v61  ;;  %v15294_v8 = vcombine.low %v233_v60, %v249_v61  ;;  %v17291_v57 = vld [vmem:[#allocation7 + $0xc0] ss:$8 sps:$4 sm:$0xff]   ;;  %v17314_v58 = vld [vmem:[#allocation7 + $0x2b4] ss:$8 sps:$4 sm:$0xff]   ;;  %v17312_v60 = vld [vmem:[#allocation7 + $0x2b0] ss:$8 sps:$4 sm:$0xff]  }
 0x102   :  { %1550 = vmatpush1.bf16.msra.mxu1 %v15286_v10  ;;  %v17231_v10 = vld [vmem:[#allocation7] ss:$8 sps:$4 sm:$0xff]   ;;  %v17320_v61 = vld [vmem:[#allocation7 + $0x2c4] ss:$8 sps:$4 sm:$0xff]  }
 0x103   :  { %1551 = vmatprep.subr.bf16.mxu1 %v15319_v13  ;;  %v17234_v13 = vld [vmem:[#allocation7 + $0x10] ss:$8 sps:$4 sm:$0xff]  }
 0x104   :  { %1511 = vmatpush1.bf16.msra.mxu0 %v15316_v6  ;;  %v281_v6 = vld [vmem:[#allocation3 + $0x3f8] sm:$0xff] }
 0x105   :  { %1586 = vmatprep.subr.bf16.mxu0 %v15225_v9  ;;  %v15327_v9 = vcombine.high %v265_v5, %v281_v6  ;;  %v15326_v12 = vcombine.low %v265_v5, %v281_v6  ;;  %v17324_v5 = vld [vmem:[#allocation7 + $0x2d0] ss:$8 sps:$4 sm:$0xff]   ;;  %v17332_v6 = vld [vmem:[#allocation7 + $0x2e4] ss:$8 sps:$4 sm:$0xff]  }
 0x106   :  { %1552 = vmatpush1.bf16.msra.mxu1 %v15318_v18  ;;  %v17242_v18 = vld [vmem:[#allocation7 + $0x34] ss:$8 sps:$4 sm:$0xff]  }
 0x107   :  { %15338 = vmatmul.mubr.msk.bf16.vlgmr.msra.gmra.mrb[20].mxu0 %vm1090_vm0, %v18792_v38  ;;  %1627 = vmatprep.subr.bf16.mxu1 %v15227_v19  ;;  %v17252_v19 = vld [vmem:[#allocation7 + $0x210] ss:$8 sps:$4 sm:$0xff]  }
 0x108   :  { %1587 = vmatpush1.bf16.msra.mxu0 %v15224_v14  ;;  %1618 = vmatprep.mubr.bf16.mxu0 %v18615_v1  ;;  %v17239_v14 = vld [vmem:[#allocation7 + $0x24] ss:$8 sps:$4 sm:$0xff]  }
 0x109   :  { %1588 = vmatprep.subr.bf16.mxu0 %v15257_v17  ;;  %15339 = vmatmul.mubr.msk.bf16.vlgmr.msra.gmra.mrb[20].mxu1 %vm1090_vm0, %v18792_v38  ;;  %v17237_v17 = vld [vmem:[#allocation7 + $0x20] ss:$8 sps:$4 sm:$0xff]  }
 0x10a   :  { %1628 = vmatpush1.bf16.msra.mxu1 %v15226_v26  ;;  %1659 = vmatprep.mubr.bf16.mxu1 %v18615_v1  ;;  %v17251_v26 = vld [vmem:[#allocation7 + $0x54] ss:$8 sps:$4 sm:$0xff]  }
 0x10b   :  { %1629 = vmatprep.subr.bf16.mxu1 %v15259_v27  ;;  %v17264_v27 = vld [vmem:[#allocation7 + $0x230] ss:$8 sps:$4 sm:$0xff]  }
 0x10c   :  { %1589 = vmatpush1.bf16.msra.mxu0 %v15256_v20  ;;  %v17260_v20 = vld [vmem:[#allocation7 + $0x224] ss:$8 sps:$4 sm:$0xff]  }
 0x10d   :  { %1590 = vmatprep.subr.bf16.mxu0 %v15289_v23  ;;  %v17258_v23 = vld [vmem:[#allocation7 + $0x220] ss:$8 sps:$4 sm:$0xff]  }
 0x10e   :  { %1630 = vmatpush1.bf16.msra.mxu1 %v15258_v34  ;;  %v17263_v34 = vld [vmem:[#allocation7 + $0x74] ss:$8 sps:$4 sm:$0xff]  }
 0x10f   :  { %1631 = vmatprep.subr.bf16.mxu1 %v15291_v35  ;;  %v17276_v35 = vld [vmem:[#allocation7 + $0x250] ss:$8 sps:$4 sm:$0xff]  }
 0x110   :  { %1591 = vmatpush1.bf16.msra.mxu0 %v15288_v28  ;;  %v17272_v28 = vld [vmem:[#allocation7 + $0x244] ss:$8 sps:$4 sm:$0xff]  }
 0x111   :  { %1592 = vmatprep.subr.bf16.mxu0 %v15321_v31  ;;  %v17270_v31 = vld [vmem:[#allocation7 + $0x240] ss:$8 sps:$4 sm:$0xff]  }
 0x112   :  { %1632 = vmatpush1.bf16.msra.mxu1 %v15290_v43  ;;  %v17275_v43 = vld [vmem:[#allocation7 + $0x94] ss:$8 sps:$4 sm:$0xff]  }
 0x113   :  { %1633 = vmatprep.subr.bf16.mxu1 %v15323_v44  ;;  %v17288_v44 = vld [vmem:[#allocation7 + $0x270] ss:$8 sps:$4 sm:$0xff]  }
 0x114   :  { %1593 = vmatpush1.bf16.msra.mxu0 %v15320_v36  ;;  %v17284_v36 = vld [vmem:[#allocation7 + $0x264] ss:$8 sps:$4 sm:$0xff]  }
 0x115   :  { %1668 = vmatprep.subr.bf16.mxu0 %v15229_v40  ;;  %v17282_v40 = vld [vmem:[#allocation7 + $0x260] ss:$8 sps:$4 sm:$0xff]  }
 0x116   :  { %1634 = vmatpush1.bf16.msra.mxu1 %v15322_v51  ;;  %v17287_v51 = vld [vmem:[#allocation7 + $0xb4] ss:$8 sps:$4 sm:$0xff]  }
 0x117   :  { %15340 = vmatmul.mubr.msk.bf16.vlgmr.msra.gmra.mrb[24].mxu0 %vm1090_vm0, %v18792_v38  ;;  %1709 = vmatprep.subr.bf16.mxu1 %v15231_v54  ;;  %v17285_v54 = vld [vmem:[#allocation7 + $0xb0] ss:$8 sps:$4 sm:$0xff]  }
 0x118   :  { %1669 = vmatpush1.bf16.msra.mxu0 %v15228_v45  ;;  %1700 = vmatprep.mubr.bf16.mxu0 %v18615_v1  ;;  %v17296_v45 = vld [vmem:[#allocation7 + $0x284] ss:$8 sps:$4 sm:$0xff]  }
 0x119   :  { %1670 = vmatprep.subr.bf16.mxu0 %v15261_v48  ;;  %15341 = vmatmul.mubr.msk.bf16.vlgmr.msra.gmra.mrb[24].mxu1 %vm1090_vm0, %v18792_v38  ;;  %v17236_v38 = vld [vmem:[#allocation7 + $0x14] ss:$8 sps:$4 sm:$0xff]   ;;  %v17294_v48 = vld [vmem:[#allocation7 + $0x280] ss:$8 sps:$4 sm:$0xff]  }
 0x11a   :  { %1710 = vmatpush1.bf16.msra.mxu1 %v15230_v59  ;;  %1741 = vmatprep.mubr.bf16.mxu1 %v18615_v1  ;;  %v18387_v1 = vld [vmem:[%s19345_s0] sm:$0xf] }
 0x11b   :  { %1711 = vmatprep.subr.bf16.mxu1 %v15263_v62  ;;  %v17299_v59 = vld [vmem:[#allocation7 + $0xd4] ss:$8 sps:$4 sm:$0xff]   ;;  %v17297_v62 = vld [vmem:[#allocation7 + $0xd0] ss:$8 sps:$4 sm:$0xff]  }
 0x11c   :  { %1671 = vmatpush1.bf16.msra.mxu0 %v15260_v55  ;;  %v17293_v55 = vld [vmem:[#allocation7 + $0xc4] ss:$8 sps:$4 sm:$0xff]  }
 0x11d   :  { %1672 = vmatprep.subr.bf16.mxu0 %v15293_v56  ;;  %v17306_v56 = vld [vmem:[#allocation7 + $0x2a0] ss:$8 sps:$4 sm:$0xff]  }
 0x11e   :  { %1712 = vmatpush1.bf16.msra.mxu1 %v15262_v2  ;;  %v17326_v2 = vld [vmem:[#allocation7 + $0x2d4] ss:$8 sps:$4 sm:$0xff]  }
 0x11f   :  { %1713 = vmatprep.subr.bf16.mxu1 %v15295_v3  ;;  %v17303_v3 = vld [vmem:[#allocation7 + $0xe0] ss:$8 sps:$4 sm:$0xff]  }
 0x120   :  { %1673 = vmatpush1.bf16.msra.mxu0 %v15292_v63  ;;  %v17305_v63 = vld [vmem:[#allocation7 + $0xe4] ss:$8 sps:$4 sm:$0xff]  }
 0x121   :  { %1674 = vmatprep.subr.bf16.mxu0 %v15325_v0  ;;  %v17318_v0 = vld [vmem:[#allocation7 + $0x2c0] ss:$8 sps:$4 sm:$0xff]  }
 0x122   :  { %1714 = vmatpush1.bf16.msra.mxu1 %v15294_v8  ;;  %v17317_v8 = vld [vmem:[#allocation7 + $0x104] ss:$8 sps:$4 sm:$0xff]  }
 0x123   :  { %1715 = vmatprep.subr.bf16.mxu1 %v15327_v9  ;;  %v17330_v9 = vld [vmem:[#allocation7 + $0x2e0] ss:$8 sps:$4 sm:$0xff]  }
 0x124   :  { %1675 = vmatpush1.bf16.msra.mxu0 %v15324_v4  ;;  %v17311_v4 = vld [vmem:[#allocation7 + $0xf4] ss:$8 sps:$4 sm:$0xff]  }
 0x125   :  { %2182 = vmatprep.subr.bf16.mxu0 %v17233_v7  ;;  %v17309_v7 = vld [vmem:[#allocation7 + $0xf0] ss:$8 sps:$4 sm:$0xff]  }
 0x126   :  { %1716 = vmatpush1.bf16.msra.mxu1 %v15326_v12  ;;  %v290_v12 = vlaneseq }
 0x127   :  { %15342 = vmatmul.mubr.msk.bf16.vlgmr.msra.gmra.mrb[28].mxu0 %vm1090_vm0, %v18387_v1  ;;  %2797 = vmatprep.subr.bf16.mxu1 %v17248_v11  ;;  %v17344_v11 = vld [vmem:[#allocation7 + $0x304] ss:$8 sps:$4 sm:$0xff]  }
 0x128   :  { %2183 = vmatpush1.bf16.msra.mxu0 %v17231_v10  ;;  %v17338_v10 = vld [vmem:[#allocation7 + $0x2f4] ss:$8 sps:$4 sm:$0xff]  }
 0x129   :  { %2184 = vmatprep.subr.bf16.mxu0 %v17236_v38  ;;  %15343 = vmatmul.mubr.msk.bf16.vlgmr.msra.gmra.mrb[28].mxu1 %vm1090_vm0, %v18387_v1  ;;  %v17336_v38 = vld [vmem:[#allocation7 + $0x2f0] ss:$8 sps:$4 sm:$0xff]   ;;  %v18841_v1 = vshrl.u32 %v290_v12, 7  ;;  %v17351_v12 = vld [vmem:[#allocation7 + $0x160] ss:$8 sps:$4 sm:$0xff]  }
 0x12a   :  { %2798 = vmatpush1.bf16.msra.mxu1 %v17246_v15 }
 0x12b   :  { %2799 = vmatprep.subr.bf16.mxu1 %v17254_v16  ;;  %v18849_v15 = vsub.s32 1, %v18841_v1 }
 0x12c   :  { %2185 = vmatpush1.bf16.msra.mxu0 %v17234_v13  ;;  %v18843_v13 = vld [vmem:[#allocation5] sm:$0xff] }
 0x12d   :  { %2186 = vmatprep.subr.bf16.mxu0 %v17239_v14  ;;  %v18846_v14 = vsub.s32 0, %v18841_v1 }
 0x12e   :  { %2800 = vmatpush1.bf16.msra.mxu1 %v17252_v19  ;;  %v18856_v19 = vsub.s32 3, %v18841_v1 }
 0x12f   :  { %2801 = vmatprep.subr.bf16.mxu1 %v17260_v20  ;;  %v293_v16 = vrot.slane %v18843_v13, %v18846_v14 }
 0x130   :  { %2187 = vmatpush1.bf16.msra.mxu0 %v17237_v17  ;;  %v297_v17 = vrot.slane %v18843_v13, %v18849_v15 }
 0x131   :  { %2188 = vmatprep.subr.bf16.mxu0 %v17242_v18 }
 0x132   :  { %2802 = vmatpush1.bf16.msra.mxu1 %v17258_v23 }
 0x133   :  { %2803 = vmatprep.subr.bf16.mxu1 %v17266_v24 }
 0x134   :  { %2189 = vmatpush1.bf16.msra.mxu0 %v17240_v21 }
 0x135   :  { %2190 = vmatprep.subr.bf16.mxu0 %v17245_v22 }
 0x136   :  { %2804 = vmatpush1.bf16.msra.mxu1 %v17264_v27  ;;  %v305_v27 = vrot.slane %v18843_v13, %v18856_v19 }
 0x137   :  { %2805 = vmatprep.subr.bf16.mxu1 %v17272_v28 }
 0x138   :  { %2191 = vmatpush1.bf16.msra.mxu0 %v17243_v25 }
 0x139   :  { %2192 = vmatprep.subr.bf16.mxu0 %v17251_v26 }
 0x13a   :  { %2806 = vmatpush1.bf16.msra.mxu1 %v17270_v31 }
 0x13b   :  { %2807 = vmatprep.subr.bf16.mxu1 %v17278_v32  ;;  %v17323_v32 = vld [vmem:[#allocation7 + $0x114] ss:$8 sps:$4 sm:$0xff]  }
 0x13c   :  { %2193 = vmatpush1.bf16.msra.mxu0 %v17249_v29 }
 0x13d   :  { %2194 = vmatprep.subr.bf16.mxu0 %v17257_v30  ;;  %v17315_v30 = vld [vmem:[#allocation7 + $0x100] ss:$8 sps:$4 sm:$0xff]  }
 0x13e   :  { %2808 = vmatpush1.bf16.msra.mxu1 %v17276_v35 }
 0x13f   :  { %2809 = vmatprep.subr.bf16.mxu1 %v17284_v36 }
 0x140   :  { %2195 = vmatpush1.bf16.msra.mxu0 %v17255_v33 }
 0x141   :  { %2196 = vmatprep.subr.bf16.mxu0 %v17263_v34  ;;  %v17321_v34 = vld [vmem:[#allocation7 + $0x110] ss:$8 sps:$4 sm:$0xff]  }
 0x142   :  { %2810 = vmatpush1.bf16.msra.mxu1 %v17282_v40 }
 0x143   :  { %2811 = vmatprep.subr.bf16.mxu1 %v17290_v41  ;;  %v18866_v41 = vsub.s32 5, %v18841_v1 }
 0x144   :  { %2197 = vmatpush1.bf16.msra.mxu0 %v17261_v37  ;;  %v18863_v37 = vsub.s32 4, %v18841_v1 }
 0x145   :  { %2198 = vmatprep.subr.bf16.mxu0 %v17269_v39  ;;  %v17329_v39 = vld [vmem:[#allocation7 + $0x124] ss:$8 sps:$4 sm:$0xff]  }
 0x146   :  { %2812 = vmatpush1.bf16.msra.mxu1 %v17288_v44 }
 0x147   :  { %2813 = vmatprep.subr.bf16.mxu1 %v17296_v45  ;;  %v309_v45 = vrot.slane %v18843_v13, %v18863_v37 }
 0x148   :  { %2199 = vmatpush1.bf16.msra.mxu0 %v17267_v42 }
 0x149   :  { %2200 = vmatprep.subr.bf16.mxu0 %v17275_v43  ;;  %v17327_v43 = vld [vmem:[#allocation7 + $0x120] ss:$8 sps:$4 sm:$0xff]  }
 0x14a   :  { %2814 = vmatpush1.bf16.msra.mxu1 %v17294_v48 }
 0x14b   :  { %2815 = vmatprep.subr.bf16.mxu1 %v17302_v49  ;;  %v17333_v49 = vld [vmem:[#allocation7 + $0x130] ss:$8 sps:$4 sm:$0xff]  }
 0x14c   :  { %2201 = vmatpush1.bf16.msra.mxu0 %v17273_v46  ;;  %v17335_v46 = vld [vmem:[#allocation7 + $0x134] ss:$8 sps:$4 sm:$0xff]  }
 0x14d   :  { %2202 = vmatprep.subr.bf16.mxu0 %v17281_v47  ;;  %v313_v47 = vrot.slane %v18843_v13, %v18866_v41 }
 0x14e   :  { %2816 = vmatpush1.bf16.msra.mxu1 %v17300_v52 }
 0x14f   :  { %2817 = vmatprep.subr.bf16.mxu1 %v17308_v53  ;;  %v17341_v53 = vld [vmem:[#allocation7 + $0x144] ss:$8 sps:$4 sm:$0xff]  }
 0x150   :  { %2203 = vmatpush1.bf16.msra.mxu0 %v17279_v50  ;;  %v18873_v50 = vsub.s32 7, %v18841_v1 }
 0x151   :  { %2204 = vmatprep.subr.bf16.mxu0 %v17287_v51 }
 0x152   :  { %2818 = vmatpush1.bf16.msra.mxu1 %v17306_v56 }
 0x153   :  { %2819 = vmatprep.subr.bf16.mxu1 %v17314_v58 }
 0x154   :  { %2205 = vmatpush1.bf16.msra.mxu0 %v17285_v54 }
 0x155   :  { %2206 = vmatprep.subr.bf16.mxu0 %v17293_v55 }
 0x156   :  { %2820 = vmatpush1.bf16.msra.mxu1 %v17312_v60  ;;  %v17342_v60 = vld [vmem:[#allocation7 + $0x300] ss:$8 sps:$4 sm:$0xff]  }
 0x157   :  { %2821 = vmatprep.subr.bf16.mxu1 %v17320_v61  ;;  %v321_v61 = vrot.slane %v18843_v13, %v18873_v50 }
 0x158   :  { %2207 = vmatpush1.bf16.msra.mxu0 %v17291_v57 }
 0x159   :  { %2208 = vmatprep.subr.bf16.mxu0 %v17299_v59  ;;  %v17339_v59 = vld [vmem:[#allocation7 + $0x140] ss:$8 sps:$4 sm:$0xff]  }
 0x15a   :  { %2822 = vmatpush1.bf16.msra.mxu1 %v17318_v0 }
 0x15b   :  { %2823 = vmatprep.subr.bf16.mxu1 %v17326_v2 }
 0x15c   :  { %2209 = vmatpush1.bf16.msra.mxu0 %v17297_v62  ;;  %v17347_v62 = vld [vmem:[#allocation7 + $0x154] ss:$8 sps:$4 sm:$0xff]  }
 0x15d   :  { %2210 = vmatprep.subr.bf16.mxu0 %v17305_v63  ;;  %v17350_v63 = vld [vmem:[#allocation7 + $0x314] ss:$8 sps:$4 sm:$0xff]  }
 0x15e   :  { %2824 = vmatpush1.bf16.msra.mxu1 %v17324_v5  ;;  %v17345_v5 = vld [vmem:[#allocation7 + $0x150] ss:$8 sps:$4 sm:$0xff]  }
 0x15f   :  { %2825 = vmatprep.subr.bf16.mxu1 %v17332_v6  ;;  %v17348_v6 = vld [vmem:[#allocation7 + $0x310] ss:$8 sps:$4 sm:$0xff]  }
 0x160   :  { %2211 = vmatpush1.bf16.msra.mxu0 %v17303_v3 }
 0x161   :  { %2212 = vmatprep.subr.bf16.mxu0 %v17311_v4 }
 0x162   :  { %2826 = vmatpush1.bf16.msra.mxu1 %v17330_v9  ;;  %v17353_v9 = vld [vmem:[#allocation7 + $0x164] ss:$8 sps:$4 sm:$0xff]  }
 0x163   :  { %2827 = vmatprep.subr.bf16.mxu1 %v17338_v10  ;;  %v17356_v10 = vld [vmem:[#allocation7 + $0x324] ss:$8 sps:$4 sm:$0xff]  }
 0x164   :  { %2213 = vmatpush1.bf16.msra.mxu0 %v17309_v7 }
 0x165   :  { %2223 = vmatprep.subr.bf16.mxu0 %v17317_v8 }
 0x166   :  { %2828 = vmatpush1.bf16.msra.mxu1 %v17336_v38 }
 0x167   :  { %2838 = vmatprep.subr.bf16.mxu1 %v17344_v11 }
 0x18a   :  { %v1128_v18 = vpop.f32.mrb[0].mxu0  ;;  %v18860_v31 = vpop.f32.mrb[0].mxu1 }
 0x18b   :  { %v1129_v20 = vadd.f32 %v1128_v18, %v293_v16  ;;  %v1130_v21 = vpop.f32.mrb[1].mxu0  ;;  %v1171_v33 = vpop.f32.mrb[1].mxu1  ;;  %v17354_v16 = vld [vmem:[#allocation7 + $0x320] ss:$8 sps:$4 sm:$0xff]   ;;  %v17359_v18 = vld [vmem:[#allocation7 + $0x174] ss:$8 sps:$4 sm:$0xff]  }
 0x18c   :  { %v1131_v22 = vadd.f32 %v1130_v21, %v297_v17  ;;  %v1132_v23 = vpop.f32.mrb[2].mxu0  ;;  %v1172_v35 = vadd.f32 %v1171_v33, %v305_v27  ;;  %v1173_v36 = vpop.f32.mrb[2].mxu1  ;;  %v18879_v21 = vld [vmem:[#allocation5 + $0x8] sm:$0xff]  ;;  %v18884_v27 = vsub.s32 2, %v18841_v1 }
 0x18d   :  { %v1750_v24 = vmax.f32 %v1129_v20, 0.0  ;;  %v1133_v25 = vpop.f32.mrb[3].mxu0  ;;  %v1174_v40 = vpop.f32.mrb[3].mxu1  ;;  %v17362_v20 = vld [vmem:[#allocation7 + $0x334] ss:$8 sps:$4 sm:$0xff]  }
 0x18e   :  { %v1751_v26 = vmax.f32 %v1131_v22, 0.0  ;;  %v1753_v42 = vmax.f32 %v1172_v35, 0.0  ;;  %v17357_v22 = vld [vmem:[#allocation7 + $0x170] ss:$8 sps:$4 sm:$0xff]   ;;  %v17365_v25 = vld [vmem:[#allocation7 + $0x184] ss:$8 sps:$4 sm:$0xff]  }
 0x18f   :  { %v1782_v28 = vpack.c.bf16 %v1750_v24, %v1750_v24  ;;  %v17360_v23 = vld [vmem:[#allocation7 + $0x330] ss:$8 sps:$4 sm:$0xff]   ;;  %v17363_v33 = vld [vmem:[#allocation7 + $0x180] ss:$8 sps:$4 sm:$0xff]   ;;  %v17371_v35 = vld [vmem:[#allocation7 + $0x194] ss:$8 sps:$4 sm:$0xff]  }
 0x190   :  { %v1783_v29 = vpack.c.bf16 %v1751_v26, %v1751_v26  ;;  %v1785_v44 = vpack.c.bf16 %v1753_v42, %v1753_v42  ;;  %v17368_v26 = vld [vmem:[#allocation7 + $0x344] ss:$8 sps:$4 sm:$0xff]   ;;  %v17374_v36 = vld [vmem:[#allocation7 + $0x354] ss:$8 sps:$4 sm:$0xff]  }
 0x192   :  { %2214 = vmatprep.mubr.bf16.mxu0 %v1783_v29 }
 0x193   :  { %2215 = vmatmul.mubr.bf16.vlgmr.msra.gmra.mrb[32].mxu0 %v1782_v28 }
 0x194   :  { %2224 = vmatpush1.bf16.msra.mxu0 %v17315_v30  ;;  %2255 = vmatprep.mubr.bf16.mxu0 %v1785_v44  ;;  %v333_v30 = vrot.slane %v18879_v21, %v18884_v27  ;;  %v17372_v44 = vld [vmem:[#allocation7 + $0x350] ss:$8 sps:$4 sm:$0xff]  }
 0x195   :  { %2225 = vmatprep.subr.bf16.mxu0 %v17323_v32 }
 0x198   :  { %2226 = vmatpush1.bf16.msra.mxu0 %v17321_v34  ;;  %v17366_v34 = vld [vmem:[#allocation7 + $0x340] ss:$8 sps:$4 sm:$0xff]  }
 0x199   :  { %2227 = vmatprep.subr.bf16.mxu0 %v17329_v39 }
 0x19a   :  { %v1210_v48 = vpop.f32.mrb[4].mxu0 }
 0x19b   :  { %v1211_v51 = vadd.f32 %v1210_v48, %v309_v45  ;;  %v1212_v52 = vpop.f32.mrb[5].mxu0 }
 0x19c   :  { %v1213_v54 = vadd.f32 %v1212_v52, %v313_v47  ;;  %2228 = vmatpush1.bf16.msra.mxu0 %v17327_v43  ;;  %v1214_v55 = vpop.f32.mrb[6].mxu0  ;;  %v18877_v2 = vpop.f32.mrb[4].mxu1  ;;  %v17369_v43 = vld [vmem:[#allocation7 + $0x190] ss:$8 sps:$4 sm:$0xff]   ;;  %v17380_v47 = vld [vmem:[#allocation7 + $0x364] ss:$8 sps:$4 sm:$0xff]  }
 0x19d   :  { %v1754_v56 = vmax.f32 %v1211_v51, 0.0  ;;  %v1215_v57 = vpop.f32.mrb[7].mxu0  ;;  %2229 = vmatprep.subr.bf16.mxu0 %v17335_v46  ;;  %v1253_v4 = vpop.f32.mrb[5].mxu1  ;;  %v17377_v46 = vld [vmem:[#allocation7 + $0x1a4] ss:$8 sps:$4 sm:$0xff]   ;;  %v345_v55 = vrot.slane %v18879_v21, %v18866_v41 }
 0x19e   :  { %v1755_v58 = vmax.f32 %v1213_v54, 0.0  ;;  %v1254_v7 = vadd.f32 %v1253_v4, %v321_v61  ;;  %v1255_v8 = vpop.f32.mrb[6].mxu1  ;;  %v17378_v51 = vld [vmem:[#allocation7 + $0x360] ss:$8 sps:$4 sm:$0xff]   ;;  %v17383_v52 = vld [vmem:[#allocation7 + $0x1b4] ss:$8 sps:$4 sm:$0xff]   ;;  %v341_v54 = vrot.slane %v18879_v21, %v18863_v37 }
 0x19f   :  { %v2396_v3 = vpack.c.bf16 %v1754_v56, %v1754_v56  ;;  %v1256_v38 = vpop.f32.mrb[7].mxu1  ;;  %v17381_v56 = vld [vmem:[#allocation7 + $0x1b0] ss:$8 sps:$4 sm:$0xff]   ;;  %v18899_v61 = vsub.s32 6, %v18841_v1  ;;  %v353_v1 = vrot.slane %v18879_v21, %v18873_v50  ;;  %v17395_v8 = vld [vmem:[#allocation7 + $0x1d4] ss:$8 sps:$4 sm:$0xff]  }
 0x1a0   :  { %v2397_v0 = vpack.c.bf16 %v1755_v58, %v1755_v58  ;;  %2230 = vmatpush1.bf16.msra.mxu0 %v17333_v49  ;;  %v1757_v11 = vmax.f32 %v1254_v7, 0.0  ;;  %v17375_v49 = vld [vmem:[#allocation7 + $0x1a0] ss:$8 sps:$4 sm:$0xff]   ;;  %v17384_v57 = vld [vmem:[#allocation7 + $0x370] ss:$8 sps:$4 sm:$0xff]  }
 0x1a1   :  { %2231 = vmatprep.subr.bf16.mxu0 %v17341_v53  ;;  %v17386_v53 = vld [vmem:[#allocation7 + $0x374] ss:$8 sps:$4 sm:$0xff]   ;;  %v349_v4 = vrot.slane %v18879_v21, %v18899_v61  ;;  %v17390_v7 = vld [vmem:[#allocation7 + $0x380] ss:$8 sps:$4 sm:$0xff]   ;;  %v301_v21 = vrot.slane %v18843_v13, %v18884_v27 }
 0x1a2   :  { %2829 = vmatprep.mubr.bf16.mxu1 %v2397_v0  ;;  %v2399_v17 = vpack.c.bf16 %v1757_v11, %v1757_v11 }
 0x1a3   :  { %2830 = vmatmul.mubr.bf16.vlgmr.msra.gmra.mrb[32].mxu1 %v2396_v3 }
 0x1a4   :  { %2232 = vmatpush1.bf16.msra.mxu0 %v17339_v59  ;;  %2839 = vmatpush1.bf16.msra.mxu1 %v17342_v60  ;;  %v17389_v59 = vld [vmem:[#allocation7 + $0x1c4] ss:$8 sps:$4 sm:$0xff]  }
 0x1a5   :  { %2233 = vmatprep.subr.bf16.mxu0 %v17347_v62  ;;  %2840 = vmatprep.subr.bf16.mxu1 %v17350_v63  ;;  %v17392_v60 = vld [vmem:[#allocation7 + $0x384] ss:$8 sps:$4 sm:$0xff]  }
 0x1a6   :  { %2870 = vmatprep.mubr.bf16.mxu1 %v2399_v17 }
 0x1a8   :  { %2234 = vmatpush1.bf16.msra.mxu0 %v17345_v5  ;;  %2841 = vmatpush1.bf16.msra.mxu1 %v17348_v6  ;;  %v17387_v6 = vld [vmem:[#allocation7 + $0x1c0] ss:$8 sps:$4 sm:$0xff]  }
 0x1a9   :  { %2235 = vmatprep.subr.bf16.mxu0 %v17353_v9  ;;  %2842 = vmatprep.subr.bf16.mxu1 %v17356_v10  ;;  %v17398_v9 = vld [vmem:[#allocation7 + $0x394] ss:$8 sps:$4 sm:$0xff]  }
 0x1aa   :  { %v18881_v24 = vpop.f32.mrb[8].mxu0 }
 0x1ab   :  { %v18886_v28 = vpop.f32.mrb[9].mxu0 }
 0x1ac   :  { %2236 = vmatpush1.bf16.msra.mxu0 %v17351_v12  ;;  %2843 = vmatpush1.bf16.msra.mxu1 %v17354_v16  ;;  %v1296_v29 = vpop.f32.mrb[10].mxu0  ;;  %v1333_v39 = vpop.f32.mrb[8].mxu1  ;;  %v17393_v12 = vld [vmem:[#allocation7 + $0x1d0] ss:$8 sps:$4 sm:$0xff]  }
 0x1ad   :  { %2237 = vmatprep.subr.bf16.mxu0 %v17359_v18  ;;  %2844 = vmatprep.subr.bf16.mxu1 %v17362_v20  ;;  %v1297_v32 = vpop.f32.mrb[11].mxu0  ;;  %v18890_v40 = vadd.f32 %v1333_v39, %v333_v30  ;;  %v18892_v42 = vpop.f32.mrb[9].mxu1  ;;  %v17396_v16 = vld [vmem:[#allocation7 + $0x390] ss:$8 sps:$4 sm:$0xff]   ;;  %v17401_v20 = vld [vmem:[#allocation7 + $0x1e4] ss:$8 sps:$4 sm:$0xff]  }
 0x1ae   :  { %v1337_v45 = vpop.f32.mrb[10].mxu1  ;;  %v17407_v29 = vld [vmem:[#allocation7 + $0x1f4] ss:$8 sps:$4 sm:$0xff]   ;;  %v17408_v39 = vld [vmem:[#allocation7 + $0x3b0] ss:$8 sps:$4 sm:$0xff]  }
 0x1af   :  { %v1338_v48 = vpop.f32.mrb[11].mxu1  ;;  %v17410_v30 = vld [vmem:[#allocation7 + $0x3b4] ss:$8 sps:$4 sm:$0xff]  }
 0x1b0   :  { %2238 = vmatpush1.bf16.msra.mxu0 %v17357_v22  ;;  %2845 = vmatpush1.bf16.msra.mxu1 %v17360_v23  ;;  %v17404_v22 = vld [vmem:[#allocation7 + $0x3a4] ss:$8 sps:$4 sm:$0xff]   ;;  %v18915_v32 = vld [vmem:[#allocation5 + $0x10] sm:$0xff] }
 0x1b1   :  { %2239 = vmatprep.subr.bf16.mxu0 %v17365_v25  ;;  %2846 = vmatprep.subr.bf16.mxu1 %v17368_v26  ;;  %v17399_v25 = vld [vmem:[#allocation7 + $0x1e0] ss:$8 sps:$4 sm:$0xff]  }
 0x1b2   :  { %v17402_v26 = vld [vmem:[#allocation7 + $0x3a0] ss:$8 sps:$4 sm:$0xff]  }
 0x1b4   :  { %2240 = vmatpush1.bf16.msra.mxu0 %v17363_v33  ;;  %2847 = vmatpush1.bf16.msra.mxu1 %v17366_v34  ;;  %v2884_v33 = vld [vmem:[#allocation10 + $0x400] sm:$0xff] }
 0x1b5   :  { %2241 = vmatprep.subr.bf16.mxu0 %v17371_v35  ;;  %2848 = vmatprep.subr.bf16.mxu1 %v17374_v36  ;;  %v2888_v34 = vld [vmem:[#allocation10 + $0x420] sm:$0xff]  ;;  %v1170_v35 = vadd.f32 %v18860_v31, %v301_v21  ;;  %v365_v31 = vrot.slane %v18915_v32, %v18884_v27  ;;  %v2889_v21 = vld [vmem:[#allocation10 + $0x428] sm:$0xff] }
 0x1b6   :  { %v17405_v36 = vld [vmem:[#allocation7 + $0x1f0] ss:$8 sps:$4 sm:$0xff]  }
 0x1b8   :  { %2242 = vmatpush1.bf16.msra.mxu0 %v17369_v43  ;;  %2849 = vmatpush1.bf16.msra.mxu1 %v17372_v44  ;;  %v17413_v44 = vld [vmem:[#allocation7 + $0x3c4] ss:$8 sps:$4 sm:$0xff]  }
 0x1b9   :  { %2243 = vmatprep.subr.bf16.mxu0 %v17377_v46  ;;  %2850 = vmatprep.subr.bf16.mxu1 %v17380_v47  ;;  %v2892_v46 = vld [vmem:[#allocation10 + $0x440] sm:$0xff] }
 0x1ba   :  { %v1374_v58 = vpop.f32.mrb[12].mxu0  ;;  %v2896_v47 = vld [vmem:[#allocation10 + $0x460] sm:$0xff] }
 0x1bb   :  { %v18901_v62 = vadd.f32 %v1374_v58, %v341_v54  ;;  %v1376_v63 = vpop.f32.mrb[13].mxu0  ;;  %v369_v54 = vrot.slane %v18915_v32, %v18856_v19  ;;  %v2900_v58 = vld [vmem:[#allocation10 + $0x480] sm:$0xff] }
 0x1bc   :  { %2244 = vmatpush1.bf16.msra.mxu0 %v17375_v49  ;;  %2851 = vmatpush1.bf16.msra.mxu1 %v17378_v51  ;;  %v18903_v0 = vadd.f32 %v1376_v63, %v345_v55  ;;  %v1378_v3 = vpop.f32.mrb[14].mxu0  ;;  %v1415_v10 = vpop.f32.mrb[12].mxu1  ;;  %v1752_v49 = vmax.f32 %v1170_v35, 0.0  ;;  %v15473_v51 = vcombine.high %v2884_v33, %v2888_v34  ;;  %v17416_v55 = vld [vmem:[#allocation7 + $0x3d4] ss:$8 sps:$4 sm:$0xff]  }
 0x1bd   :  { %2245 = vmatprep.subr.bf16.mxu0 %v17383_v52  ;;  %2852 = vmatprep.subr.bf16.mxu1 %v17386_v53  ;;  %v1379_v5 = vpop.f32.mrb[15].mxu0  ;;  %v18909_v38 = vadd.f32 %v1415_v10, %v349_v4  ;;  %v1417_v11 = vpop.f32.mrb[13].mxu1  ;;  %v17411_v53 = vld [vmem:[#allocation7 + $0x3c0] ss:$8 sps:$4 sm:$0xff]   ;;  %v15481_v4 = vcombine.high %v2892_v46, %v2896_v47  ;;  %v2908_v10 = vld [vmem:[#allocation10 + $0x4c0] sm:$0xff] }
 0x1be   :  { %v18911_v17 = vadd.f32 %v1417_v11, %v353_v1  ;;  %v1419_v18 = vpop.f32.mrb[14].mxu1  ;;  %v17414_v5 = vld [vmem:[#allocation7 + $0x3d0] ss:$8 sps:$4 sm:$0xff]   ;;  %v17419_v1 = vld [vmem:[#allocation7 + $0x3e4] ss:$8 sps:$4 sm:$0xff]  }
 0x1bf   :  { %v1420_v23 = vpop.f32.mrb[15].mxu1  ;;  %v2912_v11 = vld [vmem:[#allocation10 + $0x4e0] sm:$0xff]  ;;  %v17417_v18 = vld [vmem:[#allocation7 + $0x3e0] ss:$8 sps:$4 sm:$0xff]  }
 0x1c0   :  { %2246 = vmatpush1.bf16.msra.mxu0 %v17381_v56  ;;  %2853 = vmatpush1.bf16.msra.mxu1 %v17384_v57  ;;  %v15472_v57 = vcombine.low %v2884_v33, %v2888_v34  ;;  %v2885_v23 = vld [vmem:[#allocation10 + $0x408] sm:$0xff]  ;;  %v15497_v33 = vcombine.high %v2908_v10, %v2912_v11 }
 0x1c1   :  { %2247 = vmatprep.subr.bf16.mxu0 %v17389_v59  ;;  %2854 = vmatprep.subr.bf16.mxu1 %v17392_v60  ;;  %v2904_v59 = vld [vmem:[#allocation10 + $0x4a0] sm:$0xff]  ;;  %v1784_v60 = vpack.c.bf16 %v1752_v49, %v1752_v49 }
 0x1c2   :  { %v17420_v34 = vld [vmem:[#allocation7 + $0x3f0] ss:$8 sps:$4 sm:$0xff]  }
 0x1c3   :  { %v2928_v49 = vld [vmem:[#allocation10 + $0x560] sm:$0xff] }
 0x1c4   :  { %2248 = vmatpush1.bf16.msra.mxu0 %v17387_v6  ;;  %2855 = vmatpush1.bf16.msra.mxu1 %v17390_v7 }
 0x1c5   :  { %2249 = vmatprep.subr.bf16.mxu0 %v17395_v8  ;;  %2856 = vmatprep.subr.bf16.mxu1 %v17398_v9  ;;  %v15480_v9 = vcombine.low %v2892_v46, %v2896_v47  ;;  %v15496_v47 = vcombine.low %v2908_v10, %v2912_v11 }
 0x1c8   :  { %2250 = vmatpush1.bf16.msra.mxu0 %v17393_v12  ;;  %2857 = vmatpush1.bf16.msra.mxu1 %v17396_v16  ;;  %v317_v12 = vrot.slane %v18843_v13, %v18899_v61  ;;  %v15489_v16 = vcombine.high %v2900_v58, %v2904_v59 }
 0x1c9   :  { %2251 = vmatprep.subr.bf16.mxu0 %v17401_v20  ;;  %2858 = vmatprep.subr.bf16.mxu1 %v17404_v22  ;;  %v17422_v20 = vld [vmem:[#allocation7 + $0x3f4] ss:$8 sps:$4 sm:$0xff]   ;;  %v373_v22 = vrot.slane %v18915_v32, %v18863_v37 }
 0x1ca   :  { %v18918_v43 = vpop.f32.mrb[16].mxu0  ;;  %v1252_v13 = vadd.f32 %v18877_v2, %v317_v12  ;;  %v381_v2 = vrot.slane %v18915_v32, %v18899_v61 }
 0x1cb   :  { %v18920_v45 = vpop.f32.mrb[17].mxu0 }
 0x1cc   :  { %2252 = vmatpush1.bf16.msra.mxu0 %v17399_v25  ;;  %2859 = vmatpush1.bf16.msra.mxu1 %v17402_v26  ;;  %v1460_v48 = vpop.f32.mrb[18].mxu0  ;;  %v1497_v56 = vpop.f32.mrb[16].mxu1  ;;  %v15488_v25 = vcombine.low %v2900_v58, %v2904_v59  ;;  %v2916_v26 = vld [vmem:[#allocation10 + $0x500] sm:$0xff]  ;;  %v15474_v58 = vcombine.low %v2885_v23, %v2889_v21 }
 0x1cd   :  { %2253 = vmatprep.subr.bf16.mxu0 %v17407_v29  ;;  %2860 = vmatprep.subr.bf16.mxu1 %v17410_v30  ;;  %v1461_v52 = vpop.f32.mrb[19].mxu0  ;;  %v18926_v63 = vadd.f32 %v1497_v56, %v365_v31  ;;  %v1499_v3 = vpop.f32.mrb[17].mxu1  ;;  %v2920_v29 = vld [vmem:[#allocation10 + $0x520] sm:$0xff]  ;;  %v377_v30 = vrot.slane %v18915_v32, %v18866_v41  ;;  %v385_v56 = vrot.slane %v18915_v32, %v18873_v50 }
 0x1ce   :  { %v18928_v6 = vadd.f32 %v1499_v3, %v369_v54  ;;  %v1501_v7 = vpop.f32.mrb[18].mxu1  ;;  %v2924_v48 = vld [vmem:[#allocation10 + $0x540] sm:$0xff]  ;;  %v1756_v52 = vmax.f32 %v1252_v13, 0.0  ;;  %v15505_v54 = vcombine.high %v2916_v26, %v2920_v29  ;;  %v2905_v3 = vld [vmem:[#allocation10 + $0x4a8] sm:$0xff] }
 0x1cf   :  { %v1502_v8 = vpop.f32.mrb[19].mxu1  ;;  %v2936_v7 = vld [vmem:[#allocation10 + $0x5a0] sm:$0xff]  ;;  %v15513_v10 = vcombine.high %v2924_v48, %v2928_v49  ;;  %v2917_v13 = vld [vmem:[#allocation10 + $0x508] sm:$0xff] }
 0x1d0   :  { %2254 = vmatpush1.bf16.msra.mxu0 %v17405_v36  ;;  %2861 = vmatpush1.bf16.msra.mxu1 %v17408_v39  ;;  %v2893_v36 = vld [vmem:[#allocation10 + $0x448] sm:$0xff] }
 0x1d1   :  { %2862 = vmatprep.subr.bf16.mxu1 %v17413_v44  ;;  %3652 = vmatprep.subr.bf16.mxu0 %v15473_v51  ;;  %v2897_v39 = vld [vmem:[#allocation10 + $0x468] sm:$0xff] }
 0x1d2   :  { %v15483_v59 = vcombine.high %v2893_v36, %v2897_v39 }
 0x1d3   :  { %2256 = vmatmul.mubr.bf16.vlgmr.msra.gmra.mrb[32].mxu0 %v1784_v60  ;;  %v2901_v60 = vld [vmem:[#allocation10 + $0x488] sm:$0xff] }
 0x1d4   :  { %2863 = vmatpush1.bf16.msra.mxu1 %v17411_v53  ;;  %3653 = vmatpush1.bf16.msra.mxu0 %v15472_v57  ;;  %v15475_v53 = vcombine.high %v2885_v23, %v2889_v21  ;;  %v2940_v23 = vld [vmem:[#allocation10 + $0x5c0] sm:$0xff] }
 0x1d5   :  { %2864 = vmatprep.subr.bf16.mxu1 %v17416_v55  ;;  %3654 = vmatprep.subr.bf16.mxu0 %v15481_v4  ;;  %v15504_v4 = vcombine.low %v2916_v26, %v2920_v29  ;;  %v2944_v21 = vld [vmem:[#allocation10 + $0x5e0] sm:$0xff]  ;;  %v18949_v29 = vld [vmem:[#allocation5 + $0x18] sm:$0xff] }
 0x1d8   :  { %2865 = vmatpush1.bf16.msra.mxu1 %v17414_v5  ;;  %3655 = vmatpush1.bf16.msra.mxu0 %v15480_v9  ;;  %v2932_v5 = vld [vmem:[#allocation10 + $0x580] sm:$0xff] }
 0x1d9   :  { %2866 = vmatprep.subr.bf16.mxu1 %v17419_v1  ;;  %3656 = vmatprep.subr.bf16.mxu0 %v15489_v16  ;;  %v2398_v1 = vpack.c.bf16 %v1756_v52, %v1756_v52  ;;  %v15482_v16 = vcombine.low %v2893_v36, %v2897_v39  ;;  %v15521_v26 = vcombine.high %v2932_v5, %v2936_v7  ;;  %v2952_v36 = vld [vmem:[#allocation10 + $0x620] sm:$0xff]  ;;  %v2929_v52 = vld [vmem:[#allocation10 + $0x568] sm:$0xff] }
 0x1da   :  { %v1538_v35 = vpop.f32.mrb[20].mxu0 }
 0x1db   :  { %v18937_v44 = vadd.f32 %v1538_v35, %v373_v22  ;;  %v1540_v46 = vpop.f32.mrb[21].mxu0  ;;  %v15512_v22 = vcombine.low %v2924_v48, %v2928_v49  ;;  %v2948_v35 = vld [vmem:[#allocation10 + $0x600] sm:$0xff] }
 0x1dc   :  { %2867 = vmatpush1.bf16.msra.mxu1 %v17417_v18  ;;  %3657 = vmatpush1.bf16.msra.mxu0 %v15488_v25  ;;  %v18939_v31 = vadd.f32 %v1540_v46, %v377_v30  ;;  %v1542_v51 = vpop.f32.mrb[22].mxu0  ;;  %v1579_v57 = vpop.f32.mrb[20].mxu1  ;;  %v2909_v18 = vld [vmem:[#allocation10 + $0x4c8] sm:$0xff]  ;;  %v15491_v25 = vcombine.high %v2901_v60, %v2905_v3  ;;  %v15490_v30 = vcombine.low %v2901_v60, %v2905_v3 }
 0x1dd   :  { %2868 = vmatprep.subr.bf16.mxu1 %v17422_v20  ;;  %3658 = vmatprep.subr.bf16.mxu0 %v15497_v33  ;;  %v1543_v55 = vpop.f32.mrb[23].mxu0  ;;  %v18945_v8 = vadd.f32 %v1579_v57, %v381_v2  ;;  %v1581_v9 = vpop.f32.mrb[21].mxu1  ;;  %v2913_v20 = vld [vmem:[#allocation10 + $0x4e8] sm:$0xff]  ;;  %v15529_v46 = vcombine.high %v2940_v23, %v2944_v21  ;;  %v15528_v2 = vcombine.low %v2940_v23, %v2944_v21 }
 0x1de   :  { %v18947_v11 = vadd.f32 %v1581_v9, %v385_v56  ;;  %v1583_v32 = vpop.f32.mrb[22].mxu1  ;;  %v2921_v33 = vld [vmem:[#allocation10 + $0x528] sm:$0xff]  ;;  %v15499_v39 = vcombine.high %v2909_v18, %v2913_v20  ;;  %v15498_v49 = vcombine.low %v2909_v18, %v2913_v20  ;;  %v2960_v55 = vld [vmem:[#allocation10 + $0x660] sm:$0xff]  ;;  %v397_v56 = vrot.slane %v18949_v29, %v18884_v27 }
 0x1df   :  { %v1584_v12 = vpop.f32.mrb[23].mxu1  ;;  %v2925_v51 = vld [vmem:[#allocation10 + $0x548] sm:$0xff]  ;;  %v15507_v57 = vcombine.high %v2917_v13, %v2921_v33  ;;  %v401_v60 = vrot.slane %v18949_v29, %v18856_v19 }
 0x1e0   :  { %2869 = vmatpush1.bf16.msra.mxu1 %v17420_v34  ;;  %3659 = vmatpush1.bf16.msra.mxu0 %v15496_v47  ;;  %v15520_v34 = vcombine.low %v2932_v5, %v2936_v7  ;;  %v2933_v5 = vld [vmem:[#allocation10 + $0x588] sm:$0xff]  ;;  %v15515_v32 = vcombine.high %v2925_v51, %v2929_v52 }
 0x1e1   :  { %3693 = vmatprep.subr.bf16.mxu1 %v15475_v53  ;;  %3660 = vmatprep.subr.bf16.mxu0 %v15505_v54  ;;  %v2956_v54 = vld [vmem:[#allocation10 + $0x640] sm:$0xff]  ;;  %v2937_v7 = vld [vmem:[#allocation10 + $0x5a8] sm:$0xff] }
 0x1e2   :  { %v15545_v12 = vcombine.high %v2956_v54, %v2960_v55  ;;  %v2941_v23 = vld [vmem:[#allocation10 + $0x5c8] sm:$0xff] }
 0x1e3   :  { %2871 = vmatmul.mubr.bf16.vlgmr.msra.gmra.mrb[32].mxu1 %v2398_v1  ;;  %v15536_v1 = vcombine.low %v2948_v35, %v2952_v36  ;;  %v2945_v21 = vld [vmem:[#allocation10 + $0x5e8] sm:$0xff] }
 0x1e4   :  { %3694 = vmatpush1.bf16.msra.mxu1 %v15474_v58  ;;  %3661 = vmatpush1.bf16.msra.mxu0 %v15504_v4  ;;  %v15537_v58 = vcombine.high %v2948_v35, %v2952_v36  ;;  %v15506_v4 = vcombine.low %v2917_v13, %v2921_v33  ;;  %v15522_v13 = vcombine.low %v2933_v5, %v2937_v7  ;;  %v2949_v33 = vld [vmem:[#allocation10 + $0x608] sm:$0xff] }
 0x1e5   :  { %3695 = vmatprep.subr.bf16.mxu1 %v15483_v59  ;;  %3662 = vmatprep.subr.bf16.mxu0 %v15513_v10  ;;  %v409_v35 = vrot.slane %v18949_v29, %v18866_v41  ;;  %v15531_v36 = vcombine.high %v2941_v23, %v2945_v21 }
 0x1e8   :  { %3696 = vmatpush1.bf16.msra.mxu1 %v15482_v16  ;;  %3663 = vmatpush1.bf16.msra.mxu0 %v15512_v22  ;;  %v15514_v22 = vcombine.low %v2925_v51, %v2929_v52  ;;  %v15530_v51 = vcombine.low %v2941_v23, %v2945_v21  ;;  %v2957_v52 = vld [vmem:[#allocation10 + $0x648] sm:$0xff] }
 0x1e9   :  { %3697 = vmatprep.subr.bf16.mxu1 %v15491_v25  ;;  %3664 = vmatprep.subr.bf16.mxu0 %v15521_v26  ;;  %v15544_v25 = vcombine.low %v2956_v54, %v2960_v55  ;;  %v15523_v26 = vcombine.high %v2933_v5, %v2937_v7  ;;  %v413_v55 = vrot.slane %v18949_v29, %v18899_v61 }
 0x1ea   :  { %v18951_v47 = vpop.f32.mrb[24].mxu0 }
 0x1eb   :  { %v18953_v48 = vpop.f32.mrb[25].mxu0 }
 0x1ec   :  { %3698 = vmatpush1.bf16.msra.mxu1 %v15490_v30  ;;  %3665 = vmatpush1.bf16.msra.mxu0 %v15520_v34  ;;  %v1624_v53 = vpop.f32.mrb[26].mxu0  ;;  %v1661_v3 = vpop.f32.mrb[24].mxu1  ;;  %v405_v30 = vrot.slane %v18949_v29, %v18863_v37  ;;  %v2953_v34 = vld [vmem:[#allocation10 + $0x628] sm:$0xff] }
 0x1ed   :  { %3699 = vmatprep.subr.bf16.mxu1 %v15499_v39  ;;  %3666 = vmatprep.subr.bf16.mxu0 %v15529_v46  ;;  %v1625_v59 = vpop.f32.mrb[27].mxu0  ;;  %v18959_v9 = vadd.f32 %v1661_v3, %v397_v56  ;;  %v1663_v10 = vpop.f32.mrb[25].mxu1  ;;  %v15539_v56 = vcombine.high %v2949_v33, %v2953_v34 }
 0x1ee   :  { %v18961_v16 = vadd.f32 %v1663_v10, %v401_v60  ;;  %v1665_v18 = vpop.f32.mrb[26].mxu1  ;;  %v15538_v60 = vcombine.low %v2949_v33, %v2953_v34  ;;  %v2977_v34 = vld [vmem:[#allocation10 + $0x6e8] sm:$0xff] }
 0x1ef   :  { %v1666_v20 = vpop.f32.mrb[27].mxu1  ;;  %v2968_v18 = vld [vmem:[#allocation10 + $0x6a0] sm:$0xff] }
 0x1f0   :  { %3700 = vmatpush1.bf16.msra.mxu1 %v15498_v49  ;;  %3667 = vmatpush1.bf16.msra.mxu0 %v15528_v2  ;;  %v2961_v2 = vld [vmem:[#allocation10 + $0x668] sm:$0xff] }
 0x1f1   :  { %3701 = vmatprep.subr.bf16.mxu1 %v15507_v57  ;;  %3668 = vmatprep.subr.bf16.mxu0 %v15537_v58  ;;  %v417_v58 = vrot.slane %v18949_v29, %v18873_v50  ;;  %v15547_v5 = vcombine.high %v2957_v52, %v2961_v2  ;;  %v2965_v20 = vld [vmem:[#allocation10 + $0x688] sm:$0xff] }
 0x1f4   :  { %3702 = vmatpush1.bf16.msra.mxu1 %v15506_v4  ;;  %3669 = vmatpush1.bf16.msra.mxu0 %v15536_v1 }
 0x1f5   :  { %3703 = vmatprep.subr.bf16.mxu1 %v15515_v32  ;;  %3670 = vmatprep.subr.bf16.mxu0 %v15545_v12  ;;  %v15546_v32 = vcombine.low %v2957_v52, %v2961_v2  ;;  %v2964_v12 = vld [vmem:[#allocation10 + $0x680] sm:$0xff]  ;;  %v2981_v52 = vld [vmem:[#allocation10 + $0x708] sm:$0xff] }
 0x1f6   :  { %v15553_v29 = vcombine.high %v2964_v12, %v2968_v18  ;;  %v15552_v23 = vcombine.low %v2964_v12, %v2968_v18  ;;  %v2996_v12 = vld [vmem:[#allocation10 + $0x780] sm:$0xff] }
 0x1f7   :  { %v3000_v18 = vld [vmem:[#allocation10 + $0x7a0] sm:$0xff] }
 0x1f8   :  { %3704 = vmatpush1.bf16.msra.mxu1 %v15514_v22  ;;  %3671 = vmatpush1.bf16.msra.mxu0 %v15544_v25  ;;  %v2969_v22 = vld [vmem:[#allocation10 + $0x6a8] sm:$0xff] }
 0x1f9   :  { %3705 = vmatprep.subr.bf16.mxu1 %v15523_v26  ;;  %v15554_v21 = vcombine.low %v2965_v20, %v2969_v22  ;;  %v15555_v25 = vcombine.high %v2965_v20, %v2969_v22  ;;  %3672 = vmatprep.subr.bf16.mxu0 %v15553_v29  ;;  %v2972_v26 = vld [vmem:[#allocation10 + $0x6c0] sm:$0xff]  ;;  %v2997_v20 = vld [vmem:[#allocation10 + $0x788] sm:$0xff]  ;;  %v15585_v29 = vcombine.high %v2996_v12, %v3000_v18 }
 0x1fa   :  { %v1702_v39 = vpop.f32.mrb[28].mxu0  ;;  %v3001_v22 = vld [vmem:[#allocation10 + $0x7a8] sm:$0xff] }
 0x1fb   :  { %v18967_v46 = vadd.f32 %v1702_v39, %v405_v30  ;;  %v1704_v49 = vpop.f32.mrb[29].mxu0  ;;  %v2976_v30 = vld [vmem:[#allocation10 + $0x6e0] sm:$0xff] }
 0x1fc   :  { %3706 = vmatpush1.bf16.msra.mxu1 %v15522_v13  ;;  %v18969_v53 = vadd.f32 %v1704_v49, %v409_v35  ;;  %v1706_v54 = vpop.f32.mrb[30].mxu0  ;;  %v1743_v59 = vpop.f32.mrb[28].mxu1  ;;  %3673 = vmatpush1.bf16.msra.mxu0 %v15552_v23  ;;  %v2973_v13 = vld [vmem:[#allocation10 + $0x6c8] sm:$0xff]  ;;  %v15561_v33 = vcombine.high %v2972_v26, %v2976_v30  ;;  %v15560_v35 = vcombine.low %v2972_v26, %v2976_v30  ;;  %v2980_v49 = vld [vmem:[#allocation10 + $0x700] sm:$0xff] }
 0x1fd   :  { %3707 = vmatprep.subr.bf16.mxu1 %v15531_v36  ;;  %v1707_v57 = vpop.f32.mrb[31].mxu0  ;;  %v18975_v3 = vadd.f32 %v1743_v59, %v413_v55  ;;  %v1745_v4 = vpop.f32.mrb[29].mxu1  ;;  %v15562_v36 = vcombine.low %v2973_v13, %v2977_v34  ;;  %v15563_v39 = vcombine.high %v2973_v13, %v2977_v34  ;;  %v2985_v55 = vld [vmem:[#allocation10 + $0x728] sm:$0xff]  ;;  %v15584_v23 = vcombine.low %v2996_v12, %v3000_v18  ;;  %v3004_v26 = vld [vmem:[#allocation10 + $0x7c0] sm:$0xff] }
 0x1fe   :  { %v18977_v7 = vadd.f32 %v1745_v4, %v417_v58  ;;  %v1747_v1 = vpop.f32.mrb[30].mxu1  ;;  %3674 = vmatprep.subr.bf16.mxu0 %v15561_v33  ;;  %v2992_v57 = vld [vmem:[#allocation10 + $0x760] sm:$0xff]  ;;  %v15570_v58 = vcombine.low %v2981_v52, %v2985_v55  ;;  %v15571_v59 = vcombine.high %v2981_v52, %v2985_v55  ;;  %v2989_v4 = vld [vmem:[#allocation10 + $0x748] sm:$0xff]  ;;  %v2887_v52 = vld [vmem:[#allocation10 + $0x418] sm:$0xff] }
 0x1ff   :  { %v1748_v10 = vpop.f32.mrb[31].mxu1  ;;  %v3008_v30 = vld [vmem:[#allocation10 + $0x7e0] sm:$0xff]  ;;  %v3005_v13 = vld [vmem:[#allocation10 + $0x7c8] sm:$0xff] }
 0x200   :  { %3708 = vmatpush1.bf16.msra.mxu1 %v15530_v51  ;;  %3675 = vmatpush1.bf16.msra.mxu0 %v15560_v35  ;;  %v2984_v51 = vld [vmem:[#allocation10 + $0x720] sm:$0xff]  ;;  %v15593_v33 = vcombine.high %v3004_v26, %v3008_v30  ;;  %v3009_v34 = vld [vmem:[#allocation10 + $0x7e8] sm:$0xff]  ;;  %v15592_v35 = vcombine.low %v3004_v26, %v3008_v30  ;;  %v2898_v26 = vld [vmem:[#allocation10 + $0x470] sm:$0xff] }
 0x201   :  { %3709 = vmatprep.subr.bf16.mxu1 %v15539_v56  ;;  %v15568_v2 = vcombine.low %v2980_v49, %v2984_v51  ;;  %v15569_v54 = vcombine.high %v2980_v49, %v2984_v51  ;;  %v2988_v56 = vld [vmem:[#allocation10 + $0x740] sm:$0xff]  ;;  %v2886_v49 = vld [vmem:[#allocation10 + $0x410] sm:$0xff]  ;;  %v2895_v30 = vld [vmem:[#allocation10 + $0x458] sm:$0xff] }
 0x202   :  { %v15576_v10 = vcombine.low %v2988_v56, %v2992_v57  ;;  %v2890_v51 = vld [vmem:[#allocation10 + $0x430] sm:$0xff] }
 0x203   :  { %3676 = vmatprep.subr.bf16.mxu0 %v15569_v54  ;;  %v2891_v54 = vld [vmem:[#allocation10 + $0x438] sm:$0xff]  ;;  %v15476_v55 = vcombine.low %v2886_v49, %v2890_v51 }
 0x204   :  { %3710 = vmatpush1.bf16.msra.mxu1 %v15538_v60  ;;  %v15577_v60 = vcombine.high %v2988_v56, %v2992_v57  ;;  %3677 = vmatpush1.bf16.msra.mxu0 %v15568_v2  ;;  %v15477_v2 = vcombine.high %v2886_v49, %v2890_v51  ;;  %v15478_v56 = vcombine.low %v2887_v52, %v2891_v54  ;;  %v2906_v49 = vld [vmem:[#allocation10 + $0x4b0] sm:$0xff]  ;;  %v2903_v51 = vld [vmem:[#allocation10 + $0x498] sm:$0xff] }
 0x205   :  { %3711 = vmatprep.subr.bf16.mxu1 %v15547_v5  ;;  %v2993_v5 = vld [vmem:[#allocation10 + $0x768] sm:$0xff]  ;;  %v15479_v57 = vcombine.high %v2887_v52, %v2891_v54  ;;  %v2907_v52 = vld [vmem:[#allocation10 + $0x4b8] sm:$0xff] }
 0x206   :  { %v15579_v1 = vcombine.high %v2989_v4, %v2993_v5  ;;  %3678 = vmatprep.subr.bf16.mxu0 %v15577_v60 }
 0x208   :  { %3712 = vmatpush1.bf16.msra.mxu1 %v15546_v32  ;;  %v15578_v32 = vcombine.low %v2989_v4, %v2993_v5  ;;  %3679 = vmatpush1.bf16.msra.mxu0 %v15576_v10  ;;  %v2465_v5 = vld [vmem:[#allocation8 + $0x2] sm:$0x3] }
 0x209   :  { %3713 = vmatprep.subr.bf16.mxu1 %v15555_v25  ;;  %v15587_v25 = vcombine.high %v2997_v20, %v3001_v22  ;;  %3680 = vmatprep.subr.bf16.mxu0 %v15585_v29  ;;  %v2474_v10 = vrot.slane %v2465_v5, %v18849_v15 }
 0x20c   :  { %3714 = vmatpush1.bf16.msra.mxu1 %v15554_v21  ;;  %v15586_v21 = vcombine.low %v2997_v20, %v3001_v22  ;;  %3681 = vmatpush1.bf16.msra.mxu0 %v15584_v23 }
 0x20d   :  { %3715 = vmatprep.subr.bf16.mxu1 %v15563_v39  ;;  %v15595_v39 = vcombine.high %v3005_v13, %v3009_v34  ;;  %3682 = vmatprep.subr.bf16.mxu0 %v15593_v33 }
 0x210   :  { %3716 = vmatpush1.bf16.msra.mxu1 %v15562_v36  ;;  %v15594_v36 = vcombine.low %v3005_v13, %v3009_v34  ;;  %3683 = vmatpush1.bf16.msra.mxu0 %v15592_v35  ;;  %v2899_v13 = vld [vmem:[#allocation10 + $0x478] sm:$0xff]  ;;  %v2902_v35 = vld [vmem:[#allocation10 + $0x490] sm:$0xff] }
 0x211   :  { %3717 = vmatprep.subr.bf16.mxu1 %v15571_v59  ;;  %3734 = vmatprep.subr.bf16.mxu0 %v15477_v2  ;;  %v15486_v54 = vcombine.low %v2895_v30, %v2899_v13 }
 0x214   :  { %3718 = vmatpush1.bf16.msra.mxu1 %v15570_v58 }
 0x215   :  { %3719 = vmatprep.subr.bf16.mxu1 %v15579_v1  ;;  %v2470_v1 = vrot.slane %v2465_v5, %v18846_v14  ;;  %v2914_v5 = vld [vmem:[#allocation10 + $0x4f0] sm:$0xff] }
 0x218   :  { %3720 = vmatpush1.bf16.msra.mxu1 %v15578_v32 }
 0x219   :  { %3721 = vmatprep.subr.bf16.mxu1 %v15587_v25  ;;  %v2894_v25 = vld [vmem:[#allocation10 + $0x450] sm:$0xff] }
 0x21a   :  { %v15484_v2 = vcombine.low %v2894_v25, %v2898_v26 }
 0x21c   :  { %3722 = vmatpush1.bf16.msra.mxu1 %v15586_v21 }
 0x21d   :  { %3723 = vmatprep.subr.bf16.mxu1 %v15595_v39  ;;  %v15487_v39 = vcombine.high %v2895_v30, %v2899_v13  ;;  %v2926_v30 = vld [vmem:[#allocation10 + $0x550] sm:$0xff] }
 0x21e   :  { %v2930_v13 = vld [vmem:[#allocation10 + $0x570] sm:$0xff] }
 0x220   :  { %3724 = vmatpush1.bf16.msra.mxu1 %v15594_v36  ;;  %v15485_v36 = vcombine.high %v2894_v25, %v2898_v26 }
 0x221   :  { %3775 = vmatprep.subr.bf16.mxu1 %v15479_v57  ;;  %v15493_v57 = vcombine.high %v2902_v35, %v2906_v49 }
 0x2a6   :  { %v18979_v58 = vpop.f32.mrb[32].mxu0 }
 0x2a7   :  { %v18981_v59 = vpop.f32.mrb[33].mxu0 }
 0x2a8   :  { %v2261_v60 = vpop.f32.mrb[34].mxu0 }
 0x2a9   :  { %v2262_v4 = vpop.f32.mrb[35].mxu0  ;;  %v15495_v60 = vcombine.high %v2903_v51, %v2907_v52 }
 0x2aa   :  { %v2910_v4 = vld [vmem:[#allocation10 + $0x4d0] sm:$0xff] }
 0x2b6   :  { %v2872_v32 = vpop.f32.mrb[32].mxu1 }
 0x2b7   :  { %v17140_v12 = vadd.f32 %v2872_v32, %v2470_v1  ;;  %v2874_v18 = vpop.f32.mrb[33].mxu1  ;;  %v2911_v1 = vld [vmem:[#allocation10 + $0x4d8] sm:$0xff]  ;;  %v15492_v32 = vcombine.low %v2902_v35, %v2906_v49  ;;  %v15517_v49 = vcombine.high %v2926_v30, %v2930_v13 }
 0x2b8   :  { %v17141_v20 = vadd.f32 %v2874_v18, %v2474_v10  ;;  %v2876_v29 = vpop.f32.mrb[34].mxu1  ;;  %v2915_v10 = vld [vmem:[#allocation10 + $0x4f8] sm:$0xff]  ;;  %v2918_v18 = vld [vmem:[#allocation10 + $0x510] sm:$0xff] }
 0x2b9   :  { %v2879_v22 = vmax.f32 %v17140_v12, 0.0  ;;  %v2877_v23 = vpop.f32.mrb[35].mxu1  ;;  %v15494_v12 = vcombine.low %v2903_v51, %v2907_v52  ;;  %v2919_v29 = vld [vmem:[#allocation10 + $0x518] sm:$0xff]  ;;  %v2934_v52 = vld [vmem:[#allocation10 + $0x590] sm:$0xff] }
 0x2ba   :  { %v2880_v21 = vmax.f32 %v17141_v20, 0.0  ;;  %v2922_v20 = vld [vmem:[#allocation10 + $0x530] sm:$0xff]  ;;  %v15500_v23 = vcombine.low %v2910_v4, %v2914_v5  ;;  %v2931_v35 = vld [vmem:[#allocation10 + $0x578] sm:$0xff] }
 0x2bb   :  { %v18985_v34 = vpack.c.bf16 %v2879_v22, %v2879_v22  ;;  %v2923_v22 = vld [vmem:[#allocation10 + $0x538] sm:$0xff]  ;;  %v15509_v25 = vcombine.high %v2918_v18, %v2922_v20 }
 0x2bc   :  { %v2882_v33 = vpack.c.bf16 %v2880_v21, %v2880_v21  ;;  %v15502_v21 = vcombine.low %v2911_v1, %v2915_v10  ;;  %v15511_v26 = vcombine.high %v2919_v29, %v2923_v22 }
 0x2be   :  { %3684 = vmatprep.mubr.bf16.mxu0 %v2882_v33  ;;  %3725 = vmatprep.mubr.bf16.mxu1 %v2882_v33 }
 0x2bf   :  { %3685 = vmatmul.mubr.bf16.vlgmr.msra.gmra.mrb[36].mxu0 %v18985_v34  ;;  %3726 = vmatmul.mubr.bf16.vlgmr.msra.gmra.mrb[36].mxu1 %v18985_v34 }
 0x2c0   :  { %3735 = vmatpush1.bf16.msra.mxu0 %v15476_v55  ;;  %3776 = vmatpush1.bf16.msra.mxu1 %v15478_v56  ;;  %v15501_v55 = vcombine.high %v2910_v4, %v2914_v5  ;;  %v15503_v56 = vcombine.high %v2911_v1, %v2915_v10  ;;  %v2942_v10 = vld [vmem:[#allocation10 + $0x5d0] sm:$0xff] }
 0x2c1   :  { %3766 = vmatprep.mubr.bf16.mxu0 %v2882_v33  ;;  %3807 = vmatprep.mubr.bf16.mxu1 %v2882_v33  ;;  %v2927_v33 = vld [vmem:[#allocation10 + $0x558] sm:$0xff] }
 0x2c2   :  { %3736 = vmatprep.subr.bf16.mxu0 %v15485_v36  ;;  %3777 = vmatprep.subr.bf16.mxu1 %v15487_v39  ;;  %v15508_v36 = vcombine.low %v2918_v18, %v2922_v20  ;;  %v15510_v39 = vcombine.low %v2919_v29, %v2923_v22  ;;  %v15519_v51 = vcombine.high %v2927_v33, %v2931_v35  ;;  %v2950_v22 = vld [vmem:[#allocation10 + $0x610] sm:$0xff] }
 0x2c3   :  { %v15518_v4 = vcombine.low %v2927_v33, %v2931_v35  ;;  %v2958_v35 = vld [vmem:[#allocation10 + $0x650] sm:$0xff] }
 0x2c4   :  { %3737 = vmatpush1.bf16.msra.mxu0 %v15484_v2  ;;  %3778 = vmatpush1.bf16.msra.mxu1 %v15486_v54  ;;  %v2938_v2 = vld [vmem:[#allocation10 + $0x5b0] sm:$0xff]  ;;  %v2935_v54 = vld [vmem:[#allocation10 + $0x598] sm:$0xff] }
 0x2c5   :  { %3738 = vmatprep.subr.bf16.mxu0 %v15493_v57  ;;  %3779 = vmatprep.subr.bf16.mxu1 %v15495_v60  ;;  %v2939_v57 = vld [vmem:[#allocation10 + $0x5b8] sm:$0xff]  ;;  %v15516_v60 = vcombine.low %v2926_v30, %v2930_v13  ;;  %v15525_v5 = vcombine.high %v2934_v52, %v2938_v2 }
 0x2c6   :  { %v15527_v1 = vcombine.high %v2935_v54, %v2939_v57  ;;  %v15526_v18 = vcombine.low %v2935_v54, %v2939_v57  ;;  %v2966_v57 = vld [vmem:[#allocation10 + $0x690] sm:$0xff] }
 0x2c8   :  { %3739 = vmatpush1.bf16.msra.mxu0 %v15492_v32  ;;  %3780 = vmatpush1.bf16.msra.mxu1 %v15494_v12  ;;  %v2946_v32 = vld [vmem:[#allocation10 + $0x5f0] sm:$0xff]  ;;  %v2943_v12 = vld [vmem:[#allocation10 + $0x5d8] sm:$0xff] }
 0x2c9   :  { %3740 = vmatprep.subr.bf16.mxu0 %v15501_v55  ;;  %3781 = vmatprep.subr.bf16.mxu1 %v15503_v56  ;;  %v2947_v55 = vld [vmem:[#allocation10 + $0x5f8] sm:$0xff]  ;;  %v15524_v56 = vcombine.low %v2934_v52, %v2938_v2  ;;  %v15533_v20 = vcombine.high %v2942_v10, %v2946_v32 }
 0x2ca   :  { %v15535_v29 = vcombine.high %v2943_v12, %v2947_v55  ;;  %v15534_v30 = vcombine.low %v2943_v12, %v2947_v55  ;;  %v2974_v55 = vld [vmem:[#allocation10 + $0x6d0] sm:$0xff] }
 0x2cc   :  { %3741 = vmatpush1.bf16.msra.mxu0 %v15500_v23  ;;  %3782 = vmatpush1.bf16.msra.mxu1 %v15502_v21  ;;  %v2954_v23 = vld [vmem:[#allocation10 + $0x630] sm:$0xff]  ;;  %v2951_v21 = vld [vmem:[#allocation10 + $0x618] sm:$0xff] }
 0x2cd   :  { %3742 = vmatprep.subr.bf16.mxu0 %v15509_v25  ;;  %3783 = vmatprep.subr.bf16.mxu1 %v15511_v26  ;;  %v2955_v25 = vld [vmem:[#allocation10 + $0x638] sm:$0xff]  ;;  %v15532_v26 = vcombine.low %v2942_v10, %v2946_v32  ;;  %v15541_v13 = vcombine.high %v2950_v22, %v2954_v23 }
 0x2ce   :  { %v15543_v33 = vcombine.high %v2951_v21, %v2955_v25  ;;  %v15542_v52 = vcombine.low %v2951_v21, %v2955_v25  ;;  %v2982_v25 = vld [vmem:[#allocation10 + $0x710] sm:$0xff] }
 0x2d0   :  { %3743 = vmatpush1.bf16.msra.mxu0 %v15508_v36  ;;  %3784 = vmatpush1.bf16.msra.mxu1 %v15510_v39  ;;  %v2962_v36 = vld [vmem:[#allocation10 + $0x670] sm:$0xff]  ;;  %v2959_v39 = vld [vmem:[#allocation10 + $0x658] sm:$0xff] }
 0x2d1   :  { %3744 = vmatprep.subr.bf16.mxu0 %v15517_v49  ;;  %3785 = vmatprep.subr.bf16.mxu1 %v15519_v51  ;;  %v2963_v49 = vld [vmem:[#allocation10 + $0x678] sm:$0xff]  ;;  %v15540_v51 = vcombine.low %v2950_v22, %v2954_v23  ;;  %v15549_v2 = vcombine.high %v2958_v35, %v2962_v36 }
 0x2d2   :  { %v15551_v54 = vcombine.high %v2959_v39, %v2963_v49  ;;  %v15550_v10 = vcombine.low %v2959_v39, %v2963_v49  ;;  %v2990_v49 = vld [vmem:[#allocation10 + $0x750] sm:$0xff] }
 0x2d4   :  { %3745 = vmatpush1.bf16.msra.mxu0 %v15516_v60  ;;  %3786 = vmatpush1.bf16.msra.mxu1 %v15518_v4  ;;  %v2970_v60 = vld [vmem:[#allocation10 + $0x6b0] sm:$0xff]  ;;  %v2967_v4 = vld [vmem:[#allocation10 + $0x698] sm:$0xff] }
 0x2d5   :  { %3746 = vmatprep.subr.bf16.mxu0 %v15525_v5  ;;  %3787 = vmatprep.subr.bf16.mxu1 %v15527_v1  ;;  %v2971_v5 = vld [vmem:[#allocation10 + $0x6b8] sm:$0xff]  ;;  %v15548_v1 = vcombine.low %v2958_v35, %v2962_v36  ;;  %v15557_v32 = vcombine.high %v2966_v57, %v2970_v60 }
 0x2d6   :  { %v15559_v12 = vcombine.high %v2967_v4, %v2971_v5  ;;  %v15558_v22 = vcombine.low %v2967_v4, %v2971_v5  ;;  %v2998_v5 = vld [vmem:[#allocation10 + $0x790] sm:$0xff] }
 0x2d8   :  { %3747 = vmatpush1.bf16.msra.mxu0 %v15524_v56  ;;  %3788 = vmatpush1.bf16.msra.mxu1 %v15526_v18  ;;  %v2978_v56 = vld [vmem:[#allocation10 + $0x6f0] sm:$0xff]  ;;  %v2975_v18 = vld [vmem:[#allocation10 + $0x6d8] sm:$0xff] }
 0x2d9   :  { %3748 = vmatprep.subr.bf16.mxu0 %v15533_v20  ;;  %3789 = vmatprep.subr.bf16.mxu1 %v15535_v29  ;;  %v2979_v20 = vld [vmem:[#allocation10 + $0x6f8] sm:$0xff]  ;;  %v15556_v29 = vcombine.low %v2966_v57, %v2970_v60  ;;  %v15565_v23 = vcombine.high %v2974_v55, %v2978_v56 }
 0x2da   :  { %v15567_v21 = vcombine.high %v2975_v18, %v2979_v20  ;;  %v15566_v35 = vcombine.low %v2975_v18, %v2979_v20 }
 0x2dc   :  { %3749 = vmatpush1.bf16.msra.mxu0 %v15532_v26  ;;  %3790 = vmatpush1.bf16.msra.mxu1 %v15534_v30  ;;  %v2986_v26 = vld [vmem:[#allocation10 + $0x730] sm:$0xff]  ;;  %v2983_v30 = vld [vmem:[#allocation10 + $0x718] sm:$0xff] }
 0x2dd   :  { %3750 = vmatprep.subr.bf16.mxu0 %v15541_v13  ;;  %3791 = vmatprep.subr.bf16.mxu1 %v15543_v33  ;;  %v2987_v13 = vld [vmem:[#allocation10 + $0x738] sm:$0xff]  ;;  %v15564_v33 = vcombine.low %v2974_v55, %v2978_v56  ;;  %v15573_v36 = vcombine.high %v2982_v25, %v2986_v26 }
 0x2de   :  { %v15575_v39 = vcombine.high %v2983_v30, %v2987_v13  ;;  %v15574_v57 = vcombine.low %v2983_v30, %v2987_v13 }
 0x2e0   :  { %3751 = vmatpush1.bf16.msra.mxu0 %v15540_v51  ;;  %3792 = vmatpush1.bf16.msra.mxu1 %v15542_v52  ;;  %v2994_v51 = vld [vmem:[#allocation10 + $0x770] sm:$0xff]  ;;  %v2991_v52 = vld [vmem:[#allocation10 + $0x758] sm:$0xff] }
 0x2e1   :  { %3752 = vmatprep.subr.bf16.mxu0 %v15549_v2  ;;  %3793 = vmatprep.subr.bf16.mxu1 %v15551_v54  ;;  %v2995_v2 = vld [vmem:[#allocation10 + $0x778] sm:$0xff]  ;;  %v15572_v54 = vcombine.low %v2982_v25, %v2986_v26  ;;  %v15581_v60 = vcombine.high %v2990_v49, %v2994_v51  ;;  %v15580_v55 = vcombine.low %v2990_v49, %v2994_v51  ;;  %v2269_v49 = vld [vmem:[#allocation10 + $0x8] sm:$0xff] }
 0x2e2   :  { %v15583_v4 = vcombine.high %v2991_v52, %v2995_v2  ;;  %v15582_v56 = vcombine.low %v2991_v52, %v2995_v2  ;;  %v3011_v25 = vld [vmem:[#allocation10 + $0x7f8] sm:$0xff]  ;;  %v2273_v51 = vld [vmem:[#allocation10 + $0x28] sm:$0xff] }
 0x2e4   :  { %3753 = vmatpush1.bf16.msra.mxu0 %v15548_v1  ;;  %3794 = vmatpush1.bf16.msra.mxu1 %v15550_v10  ;;  %v3002_v1 = vld [vmem:[#allocation10 + $0x7b0] sm:$0xff]  ;;  %v2999_v10 = vld [vmem:[#allocation10 + $0x798] sm:$0xff] }
 0x2e5   :  { %3754 = vmatprep.subr.bf16.mxu0 %v15557_v32  ;;  %3795 = vmatprep.subr.bf16.mxu1 %v15559_v12  ;;  %v3003_v32 = vld [vmem:[#allocation10 + $0x7b8] sm:$0xff]  ;;  %v18989_v12 = vld [vmem:[#allocation8] sm:$0x3]  ;;  %v15589_v18 = vcombine.high %v2998_v5, %v3002_v1  ;;  %v15588_v26 = vcombine.low %v2998_v5, %v3002_v1  ;;  %v2280_v5 = vld [vmem:[#allocation10 + $0x60] sm:$0xff] }
 0x2e6   :  { %v15591_v20 = vcombine.high %v2999_v10, %v3003_v32  ;;  %v15590_v30 = vcombine.low %v2999_v10, %v3003_v32  ;;  %v2277_v1 = vld [vmem:[#allocation10 + $0x48] sm:$0xff] }
 0x2e7   :  { %v2281_v10 = vld [vmem:[#allocation10 + $0x68] sm:$0xff] }
 0x2e8   :  { %3755 = vmatpush1.bf16.msra.mxu0 %v15556_v29  ;;  %3796 = vmatpush1.bf16.msra.mxu1 %v15558_v22  ;;  %v3006_v29 = vld [vmem:[#allocation10 + $0x7d0] sm:$0xff]  ;;  %v1859_v22 = vrot.slane %v18989_v12, %v18849_v15 }
 0x2e9   :  { %3756 = vmatprep.subr.bf16.mxu0 %v15565_v23  ;;  %3797 = vmatprep.subr.bf16.mxu1 %v15567_v21  ;;  %v3010_v23 = vld [vmem:[#allocation10 + $0x7f0] sm:$0xff]  ;;  %v3007_v21 = vld [vmem:[#allocation10 + $0x7d8] sm:$0xff] }
 0x2ea   :  { %v15597_v13 = vcombine.high %v3006_v29, %v3010_v23  ;;  %v15596_v52 = vcombine.low %v3006_v29, %v3010_v23  ;;  %v15598_v2 = vcombine.low %v3007_v21, %v3011_v25  ;;  %v2288_v29 = vld [vmem:[#allocation10 + $0xa0] sm:$0xff]  ;;  %v2289_v23 = vld [vmem:[#allocation10 + $0xa8] sm:$0xff] }
 0x2ec   :  { %3757 = vmatpush1.bf16.msra.mxu0 %v15564_v33  ;;  %3798 = vmatpush1.bf16.msra.mxu1 %v15566_v35  ;;  %v15599_v33 = vcombine.high %v3007_v21, %v3011_v25  ;;  %v2268_v35 = vld [vmem:[#allocation10] sm:$0xff]  ;;  %v15610_v25 = vcombine.low %v2277_v1, %v2281_v10 }
 0x2ed   :  { %3758 = vmatprep.subr.bf16.mxu0 %v15573_v36  ;;  %3799 = vmatprep.subr.bf16.mxu1 %v15575_v39  ;;  %v17139_v36 = vadd.f32 %v18981_v59, %v1859_v22  ;;  %v2272_v39 = vld [vmem:[#allocation10 + $0x20] sm:$0xff]  ;;  %v15602_v59 = vcombine.low %v2269_v49, %v2273_v51  ;;  %v2285_v22 = vld [vmem:[#allocation10 + $0x88] sm:$0xff] }
 0x2ee   :  { %v15600_v32 = vcombine.low %v2268_v35, %v2272_v39 }
 0x2f0   :  { %3759 = vmatpush1.bf16.msra.mxu0 %v15572_v54  ;;  %3800 = vmatpush1.bf16.msra.mxu1 %v15574_v57  ;;  %v15601_v54 = vcombine.high %v2268_v35, %v2272_v39  ;;  %v15603_v57 = vcombine.high %v2269_v49, %v2273_v51  ;;  %v2293_v35 = vld [vmem:[#allocation10 + $0xc8] sm:$0xff]  ;;  %v15618_v39 = vcombine.low %v2285_v22, %v2289_v23 }
 0x2f1   :  { %3760 = vmatprep.subr.bf16.mxu0 %v15581_v60  ;;  %3801 = vmatprep.subr.bf16.mxu1 %v15583_v4  ;;  %v2265_v60 = vmax.f32 %v17139_v36, 0.0  ;;  %v2276_v4 = vld [vmem:[#allocation10 + $0x40] sm:$0xff]  ;;  %v2297_v36 = vld [vmem:[#allocation10 + $0xe8] sm:$0xff] }
 0x2f2   :  { %v15608_v21 = vcombine.low %v2276_v4, %v2280_v5  ;;  %v15627_v51 = vcombine.high %v2293_v35, %v2297_v36 }
 0x2f4   :  { %3761 = vmatpush1.bf16.msra.mxu0 %v15580_v55  ;;  %3802 = vmatpush1.bf16.msra.mxu1 %v15582_v56  ;;  %v18994_v55 = vpack.c.bf16 %v2265_v60, %v2265_v60  ;;  %v15609_v56 = vcombine.high %v2276_v4, %v2280_v5  ;;  %v15626_v4 = vcombine.low %v2293_v35, %v2297_v36  ;;  %v2324_v36 = vld [vmem:[#allocation10 + $0x1c0] sm:$0xff] }
 0x2f5   :  { %3762 = vmatprep.subr.bf16.mxu0 %v15589_v18  ;;  %3803 = vmatprep.subr.bf16.mxu1 %v15591_v20  ;;  %v15611_v18 = vcombine.high %v2277_v1, %v2281_v10  ;;  %v2284_v20 = vld [vmem:[#allocation10 + $0x80] sm:$0xff] }
 0x2f6   :  { %v2308_v10 = vld [vmem:[#allocation10 + $0x140] sm:$0xff] }
 0x2f8   :  { %3763 = vmatpush1.bf16.msra.mxu0 %v15588_v26  ;;  %3804 = vmatpush1.bf16.msra.mxu1 %v15590_v30  ;;  %v15617_v26 = vcombine.high %v2284_v20, %v2288_v29  ;;  %v15619_v30 = vcombine.high %v2285_v22, %v2289_v23  ;;  %v2316_v23 = vld [vmem:[#allocation10 + $0x180] sm:$0xff] }
 0x2f9   :  { %3764 = vmatprep.subr.bf16.mxu0 %v15597_v13  ;;  %3805 = vmatprep.subr.bf16.mxu1 %v15599_v33  ;;  %v2292_v13 = vld [vmem:[#allocation10 + $0xc0] sm:$0xff] }
 0x2fa   :  { %v2296_v33 = vld [vmem:[#allocation10 + $0xe0] sm:$0xff] }
 0x2fb   :  { %v15625_v49 = vcombine.high %v2292_v13, %v2296_v33  ;;  %v15624_v60 = vcombine.low %v2292_v13, %v2296_v33 }
 0x2fc   :  { %3765 = vmatpush1.bf16.msra.mxu0 %v15596_v52  ;;  %3806 = vmatpush1.bf16.msra.mxu1 %v15598_v2  ;;  %v2300_v52 = vld [vmem:[#allocation10 + $0x100] sm:$0xff] }
 0x2fd   :  { %4456 = vmatprep.subr.bf16.mxu0 %v15601_v54  ;;  %4497 = vmatprep.subr.bf16.mxu1 %v15603_v57  ;;  %v2304_v2 = vld [vmem:[#allocation10 + $0x120] sm:$0xff]  ;;  %v2301_v54 = vld [vmem:[#allocation10 + $0x108] sm:$0xff] }
 0x2fe   :  { %v2305_v57 = vld [vmem:[#allocation10 + $0x128] sm:$0xff]  ;;  %v15633_v5 = vcombine.high %v2300_v52, %v2304_v2 }
 0x2ff   :  { %3767 = vmatmul.mubr.bf16.vlgmr.msra.gmra.mrb[40].mxu0 %v18985_v34  ;;  %3808 = vmatmul.mubr.bf16.vlgmr.msra.gmra.mrb[40].mxu1 %v18985_v34  ;;  %v15616_v34 = vcombine.low %v2284_v20, %v2288_v29  ;;  %v15635_v1 = vcombine.high %v2301_v54, %v2305_v57  ;;  %v15634_v20 = vcombine.low %v2301_v54, %v2305_v57  ;;  %v2332_v57 = vld [vmem:[#allocation10 + $0x200] sm:$0xff] }
 0x300   :  { %4457 = vmatpush1.bf16.msra.mxu0 %v15600_v32  ;;  %4488 = vmatprep.mubr.bf16.mxu0 %v18994_v55  ;;  %v2312_v32 = vld [vmem:[#allocation10 + $0x160] sm:$0xff] }
 0x301   :  { %4498 = vmatpush1.bf16.msra.mxu1 %v15602_v59  ;;  %4529 = vmatprep.mubr.bf16.mxu1 %v18994_v55  ;;  %v2309_v59 = vld [vmem:[#allocation10 + $0x148] sm:$0xff]  ;;  %v15641_v29 = vcombine.high %v2308_v10, %v2312_v32 }
 0x302   :  { %4458 = vmatprep.subr.bf16.mxu0 %v15609_v56  ;;  %4499 = vmatprep.subr.bf16.mxu1 %v15611_v18  ;;  %v2313_v56 = vld [vmem:[#allocation10 + $0x168] sm:$0xff]  ;;  %v15632_v18 = vcombine.low %v2300_v52, %v2304_v2 }
 0x303   :  { %v15643_v22 = vcombine.high %v2309_v59, %v2313_v56  ;;  %v15642_v13 = vcombine.low %v2309_v59, %v2313_v56  ;;  %v2340_v56 = vld [vmem:[#allocation10 + $0x240] sm:$0xff] }
 0x304   :  { %4459 = vmatpush1.bf16.msra.mxu0 %v15608_v21  ;;  %v2320_v21 = vld [vmem:[#allocation10 + $0x1a0] sm:$0xff] }
 0x305   :  { %4500 = vmatpush1.bf16.msra.mxu1 %v15610_v25  ;;  %4460 = vmatprep.subr.bf16.mxu0 %v15617_v26  ;;  %v2317_v25 = vld [vmem:[#allocation10 + $0x188] sm:$0xff]  ;;  %v15649_v33 = vcombine.high %v2316_v23, %v2320_v21 }
 0x306   :  { %4501 = vmatprep.subr.bf16.mxu1 %v15619_v30  ;;  %v2321_v26 = vld [vmem:[#allocation10 + $0x1a8] sm:$0xff]  ;;  %v15640_v30 = vcombine.low %v2308_v10, %v2312_v32 }
 0x307   :  { %v15651_v35 = vcombine.high %v2317_v25, %v2321_v26  ;;  %v15650_v52 = vcombine.low %v2317_v25, %v2321_v26  ;;  %v2348_v26 = vld [vmem:[#allocation10 + $0x280] sm:$0xff] }
 0x308   :  { %4461 = vmatpush1.bf16.msra.mxu0 %v15616_v34  ;;  %v2328_v34 = vld [vmem:[#allocation10 + $0x1e0] sm:$0xff] }
 0x309   :  { %4502 = vmatpush1.bf16.msra.mxu1 %v15618_v39  ;;  %4462 = vmatprep.subr.bf16.mxu0 %v15625_v49  ;;  %v2325_v39 = vld [vmem:[#allocation10 + $0x1c8] sm:$0xff]  ;;  %v15657_v2 = vcombine.high %v2324_v36, %v2328_v34 }
 0x30a   :  { %4503 = vmatprep.subr.bf16.mxu1 %v15627_v51  ;;  %v2329_v49 = vld [vmem:[#allocation10 + $0x1e8] sm:$0xff]  ;;  %v15648_v51 = vcombine.low %v2316_v23, %v2320_v21 }
 0x30b   :  { %v15659_v54 = vcombine.high %v2325_v39, %v2329_v49  ;;  %v15658_v10 = vcombine.low %v2325_v39, %v2329_v49  ;;  %v2356_v49 = vld [vmem:[#allocation10 + $0x2c0] sm:$0xff] }
 0x30c   :  { %4463 = vmatpush1.bf16.msra.mxu0 %v15624_v60  ;;  %v2336_v60 = vld [vmem:[#allocation10 + $0x220] sm:$0xff] }
 0x30d   :  { %4504 = vmatpush1.bf16.msra.mxu1 %v15626_v4  ;;  %4464 = vmatprep.subr.bf16.mxu0 %v15633_v5  ;;  %v2333_v4 = vld [vmem:[#allocation10 + $0x208] sm:$0xff]  ;;  %v15665_v32 = vcombine.high %v2332_v57, %v2336_v60 }
 0x30e   :  { %4505 = vmatprep.subr.bf16.mxu1 %v15635_v1  ;;  %v2337_v5 = vld [vmem:[#allocation10 + $0x228] sm:$0xff]  ;;  %v15656_v1 = vcombine.low %v2324_v36, %v2328_v34 }
 0x30f   :  { %v15667_v59 = vcombine.high %v2333_v4, %v2337_v5  ;;  %v15666_v23 = vcombine.low %v2333_v4, %v2337_v5  ;;  %v2364_v5 = vld [vmem:[#allocation10 + $0x300] sm:$0xff] }
 0x310   :  { %4465 = vmatpush1.bf16.msra.mxu0 %v15632_v18  ;;  %v2344_v18 = vld [vmem:[#allocation10 + $0x260] sm:$0xff] }
 0x311   :  { %4506 = vmatpush1.bf16.msra.mxu1 %v15634_v20  ;;  %4466 = vmatprep.subr.bf16.mxu0 %v15641_v29  ;;  %v2341_v20 = vld [vmem:[#allocation10 + $0x248] sm:$0xff]  ;;  %v15673_v21 = vcombine.high %v2340_v56, %v2344_v18 }
 0x312   :  { %4507 = vmatprep.subr.bf16.mxu1 %v15643_v22  ;;  %v2345_v29 = vld [vmem:[#allocation10 + $0x268] sm:$0xff]  ;;  %v15664_v22 = vcombine.low %v2332_v57, %v2336_v60 }
 0x313   :  { %v15675_v25 = vcombine.high %v2341_v20, %v2345_v29  ;;  %v15674_v36 = vcombine.low %v2341_v20, %v2345_v29  ;;  %v2372_v29 = vld [vmem:[#allocation10 + $0x340] sm:$0xff] }
 0x314   :  { %4467 = vmatpush1.bf16.msra.mxu0 %v15640_v30  ;;  %v2352_v30 = vld [vmem:[#allocation10 + $0x2a0] sm:$0xff] }
 0x315   :  { %4508 = vmatpush1.bf16.msra.mxu1 %v15642_v13  ;;  %4468 = vmatprep.subr.bf16.mxu0 %v15649_v33  ;;  %v2349_v13 = vld [vmem:[#allocation10 + $0x288] sm:$0xff]  ;;  %v15681_v34 = vcombine.high %v2348_v26, %v2352_v30 }
 0x316   :  { %4509 = vmatprep.subr.bf16.mxu1 %v15651_v35  ;;  %v2353_v33 = vld [vmem:[#allocation10 + $0x2a8] sm:$0xff]  ;;  %v15672_v35 = vcombine.low %v2340_v56, %v2344_v18 }
 0x317   :  { %v15683_v39 = vcombine.high %v2349_v13, %v2353_v33  ;;  %v15682_v57 = vcombine.low %v2349_v13, %v2353_v33  ;;  %v2380_v33 = vld [vmem:[#allocation10 + $0x380] sm:$0xff] }
 0x318   :  { %4469 = vmatpush1.bf16.msra.mxu0 %v15648_v51  ;;  %v2360_v51 = vld [vmem:[#allocation10 + $0x2e0] sm:$0xff] }
 0x319   :  { %4510 = vmatpush1.bf16.msra.mxu1 %v15650_v52  ;;  %4470 = vmatprep.subr.bf16.mxu0 %v15657_v2  ;;  %v2357_v52 = vld [vmem:[#allocation10 + $0x2c8] sm:$0xff]  ;;  %v15689_v60 = vcombine.high %v2356_v49, %v2360_v51 }
 0x31a   :  { %4511 = vmatprep.subr.bf16.mxu1 %v15659_v54  ;;  %v2361_v2 = vld [vmem:[#allocation10 + $0x2e8] sm:$0xff]  ;;  %v15680_v54 = vcombine.low %v2348_v26, %v2352_v30 }
 0x31b   :  { %v15691_v4 = vcombine.high %v2357_v52, %v2361_v2  ;;  %v15690_v56 = vcombine.low %v2357_v52, %v2361_v2 }
 0x31c   :  { %4471 = vmatpush1.bf16.msra.mxu0 %v15656_v1  ;;  %v2368_v1 = vld [vmem:[#allocation10 + $0x320] sm:$0xff] }
 0x31d   :  { %4512 = vmatpush1.bf16.msra.mxu1 %v15658_v10  ;;  %4472 = vmatprep.subr.bf16.mxu0 %v15665_v32  ;;  %v2365_v10 = vld [vmem:[#allocation10 + $0x308] sm:$0xff]  ;;  %v15697_v18 = vcombine.high %v2364_v5, %v2368_v1 }
 0x31e   :  { %4513 = vmatprep.subr.bf16.mxu1 %v15667_v59  ;;  %v2369_v32 = vld [vmem:[#allocation10 + $0x328] sm:$0xff]  ;;  %v15688_v59 = vcombine.low %v2356_v49, %v2360_v51  ;;  %v1855_v49 = vrot.slane %v18989_v12, %v18846_v14 }
 0x31f   :  { %v15699_v20 = vcombine.high %v2365_v10, %v2369_v32  ;;  %v15698_v26 = vcombine.low %v2365_v10, %v2369_v32 }
 0x320   :  { %4473 = vmatpush1.bf16.msra.mxu0 %v15664_v22  ;;  %v2376_v22 = vld [vmem:[#allocation10 + $0x360] sm:$0xff] }
 0x321   :  { %4514 = vmatpush1.bf16.msra.mxu1 %v15666_v23  ;;  %4474 = vmatprep.subr.bf16.mxu0 %v15673_v21  ;;  %v2373_v23 = vld [vmem:[#allocation10 + $0x348] sm:$0xff]  ;;  %v15705_v30 = vcombine.high %v2372_v29, %v2376_v22 }
 0x322   :  { %4515 = vmatprep.subr.bf16.mxu1 %v15675_v25  ;;  %v2377_v21 = vld [vmem:[#allocation10 + $0x368] sm:$0xff]  ;;  %v15696_v25 = vcombine.low %v2364_v5, %v2368_v1  ;;  %v17138_v1 = vadd.f32 %v18979_v58, %v1855_v49  ;;  %v2278_v58 = vld [vmem:[#allocation10 + $0x50] sm:$0xff] }
 0x323   :  { %v15707_v13 = vcombine.high %v2373_v23, %v2377_v21  ;;  %v15706_v51 = vcombine.low %v2373_v23, %v2377_v21  ;;  %v2290_v49 = vld [vmem:[#allocation10 + $0xb0] sm:$0xff] }
 0x324   :  { %4475 = vmatpush1.bf16.msra.mxu0 %v15672_v35  ;;  %v2384_v35 = vld [vmem:[#allocation10 + $0x3a0] sm:$0xff] }
 0x325   :  { %4516 = vmatpush1.bf16.msra.mxu1 %v15674_v36  ;;  %4476 = vmatprep.subr.bf16.mxu0 %v15681_v34  ;;  %v2381_v36 = vld [vmem:[#allocation10 + $0x388] sm:$0xff]  ;;  %v15713_v52 = vcombine.high %v2380_v33, %v2384_v35  ;;  %v15712_v5 = vcombine.low %v2380_v33, %v2384_v35  ;;  %v2283_v33 = vld [vmem:[#allocation10 + $0x78] sm:$0xff] }
 0x326   :  { %4517 = vmatprep.subr.bf16.mxu1 %v15683_v39  ;;  %v2385_v34 = vld [vmem:[#allocation10 + $0x3a8] sm:$0xff]  ;;  %v15704_v39 = vcombine.low %v2372_v29, %v2376_v22  ;;  %v2264_v22 = vmax.f32 %v17138_v1, 0.0  ;;  %v2298_v1 = vld [vmem:[#allocation10 + $0xf0] sm:$0xff] }
 0x327   :  { %v15715_v2 = vcombine.high %v2381_v36, %v2385_v34  ;;  %v15714_v10 = vcombine.low %v2381_v36, %v2385_v34 }
 0x328   :  { %4477 = vmatpush1.bf16.msra.mxu0 %v15680_v54  ;;  %v2388_v54 = vld [vmem:[#allocation10 + $0x3c0] sm:$0xff]  ;;  %v19003_v35 = vpack.c.bf16 %v2264_v22, %v2264_v22  ;;  %v2303_v22 = vld [vmem:[#allocation10 + $0x118] sm:$0xff] }
 0x329   :  { %4518 = vmatpush1.bf16.msra.mxu1 %v15682_v57  ;;  %4478 = vmatprep.subr.bf16.mxu0 %v15689_v60  ;;  %v2392_v57 = vld [vmem:[#allocation10 + $0x3e0] sm:$0xff]  ;;  %v2389_v60 = vld [vmem:[#allocation10 + $0x3c8] sm:$0xff] }
 0x32a   :  { %4519 = vmatprep.subr.bf16.mxu1 %v15691_v4  ;;  %v2393_v4 = vld [vmem:[#allocation10 + $0x3e8] sm:$0xff]  ;;  %v15721_v32 = vcombine.high %v2388_v54, %v2392_v57  ;;  %v15720_v29 = vcombine.low %v2388_v54, %v2392_v57 }
 0x32b   :  { %v15723_v12 = vcombine.high %v2389_v60, %v2393_v4  ;;  %v15722_v23 = vcombine.low %v2389_v60, %v2393_v4 }
 0x32c   :  { %4479 = vmatpush1.bf16.msra.mxu0 %v15688_v59  ;;  %v2270_v59 = vld [vmem:[#allocation10 + $0x10] sm:$0xff] }
 0x32d   :  { %4520 = vmatpush1.bf16.msra.mxu1 %v15690_v56  ;;  %4480 = vmatprep.subr.bf16.mxu0 %v15697_v18  ;;  %v2274_v56 = vld [vmem:[#allocation10 + $0x30] sm:$0xff]  ;;  %v2271_v18 = vld [vmem:[#allocation10 + $0x18] sm:$0xff] }
 0x32e   :  { %4521 = vmatprep.subr.bf16.mxu1 %v15699_v20  ;;  %v2275_v20 = vld [vmem:[#allocation10 + $0x38] sm:$0xff]  ;;  %v15605_v21 = vcombine.high %v2270_v59, %v2274_v56 }
 0x32f   :  { %v15606_v36 = vcombine.low %v2271_v18, %v2275_v20 }
 0x330   :  { %4481 = vmatpush1.bf16.msra.mxu0 %v15696_v25  ;;  %v15607_v25 = vcombine.high %v2271_v18, %v2275_v20  ;;  %v2302_v20 = vld [vmem:[#allocation10 + $0x110] sm:$0xff] }
 0x331   :  { %4522 = vmatpush1.bf16.msra.mxu1 %v15698_v26  ;;  %4482 = vmatprep.subr.bf16.mxu0 %v15705_v30  ;;  %v2282_v26 = vld [vmem:[#allocation10 + $0x70] sm:$0xff]  ;;  %v15604_v30 = vcombine.low %v2270_v59, %v2274_v56 }
 0x332   :  { %4523 = vmatprep.subr.bf16.mxu1 %v15707_v13  ;;  %v2279_v13 = vld [vmem:[#allocation10 + $0x58] sm:$0xff]  ;;  %v15613_v34 = vcombine.high %v2278_v58, %v2282_v26  ;;  %v15612_v54 = vcombine.low %v2278_v58, %v2282_v26  ;;  %v2310_v26 = vld [vmem:[#allocation10 + $0x150] sm:$0xff] }
 0x333   :  { %v15614_v57 = vcombine.low %v2279_v13, %v2283_v33 }
 0x334   :  { %4483 = vmatpush1.bf16.msra.mxu0 %v15704_v39  ;;  %v2286_v39 = vld [vmem:[#allocation10 + $0x90] sm:$0xff] }
 0x335   :  { %4524 = vmatpush1.bf16.msra.mxu1 %v15706_v51  ;;  %4484 = vmatprep.subr.bf16.mxu0 %v15713_v52  ;;  %v15615_v51 = vcombine.high %v2279_v13, %v2283_v33  ;;  %v2287_v52 = vld [vmem:[#allocation10 + $0x98] sm:$0xff]  ;;  %v15621_v60 = vcombine.high %v2286_v39, %v2290_v49 }
 0x336   :  { %4525 = vmatprep.subr.bf16.mxu1 %v15715_v2  ;;  %v2291_v2 = vld [vmem:[#allocation10 + $0xb8] sm:$0xff] }
 0x337   :  { %v15623_v4 = vcombine.high %v2287_v52, %v2291_v2  ;;  %v15622_v59 = vcombine.low %v2287_v52, %v2291_v2  ;;  %v2311_v13 = vld [vmem:[#allocation10 + $0x158] sm:$0xff]  ;;  %v2322_v52 = vld [vmem:[#allocation10 + $0x1b0] sm:$0xff] }
 0x338   :  { %4485 = vmatpush1.bf16.msra.mxu0 %v15712_v5  ;;  %v2294_v5 = vld [vmem:[#allocation10 + $0xd0] sm:$0xff]  ;;  %v2315_v33 = vld [vmem:[#allocation10 + $0x178] sm:$0xff] }
 0x339   :  { %4526 = vmatpush1.bf16.msra.mxu1 %v15714_v10  ;;  %4486 = vmatprep.subr.bf16.mxu0 %v15721_v32  ;;  %v2295_v10 = vld [vmem:[#allocation10 + $0xd8] sm:$0xff]  ;;  %v15629_v56 = vcombine.high %v2294_v5, %v2298_v1 }
 0x33a   :  { %4527 = vmatprep.subr.bf16.mxu1 %v15723_v12  ;;  %v2299_v32 = vld [vmem:[#allocation10 + $0xf8] sm:$0xff]  ;;  %v15620_v12 = vcombine.low %v2286_v39, %v2290_v49  ;;  %v15647_v49 = vcombine.high %v2311_v13, %v2315_v33 }
 0x33b   :  { %v15631_v18 = vcombine.high %v2295_v10, %v2299_v32  ;;  %v2319_v2 = vld [vmem:[#allocation10 + $0x198] sm:$0xff] }
 0x33c   :  { %4487 = vmatpush1.bf16.msra.mxu0 %v15720_v29  ;;  %v2306_v29 = vld [vmem:[#allocation10 + $0x130] sm:$0xff] }
 0x33d   :  { %4528 = vmatpush1.bf16.msra.mxu1 %v15722_v23  ;;  %4538 = vmatprep.subr.bf16.mxu0 %v15605_v21  ;;  %v2307_v23 = vld [vmem:[#allocation10 + $0x138] sm:$0xff]  ;;  %v15630_v21 = vcombine.low %v2295_v10, %v2299_v32  ;;  %v2330_v10 = vld [vmem:[#allocation10 + $0x1f0] sm:$0xff] }
 0x33e   :  { %4579 = vmatprep.subr.bf16.mxu1 %v15607_v25  ;;  %v15637_v25 = vcombine.high %v2302_v20, %v2306_v29  ;;  %v15639_v58 = vcombine.high %v2303_v22, %v2307_v23  ;;  %v2327_v32 = vld [vmem:[#allocation10 + $0x1d8] sm:$0xff] }
 0x33f   :  { %4489 = vmatmul.mubr.bf16.vlgmr.msra.gmra.mrb[44].mxu0 %v19003_v35 }
 0x340   :  { %4530 = vmatmul.mubr.bf16.vlgmr.msra.gmra.mrb[44].mxu1 %v19003_v35  ;;  %4539 = vmatpush1.bf16.msra.mxu0 %v15604_v30  ;;  %v2314_v30 = vld [vmem:[#allocation10 + $0x170] sm:$0xff] }
 0x341   :  { %4570 = vmatprep.mubr.bf16.mxu0 %v18994_v55  ;;  %4580 = vmatpush1.bf16.msra.mxu1 %v15606_v36  ;;  %v15636_v36 = vcombine.low %v2302_v20, %v2306_v29  ;;  %v15645_v39 = vcombine.high %v2310_v26, %v2314_v30  ;;  %v2334_v29 = vld [vmem:[#allocation10 + $0x210] sm:$0xff] }
 0x342   :  { %4611 = vmatprep.mubr.bf16.mxu1 %v18994_v55  ;;  %4540 = vmatprep.subr.bf16.mxu0 %v15613_v34  ;;  %v15628_v55 = vcombine.low %v2294_v5, %v2298_v1  ;;  %v15638_v34 = vcombine.low %v2303_v22, %v2307_v23  ;;  %v2326_v1 = vld [vmem:[#allocation10 + $0x1d0] sm:$0xff]  ;;  %v2335_v23 = vld [vmem:[#allocation10 + $0x218] sm:$0xff] }
 0x343   :  { %4581 = vmatprep.subr.bf16.mxu1 %v15615_v51  ;;  %v2318_v51 = vld [vmem:[#allocation10 + $0x190] sm:$0xff] }
 0x344   :  { %4541 = vmatpush1.bf16.msra.mxu0 %v15612_v54  ;;  %v2323_v54 = vld [vmem:[#allocation10 + $0x1b8] sm:$0xff]  ;;  %v2338_v22 = vld [vmem:[#allocation10 + $0x230] sm:$0xff] }
 0x345   :  { %4582 = vmatpush1.bf16.msra.mxu1 %v15614_v57  ;;  %4542 = vmatprep.subr.bf16.mxu0 %v15621_v60  ;;  %v15644_v57 = vcombine.low %v2310_v26, %v2314_v30  ;;  %v15646_v60 = vcombine.low %v2311_v13, %v2315_v33  ;;  %v15655_v5 = vcombine.high %v2319_v2, %v2323_v54  ;;  %v2342_v30 = vld [vmem:[#allocation10 + $0x250] sm:$0xff]  ;;  %v2343_v33 = vld [vmem:[#allocation10 + $0x258] sm:$0xff] }
 0x346   :  { %4583 = vmatprep.subr.bf16.mxu1 %v15623_v4  ;;  %v15653_v4 = vcombine.high %v2318_v51, %v2322_v52  ;;  %v2346_v13 = vld [vmem:[#allocation10 + $0x270] sm:$0xff] }
 0x348   :  { %4543 = vmatpush1.bf16.msra.mxu0 %v15620_v12  ;;  %v2331_v12 = vld [vmem:[#allocation10 + $0x1f8] sm:$0xff] }
 0x349   :  { %4584 = vmatpush1.bf16.msra.mxu1 %v15622_v59  ;;  %4544 = vmatprep.subr.bf16.mxu0 %v15629_v56  ;;  %v15652_v59 = vcombine.low %v2318_v51, %v2322_v52  ;;  %v15654_v56 = vcombine.low %v2319_v2, %v2323_v54  ;;  %v15663_v20 = vcombine.high %v2327_v32, %v2331_v12  ;;  %v2350_v52 = vld [vmem:[#allocation10 + $0x290] sm:$0xff]  ;;  %v2351_v54 = vld [vmem:[#allocation10 + $0x298] sm:$0xff] }
 0x34a   :  { %4585 = vmatprep.subr.bf16.mxu1 %v15631_v18  ;;  %v15661_v18 = vcombine.high %v2326_v1, %v2330_v10  ;;  %v2354_v2 = vld [vmem:[#allocation10 + $0x2b0] sm:$0xff] }
 0x34c   :  { %4545 = vmatpush1.bf16.msra.mxu0 %v15628_v55  ;;  %v2339_v55 = vld [vmem:[#allocation10 + $0x238] sm:$0xff] }
 0x34d   :  { %4586 = vmatpush1.bf16.msra.mxu1 %v15630_v21  ;;  %4546 = vmatprep.subr.bf16.mxu0 %v15637_v25  ;;  %v15660_v21 = vcombine.low %v2326_v1, %v2330_v10  ;;  %v15662_v25 = vcombine.low %v2327_v32, %v2331_v12  ;;  %v15671_v26 = vcombine.high %v2335_v23, %v2339_v55  ;;  %v2358_v10 = vld [vmem:[#allocation10 + $0x2d0] sm:$0xff]  ;;  %v2359_v12 = vld [vmem:[#allocation10 + $0x2d8] sm:$0xff] }
 0x34e   :  { %4587 = vmatprep.subr.bf16.mxu1 %v15639_v58  ;;  %v15669_v58 = vcombine.high %v2334_v29, %v2338_v22  ;;  %v2362_v32 = vld [vmem:[#allocation10 + $0x2f0] sm:$0xff] }
 0x350   :  { %4547 = vmatpush1.bf16.msra.mxu0 %v15636_v36  ;;  %v2347_v36 = vld [vmem:[#allocation10 + $0x278] sm:$0xff] }
 0x351   :  { %4588 = vmatpush1.bf16.msra.mxu1 %v15638_v34  ;;  %4548 = vmatprep.subr.bf16.mxu0 %v15645_v39  ;;  %v15668_v34 = vcombine.low %v2334_v29, %v2338_v22  ;;  %v15670_v39 = vcombine.low %v2335_v23, %v2339_v55  ;;  %v15679_v51 = vcombine.high %v2343_v33, %v2347_v36  ;;  %v2366_v22 = vld [vmem:[#allocation10 + $0x310] sm:$0xff]  ;;  %v2367_v55 = vld [vmem:[#allocation10 + $0x318] sm:$0xff] }
 0x352   :  { %4589 = vmatprep.subr.bf16.mxu1 %v15647_v49  ;;  %v15677_v49 = vcombine.high %v2342_v30, %v2346_v13  ;;  %v2370_v23 = vld [vmem:[#allocation10 + $0x330] sm:$0xff] }
 0x354   :  { %4549 = vmatpush1.bf16.msra.mxu0 %v15644_v57  ;;  %v2355_v57 = vld [vmem:[#allocation10 + $0x2b8] sm:$0xff] }
 0x355   :  { %4590 = vmatpush1.bf16.msra.mxu1 %v15646_v60  ;;  %4550 = vmatprep.subr.bf16.mxu0 %v15653_v4  ;;  %v15676_v60 = vcombine.low %v2342_v30, %v2346_v13  ;;  %v15678_v4 = vcombine.low %v2343_v33, %v2347_v36  ;;  %v15687_v1 = vcombine.high %v2351_v54, %v2355_v57  ;;  %v2374_v13 = vld [vmem:[#allocation10 + $0x350] sm:$0xff]  ;;  %v2375_v36 = vld [vmem:[#allocation10 + $0x358] sm:$0xff] }
 0x356   :  { %4591 = vmatprep.subr.bf16.mxu1 %v15655_v5  ;;  %v15685_v5 = vcombine.high %v2350_v52, %v2354_v2  ;;  %v2378_v33 = vld [vmem:[#allocation10 + $0x370] sm:$0xff] }
 0x358   :  { %4551 = vmatpush1.bf16.msra.mxu0 %v15652_v59  ;;  %v2363_v59 = vld [vmem:[#allocation10 + $0x2f8] sm:$0xff] }
 0x359   :  { %4592 = vmatpush1.bf16.msra.mxu1 %v15654_v56  ;;  %4552 = vmatprep.subr.bf16.mxu0 %v15661_v18  ;;  %v15684_v56 = vcombine.low %v2350_v52, %v2354_v2  ;;  %v15686_v18 = vcombine.low %v2351_v54, %v2355_v57  ;;  %v15695_v29 = vcombine.high %v2359_v12, %v2363_v59  ;;  %v2382_v2 = vld [vmem:[#allocation10 + $0x390] sm:$0xff]  ;;  %v2383_v57 = vld [vmem:[#allocation10 + $0x398] sm:$0xff] }
 0x35a   :  { %4593 = vmatprep.subr.bf16.mxu1 %v15663_v20  ;;  %v15693_v20 = vcombine.high %v2358_v10, %v2362_v32  ;;  %v2386_v54 = vld [vmem:[#allocation10 + $0x3b0] sm:$0xff] }
 0x35c   :  { %4553 = vmatpush1.bf16.msra.mxu0 %v15660_v21  ;;  %v2371_v21 = vld [vmem:[#allocation10 + $0x338] sm:$0xff] }
 0x35d   :  { %4594 = vmatpush1.bf16.msra.mxu1 %v15662_v25  ;;  %4554 = vmatprep.subr.bf16.mxu0 %v15669_v58  ;;  %v15692_v25 = vcombine.low %v2358_v10, %v2362_v32  ;;  %v15694_v58 = vcombine.low %v2359_v12, %v2363_v59  ;;  %v15703_v30 = vcombine.high %v2367_v55, %v2371_v21  ;;  %v2390_v32 = vld [vmem:[#allocation10 + $0x3d0] sm:$0xff]  ;;  %v19009_v59 = vld [vmem:[#allocation5 + $0x8] sm:$0xff] }
 0x35e   :  { %4595 = vmatprep.subr.bf16.mxu1 %v15671_v26  ;;  %v15701_v26 = vcombine.high %v2366_v22, %v2370_v23  ;;  %v2394_v12 = vld [vmem:[#allocation10 + $0x3f0] sm:$0xff] }
 0x360   :  { %4555 = vmatpush1.bf16.msra.mxu0 %v15668_v34  ;;  %v2379_v34 = vld [vmem:[#allocation10 + $0x378] sm:$0xff] }
 0x361   :  { %4596 = vmatpush1.bf16.msra.mxu1 %v15670_v39  ;;  %4556 = vmatprep.subr.bf16.mxu0 %v15677_v49  ;;  %v15700_v39 = vcombine.low %v2366_v22, %v2370_v23  ;;  %v15702_v49 = vcombine.low %v2367_v55, %v2371_v21  ;;  %v15711_v52 = vcombine.high %v2375_v36, %v2379_v34 }
 0x362   :  { %4597 = vmatprep.subr.bf16.mxu1 %v15679_v51  ;;  %v15709_v51 = vcombine.high %v2374_v13, %v2378_v33  ;;  %v15725_v23 = vcombine.high %v2390_v32, %v2394_v12 }
 0x364   :  { %4557 = vmatpush1.bf16.msra.mxu0 %v15676_v60  ;;  %v2387_v60 = vld [vmem:[#allocation10 + $0x3b8] sm:$0xff] }
 0x365   :  { %4598 = vmatpush1.bf16.msra.mxu1 %v15678_v4  ;;  %4558 = vmatprep.subr.bf16.mxu0 %v15685_v5  ;;  %v15708_v4 = vcombine.low %v2374_v13, %v2378_v33  ;;  %v15710_v5 = vcombine.low %v2375_v36, %v2379_v34  ;;  %v15719_v10 = vcombine.high %v2383_v57, %v2387_v60  ;;  %v17423_v13 = vld [vmem:[#allocation7 + $0x400] ss:$8 sps:$4 sm:$0xff]   ;;  %v17428_v33 = vld [vmem:[#allocation7 + $0x414] ss:$8 sps:$4 sm:$0xff]   ;;  %v17431_v34 = vld [vmem:[#allocation7 + $0x424] ss:$8 sps:$4 sm:$0xff]  }
 0x366   :  { %4599 = vmatprep.subr.bf16.mxu1 %v15687_v1  ;;  %v15717_v1 = vcombine.high %v2382_v2, %v2386_v54  ;;  %v15718_v22 = vcombine.low %v2383_v57, %v2387_v60  ;;  %v17438_v57 = vld [vmem:[#allocation7 + $0x450] ss:$8 sps:$4 sm:$0xff]  }
 0x368   :  { %4559 = vmatpush1.bf16.msra.mxu0 %v15684_v56  ;;  %v329_v56 = vrot.slane %v19009_v59, %v18849_v15 }
 0x369   :  { %4600 = vmatpush1.bf16.msra.mxu1 %v15686_v18  ;;  %4560 = vmatprep.subr.bf16.mxu0 %v15693_v20  ;;  %v2391_v18 = vld [vmem:[#allocation10 + $0x3d8] sm:$0xff] }
 0x36a   :  { %4601 = vmatprep.subr.bf16.mxu1 %v15695_v29  ;;  %v2395_v20 = vld [vmem:[#allocation10 + $0x3f8] sm:$0xff]  ;;  %v15716_v29 = vcombine.low %v2382_v2, %v2386_v54  ;;  %v1295_v21 = vadd.f32 %v18886_v28, %v329_v56  ;;  %v17426_v28 = vld [vmem:[#allocation7 + $0x410] ss:$8 sps:$4 sm:$0xff]   ;;  %v17440_v54 = vld [vmem:[#allocation7 + $0x454] ss:$8 sps:$4 sm:$0xff]  }
 0x36b   :  { %v15727_v55 = vcombine.high %v2391_v18, %v2395_v20  ;;  %v17435_v2 = vld [vmem:[#allocation7 + $0x440] ss:$8 sps:$4 sm:$0xff]  }
 0x36c   :  { %4561 = vmatpush1.bf16.msra.mxu0 %v15692_v25  ;;  %v15724_v25 = vcombine.low %v2390_v32, %v2394_v12  ;;  %v17441_v12 = vld [vmem:[#allocation7 + $0x460] ss:$8 sps:$4 sm:$0xff]  }
 0x36d   :  { %4602 = vmatpush1.bf16.msra.mxu1 %v15694_v58  ;;  %4562 = vmatprep.subr.bf16.mxu0 %v15701_v26  ;;  %v15726_v58 = vcombine.low %v2391_v18, %v2395_v20  ;;  %v17425_v26 = vld [vmem:[#allocation7 + $0x404] ss:$8 sps:$4 sm:$0xff]   ;;  %v17446_v20 = vld [vmem:[#allocation7 + $0x474] ss:$8 sps:$4 sm:$0xff]  }
 0x36e   :  { %4603 = vmatprep.subr.bf16.mxu1 %v15703_v30  ;;  %v1759_v30 = vmax.f32 %v1295_v21, 0.0  ;;  %v17450_v21 = vld [vmem:[#allocation7 + $0x490] ss:$8 sps:$4 sm:$0xff]  }
 0x370   :  { %4563 = vmatpush1.bf16.msra.mxu0 %v15700_v39  ;;  %v4621_v36 = vpack.c.bf16 %v1759_v30, %v1759_v30  ;;  %v17429_v39 = vld [vmem:[#allocation7 + $0x420] ss:$8 sps:$4 sm:$0xff]   ;;  %v17456_v30 = vld [vmem:[#allocation7 + $0x4b0] ss:$8 sps:$4 sm:$0xff]  }
 0x371   :  { %4604 = vmatpush1.bf16.msra.mxu1 %v15702_v49  ;;  %4564 = vmatprep.subr.bf16.mxu0 %v15709_v51  ;;  %v17434_v49 = vld [vmem:[#allocation7 + $0x434] ss:$8 sps:$4 sm:$0xff]   ;;  %v17432_v51 = vld [vmem:[#allocation7 + $0x430] ss:$8 sps:$4 sm:$0xff]  }
 0x372   :  { %4605 = vmatprep.subr.bf16.mxu1 %v15711_v52  ;;  %v17437_v52 = vld [vmem:[#allocation7 + $0x444] ss:$8 sps:$4 sm:$0xff]  }
 0x374   :  { %4565 = vmatpush1.bf16.msra.mxu0 %v15708_v4 }
 0x375   :  { %4606 = vmatpush1.bf16.msra.mxu1 %v15710_v5  ;;  %4566 = vmatprep.subr.bf16.mxu0 %v15717_v1 }
 0x376   :  { %4607 = vmatprep.subr.bf16.mxu1 %v15719_v10 }
 0x378   :  { %4567 = vmatpush1.bf16.msra.mxu0 %v15716_v29  ;;  %v17444_v29 = vld [vmem:[#allocation7 + $0x470] ss:$8 sps:$4 sm:$0xff]  }
 0x379   :  { %4608 = vmatpush1.bf16.msra.mxu1 %v15718_v22  ;;  %4568 = vmatprep.subr.bf16.mxu0 %v15725_v23  ;;  %v17449_v22 = vld [vmem:[#allocation7 + $0x484] ss:$8 sps:$4 sm:$0xff]   ;;  %v17447_v23 = vld [vmem:[#allocation7 + $0x480] ss:$8 sps:$4 sm:$0xff]  }
 0x37a   :  { %4609 = vmatprep.subr.bf16.mxu1 %v15727_v55  ;;  %v17452_v55 = vld [vmem:[#allocation7 + $0x494] ss:$8 sps:$4 sm:$0xff]  }
 0x37c   :  { %4569 = vmatpush1.bf16.msra.mxu0 %v15724_v25  ;;  %v17455_v25 = vld [vmem:[#allocation7 + $0x4a4] ss:$8 sps:$4 sm:$0xff]  }
 0x37d   :  { %4610 = vmatpush1.bf16.msra.mxu1 %v15726_v58  ;;  %5021 = vmatprep.subr.bf16.mxu0 %v17425_v26  ;;  %v17453_v58 = vld [vmem:[#allocation7 + $0x4a0] ss:$8 sps:$4 sm:$0xff]   ;;  %v17458_v26 = vld [vmem:[#allocation7 + $0x4b4] ss:$8 sps:$4 sm:$0xff]  }
 0x37f   :  { %4571 = vmatmul.mubr.bf16.vlgmr.msra.gmra.mrb[48].mxu0 %v19003_v35 }
 0x380   :  { %4612 = vmatmul.mubr.bf16.vlgmr.msra.gmra.mrb[48].mxu1 %v19003_v35  ;;  %5022 = vmatpush1.bf16.msra.mxu0 %v17423_v13  ;;  %v17443_v35 = vld [vmem:[#allocation7 + $0x464] ss:$8 sps:$4 sm:$0xff]  }
 0x381   :  { %5053 = vmatprep.mubr.bf16.mxu0 %v4621_v36  ;;  %5023 = vmatprep.subr.bf16.mxu0 %v17428_v33  ;;  %v17461_v13 = vld [vmem:[#allocation7 + $0x4c4] ss:$8 sps:$4 sm:$0xff]   ;;  %v17459_v33 = vld [vmem:[#allocation7 + $0x4c0] ss:$8 sps:$4 sm:$0xff]   ;;  %v17464_v36 = vld [vmem:[#allocation7 + $0x4d4] ss:$8 sps:$4 sm:$0xff]  }
 0x384   :  { %5024 = vmatpush1.bf16.msra.mxu0 %v17426_v28  ;;  %v17462_v28 = vld [vmem:[#allocation7 + $0x4d0] ss:$8 sps:$4 sm:$0xff]  }
 0x385   :  { %5025 = vmatprep.subr.bf16.mxu0 %v17431_v34  ;;  %v325_v34 = vrot.slane %v19009_v59, %v18846_v14 }
 0x388   :  { %5026 = vmatpush1.bf16.msra.mxu0 %v17429_v39  ;;  %v17467_v39 = vld [vmem:[#allocation7 + $0x4e4] ss:$8 sps:$4 sm:$0xff]  }
 0x389   :  { %5027 = vmatprep.subr.bf16.mxu0 %v17434_v49  ;;  %v337_v49 = vrot.slane %v19009_v59, %v18856_v19 }
 0x38c   :  { %5028 = vmatpush1.bf16.msra.mxu0 %v17432_v51  ;;  %v17465_v51 = vld [vmem:[#allocation7 + $0x4e0] ss:$8 sps:$4 sm:$0xff]  }
 0x38d   :  { %5029 = vmatprep.subr.bf16.mxu0 %v17437_v52  ;;  %v1293_v52 = vadd.f32 %v18881_v24, %v325_v34  ;;  %v17474_v24 = vld [vmem:[#allocation7 + $0x510] ss:$8 sps:$4 sm:$0xff]   ;;  %v17489_v34 = vld [vmem:[#allocation7 + $0x560] ss:$8 sps:$4 sm:$0xff]  }
 0x390   :  { %5030 = vmatpush1.bf16.msra.mxu0 %v17435_v2  ;;  %v17470_v2 = vld [vmem:[#allocation7 + $0x4f4] ss:$8 sps:$4 sm:$0xff]  }
 0x391   :  { %5031 = vmatprep.subr.bf16.mxu0 %v17440_v54  ;;  %v1336_v54 = vadd.f32 %v18892_v42, %v337_v49  ;;  %v17477_v42 = vld [vmem:[#allocation7 + $0x520] ss:$8 sps:$4 sm:$0xff]  }
 0x392   :  { %v19016_v60 = vpop.f32.mrb[36].mxu0  ;;  %v19018_v4 = vpop.f32.mrb[36].mxu1 }
 0x393   :  { %v19020_v5 = vpop.f32.mrb[37].mxu0  ;;  %v19022_v1 = vpop.f32.mrb[37].mxu1 }
 0x394   :  { %5032 = vmatpush1.bf16.msra.mxu0 %v17438_v57  ;;  %v3690_v10 = vpop.f32.mrb[38].mxu0  ;;  %v3731_v32 = vpop.f32.mrb[38].mxu1  ;;  %v17468_v57 = vld [vmem:[#allocation7 + $0x4f0] ss:$8 sps:$4 sm:$0xff]  }
 0x395   :  { %v3691_v56 = vpop.f32.mrb[39].mxu0  ;;  %v3732_v18 = vpop.f32.mrb[39].mxu1  ;;  %5033 = vmatprep.subr.bf16.mxu0 %v17443_v35  ;;  %v1758_v35 = vmax.f32 %v1293_v52, 0.0  ;;  %v17473_v10 = vld [vmem:[#allocation7 + $0x504] ss:$8 sps:$4 sm:$0xff]   ;;  %v1761_v32 = vmax.f32 %v1336_v54, 0.0 }
 0x396   :  { %v17476_v18 = vld [vmem:[#allocation7 + $0x514] ss:$8 sps:$4 sm:$0xff]  }
 0x397   :  { %v4620_v56 = vpack.c.bf16 %v1758_v35, %v1758_v35  ;;  %v4623_v59 = vpack.c.bf16 %v1761_v32, %v1761_v32  ;;  %v5108_v52 = vld [vmem:[#allocation10 + $0x800] sm:$0xff] }
 0x398   :  { %5034 = vmatpush1.bf16.msra.mxu0 %v17441_v12  ;;  %v17471_v12 = vld [vmem:[#allocation7 + $0x500] ss:$8 sps:$4 sm:$0xff]   ;;  %v5116_v35 = vld [vmem:[#allocation10 + $0x840] sm:$0xff] }
 0x399   :  { %5035 = vmatprep.subr.bf16.mxu0 %v17446_v20  ;;  %v17479_v20 = vld [vmem:[#allocation7 + $0x524] ss:$8 sps:$4 sm:$0xff]   ;;  %v17492_v32 = vld [vmem:[#allocation7 + $0x570] ss:$8 sps:$4 sm:$0xff]  }
 0x39c   :  { %5036 = vmatpush1.bf16.msra.mxu0 %v17444_v29  ;;  %v17482_v29 = vld [vmem:[#allocation7 + $0x534] ss:$8 sps:$4 sm:$0xff]  }
 0x39d   :  { %5037 = vmatprep.subr.bf16.mxu0 %v17449_v22  ;;  %v17480_v22 = vld [vmem:[#allocation7 + $0x530] ss:$8 sps:$4 sm:$0xff]  }
 0x3a0   :  { %5038 = vmatpush1.bf16.msra.mxu0 %v17447_v23  ;;  %v17485_v23 = vld [vmem:[#allocation7 + $0x544] ss:$8 sps:$4 sm:$0xff]  }
 0x3a1   :  { %5039 = vmatprep.subr.bf16.mxu0 %v17452_v55  ;;  %v17483_v55 = vld [vmem:[#allocation7 + $0x540] ss:$8 sps:$4 sm:$0xff]  }
 0x3a4   :  { %5040 = vmatpush1.bf16.msra.mxu0 %v17450_v21  ;;  %v17488_v21 = vld [vmem:[#allocation7 + $0x554] ss:$8 sps:$4 sm:$0xff]  }
 0x3a5   :  { %5041 = vmatprep.subr.bf16.mxu0 %v17455_v25  ;;  %v17486_v25 = vld [vmem:[#allocation7 + $0x550] ss:$8 sps:$4 sm:$0xff]  }
 0x3a8   :  { %5042 = vmatpush1.bf16.msra.mxu0 %v17453_v58  ;;  %v17491_v58 = vld [vmem:[#allocation7 + $0x564] ss:$8 sps:$4 sm:$0xff]  }
 0x3a9   :  { %5043 = vmatprep.subr.bf16.mxu0 %v17458_v26 }
 0x3ac   :  { %5044 = vmatpush1.bf16.msra.mxu0 %v17456_v30 }
 0x3ad   :  { %5045 = vmatprep.subr.bf16.mxu0 %v17461_v13 }
 0x3b0   :  { %5046 = vmatpush1.bf16.msra.mxu0 %v17459_v33 }
 0x3b1   :  { %5047 = vmatprep.subr.bf16.mxu0 %v17464_v36 }
 0x3b4   :  { %5048 = vmatpush1.bf16.msra.mxu0 %v17462_v28 }
 0x3b5   :  { %5049 = vmatprep.subr.bf16.mxu0 %v17467_v39 }
 0x3b8   :  { %5050 = vmatpush1.bf16.msra.mxu0 %v17465_v51  ;;  %v17494_v51 = vld [vmem:[#allocation7 + $0x574] ss:$8 sps:$4 sm:$0xff]  }
 0x3b9   :  { %5051 = vmatprep.subr.bf16.mxu0 %v17470_v2  ;;  %v5112_v2 = vld [vmem:[#allocation10 + $0x820] sm:$0xff] }
 0x3ba   :  { %v15792_v54 = vcombine.low %v5108_v52, %v5112_v2 }
 0x3bc   :  { %5052 = vmatpush1.bf16.msra.mxu0 %v17468_v57  ;;  %v15793_v57 = vcombine.high %v5108_v52, %v5112_v2  ;;  %v5152_v52 = vld [vmem:[#allocation10 + $0x960] sm:$0xff] }
 0x3bd   :  { %5062 = vmatprep.subr.bf16.mxu0 %v17473_v10  ;;  %v5120_v10 = vld [vmem:[#allocation10 + $0x860] sm:$0xff] }
 0x3be   :  { %5876 = vmatprep.subr.bf16.mxu1 %v15793_v57  ;;  %v17506_v2 = vld [vmem:[#allocation7 + $0x5b4] ss:$8 sps:$4 sm:$0xff]  }
 0x3bf   :  { %5054 = vmatmul.mubr.bf16.vlgmr.msra.gmra.mrb[52].mxu0 %v4620_v56  ;;  %v5124_v56 = vld [vmem:[#allocation10 + $0x880] sm:$0xff]  ;;  %5877 = vmatpush1.bf16.msra.mxu1 %v15792_v54 }
 0x3c0   :  { %5063 = vmatpush1.bf16.msra.mxu0 %v17471_v12  ;;  %5094 = vmatprep.mubr.bf16.mxu0 %v4623_v59  ;;  %v15801_v12 = vcombine.high %v5116_v35, %v5120_v10  ;;  %v5128_v59 = vld [vmem:[#allocation10 + $0x8a0] sm:$0xff] }
 0x3c1   :  { %5064 = vmatprep.subr.bf16.mxu0 %v17476_v18  ;;  %v17497_v18 = vld [vmem:[#allocation7 + $0x584] ss:$8 sps:$4 sm:$0xff]  }
 0x3c2   :  { %5878 = vmatprep.subr.bf16.mxu1 %v15801_v12  ;;  %v17509_v12 = vld [vmem:[#allocation7 + $0x5c4] ss:$8 sps:$4 sm:$0xff]  }
 0x3c4   :  { %5065 = vmatpush1.bf16.msra.mxu0 %v17474_v24  ;;  %v15800_v24 = vcombine.low %v5116_v35, %v5120_v10  ;;  %v17504_v35 = vld [vmem:[#allocation7 + $0x5b0] ss:$8 sps:$4 sm:$0xff]  }
 0x3c5   :  { %5066 = vmatprep.subr.bf16.mxu0 %v17479_v20  ;;  %v15809_v20 = vcombine.high %v5124_v56, %v5128_v59  ;;  %v5156_v10 = vld [vmem:[#allocation10 + $0x980] sm:$0xff] }
 0x3c6   :  { %5879 = vmatpush1.bf16.msra.mxu1 %v15800_v24  ;;  %v5164_v24 = vld [vmem:[#allocation10 + $0x9c0] sm:$0xff] }
 0x3c7   :  { %5880 = vmatprep.subr.bf16.mxu1 %v15809_v20  ;;  %v5168_v20 = vld [vmem:[#allocation10 + $0x9e0] sm:$0xff] }
 0x3c8   :  { %5067 = vmatpush1.bf16.msra.mxu0 %v17477_v42  ;;  %v17495_v42 = vld [vmem:[#allocation7 + $0x580] ss:$8 sps:$4 sm:$0xff]  }
 0x3c9   :  { %5068 = vmatprep.subr.bf16.mxu0 %v17482_v29  ;;  %v5132_v29 = vld [vmem:[#allocation10 + $0x8c0] sm:$0xff] }
 0x3cc   :  { %5069 = vmatpush1.bf16.msra.mxu0 %v17480_v22  ;;  %v5136_v22 = vld [vmem:[#allocation10 + $0x8e0] sm:$0xff] }
 0x3cd   :  { %5070 = vmatprep.subr.bf16.mxu0 %v17485_v23  ;;  %v17500_v23 = vld [vmem:[#allocation7 + $0x594] ss:$8 sps:$4 sm:$0xff]  }
 0x3d0   :  { %5071 = vmatpush1.bf16.msra.mxu0 %v17483_v55  ;;  %v15808_v55 = vcombine.low %v5124_v56, %v5128_v59  ;;  %v17507_v59 = vld [vmem:[#allocation7 + $0x5c0] ss:$8 sps:$4 sm:$0xff]  }
 0x3d1   :  { %5072 = vmatprep.subr.bf16.mxu0 %v17488_v21  ;;  %v15817_v21 = vcombine.high %v5132_v29, %v5136_v22 }
 0x3d2   :  { %v19030_v26 = vpop.f32.mrb[40].mxu0  ;;  %v19032_v30 = vpop.f32.mrb[40].mxu1  ;;  %5881 = vmatpush1.bf16.msra.mxu1 %v15808_v55  ;;  %v5172_v55 = vld [vmem:[#allocation10 + $0xa00] sm:$0xff] }
 0x3d3   :  { %v19034_v13 = vpop.f32.mrb[41].mxu0  ;;  %v19036_v33 = vpop.f32.mrb[41].mxu1  ;;  %5882 = vmatprep.subr.bf16.mxu1 %v15817_v21  ;;  %v5176_v21 = vld [vmem:[#allocation10 + $0xa20] sm:$0xff] }
 0x3d4   :  { %v3772_v36 = vpop.f32.mrb[42].mxu0  ;;  %v3813_v28 = vpop.f32.mrb[42].mxu1  ;;  %5073 = vmatpush1.bf16.msra.mxu0 %v17486_v25  ;;  %v17498_v25 = vld [vmem:[#allocation7 + $0x590] ss:$8 sps:$4 sm:$0xff]  }
 0x3d5   :  { %v3773_v39 = vpop.f32.mrb[43].mxu0  ;;  %v3814_v49 = vpop.f32.mrb[43].mxu1  ;;  %5074 = vmatprep.subr.bf16.mxu0 %v17491_v58  ;;  %v5140_v58 = vld [vmem:[#allocation10 + $0x900] sm:$0xff]  ;;  %v17503_v28 = vld [vmem:[#allocation7 + $0x5a4] ss:$8 sps:$4 sm:$0xff]  }
 0x3d6   :  { %v5144_v36 = vld [vmem:[#allocation10 + $0x920] sm:$0xff]  ;;  %v17501_v49 = vld [vmem:[#allocation7 + $0x5a0] ss:$8 sps:$4 sm:$0xff]  }
 0x3d7   :  { %v15825_v39 = vcombine.high %v5140_v58, %v5144_v36  ;;  %v15824_v54 = vcombine.low %v5140_v58, %v5144_v36  ;;  %v15848_v58 = vcombine.low %v5164_v24, %v5168_v20  ;;  %v15857_v36 = vcombine.high %v5172_v55, %v5176_v21 }
 0x3d8   :  { %5075 = vmatpush1.bf16.msra.mxu0 %v17489_v34  ;;  %v15816_v34 = vcombine.low %v5132_v29, %v5136_v22  ;;  %v15849_v22 = vcombine.high %v5164_v24, %v5168_v20 }
 0x3d9   :  { %5076 = vmatprep.subr.bf16.mxu0 %v17494_v51  ;;  %v5148_v51 = vld [vmem:[#allocation10 + $0x940] sm:$0xff] }
 0x3da   :  { %5883 = vmatpush1.bf16.msra.mxu1 %v15816_v34  ;;  %v15833_v57 = vcombine.high %v5148_v51, %v5152_v52  ;;  %v15832_v56 = vcombine.low %v5148_v51, %v5152_v52  ;;  %v5180_v34 = vld [vmem:[#allocation10 + $0xa40] sm:$0xff]  ;;  %v5110_v51 = vld [vmem:[#allocation10 + $0x810] sm:$0xff] }
 0x3db   :  { %5884 = vmatprep.subr.bf16.mxu1 %v15825_v39  ;;  %v5184_v39 = vld [vmem:[#allocation10 + $0xa60] sm:$0xff]  ;;  %v5114_v52 = vld [vmem:[#allocation10 + $0x830] sm:$0xff] }
 0x3dc   :  { %5077 = vmatpush1.bf16.msra.mxu0 %v17492_v32  ;;  %v5160_v32 = vld [vmem:[#allocation10 + $0x9a0] sm:$0xff]  ;;  %v15796_v20 = vcombine.low %v5110_v51, %v5114_v52 }
 0x3dd   :  { %5078 = vmatprep.subr.bf16.mxu0 %v17497_v18  ;;  %v15841_v18 = vcombine.high %v5156_v10, %v5160_v32  ;;  %v15840_v29 = vcombine.low %v5156_v10, %v5160_v32  ;;  %v5192_v10 = vld [vmem:[#allocation10 + $0xaa0] sm:$0xff]  ;;  %v1760_v32 = vmax.f32 %v18890_v40, 0.0 }
 0x3de   :  { %5885 = vmatpush1.bf16.msra.mxu1 %v15824_v54  ;;  %v15865_v54 = vcombine.high %v5180_v34, %v5184_v39 }
 0x3df   :  { %5886 = vmatprep.subr.bf16.mxu1 %v15833_v57  ;;  %v17516_v57 = vld [vmem:[#allocation7 + $0x5f0] ss:$8 sps:$4 sm:$0xff]  }
 0x3e0   :  { %5079 = vmatpush1.bf16.msra.mxu0 %v17495_v42  ;;  %v17512_v42 = vld [vmem:[#allocation7 + $0x5d4] ss:$8 sps:$4 sm:$0xff]  }
 0x3e1   :  { %5080 = vmatprep.subr.bf16.mxu0 %v17500_v23  ;;  %v17510_v23 = vld [vmem:[#allocation7 + $0x5d0] ss:$8 sps:$4 sm:$0xff]  }
 0x3e2   :  { %5887 = vmatpush1.bf16.msra.mxu1 %v15832_v56  ;;  %v5118_v56 = vld [vmem:[#allocation10 + $0x850] sm:$0xff] }
 0x3e3   :  { %5888 = vmatprep.subr.bf16.mxu1 %v15841_v18  ;;  %v5122_v18 = vld [vmem:[#allocation10 + $0x870] sm:$0xff] }
 0x3e4   :  { %5081 = vmatpush1.bf16.msra.mxu0 %v17498_v25  ;;  %v17515_v25 = vld [vmem:[#allocation7 + $0x5e4] ss:$8 sps:$4 sm:$0xff]  }
 0x3e5   :  { %5082 = vmatprep.subr.bf16.mxu0 %v17503_v28  ;;  %v17513_v28 = vld [vmem:[#allocation7 + $0x5e0] ss:$8 sps:$4 sm:$0xff]  }
 0x3e6   :  { %5889 = vmatpush1.bf16.msra.mxu1 %v15840_v29  ;;  %v5200_v29 = vld [vmem:[#allocation10 + $0xae0] sm:$0xff] }
 0x3e7   :  { %5890 = vmatprep.subr.bf16.mxu1 %v15849_v22  ;;  %v4622_v22 = vpack.c.bf16 %v1760_v32, %v1760_v32  ;;  %v5146_v32 = vld [vmem:[#allocation10 + $0x930] sm:$0xff] }
 0x3e8   :  { %5083 = vmatpush1.bf16.msra.mxu0 %v17501_v49  ;;  %v17518_v49 = vld [vmem:[#allocation7 + $0x5f4] ss:$8 sps:$4 sm:$0xff]  }
 0x3e9   :  { %5084 = vmatprep.subr.bf16.mxu0 %v17506_v2  ;;  %v15856_v2 = vcombine.low %v5172_v55, %v5176_v21  ;;  %v5126_v55 = vld [vmem:[#allocation10 + $0x890] sm:$0xff] }
 0x3ea   :  { %5891 = vmatpush1.bf16.msra.mxu1 %v15848_v58  ;;  %v5130_v21 = vld [vmem:[#allocation10 + $0x8b0] sm:$0xff]  ;;  %v15804_v58 = vcombine.low %v5118_v56, %v5122_v18 }
 0x3eb   :  { %5892 = vmatprep.subr.bf16.mxu1 %v15857_v36  ;;  %v5204_v36 = vld [vmem:[#allocation10 + $0xb00] sm:$0xff] }
 0x3ec   :  { %5085 = vmatpush1.bf16.msra.mxu0 %v17504_v35  ;;  %v5188_v35 = vld [vmem:[#allocation10 + $0xa80] sm:$0xff] }
 0x3ed   :  { %5086 = vmatprep.subr.bf16.mxu0 %v17509_v12  ;;  %v15797_v12 = vcombine.high %v5110_v51, %v5114_v52  ;;  %v15873_v24 = vcombine.high %v5188_v35, %v5192_v10 }
 0x3ee   :  { %5893 = vmatpush1.bf16.msra.mxu1 %v15856_v2  ;;  %v15812_v2 = vcombine.low %v5126_v55, %v5130_v21 }
 0x3ef   :  { %5894 = vmatprep.subr.bf16.mxu1 %v15865_v54  ;;  %v5212_v54 = vld [vmem:[#allocation10 + $0xb40] sm:$0xff] }
 0x3f0   :  { %5087 = vmatpush1.bf16.msra.mxu0 %v17507_v59  ;;  %v15864_v59 = vcombine.low %v5180_v34, %v5184_v39  ;;  %v15813_v34 = vcombine.high %v5126_v55, %v5130_v21  ;;  %v5134_v39 = vld [vmem:[#allocation10 + $0x8d0] sm:$0xff] }
 0x3f1   :  { %5088 = vmatprep.subr.bf16.mxu0 %v17512_v42  ;;  %v5196_v42 = vld [vmem:[#allocation10 + $0xac0] sm:$0xff]  ;;  %v5162_v55 = vld [vmem:[#allocation10 + $0x9b0] sm:$0xff] }
 0x3f2   :  { %5895 = vmatpush1.bf16.msra.mxu1 %v15864_v59  ;;  %v15881_v40 = vcombine.high %v5196_v42, %v5200_v29  ;;  %v15880_v51 = vcombine.low %v5196_v42, %v5200_v29 }
 0x3f3   :  { %5896 = vmatprep.subr.bf16.mxu1 %v15873_v24  ;;  %v5150_v24 = vld [vmem:[#allocation10 + $0x950] sm:$0xff] }
 0x3f4   :  { %5089 = vmatpush1.bf16.msra.mxu0 %v17510_v23  ;;  %v15805_v23 = vcombine.high %v5118_v56, %v5122_v18 }
 0x3f5   :  { %5090 = vmatprep.subr.bf16.mxu0 %v17515_v25  ;;  %v15872_v25 = vcombine.low %v5188_v35, %v5192_v10  ;;  %v5142_v10 = vld [vmem:[#allocation10 + $0x910] sm:$0xff] }
 0x3f6   :  { %v15829_v59 = vcombine.high %v5142_v10, %v5146_v32  ;;  %v15828_v29 = vcombine.low %v5142_v10, %v5146_v32 }
 0x3f7   :  { %5897 = vmatpush1.bf16.msra.mxu1 %v15872_v25 }
 0x3f8   :  { %5091 = vmatpush1.bf16.msra.mxu0 %v17513_v28  ;;  %v5208_v28 = vld [vmem:[#allocation10 + $0xb20] sm:$0xff]  ;;  %5898 = vmatprep.subr.bf16.mxu1 %v15881_v40 }
 0x3f9   :  { %5092 = vmatprep.subr.bf16.mxu0 %v17518_v49  ;;  %v5138_v49 = vld [vmem:[#allocation10 + $0x8f0] sm:$0xff]  ;;  %v15889_v52 = vcombine.high %v5204_v36, %v5208_v28 }
 0x3fa   :  { %v15821_v35 = vcombine.high %v5134_v39, %v5138_v49  ;;  %v15820_v18 = vcombine.low %v5134_v39, %v5138_v49 }
 0x3fb   :  { %5899 = vmatpush1.bf16.msra.mxu1 %v15880_v51 }
 0x3fc   :  { %5093 = vmatpush1.bf16.msra.mxu0 %v17516_v57  ;;  %v5216_v57 = vld [vmem:[#allocation10 + $0xb60] sm:$0xff]  ;;  %5900 = vmatprep.subr.bf16.mxu1 %v15889_v52 }
 0x3fd   :  { %5958 = vmatprep.subr.bf16.mxu0 %v15797_v12  ;;  %v15888_v12 = vcombine.low %v5204_v36, %v5208_v28  ;;  %v15897_v56 = vcombine.high %v5212_v54, %v5216_v57  ;;  %v15896_v42 = vcombine.low %v5212_v54, %v5216_v57  ;;  %v5170_v36 = vld [vmem:[#allocation10 + $0x9f0] sm:$0xff] }
 0x3ff   :  { %5095 = vmatmul.mubr.bf16.vlgmr.msra.gmra.mrb[52].mxu0 %v4622_v22  ;;  %5901 = vmatpush1.bf16.msra.mxu1 %v15888_v12  ;;  %v5174_v12 = vld [vmem:[#allocation10 + $0xa10] sm:$0xff] }
 0x400   :  { %5959 = vmatpush1.bf16.msra.mxu0 %v15796_v20  ;;  %v5154_v20 = vld [vmem:[#allocation10 + $0x970] sm:$0xff]  ;;  %5902 = vmatprep.subr.bf16.mxu1 %v15897_v56 }
 0x401   :  { %5960 = vmatprep.subr.bf16.mxu0 %v15805_v23  ;;  %v15837_v22 = vcombine.high %v5150_v24, %v5154_v20  ;;  %v5158_v23 = vld [vmem:[#allocation10 + $0x990] sm:$0xff]  ;;  %v15836_v21 = vcombine.low %v5150_v24, %v5154_v20 }
 0x402   :  { %v15845_v25 = vcombine.high %v5158_v23, %v5162_v55  ;;  %v15844_v54 = vcombine.low %v5158_v23, %v5162_v55  ;;  %v5178_v56 = vld [vmem:[#allocation10 + $0xa30] sm:$0xff] }
 0x403   :  { %5903 = vmatpush1.bf16.msra.mxu1 %v15896_v42  ;;  %v15860_v24 = vcombine.low %v5174_v12, %v5178_v56  ;;  %v5190_v42 = vld [vmem:[#allocation10 + $0xa90] sm:$0xff] }
 0x404   :  { %5961 = vmatpush1.bf16.msra.mxu0 %v15804_v58  ;;  %v5166_v58 = vld [vmem:[#allocation10 + $0x9d0] sm:$0xff] }
 0x405   :  { %5962 = vmatprep.subr.bf16.mxu0 %v15813_v34  ;;  %v5198_v23 = vld [vmem:[#allocation10 + $0xad0] sm:$0xff] }
 0x406   :  { %v5202_v55 = vld [vmem:[#allocation10 + $0xaf0] sm:$0xff] }
 0x408   :  { %5963 = vmatpush1.bf16.msra.mxu0 %v15812_v2 }
 0x409   :  { %5964 = vmatprep.subr.bf16.mxu0 %v15821_v35 }
 0x40c   :  { %5965 = vmatpush1.bf16.msra.mxu0 %v15820_v18  ;;  %v15861_v18 = vcombine.high %v5174_v12, %v5178_v56 }
 0x40d   :  { %5966 = vmatprep.subr.bf16.mxu0 %v15829_v59  ;;  %v5186_v59 = vld [vmem:[#allocation10 + $0xa70] sm:$0xff] }
 0x410   :  { %5967 = vmatpush1.bf16.msra.mxu0 %v15828_v29 }
 0x411   :  { %5968 = vmatprep.subr.bf16.mxu0 %v15837_v22 }
 0x412   :  { %v4490_v40 = vpop.f32.mrb[44].mxu0 }
 0x413   :  { %v19040_v28 = vadd.f32 %v4490_v40, %v19016_v60  ;;  %v4531_v34 = vpop.f32.mrb[44].mxu1  ;;  %v4492_v39 = vpop.f32.mrb[45].mxu0  ;;  %v15853_v60 = vcombine.high %v5166_v58, %v5170_v36  ;;  %v5206_v40 = vld [vmem:[#allocation10 + $0xb10] sm:$0xff] }
 0x414   :  { %v19043_v49 = vadd.f32 %v4531_v34, %v19018_v4  ;;  %v19046_v51 = vadd.f32 %v4492_v39, %v19020_v5  ;;  %v4533_v52 = vpop.f32.mrb[45].mxu1  ;;  %v4494_v2 = vpop.f32.mrb[46].mxu0  ;;  %5969 = vmatpush1.bf16.msra.mxu0 %v15836_v21  ;;  %v15852_v4 = vcombine.low %v5166_v58, %v5170_v36  ;;  %v5182_v5 = vld [vmem:[#allocation10 + $0xa50] sm:$0xff]  ;;  %v15884_v36 = vcombine.low %v5198_v23, %v5202_v55 }
 0x415   :  { %v19049_v57 = vadd.f32 %v4533_v52, %v19022_v1  ;;  %v4535_v35 = vpop.f32.mrb[46].mxu1  ;;  %v4495_v10 = vpop.f32.mrb[47].mxu0  ;;  %5970 = vmatprep.subr.bf16.mxu0 %v15845_v25  ;;  %v15869_v20 = vcombine.high %v5182_v5, %v5186_v59  ;;  %v5194_v1 = vld [vmem:[#allocation10 + $0xab0] sm:$0xff]  ;;  %v15868_v29 = vcombine.low %v5182_v5, %v5186_v59  ;;  %v15885_v25 = vcombine.high %v5198_v23, %v5202_v55 }
 0x416   :  { %v4536_v32 = vpop.f32.mrb[47].mxu1  ;;  %v15877_v22 = vcombine.high %v5190_v42, %v5194_v1  ;;  %v15876_v21 = vcombine.low %v5190_v42, %v5194_v1  ;;  %v5210_v58 = vld [vmem:[#allocation10 + $0xb30] sm:$0xff]  ;;  %v5220_v10 = vld [vmem:[#allocation10 + $0xb80] sm:$0xff] }
 0x417   :  { %v15893_v34 = vcombine.high %v5206_v40, %v5210_v58  ;;  %v5214_v39 = vld [vmem:[#allocation10 + $0xb50] sm:$0xff]  ;;  %v15892_v2 = vcombine.low %v5206_v40, %v5210_v58  ;;  %v5232_v40 = vld [vmem:[#allocation10 + $0xbe0] sm:$0xff] }
 0x418   :  { %5971 = vmatpush1.bf16.msra.mxu0 %v15844_v54  ;;  %v5218_v52 = vld [vmem:[#allocation10 + $0xb70] sm:$0xff] }
 0x419   :  { %5972 = vmatprep.subr.bf16.mxu0 %v15853_v60  ;;  %v15901_v54 = vcombine.high %v5214_v39, %v5218_v52  ;;  %v15900_v35 = vcombine.low %v5214_v39, %v5218_v52  ;;  %v5224_v60 = vld [vmem:[#allocation10 + $0xba0] sm:$0xff]  ;;  %v5222_v32 = vld [vmem:[#allocation10 + $0xb90] sm:$0xff] }
 0x41a   :  { %v15905_v56 = vcombine.high %v5220_v10, %v5224_v60  ;;  %v5230_v58 = vld [vmem:[#allocation10 + $0xbd0] sm:$0xff] }
 0x41c   :  { %5973 = vmatpush1.bf16.msra.mxu0 %v15852_v4  ;;  %v5226_v4 = vld [vmem:[#allocation10 + $0xbb0] sm:$0xff]  ;;  %5904 = vmatprep.subr.bf16.mxu1 %v15905_v56 }
 0x41d   :  { %5974 = vmatprep.subr.bf16.mxu0 %v15861_v18  ;;  %v15909_v42 = vcombine.high %v5222_v32, %v5226_v4 }
 0x420   :  { %5975 = vmatpush1.bf16.msra.mxu0 %v15860_v24  ;;  %v15904_v24 = vcombine.low %v5220_v10, %v5224_v60  ;;  %v17521_v10 = vld [vmem:[#allocation7 + $0x604] ss:$8 sps:$4 sm:$0xff]  }
 0x421   :  { %5976 = vmatprep.subr.bf16.mxu0 %v15869_v20  ;;  %v15908_v20 = vcombine.low %v5222_v32, %v5226_v4  ;;  %v4689_v60 = vld [vmem:[#allocation8 + $0x4] sm:$0x3] }
 0x422   :  { %5905 = vmatpush1.bf16.msra.mxu1 %v15904_v24  ;;  %v4694_v32 = vrot.slane %v4689_v60, %v18846_v14 }
 0x424   :  { %5977 = vmatpush1.bf16.msra.mxu0 %v15868_v29 }
 0x425   :  { %5978 = vmatprep.subr.bf16.mxu0 %v15877_v22 }
 0x428   :  { %5979 = vmatpush1.bf16.msra.mxu0 %v15876_v21 }
 0x429   :  { %5980 = vmatprep.subr.bf16.mxu0 %v15885_v25  ;;  %v5228_v25 = vld [vmem:[#allocation10 + $0xbc0] sm:$0xff] }
 0x42a   :  { %v15912_v39 = vcombine.low %v5228_v25, %v5232_v40 }
 0x42c   :  { %5981 = vmatpush1.bf16.msra.mxu0 %v15884_v36 }
 0x42d   :  { %5982 = vmatprep.subr.bf16.mxu0 %v15893_v34  ;;  %v5234_v34 = vld [vmem:[#allocation10 + $0xbf0] sm:$0xff] }
 0x42e   :  { %v15917_v52 = vcombine.high %v5230_v58, %v5234_v34 }
 0x430   :  { %5983 = vmatpush1.bf16.msra.mxu0 %v15892_v2  ;;  %v5109_v2 = vld [vmem:[#allocation10 + $0x808] sm:$0xff] }
 0x431   :  { %5984 = vmatprep.subr.bf16.mxu0 %v15901_v54 }
 0x434   :  { %5985 = vmatpush1.bf16.msra.mxu0 %v15900_v35 }
 0x435   :  { %5986 = vmatprep.subr.bf16.mxu0 %v15909_v42 }
 0x438   :  { %5987 = vmatpush1.bf16.msra.mxu0 %v15908_v20 }
 0x439   :  { %5988 = vmatprep.subr.bf16.mxu0 %v15917_v52  ;;  %v17522_v52 = vld [vmem:[#allocation7 + $0x610] ss:$8 sps:$4 sm:$0xff]  }
 0x452   :  { %v4572_v12 = vpop.f32.mrb[48].mxu0 }
 0x453   :  { %v19052_v18 = vadd.f32 %v4572_v12, %v19030_v26  ;;  %v4613_v5 = vpop.f32.mrb[48].mxu1  ;;  %v4574_v59 = vpop.f32.mrb[49].mxu0  ;;  %v4698_v12 = vrot.slane %v4689_v60, %v18849_v15 }
 0x454   :  { %v19055_v1 = vadd.f32 %v4613_v5, %v19032_v30  ;;  %v19058_v29 = vadd.f32 %v4574_v59, %v19034_v13  ;;  %v4615_v22 = vpop.f32.mrb[49].mxu1  ;;  %v4576_v23 = vpop.f32.mrb[50].mxu0  ;;  %v15913_v30 = vcombine.high %v5228_v25, %v5232_v40  ;;  %v15916_v13 = vcombine.low %v5230_v58, %v5234_v34  ;;  %v17519_v40 = vld [vmem:[#allocation7 + $0x600] ss:$8 sps:$4 sm:$0xff]   ;;  %v5125_v34 = vld [vmem:[#allocation10 + $0x888] sm:$0xff] }
 0x455   :  { %v19061_v55 = vadd.f32 %v4615_v22, %v19036_v33  ;;  %v4617_v21 = vpop.f32.mrb[50].mxu1  ;;  %v4577_v26 = vpop.f32.mrb[51].mxu0  ;;  %v5113_v33 = vld [vmem:[#allocation10 + $0x828] sm:$0xff]  ;;  %v1763_v23 = vmax.f32 %v18903_v0, 0.0 }
 0x456   :  { %v4618_v36 = vpop.f32.mrb[51].mxu1  ;;  %5906 = vmatprep.subr.bf16.mxu1 %v15913_v30  ;;  %5989 = vmatpush1.bf16.msra.mxu0 %v15916_v13  ;;  %v15794_v54 = vcombine.low %v5109_v2, %v5113_v33  ;;  %v15795_v35 = vcombine.high %v5109_v2, %v5113_v33  ;;  %v5117_v21 = vld [vmem:[#allocation10 + $0x848] sm:$0xff]  ;;  %v17527_v33 = vld [vmem:[#allocation7 + $0x624] ss:$8 sps:$4 sm:$0xff]  }
 0x457   :  { %5907 = vmatpush1.bf16.msra.mxu1 %v15912_v39  ;;  %6449 = vmatprep.subr.bf16.mxu0 %v17521_v10  ;;  %v5121_v26 = vld [vmem:[#allocation10 + $0x868] sm:$0xff]  ;;  %v6049_v13 = vpack.c.bf16 %v1763_v23, %v1763_v23 }
 0x458   :  { %5917 = vmatprep.subr.bf16.mxu1 %v15795_v35  ;;  %v15803_v36 = vcombine.high %v5117_v21, %v5121_v26  ;;  %v17524_v30 = vld [vmem:[#allocation7 + $0x614] ss:$8 sps:$4 sm:$0xff]   ;;  %v15802_v0 = vcombine.low %v5117_v21, %v5121_v26  ;;  %v17531_v21 = vld [vmem:[#allocation7 + $0x640] ss:$8 sps:$4 sm:$0xff]  }
 0x459   :  { %v5129_v39 = vld [vmem:[#allocation10 + $0x8a8] sm:$0xff] }
 0x45a   :  { %v15811_v2 = vcombine.high %v5125_v34, %v5129_v39  ;;  %v5133_v35 = vld [vmem:[#allocation10 + $0x8c8] sm:$0xff]  ;;  %v15810_v60 = vcombine.low %v5125_v34, %v5129_v39 }
 0x45b   :  { %v5137_v10 = vld [vmem:[#allocation10 + $0x8e8] sm:$0xff] }
 0x45c   :  { %v17534_v39 = vld [vmem:[#allocation7 + $0x650] ss:$8 sps:$4 sm:$0xff]  }
 0x4d2   :  { %v5096_v56 = vpop.f32.mrb[52].mxu0 }
 0x4d3   :  { %v17142_v4 = vadd.f32 %v5096_v56, %v4694_v32  ;;  %v5098_v5 = vpop.f32.mrb[53].mxu0  ;;  %v17525_v32 = vld [vmem:[#allocation7 + $0x620] ss:$8 sps:$4 sm:$0xff]   ;;  %v5141_v56 = vld [vmem:[#allocation10 + $0x908] sm:$0xff] }
 0x4d4   :  { %v17143_v59 = vadd.f32 %v5098_v5, %v4698_v12  ;;  %v5100_v24 = vpop.f32.mrb[54].mxu0  ;;  %v15819_v12 = vcombine.high %v5133_v35, %v5137_v10  ;;  %v15818_v5 = vcombine.low %v5133_v35, %v5137_v10  ;;  %v17537_v35 = vld [vmem:[#allocation7 + $0x660] ss:$8 sps:$4 sm:$0xff]  }
 0x4d5   :  { %v5103_v20 = vmax.f32 %v17142_v4, 0.0  ;;  %v5101_v42 = vpop.f32.mrb[55].mxu0  ;;  %v5145_v4 = vld [vmem:[#allocation10 + $0x928] sm:$0xff] }
 0x4d6   :  { %v5104_v22 = vmax.f32 %v17143_v59, 0.0  ;;  %v17528_v59 = vld [vmem:[#allocation7 + $0x630] ss:$8 sps:$4 sm:$0xff]   ;;  %v15827_v24 = vcombine.high %v5141_v56, %v5145_v4  ;;  %v15826_v23 = vcombine.low %v5141_v56, %v5145_v4 }
 0x4d7   :  { %v19068_v58 = vpack.c.bf16 %v5103_v20, %v5103_v20  ;;  %v17533_v20 = vld [vmem:[#allocation7 + $0x644] ss:$8 sps:$4 sm:$0xff]   ;;  %v5149_v42 = vld [vmem:[#allocation10 + $0x948] sm:$0xff] }
 0x4d8   :  { %v19066_v25 = vpack.c.bf16 %v5104_v22, %v5104_v22  ;;  %v5153_v22 = vld [vmem:[#allocation10 + $0x968] sm:$0xff] }
 0x4d9   :  { %v15835_v26 = vcombine.high %v5149_v42, %v5153_v22  ;;  %v15834_v34 = vcombine.low %v5149_v42, %v5153_v22  ;;  %v17540_v56 = vld [vmem:[#allocation7 + $0x670] ss:$8 sps:$4 sm:$0xff]   ;;  %v17543_v42 = vld [vmem:[#allocation7 + $0x680] ss:$8 sps:$4 sm:$0xff]  }
 0x4da   :  { %5908 = vmatprep.mubr.bf16.mxu1 %v19066_v25  ;;  %5990 = vmatprep.mubr.bf16.mxu0 %v19066_v25 }
 0x4db   :  { %5909 = vmatmul.mubr.bf16.vlgmr.msra.gmra.mrb[52].mxu1 %v19068_v58  ;;  %5991 = vmatmul.mubr.bf16.vlgmr.msra.gmra.mrb[56].mxu0 %v19068_v58 }
 0x4dc   :  { %5918 = vmatpush1.bf16.msra.mxu1 %v15794_v54  ;;  %6450 = vmatpush1.bf16.msra.mxu0 %v17519_v40  ;;  %v17530_v54 = vld [vmem:[#allocation7 + $0x634] ss:$8 sps:$4 sm:$0xff]  }
 0x4dd   :  { %5949 = vmatprep.mubr.bf16.mxu1 %v19066_v25  ;;  %6481 = vmatprep.mubr.bf16.mxu0 %v6049_v13  ;;  %v17536_v40 = vld [vmem:[#allocation7 + $0x654] ss:$8 sps:$4 sm:$0xff]  }
 0x4de   :  { %5919 = vmatprep.subr.bf16.mxu1 %v15803_v36  ;;  %6451 = vmatprep.subr.bf16.mxu0 %v17524_v30  ;;  %v5157_v36 = vld [vmem:[#allocation10 + $0x988] sm:$0xff] }
 0x4df   :  { %v5161_v30 = vld [vmem:[#allocation10 + $0x9a8] sm:$0xff] }
 0x4e0   :  { %5920 = vmatpush1.bf16.msra.mxu1 %v15802_v0  ;;  %6452 = vmatpush1.bf16.msra.mxu0 %v17522_v52  ;;  %v15843_v13 = vcombine.high %v5157_v36, %v5161_v30  ;;  %v17539_v0 = vld [vmem:[#allocation7 + $0x664] ss:$8 sps:$4 sm:$0xff]   ;;  %v5165_v52 = vld [vmem:[#allocation10 + $0x9c8] sm:$0xff] }
 0x4e1   :  { %5921 = vmatprep.subr.bf16.mxu1 %v15811_v2  ;;  %6453 = vmatprep.subr.bf16.mxu0 %v17527_v33  ;;  %v5169_v2 = vld [vmem:[#allocation10 + $0x9e8] sm:$0xff]  ;;  %v15842_v33 = vcombine.low %v5157_v36, %v5161_v30 }
 0x4e2   :  { %v15851_v10 = vcombine.high %v5165_v52, %v5169_v2  ;;  %v17546_v36 = vld [vmem:[#allocation7 + $0x690] ss:$8 sps:$4 sm:$0xff]  }
 0x4e4   :  { %5922 = vmatpush1.bf16.msra.mxu1 %v15810_v60  ;;  %6454 = vmatpush1.bf16.msra.mxu0 %v17525_v32  ;;  %v17542_v60 = vld [vmem:[#allocation7 + $0x674] ss:$8 sps:$4 sm:$0xff]  }
 0x4e5   :  { %5923 = vmatprep.subr.bf16.mxu1 %v15819_v12  ;;  %6455 = vmatprep.subr.bf16.mxu0 %v17530_v54  ;;  %v5173_v32 = vld [vmem:[#allocation10 + $0xa08] sm:$0xff]  ;;  %v15850_v54 = vcombine.low %v5165_v52, %v5169_v2  ;;  %v17549_v52 = vld [vmem:[#allocation7 + $0x6a0] ss:$8 sps:$4 sm:$0xff]  }
 0x4e6   :  { %v5177_v12 = vld [vmem:[#allocation10 + $0xa28] sm:$0xff] }
 0x4e7   :  { %v15859_v4 = vcombine.high %v5173_v32, %v5177_v12 }
 0x4e8   :  { %5924 = vmatpush1.bf16.msra.mxu1 %v15818_v5  ;;  %6456 = vmatpush1.bf16.msra.mxu0 %v17528_v59  ;;  %v17545_v5 = vld [vmem:[#allocation7 + $0x684] ss:$8 sps:$4 sm:$0xff]   ;;  %v5181_v59 = vld [vmem:[#allocation10 + $0xa48] sm:$0xff] }
 0x4e9   :  { %5925 = vmatprep.subr.bf16.mxu1 %v15827_v24  ;;  %6457 = vmatprep.subr.bf16.mxu0 %v17533_v20  ;;  %v5185_v24 = vld [vmem:[#allocation10 + $0xa68] sm:$0xff]  ;;  %v15858_v20 = vcombine.low %v5173_v32, %v5177_v12 }
 0x4ea   :  { %v15867_v22 = vcombine.high %v5181_v59, %v5185_v24  ;;  %v17552_v32 = vld [vmem:[#allocation7 + $0x6b0] ss:$8 sps:$4 sm:$0xff]  }
 0x4ec   :  { %5926 = vmatpush1.bf16.msra.mxu1 %v15826_v23  ;;  %6458 = vmatpush1.bf16.msra.mxu0 %v17531_v21  ;;  %v17548_v23 = vld [vmem:[#allocation7 + $0x694] ss:$8 sps:$4 sm:$0xff]  }
 0x4ed   :  { %5927 = vmatprep.subr.bf16.mxu1 %v15835_v26  ;;  %6459 = vmatprep.subr.bf16.mxu0 %v17536_v40  ;;  %v5189_v21 = vld [vmem:[#allocation10 + $0xa88] sm:$0xff]  ;;  %v15866_v40 = vcombine.low %v5181_v59, %v5185_v24  ;;  %v17555_v59 = vld [vmem:[#allocation7 + $0x6c0] ss:$8 sps:$4 sm:$0xff]  }
 0x4ee   :  { %v5193_v26 = vld [vmem:[#allocation10 + $0xaa8] sm:$0xff] }
 0x4ef   :  { %v15875_v30 = vcombine.high %v5189_v21, %v5193_v26 }
 0x4f0   :  { %5928 = vmatpush1.bf16.msra.mxu1 %v15834_v34  ;;  %6460 = vmatpush1.bf16.msra.mxu0 %v17534_v39  ;;  %v17551_v34 = vld [vmem:[#allocation7 + $0x6a4] ss:$8 sps:$4 sm:$0xff]   ;;  %v5197_v39 = vld [vmem:[#allocation10 + $0xac8] sm:$0xff] }
 0x4f1   :  { %5929 = vmatprep.subr.bf16.mxu1 %v15843_v13  ;;  %6461 = vmatprep.subr.bf16.mxu0 %v17539_v0  ;;  %v5201_v13 = vld [vmem:[#allocation10 + $0xae8] sm:$0xff]  ;;  %v15874_v0 = vcombine.low %v5189_v21, %v5193_v26 }
 0x4f2   :  { %v15883_v2 = vcombine.high %v5197_v39, %v5201_v13  ;;  %v17558_v21 = vld [vmem:[#allocation7 + $0x6d0] ss:$8 sps:$4 sm:$0xff]  }
 0x4f4   :  { %5930 = vmatpush1.bf16.msra.mxu1 %v15842_v33  ;;  %6462 = vmatpush1.bf16.msra.mxu0 %v17537_v35  ;;  %v17554_v33 = vld [vmem:[#allocation7 + $0x6b4] ss:$8 sps:$4 sm:$0xff]  }
 0x4f5   :  { %5931 = vmatprep.subr.bf16.mxu1 %v15851_v10  ;;  %6463 = vmatprep.subr.bf16.mxu0 %v17542_v60  ;;  %v5205_v35 = vld [vmem:[#allocation10 + $0xb08] sm:$0xff]  ;;  %v15882_v60 = vcombine.low %v5197_v39, %v5201_v13  ;;  %v17561_v39 = vld [vmem:[#allocation7 + $0x6e0] ss:$8 sps:$4 sm:$0xff]  }
 0x4f6   :  { %v5209_v10 = vld [vmem:[#allocation10 + $0xb28] sm:$0xff] }
 0x4f7   :  { %v15891_v12 = vcombine.high %v5205_v35, %v5209_v10 }
 0x4f8   :  { %5932 = vmatpush1.bf16.msra.mxu1 %v15850_v54  ;;  %6464 = vmatpush1.bf16.msra.mxu0 %v17540_v56  ;;  %v17557_v54 = vld [vmem:[#allocation7 + $0x6c4] ss:$8 sps:$4 sm:$0xff]   ;;  %v5213_v56 = vld [vmem:[#allocation10 + $0xb48] sm:$0xff] }
 0x4f9   :  { %5933 = vmatprep.subr.bf16.mxu1 %v15859_v4  ;;  %6465 = vmatprep.subr.bf16.mxu0 %v17545_v5  ;;  %v5217_v4 = vld [vmem:[#allocation10 + $0xb68] sm:$0xff]  ;;  %v15890_v5 = vcombine.low %v5205_v35, %v5209_v10  ;;  %v1762_v10 = vmax.f32 %v18901_v62, 0.0 }
 0x4fa   :  { %v15899_v24 = vcombine.high %v5213_v56, %v5217_v4  ;;  %v17564_v35 = vld [vmem:[#allocation7 + $0x6f0] ss:$8 sps:$4 sm:$0xff]  }
 0x4fc   :  { %5934 = vmatpush1.bf16.msra.mxu1 %v15858_v20  ;;  %6466 = vmatpush1.bf16.msra.mxu0 %v17543_v42  ;;  %v17560_v20 = vld [vmem:[#allocation7 + $0x6d4] ss:$8 sps:$4 sm:$0xff]  }
 0x4fd   :  { %5935 = vmatprep.subr.bf16.mxu1 %v15867_v22  ;;  %6467 = vmatprep.subr.bf16.mxu0 %v17548_v23  ;;  %v5221_v42 = vld [vmem:[#allocation10 + $0xb88] sm:$0xff]  ;;  %v15898_v23 = vcombine.low %v5213_v56, %v5217_v4  ;;  %v5123_v56 = vld [vmem:[#allocation10 + $0x878] sm:$0xff] }
 0x4fe   :  { %v5225_v22 = vld [vmem:[#allocation10 + $0xba8] sm:$0xff] }
 0x4ff   :  { %v15907_v26 = vcombine.high %v5221_v42, %v5225_v22 }
 0x500   :  { %5936 = vmatpush1.bf16.msra.mxu1 %v15866_v40  ;;  %6468 = vmatpush1.bf16.msra.mxu0 %v17546_v36  ;;  %v17563_v40 = vld [vmem:[#allocation7 + $0x6e4] ss:$8 sps:$4 sm:$0xff]   ;;  %v5229_v36 = vld [vmem:[#allocation10 + $0xbc8] sm:$0xff] }
 0x501   :  { %5937 = vmatprep.subr.bf16.mxu1 %v15875_v30  ;;  %6469 = vmatprep.subr.bf16.mxu0 %v17551_v34  ;;  %v5233_v30 = vld [vmem:[#allocation10 + $0xbe8] sm:$0xff]  ;;  %v15906_v34 = vcombine.low %v5221_v42, %v5225_v22  ;;  %v5127_v42 = vld [vmem:[#allocation10 + $0x898] sm:$0xff] }
 0x502   :  { %v15915_v13 = vcombine.high %v5229_v36, %v5233_v30  ;;  %v5131_v22 = vld [vmem:[#allocation10 + $0x8b8] sm:$0xff] }
 0x504   :  { %5938 = vmatpush1.bf16.msra.mxu1 %v15874_v0  ;;  %6470 = vmatpush1.bf16.msra.mxu0 %v17549_v52  ;;  %v17566_v0 = vld [vmem:[#allocation7 + $0x6f4] ss:$8 sps:$4 sm:$0xff]   ;;  %v5111_v52 = vld [vmem:[#allocation10 + $0x818] sm:$0xff] }
 0x505   :  { %5939 = vmatprep.subr.bf16.mxu1 %v15883_v2  ;;  %6471 = vmatprep.subr.bf16.mxu0 %v17554_v33  ;;  %v5115_v2 = vld [vmem:[#allocation10 + $0x838] sm:$0xff]  ;;  %v15914_v33 = vcombine.low %v5229_v36, %v5233_v30  ;;  %v15814_v30 = vcombine.low %v5127_v42, %v5131_v22 }
 0x506   :  { %v15798_v4 = vcombine.low %v5111_v52, %v5115_v2  ;;  %v5139_v36 = vld [vmem:[#allocation10 + $0x8f8] sm:$0xff] }
 0x508   :  { %5940 = vmatpush1.bf16.msra.mxu1 %v15882_v60  ;;  %6472 = vmatpush1.bf16.msra.mxu0 %v17552_v32  ;;  %v15799_v60 = vcombine.high %v5111_v52, %v5115_v2  ;;  %v17569_v32 = vld [vmem:[#allocation7 + $0x704] ss:$8 sps:$4 sm:$0xff]   ;;  %v17576_v2 = vld [vmem:[#allocation7 + $0x730] ss:$8 sps:$4 sm:$0xff]  }
 0x509   :  { %5941 = vmatprep.subr.bf16.mxu1 %v15891_v12  ;;  %6473 = vmatprep.subr.bf16.mxu0 %v17557_v54  ;;  %v1765_v12 = vmax.f32 %v18911_v17, 0.0  ;;  %v5119_v54 = vld [vmem:[#allocation10 + $0x858] sm:$0xff] }
 0x50a   :  { %v15806_v17 = vcombine.low %v5119_v54, %v5123_v56 }
 0x50b   :  { %v6051_v62 = vpack.c.bf16 %v1765_v12, %v1765_v12  ;;  %v17579_v12 = vld [vmem:[#allocation7 + $0x740] ss:$8 sps:$4 sm:$0xff]  }
 0x50c   :  { %5942 = vmatpush1.bf16.msra.mxu1 %v15890_v5  ;;  %6474 = vmatpush1.bf16.msra.mxu0 %v17555_v59  ;;  %v6048_v5 = vpack.c.bf16 %v1762_v10, %v1762_v10  ;;  %v17567_v59 = vld [vmem:[#allocation7 + $0x700] ss:$8 sps:$4 sm:$0xff]  }
 0x50d   :  { %5943 = vmatprep.subr.bf16.mxu1 %v15899_v24  ;;  %6475 = vmatprep.subr.bf16.mxu0 %v17560_v20  ;;  %v15807_v24 = vcombine.high %v5119_v54, %v5123_v56  ;;  %v17572_v20 = vld [vmem:[#allocation7 + $0x714] ss:$8 sps:$4 sm:$0xff]   ;;  %v5151_v10 = vld [vmem:[#allocation10 + $0x958] sm:$0xff] }
 0x50e   :  { %v17584_v56 = vld [vmem:[#allocation7 + $0x754] ss:$8 sps:$4 sm:$0xff]  }
 0x510   :  { %5944 = vmatpush1.bf16.msra.mxu1 %v15898_v23  ;;  %6476 = vmatpush1.bf16.msra.mxu0 %v17558_v21  ;;  %v17570_v23 = vld [vmem:[#allocation7 + $0x710] ss:$8 sps:$4 sm:$0xff]   ;;  %v15815_v21 = vcombine.high %v5127_v42, %v5131_v22  ;;  %v17587_v42 = vld [vmem:[#allocation7 + $0x764] ss:$8 sps:$4 sm:$0xff]  }
 0x511   :  { %5945 = vmatprep.subr.bf16.mxu1 %v15907_v26  ;;  %6477 = vmatprep.subr.bf16.mxu0 %v17563_v40  ;;  %v17575_v26 = vld [vmem:[#allocation7 + $0x724] ss:$8 sps:$4 sm:$0xff]  }
 0x512   :  { %v5135_v40 = vld [vmem:[#allocation10 + $0x8d8] sm:$0xff] }
 0x513   :  { %v15822_v52 = vcombine.low %v5135_v40, %v5139_v36  ;;  %v5167_v22 = vld [vmem:[#allocation10 + $0x9d8] sm:$0xff] }
 0x514   :  { %5946 = vmatpush1.bf16.msra.mxu1 %v15906_v34  ;;  %6478 = vmatpush1.bf16.msra.mxu0 %v17561_v39  ;;  %v17573_v34 = vld [vmem:[#allocation7 + $0x720] ss:$8 sps:$4 sm:$0xff]   ;;  %v15823_v39 = vcombine.high %v5135_v40, %v5139_v36 }
 0x515   :  { %5947 = vmatprep.subr.bf16.mxu1 %v15915_v13  ;;  %6479 = vmatprep.subr.bf16.mxu0 %v17566_v0  ;;  %v17578_v13 = vld [vmem:[#allocation7 + $0x734] ss:$8 sps:$4 sm:$0xff]   ;;  %v5143_v0 = vld [vmem:[#allocation10 + $0x918] sm:$0xff] }
 0x516   :  { %v5175_v40 = vld [vmem:[#allocation10 + $0xa18] sm:$0xff] }
 0x517   :  { %v5179_v36 = vld [vmem:[#allocation10 + $0xa38] sm:$0xff] }
 0x518   :  { %5948 = vmatpush1.bf16.msra.mxu1 %v15914_v33  ;;  %6480 = vmatpush1.bf16.msra.mxu0 %v17564_v35  ;;  %v17581_v35 = vld [vmem:[#allocation7 + $0x744] ss:$8 sps:$4 sm:$0xff]  }
 0x519   :  { %5999 = vmatprep.subr.bf16.mxu1 %v15799_v60  ;;  %6490 = vmatprep.subr.bf16.mxu0 %v17569_v32  ;;  %v5155_v60 = vld [vmem:[#allocation10 + $0x978] sm:$0xff] }
 0x51a   :  { %v15839_v54 = vcombine.high %v5151_v10, %v5155_v60 }
 0x51b   :  { %5950 = vmatmul.mubr.bf16.vlgmr.msra.gmra.mrb[56].mxu1 %v19068_v58  ;;  %6482 = vmatmul.mubr.bf16.vlgmr.msra.gmra.mrb[60].mxu0 %v6048_v5  ;;  %v5163_v5 = vld [vmem:[#allocation10 + $0x9b8] sm:$0xff] }
 0x51c   :  { %6000 = vmatpush1.bf16.msra.mxu1 %v15798_v4  ;;  %6031 = vmatprep.mubr.bf16.mxu1 %v19066_v25  ;;  %v5147_v25 = vld [vmem:[#allocation10 + $0x938] sm:$0xff] }
 0x51d   :  { %6491 = vmatpush1.bf16.msra.mxu0 %v17567_v59  ;;  %6522 = vmatprep.mubr.bf16.mxu0 %v6051_v62  ;;  %v15831_v33 = vcombine.high %v5143_v0, %v5147_v25  ;;  %v15830_v32 = vcombine.low %v5143_v0, %v5147_v25  ;;  %v5159_v4 = vld [vmem:[#allocation10 + $0x998] sm:$0xff]  ;;  %v15838_v59 = vcombine.low %v5151_v10, %v5155_v60 }
 0x51e   :  { %6001 = vmatprep.subr.bf16.mxu1 %v15807_v24  ;;  %6492 = vmatprep.subr.bf16.mxu0 %v17572_v20  ;;  %v17582_v24 = vld [vmem:[#allocation7 + $0x750] ss:$8 sps:$4 sm:$0xff]   ;;  %v15847_v20 = vcombine.high %v5159_v4, %v5163_v5  ;;  %v5171_v62 = vld [vmem:[#allocation10 + $0x9f8] sm:$0xff] }
 0x51f   :  { %v5183_v0 = vld [vmem:[#allocation10 + $0xa58] sm:$0xff] }
 0x520   :  { %6002 = vmatpush1.bf16.msra.mxu1 %v15806_v17  ;;  %v15846_v17 = vcombine.low %v5159_v4, %v5163_v5  ;;  %v5187_v25 = vld [vmem:[#allocation10 + $0xa78] sm:$0xff] }
 0x521   :  { %6493 = vmatpush1.bf16.msra.mxu0 %v17570_v23  ;;  %6003 = vmatprep.subr.bf16.mxu1 %v15815_v21  ;;  %v17585_v23 = vld [vmem:[#allocation7 + $0x760] ss:$8 sps:$4 sm:$0xff]   ;;  %v15855_v21 = vcombine.high %v5167_v22, %v5171_v62 }
 0x522   :  { %6494 = vmatprep.subr.bf16.mxu0 %v17575_v26  ;;  %v17590_v26 = vld [vmem:[#allocation7 + $0x774] ss:$8 sps:$4 sm:$0xff]   ;;  %v5191_v10 = vld [vmem:[#allocation10 + $0xa98] sm:$0xff] }
 0x523   :  { %v5195_v60 = vld [vmem:[#allocation10 + $0xab8] sm:$0xff] }
 0x524   :  { %6004 = vmatpush1.bf16.msra.mxu1 %v15814_v30  ;;  %v15854_v30 = vcombine.low %v5167_v22, %v5171_v62  ;;  %v5199_v4 = vld [vmem:[#allocation10 + $0xad8] sm:$0xff] }
 0x525   :  { %6495 = vmatpush1.bf16.msra.mxu0 %v17573_v34  ;;  %6005 = vmatprep.subr.bf16.mxu1 %v15823_v39  ;;  %v17588_v34 = vld [vmem:[#allocation7 + $0x770] ss:$8 sps:$4 sm:$0xff]   ;;  %v15863_v39 = vcombine.high %v5175_v40, %v5179_v36  ;;  %v5203_v5 = vld [vmem:[#allocation10 + $0xaf8] sm:$0xff] }
 0x526   :  { %6496 = vmatprep.subr.bf16.mxu0 %v17578_v13  ;;  %v17593_v13 = vld [vmem:[#allocation7 + $0x784] ss:$8 sps:$4 sm:$0xff]  }
 0x527   :  { %v5207_v22 = vld [vmem:[#allocation10 + $0xb18] sm:$0xff] }
 0x528   :  { %6006 = vmatpush1.bf16.msra.mxu1 %v15822_v52  ;;  %v15862_v52 = vcombine.low %v5175_v40, %v5179_v36  ;;  %v5211_v62 = vld [vmem:[#allocation10 + $0xb38] sm:$0xff] }
 0x529   :  { %6497 = vmatpush1.bf16.msra.mxu0 %v17576_v2  ;;  %6007 = vmatprep.subr.bf16.mxu1 %v15831_v33  ;;  %v17591_v2 = vld [vmem:[#allocation7 + $0x780] ss:$8 sps:$4 sm:$0xff]   ;;  %v15871_v33 = vcombine.high %v5183_v0, %v5187_v25 }
 0x52a   :  { %6498 = vmatprep.subr.bf16.mxu0 %v17581_v35  ;;  %v17596_v35 = vld [vmem:[#allocation7 + $0x794] ss:$8 sps:$4 sm:$0xff]   ;;  %v5215_v40 = vld [vmem:[#allocation10 + $0xb58] sm:$0xff] }
 0x52b   :  { %v5219_v36 = vld [vmem:[#allocation10 + $0xb78] sm:$0xff] }
 0x52c   :  { %6008 = vmatpush1.bf16.msra.mxu1 %v15830_v32  ;;  %v15870_v32 = vcombine.low %v5183_v0, %v5187_v25  ;;  %v5223_v0 = vld [vmem:[#allocation10 + $0xb98] sm:$0xff] }
 0x52d   :  { %6499 = vmatpush1.bf16.msra.mxu0 %v17579_v12  ;;  %6009 = vmatprep.subr.bf16.mxu1 %v15839_v54  ;;  %v17594_v12 = vld [vmem:[#allocation7 + $0x790] ss:$8 sps:$4 sm:$0xff]   ;;  %v15879_v54 = vcombine.high %v5191_v10, %v5195_v60  ;;  %v5227_v25 = vld [vmem:[#allocation10 + $0xbb8] sm:$0xff] }
 0x52e   :  { %6500 = vmatprep.subr.bf16.mxu0 %v17584_v56  ;;  %v17599_v56 = vld [vmem:[#allocation7 + $0x7a4] ss:$8 sps:$4 sm:$0xff]  }
 0x530   :  { %6010 = vmatpush1.bf16.msra.mxu1 %v15838_v59  ;;  %v15878_v59 = vcombine.low %v5191_v10, %v5195_v60  ;;  %v5231_v10 = vld [vmem:[#allocation10 + $0xbd8] sm:$0xff] }
 0x531   :  { %6501 = vmatpush1.bf16.msra.mxu0 %v17582_v24  ;;  %6011 = vmatprep.subr.bf16.mxu1 %v15847_v20  ;;  %v17597_v24 = vld [vmem:[#allocation7 + $0x7a0] ss:$8 sps:$4 sm:$0xff]   ;;  %v15887_v20 = vcombine.high %v5199_v4, %v5203_v5 }
 0x532   :  { %6502 = vmatprep.subr.bf16.mxu0 %v17587_v42  ;;  %v17602_v42 = vld [vmem:[#allocation7 + $0x7b4] ss:$8 sps:$4 sm:$0xff]   ;;  %v5235_v60 = vld [vmem:[#allocation10 + $0xbf8] sm:$0xff] }
 0x534   :  { %6012 = vmatpush1.bf16.msra.mxu1 %v15846_v17  ;;  %v15886_v17 = vcombine.low %v5199_v4, %v5203_v5  ;;  %v15918_v4 = vcombine.low %v5231_v10, %v5235_v60  ;;  %v17612_v5 = vld [vmem:[#allocation7 + $0x7f0] ss:$8 sps:$4 sm:$0xff]  }
 0x535   :  { %6503 = vmatpush1.bf16.msra.mxu0 %v17585_v23  ;;  %6013 = vmatprep.subr.bf16.mxu1 %v15855_v21  ;;  %v17600_v23 = vld [vmem:[#allocation7 + $0x7b0] ss:$8 sps:$4 sm:$0xff]   ;;  %v15895_v21 = vcombine.high %v5207_v22, %v5211_v62 }
 0x536   :  { %6504 = vmatprep.subr.bf16.mxu0 %v17590_v26  ;;  %v17605_v26 = vld [vmem:[#allocation7 + $0x7c4] ss:$8 sps:$4 sm:$0xff]  }
 0x538   :  { %6014 = vmatpush1.bf16.msra.mxu1 %v15854_v30  ;;  %v15894_v30 = vcombine.low %v5207_v22, %v5211_v62  ;;  %v6538_v22 = vld [vmem:[#allocation10 + $0xc10] sm:$0xff] }
 0x539   :  { %6505 = vmatpush1.bf16.msra.mxu0 %v17588_v34  ;;  %6015 = vmatprep.subr.bf16.mxu1 %v15863_v39  ;;  %v17603_v34 = vld [vmem:[#allocation7 + $0x7c0] ss:$8 sps:$4 sm:$0xff]   ;;  %v15903_v39 = vcombine.high %v5215_v40, %v5219_v36 }
 0x53a   :  { %6506 = vmatprep.subr.bf16.mxu0 %v17593_v13  ;;  %v17608_v13 = vld [vmem:[#allocation7 + $0x7d4] ss:$8 sps:$4 sm:$0xff]  }
 0x53c   :  { %6016 = vmatpush1.bf16.msra.mxu1 %v15862_v52  ;;  %v15902_v52 = vcombine.low %v5215_v40, %v5219_v36 }
 0x53d   :  { %6507 = vmatpush1.bf16.msra.mxu0 %v17591_v2  ;;  %6017 = vmatprep.subr.bf16.mxu1 %v15871_v33  ;;  %v17606_v2 = vld [vmem:[#allocation7 + $0x7d0] ss:$8 sps:$4 sm:$0xff]   ;;  %v15911_v33 = vcombine.high %v5223_v0, %v5227_v25 }
 0x53e   :  { %6508 = vmatprep.subr.bf16.mxu0 %v17596_v35  ;;  %v17611_v35 = vld [vmem:[#allocation7 + $0x7e4] ss:$8 sps:$4 sm:$0xff]  }
 0x540   :  { %6018 = vmatpush1.bf16.msra.mxu1 %v15870_v32  ;;  %v15910_v32 = vcombine.low %v5223_v0, %v5227_v25  ;;  %v6556_v0 = vld [vmem:[#allocation10 + $0xca0] sm:$0xff]  ;;  %v6554_v25 = vld [vmem:[#allocation10 + $0xc90] sm:$0xff] }
 0x541   :  { %6509 = vmatpush1.bf16.msra.mxu0 %v17594_v12  ;;  %6019 = vmatprep.subr.bf16.mxu1 %v15879_v54  ;;  %v17609_v12 = vld [vmem:[#allocation7 + $0x7e0] ss:$8 sps:$4 sm:$0xff]   ;;  %v15919_v54 = vcombine.high %v5231_v10, %v5235_v60  ;;  %v6560_v10 = vld [vmem:[#allocation10 + $0xcc0] sm:$0xff] }
 0x542   :  { %6510 = vmatprep.subr.bf16.mxu0 %v17599_v56  ;;  %v17614_v56 = vld [vmem:[#allocation7 + $0x7f4] ss:$8 sps:$4 sm:$0xff]  }
 0x543   :  { %v6564_v60 = vld [vmem:[#allocation10 + $0xce0] sm:$0xff] }
 0x544   :  { %6020 = vmatpush1.bf16.msra.mxu1 %v15878_v59  ;;  %v1764_v59 = vmax.f32 %v18909_v38, 0.0  ;;  %v6550_v38 = vld [vmem:[#allocation10 + $0xc70] sm:$0xff] }
 0x545   :  { %6511 = vmatpush1.bf16.msra.mxu0 %v17597_v24  ;;  %6021 = vmatprep.subr.bf16.mxu1 %v15887_v20  ;;  %v6536_v20 = vld [vmem:[#allocation10 + $0xc00] sm:$0xff] }
 0x546   :  { %6512 = vmatprep.subr.bf16.mxu0 %v17602_v42  ;;  %v6050_v24 = vpack.c.bf16 %v1764_v59, %v1764_v59  ;;  %v6540_v42 = vld [vmem:[#allocation10 + $0xc20] sm:$0xff] }
 0x547   :  { %v15984_v62 = vcombine.low %v6536_v20, %v6540_v42  ;;  %v6568_v59 = vld [vmem:[#allocation10 + $0xd00] sm:$0xff] }
 0x548   :  { %6022 = vmatpush1.bf16.msra.mxu1 %v15886_v17  ;;  %v15985_v17 = vcombine.high %v6536_v20, %v6540_v42  ;;  %v6570_v20 = vld [vmem:[#allocation10 + $0xd10] sm:$0xff] }
 0x549   :  { %6513 = vmatpush1.bf16.msra.mxu0 %v17600_v23  ;;  %6023 = vmatprep.subr.bf16.mxu1 %v15895_v21  ;;  %v6542_v23 = vld [vmem:[#allocation10 + $0xc30] sm:$0xff]  ;;  %v6544_v21 = vld [vmem:[#allocation10 + $0xc40] sm:$0xff] }
 0x54a   :  { %6514 = vmatprep.subr.bf16.mxu0 %v17605_v26  ;;  %v6548_v26 = vld [vmem:[#allocation10 + $0xc60] sm:$0xff]  ;;  %v15988_v40 = vcombine.low %v6538_v22, %v6542_v23  ;;  %v15989_v36 = vcombine.high %v6538_v22, %v6542_v23  ;;  %v6574_v42 = vld [vmem:[#allocation10 + $0xd30] sm:$0xff]  ;;  %v16008_v22 = vcombine.low %v6560_v10, %v6564_v60 }
 0x54b   :  { %v16021_v23 = vcombine.high %v6570_v20, %v6574_v42 }
 0x54c   :  { %6024 = vmatpush1.bf16.msra.mxu1 %v15894_v30  ;;  %v15993_v30 = vcombine.high %v6544_v21, %v6548_v26 }
 0x54d   :  { %6515 = vmatpush1.bf16.msra.mxu0 %v17603_v34  ;;  %6025 = vmatprep.subr.bf16.mxu1 %v15903_v39  ;;  %v6546_v34 = vld [vmem:[#allocation10 + $0xc50] sm:$0xff]  ;;  %v6552_v39 = vld [vmem:[#allocation10 + $0xc80] sm:$0xff] }
 0x54e   :  { %6516 = vmatprep.subr.bf16.mxu0 %v17608_v13  ;;  %v15997_v13 = vcombine.high %v6546_v34, %v6550_v38 }
 0x550   :  { %6026 = vmatpush1.bf16.msra.mxu1 %v15902_v52  ;;  %v15992_v52 = vcombine.low %v6544_v21, %v6548_v26  ;;  %v6576_v21 = vld [vmem:[#allocation10 + $0xd40] sm:$0xff] }
 0x551   :  { %6517 = vmatpush1.bf16.msra.mxu0 %v17606_v2  ;;  %6027 = vmatprep.subr.bf16.mxu1 %v15911_v33  ;;  %v15996_v2 = vcombine.low %v6546_v34, %v6550_v38  ;;  %v16001_v33 = vcombine.high %v6552_v39, %v6556_v0  ;;  %v6580_v26 = vld [vmem:[#allocation10 + $0xd60] sm:$0xff]  ;;  %v16020_v34 = vcombine.low %v6570_v20, %v6574_v42  ;;  %v6602_v20 = vld [vmem:[#allocation10 + $0xe10] sm:$0xff] }
 0x552   :  { %6518 = vmatprep.subr.bf16.mxu0 %v17611_v35  ;;  %v16025_v38 = vcombine.high %v6576_v21, %v6580_v26  ;;  %v6606_v42 = vld [vmem:[#allocation10 + $0xe30] sm:$0xff] }
 0x554   :  { %6028 = vmatpush1.bf16.msra.mxu1 %v15910_v32  ;;  %v6562_v32 = vld [vmem:[#allocation10 + $0xcd0] sm:$0xff] }
 0x555   :  { %6519 = vmatpush1.bf16.msra.mxu0 %v17609_v12  ;;  %6029 = vmatprep.subr.bf16.mxu1 %v15919_v54  ;;  %v6566_v12 = vld [vmem:[#allocation10 + $0xcf0] sm:$0xff]  ;;  %v16000_v54 = vcombine.low %v6552_v39, %v6556_v0  ;;  %v6588_v0 = vld [vmem:[#allocation10 + $0xda0] sm:$0xff] }
 0x556   :  { %6520 = vmatprep.subr.bf16.mxu0 %v17614_v56 }
 0x558   :  { %6030 = vmatpush1.bf16.msra.mxu1 %v15918_v4  ;;  %v16009_v4 = vcombine.high %v6560_v10, %v6564_v60  ;;  %v6592_v10 = vld [vmem:[#allocation10 + $0xdc0] sm:$0xff] }
 0x559   :  { %6521 = vmatpush1.bf16.msra.mxu0 %v17612_v5  ;;  %7304 = vmatprep.subr.bf16.mxu1 %v15985_v17  ;;  %v16013_v5 = vcombine.high %v6562_v32, %v6566_v12  ;;  %v6596_v60 = vld [vmem:[#allocation10 + $0xde0] sm:$0xff] }
 0x55a   :  { %7386 = vmatprep.subr.bf16.mxu0 %v15989_v36  ;;  %v6582_v36 = vld [vmem:[#allocation10 + $0xd70] sm:$0xff] }
 0x55b   :  { %6032 = vmatmul.mubr.bf16.vlgmr.msra.gmra.mrb[60].mxu1 %v19068_v58  ;;  %v6558_v58 = vld [vmem:[#allocation10 + $0xcb0] sm:$0xff] }
 0x55c   :  { %6523 = vmatmul.mubr.bf16.vlgmr.msra.gmra.mrb[60].mxu0 %v6050_v24  ;;  %7305 = vmatpush1.bf16.msra.mxu1 %v15984_v62  ;;  %v16005_v35 = vcombine.high %v6554_v25, %v6558_v58  ;;  %v16004_v56 = vcombine.low %v6554_v25, %v6558_v58  ;;  %v6572_v24 = vld [vmem:[#allocation10 + $0xd20] sm:$0xff]  ;;  %v16012_v62 = vcombine.low %v6562_v32, %v6566_v12  ;;  %v6586_v25 = vld [vmem:[#allocation10 + $0xd90] sm:$0xff] }
 0x55d   :  { %7387 = vmatpush1.bf16.msra.mxu0 %v15988_v40  ;;  %7306 = vmatprep.subr.bf16.mxu1 %v15993_v30  ;;  %v16017_v17 = vcombine.high %v6568_v59, %v6572_v24  ;;  %v6578_v40 = vld [vmem:[#allocation10 + $0xd50] sm:$0xff]  ;;  %v16016_v30 = vcombine.low %v6568_v59, %v6572_v24  ;;  %v6600_v59 = vld [vmem:[#allocation10 + $0xe00] sm:$0xff] }
 0x55e   :  { %7388 = vmatprep.subr.bf16.mxu0 %v15997_v13  ;;  %v16029_v39 = vcombine.high %v6578_v40, %v6582_v36  ;;  %v6584_v13 = vld [vmem:[#allocation10 + $0xd80] sm:$0xff]  ;;  %v6590_v58 = vld [vmem:[#allocation10 + $0xdb0] sm:$0xff] }
 0x55f   :  { %v6594_v32 = vld [vmem:[#allocation10 + $0xdd0] sm:$0xff]  ;;  %v6604_v24 = vld [vmem:[#allocation10 + $0xe20] sm:$0xff] }
 0x560   :  { %7307 = vmatpush1.bf16.msra.mxu1 %v15992_v52  ;;  %v16024_v52 = vcombine.low %v6576_v21, %v6580_v26  ;;  %v6598_v12 = vld [vmem:[#allocation10 + $0xdf0] sm:$0xff]  ;;  %v6608_v21 = vld [vmem:[#allocation10 + $0xe40] sm:$0xff] }
 0x561   :  { %7389 = vmatpush1.bf16.msra.mxu0 %v15996_v2  ;;  %7308 = vmatprep.subr.bf16.mxu1 %v16001_v33  ;;  %v16028_v2 = vcombine.low %v6578_v40, %v6582_v36  ;;  %v16033_v33 = vcombine.high %v6584_v13, %v6588_v0  ;;  %v6612_v26 = vld [vmem:[#allocation10 + $0xe60] sm:$0xff]  ;;  %v6610_v40 = vld [vmem:[#allocation10 + $0xe50] sm:$0xff] }
 0x562   :  { %7390 = vmatprep.subr.bf16.mxu0 %v16005_v35  ;;  %v16037_v35 = vcombine.high %v6586_v25, %v6590_v58  ;;  %v6614_v36 = vld [vmem:[#allocation10 + $0xe70] sm:$0xff] }
 0x564   :  { %7309 = vmatpush1.bf16.msra.mxu1 %v16000_v54  ;;  %v16032_v54 = vcombine.low %v6584_v13, %v6588_v0  ;;  %v6616_v13 = vld [vmem:[#allocation10 + $0xe80] sm:$0xff] }
 0x565   :  { %7391 = vmatpush1.bf16.msra.mxu0 %v16004_v56  ;;  %7310 = vmatprep.subr.bf16.mxu1 %v16009_v4  ;;  %v16036_v56 = vcombine.low %v6586_v25, %v6590_v58  ;;  %v16041_v4 = vcombine.high %v6592_v10, %v6596_v60  ;;  %v6620_v0 = vld [vmem:[#allocation10 + $0xea0] sm:$0xff]  ;;  %v6618_v25 = vld [vmem:[#allocation10 + $0xe90] sm:$0xff] }
 0x566   :  { %7392 = vmatprep.subr.bf16.mxu0 %v16013_v5  ;;  %v16045_v5 = vcombine.high %v6594_v32, %v6598_v12  ;;  %v6622_v58 = vld [vmem:[#allocation10 + $0xeb0] sm:$0xff] }
 0x568   :  { %7311 = vmatpush1.bf16.msra.mxu1 %v16008_v22  ;;  %v16040_v22 = vcombine.low %v6592_v10, %v6596_v60  ;;  %v6624_v10 = vld [vmem:[#allocation10 + $0xec0] sm:$0xff] }
 0x569   :  { %7393 = vmatpush1.bf16.msra.mxu0 %v16012_v62  ;;  %7312 = vmatprep.subr.bf16.mxu1 %v16017_v17  ;;  %v16044_v62 = vcombine.low %v6594_v32, %v6598_v12  ;;  %v16049_v17 = vcombine.high %v6600_v59, %v6604_v24  ;;  %v6628_v60 = vld [vmem:[#allocation10 + $0xee0] sm:$0xff]  ;;  %v6626_v32 = vld [vmem:[#allocation10 + $0xed0] sm:$0xff] }
 0x56a   :  { %7394 = vmatprep.subr.bf16.mxu0 %v16021_v23  ;;  %v16053_v23 = vcombine.high %v6602_v20, %v6606_v42  ;;  %v6630_v12 = vld [vmem:[#allocation10 + $0xef0] sm:$0xff] }
 0x56c   :  { %7313 = vmatpush1.bf16.msra.mxu1 %v16016_v30  ;;  %v16048_v30 = vcombine.low %v6600_v59, %v6604_v24  ;;  %v6632_v59 = vld [vmem:[#allocation10 + $0xf00] sm:$0xff] }
 0x56d   :  { %7395 = vmatpush1.bf16.msra.mxu0 %v16020_v34  ;;  %7314 = vmatprep.subr.bf16.mxu1 %v16025_v38  ;;  %v16052_v34 = vcombine.low %v6602_v20, %v6606_v42  ;;  %v16057_v38 = vcombine.high %v6608_v21, %v6612_v26  ;;  %v6636_v24 = vld [vmem:[#allocation10 + $0xf20] sm:$0xff]  ;;  %v6634_v20 = vld [vmem:[#allocation10 + $0xf10] sm:$0xff] }
 0x56e   :  { %7396 = vmatprep.subr.bf16.mxu0 %v16029_v39  ;;  %v16061_v39 = vcombine.high %v6610_v40, %v6614_v36  ;;  %v6638_v42 = vld [vmem:[#allocation10 + $0xf30] sm:$0xff] }
 0x570   :  { %7315 = vmatpush1.bf16.msra.mxu1 %v16024_v52  ;;  %v16056_v52 = vcombine.low %v6608_v21, %v6612_v26  ;;  %v6640_v21 = vld [vmem:[#allocation10 + $0xf40] sm:$0xff] }
 0x571   :  { %7397 = vmatpush1.bf16.msra.mxu0 %v16028_v2  ;;  %7316 = vmatprep.subr.bf16.mxu1 %v16033_v33  ;;  %v16060_v2 = vcombine.low %v6610_v40, %v6614_v36  ;;  %v16065_v33 = vcombine.high %v6616_v13, %v6620_v0  ;;  %v6644_v26 = vld [vmem:[#allocation10 + $0xf60] sm:$0xff]  ;;  %v6642_v40 = vld [vmem:[#allocation10 + $0xf50] sm:$0xff] }
 0x572   :  { %7398 = vmatprep.subr.bf16.mxu0 %v16037_v35  ;;  %v16069_v35 = vcombine.high %v6618_v25, %v6622_v58  ;;  %v6646_v36 = vld [vmem:[#allocation10 + $0xf70] sm:$0xff] }
 0x574   :  { %7317 = vmatpush1.bf16.msra.mxu1 %v16032_v54  ;;  %v16064_v54 = vcombine.low %v6616_v13, %v6620_v0  ;;  %v16088_v13 = vcombine.low %v6640_v21, %v6644_v26  ;;  %v16092_v0 = vcombine.low %v6642_v40, %v6646_v36 }
 0x575   :  { %7399 = vmatpush1.bf16.msra.mxu0 %v16036_v56  ;;  %7318 = vmatprep.subr.bf16.mxu1 %v16041_v4  ;;  %v16068_v56 = vcombine.low %v6618_v25, %v6622_v58  ;;  %v16073_v4 = vcombine.high %v6624_v10, %v6628_v60  ;;  %v6648_v25 = vld [vmem:[#allocation10 + $0xf80] sm:$0xff] }
 0x576   :  { %7400 = vmatprep.subr.bf16.mxu0 %v16045_v5  ;;  %v16077_v5 = vcombine.high %v6626_v32, %v6630_v12  ;;  %v6652_v58 = vld [vmem:[#allocation10 + $0xfa0] sm:$0xff] }
 0x578   :  { %7319 = vmatpush1.bf16.msra.mxu1 %v16040_v22  ;;  %v16072_v22 = vcombine.low %v6624_v10, %v6628_v60  ;;  %v16096_v60 = vcombine.low %v6648_v25, %v6652_v58 }
 0x579   :  { %7401 = vmatpush1.bf16.msra.mxu0 %v16044_v62  ;;  %7320 = vmatprep.subr.bf16.mxu1 %v16049_v17  ;;  %v16076_v62 = vcombine.low %v6626_v32, %v6630_v12  ;;  %v16081_v17 = vcombine.high %v6632_v59, %v6636_v24 }
 0x57a   :  { %7402 = vmatprep.subr.bf16.mxu0 %v16053_v23  ;;  %v16085_v23 = vcombine.high %v6634_v20, %v6638_v42 }
 0x57c   :  { %7321 = vmatpush1.bf16.msra.mxu1 %v16048_v30  ;;  %v16080_v30 = vcombine.low %v6632_v59, %v6636_v24 }
 0x57d   :  { %7403 = vmatpush1.bf16.msra.mxu0 %v16052_v34  ;;  %7322 = vmatprep.subr.bf16.mxu1 %v16057_v38  ;;  %v16084_v34 = vcombine.low %v6634_v20, %v6638_v42  ;;  %v16089_v38 = vcombine.high %v6640_v21, %v6644_v26  ;;  %v6662_v21 = vld [vmem:[#allocation10 + $0xff0] sm:$0xff] }
 0x57e   :  { %7404 = vmatprep.subr.bf16.mxu0 %v16061_v39  ;;  %v16093_v39 = vcombine.high %v6642_v40, %v6646_v36 }
 0x580   :  { %7323 = vmatpush1.bf16.msra.mxu1 %v16056_v52  ;;  %v6650_v52 = vld [vmem:[#allocation10 + $0xf90] sm:$0xff] }
 0x581   :  { %7405 = vmatpush1.bf16.msra.mxu0 %v16060_v2  ;;  %7324 = vmatprep.subr.bf16.mxu1 %v16065_v33  ;;  %v16097_v2 = vcombine.high %v6648_v25, %v6652_v58  ;;  %v6654_v33 = vld [vmem:[#allocation10 + $0xfb0] sm:$0xff] }
 0x582   :  { %7406 = vmatprep.subr.bf16.mxu0 %v16069_v35  ;;  %v16100_v32 = vcombine.low %v6650_v52, %v6654_v33  ;;  %v16101_v12 = vcombine.high %v6650_v52, %v6654_v33  ;;  %v19099_v33 = vld [vmem:[#allocation5 + $0x10] sm:$0xff] }
 0x584   :  { %7325 = vmatpush1.bf16.msra.mxu1 %v16064_v54 }
 0x585   :  { %7407 = vmatpush1.bf16.msra.mxu0 %v16068_v56  ;;  %7326 = vmatprep.subr.bf16.mxu1 %v16073_v4 }
 0x586   :  { %7408 = vmatprep.subr.bf16.mxu0 %v16077_v5 }
 0x588   :  { %7327 = vmatpush1.bf16.msra.mxu1 %v16072_v22  ;;  %v6656_v22 = vld [vmem:[#allocation10 + $0xfc0] sm:$0xff] }
 0x589   :  { %7409 = vmatpush1.bf16.msra.mxu0 %v16076_v62  ;;  %7328 = vmatprep.subr.bf16.mxu1 %v16081_v17  ;;  %v6660_v62 = vld [vmem:[#allocation10 + $0xfe0] sm:$0xff] }
 0x58a   :  { %7410 = vmatprep.subr.bf16.mxu0 %v16085_v23  ;;  %v16104_v26 = vcombine.low %v6656_v22, %v6660_v62 }
 0x58c   :  { %7329 = vmatpush1.bf16.msra.mxu1 %v16080_v30 }
 0x58d   :  { %7411 = vmatpush1.bf16.msra.mxu0 %v16084_v34  ;;  %7330 = vmatprep.subr.bf16.mxu1 %v16089_v38  ;;  %v17617_v34 = vld [vmem:[#allocation7 + $0x804] ss:$8 sps:$4 sm:$0xff]  }
 0x58e   :  { %7412 = vmatprep.subr.bf16.mxu0 %v16093_v39 }
 0x590   :  { %7331 = vmatpush1.bf16.msra.mxu1 %v16088_v13 }
 0x591   :  { %7413 = vmatpush1.bf16.msra.mxu0 %v16092_v0  ;;  %7332 = vmatprep.subr.bf16.mxu1 %v16097_v2  ;;  %v6117_v2 = vld [vmem:[#allocation8 + $0x6] sm:$0x3] }
 0x592   :  { %7414 = vmatprep.subr.bf16.mxu0 %v16101_v12 }
 0x594   :  { %7333 = vmatpush1.bf16.msra.mxu1 %v16096_v60  ;;  %v6126_v60 = vrot.slane %v6117_v2, %v18849_v15 }
 0x595   :  { %7415 = vmatpush1.bf16.msra.mxu0 %v16100_v32 }
 0x5ae   :  { %v5910_v35 = vpop.f32.mrb[52].mxu1  ;;  %v5992_v10 = vpop.f32.mrb[56].mxu0 }
 0x5af   :  { %v19082_v54 = vadd.f32 %v5910_v35, %v19040_v28  ;;  %v19085_v56 = vadd.f32 %v5992_v10, %v19052_v18  ;;  %v5912_v4 = vpop.f32.mrb[53].mxu1  ;;  %v5994_v5 = vpop.f32.mrb[57].mxu0  ;;  %v6658_v28 = vld [vmem:[#allocation10 + $0xfd0] sm:$0xff]  ;;  %v16105_v18 = vcombine.high %v6656_v22, %v6660_v62  ;;  %v361_v35 = vrot.slane %v19099_v33, %v18849_v15 }
 0x5b0   :  { %v19088_v59 = vadd.f32 %v5912_v4, %v19046_v51  ;;  %v19091_v24 = vadd.f32 %v5994_v5, %v19058_v29  ;;  %v5914_v20 = vpop.f32.mrb[54].mxu1  ;;  %v5996_v42 = vpop.f32.mrb[58].mxu0  ;;  %v16108_v40 = vcombine.low %v6658_v28, %v6662_v21  ;;  %v16109_v36 = vcombine.high %v6658_v28, %v6662_v21  ;;  %v6537_v51 = vld [vmem:[#allocation10 + $0xc08] sm:$0xff] }
 0x5b1   :  { %v5915_v17 = vpop.f32.mrb[55].mxu1  ;;  %v5997_v23 = vpop.f32.mrb[59].mxu0  ;;  %7334 = vmatprep.subr.bf16.mxu1 %v16105_v18  ;;  %v6541_v29 = vld [vmem:[#allocation10 + $0xc28] sm:$0xff]  ;;  %v6122_v10 = vrot.slane %v6117_v2, %v18846_v14  ;;  %v17623_v2 = vld [vmem:[#allocation7 + $0x824] ss:$8 sps:$4 sm:$0xff]  }
 0x5b2   :  { %7416 = vmatprep.subr.bf16.mxu0 %v16109_v36  ;;  %7335 = vmatpush1.bf16.msra.mxu1 %v16104_v26  ;;  %v15987_v30 = vcombine.high %v6537_v51, %v6541_v29  ;;  %v15986_v38 = vcombine.low %v6537_v51, %v6541_v29  ;;  %v17615_v51 = vld [vmem:[#allocation7 + $0x800] ss:$8 sps:$4 sm:$0xff]  }
 0x5b3   :  { %7417 = vmatpush1.bf16.msra.mxu0 %v16108_v40  ;;  %v6545_v40 = vld [vmem:[#allocation10 + $0xc48] sm:$0xff] }
 0x5b4   :  { %7345 = vmatprep.subr.bf16.mxu1 %v15987_v30  ;;  %7877 = vmatprep.subr.bf16.mxu0 %v17617_v34  ;;  %v6553_v30 = vld [vmem:[#allocation10 + $0xc88] sm:$0xff] }
 0x5b5   :  { %v6557_v34 = vld [vmem:[#allocation10 + $0xca8] sm:$0xff] }
 0x5ee   :  { %v5951_v39 = vpop.f32.mrb[56].mxu1 }
 0x5ef   :  { %v19094_v13 = vadd.f32 %v5951_v39, %v19043_v49  ;;  %v5953_v0 = vpop.f32.mrb[57].mxu1 }
 0x5f0   :  { %v19097_v25 = vadd.f32 %v5953_v0, %v19049_v57  ;;  %v5955_v58 = vpop.f32.mrb[58].mxu1  ;;  %v1459_v57 = vadd.f32 %v18920_v45, %v361_v35  ;;  %v6561_v35 = vld [vmem:[#allocation10 + $0xcc8] sm:$0xff] }
 0x5f1   :  { %v5956_v52 = vpop.f32.mrb[59].mxu1  ;;  %v17618_v58 = vld [vmem:[#allocation7 + $0x810] ss:$8 sps:$4 sm:$0xff]  }
 0x5f2   :  { %v1767_v26 = vmax.f32 %v1459_v57, 0.0  ;;  %v16003_v52 = vcombine.high %v6553_v30, %v6557_v34  ;;  %v6573_v57 = vld [vmem:[#allocation10 + $0xd28] sm:$0xff] }
 0x5f4   :  { %v7477_v39 = vpack.c.bf16 %v1767_v26, %v1767_v26  ;;  %v17632_v26 = vld [vmem:[#allocation7 + $0x854] ss:$8 sps:$4 sm:$0xff]  }
 0x62e   :  { %v6033_v32 = vpop.f32.mrb[60].mxu1 }
 0x62f   :  { %v19106_v49 = vadd.f32 %v6033_v32, %v19055_v1  ;;  %v6524_v12 = vpop.f32.mrb[60].mxu0  ;;  %v6035_v4 = vpop.f32.mrb[61].mxu1  ;;  %v6549_v1 = vld [vmem:[#allocation10 + $0xc68] sm:$0xff]  ;;  %v17621_v32 = vld [vmem:[#allocation7 + $0x820] ss:$8 sps:$4 sm:$0xff]  }
 0x630   :  { %v17144_v5 = vadd.f32 %v6524_v12, %v6122_v10  ;;  %v19110_v20 = vadd.f32 %v6035_v4, %v19061_v55  ;;  %v6526_v42 = vpop.f32.mrb[61].mxu0  ;;  %v6037_v22 = vpop.f32.mrb[62].mxu1  ;;  %v15995_v45 = vcombine.high %v6545_v40, %v6549_v1  ;;  %v17620_v55 = vld [vmem:[#allocation7 + $0x814] ss:$8 sps:$4 sm:$0xff]   ;;  %v15994_v0 = vcombine.low %v6545_v40, %v6549_v1 }
 0x631   :  { %v17145_v62 = vadd.f32 %v6526_v42, %v6126_v60  ;;  %v6528_v28 = vpop.f32.mrb[62].mxu0  ;;  %v6038_v17 = vpop.f32.mrb[63].mxu1  ;;  %v6565_v10 = vld [vmem:[#allocation10 + $0xce8] sm:$0xff]  ;;  %v16002_v60 = vcombine.low %v6553_v30, %v6557_v34  ;;  %v17635_v30 = vld [vmem:[#allocation7 + $0x864] ss:$8 sps:$4 sm:$0xff]  }
 0x632   :  { %v6531_v23 = vmax.f32 %v17144_v5, 0.0  ;;  %v6529_v18 = vpop.f32.mrb[63].mxu0  ;;  %v16011_v12 = vcombine.high %v6561_v35, %v6565_v10  ;;  %v6569_v4 = vld [vmem:[#allocation10 + $0xd08] sm:$0xff]  ;;  %v16010_v5 = vcombine.low %v6561_v35, %v6565_v10 }
 0x633   :  { %v6532_v21 = vmax.f32 %v17145_v62, 0.0  ;;  %v17624_v42 = vld [vmem:[#allocation7 + $0x830] ss:$8 sps:$4 sm:$0xff]   ;;  %v16019_v22 = vcombine.high %v6569_v4, %v6573_v57  ;;  %v17629_v62 = vld [vmem:[#allocation7 + $0x844] ss:$8 sps:$4 sm:$0xff]  }
 0x634   :  { %v19114_v29 = vpack.c.bf16 %v6531_v23, %v6531_v23  ;;  %v6577_v28 = vld [vmem:[#allocation10 + $0xd48] sm:$0xff]  ;;  %v16018_v23 = vcombine.low %v6569_v4, %v6573_v57  ;;  %v17627_v18 = vld [vmem:[#allocation7 + $0x840] ss:$8 sps:$4 sm:$0xff]  }
 0x635   :  { %v19112_v36 = vpack.c.bf16 %v6532_v21, %v6532_v21  ;;  %v6581_v17 = vld [vmem:[#allocation10 + $0xd68] sm:$0xff] }
 0x636   :  { %v16027_v21 = vcombine.high %v6577_v28, %v6581_v17  ;;  %v6585_v40 = vld [vmem:[#allocation10 + $0xd88] sm:$0xff] }
 0x637   :  { %7336 = vmatprep.mubr.bf16.mxu1 %v19112_v36  ;;  %7418 = vmatprep.mubr.bf16.mxu0 %v19112_v36  ;;  %v6589_v1 = vld [vmem:[#allocation10 + $0xda8] sm:$0xff] }
 0x638   :  { %7337 = vmatmul.mubr.bf16.vlgmr.msra.gmra.mrb[64].mxu1 %v19114_v29  ;;  %7419 = vmatmul.mubr.bf16.vlgmr.msra.gmra.mrb[64].mxu0 %v19114_v29  ;;  %v6593_v34 = vld [vmem:[#allocation10 + $0xdc8] sm:$0xff] }
 0x639   :  { %7346 = vmatpush1.bf16.msra.mxu1 %v15986_v38  ;;  %7878 = vmatpush1.bf16.msra.mxu0 %v17615_v51  ;;  %v17626_v38 = vld [vmem:[#allocation7 + $0x834] ss:$8 sps:$4 sm:$0xff]   ;;  %v16026_v51 = vcombine.low %v6577_v28, %v6581_v17 }
 0x63a   :  { %7377 = vmatprep.mubr.bf16.mxu1 %v19112_v36  ;;  %7909 = vmatprep.mubr.bf16.mxu0 %v7477_v39  ;;  %v6597_v39 = vld [vmem:[#allocation10 + $0xde8] sm:$0xff] }
 0x63b   :  { %7347 = vmatprep.subr.bf16.mxu1 %v15995_v45  ;;  %7879 = vmatprep.subr.bf16.mxu0 %v17620_v55  ;;  %v17630_v45 = vld [vmem:[#allocation7 + $0x850] ss:$8 sps:$4 sm:$0xff]   ;;  %v16035_v55 = vcombine.high %v6585_v40, %v6589_v1 }
 0x63c   :  { %v6601_v35 = vld [vmem:[#allocation10 + $0xe08] sm:$0xff] }
 0x63d   :  { %7348 = vmatpush1.bf16.msra.mxu1 %v15994_v0  ;;  %7880 = vmatpush1.bf16.msra.mxu0 %v17618_v58  ;;  %v16034_v0 = vcombine.low %v6585_v40, %v6589_v1  ;;  %v17633_v58 = vld [vmem:[#allocation7 + $0x860] ss:$8 sps:$4 sm:$0xff]   ;;  %v6605_v10 = vld [vmem:[#allocation10 + $0xe28] sm:$0xff] }
 0x63e   :  { %7349 = vmatprep.subr.bf16.mxu1 %v16003_v52  ;;  %7881 = vmatprep.subr.bf16.mxu0 %v17623_v2  ;;  %v16043_v52 = vcombine.high %v6593_v34, %v6597_v39  ;;  %v17638_v2 = vld [vmem:[#allocation7 + $0x874] ss:$8 sps:$4 sm:$0xff]  }
 0x63f   :  { %v6609_v4 = vld [vmem:[#allocation10 + $0xe48] sm:$0xff] }
 0x640   :  { %v6613_v57 = vld [vmem:[#allocation10 + $0xe68] sm:$0xff] }
 0x641   :  { %7350 = vmatpush1.bf16.msra.mxu1 %v16002_v60  ;;  %7882 = vmatpush1.bf16.msra.mxu0 %v17621_v32  ;;  %v16042_v60 = vcombine.low %v6593_v34, %v6597_v39  ;;  %v17636_v32 = vld [vmem:[#allocation7 + $0x870] ss:$8 sps:$4 sm:$0xff]  }
 0x642   :  { %7351 = vmatprep.subr.bf16.mxu1 %v16011_v12  ;;  %7883 = vmatprep.subr.bf16.mxu0 %v17626_v38  ;;  %v16051_v12 = vcombine.high %v6601_v35, %v6605_v10  ;;  %v17641_v38 = vld [vmem:[#allocation7 + $0x884] ss:$8 sps:$4 sm:$0xff]   ;;  %v6617_v28 = vld [vmem:[#allocation10 + $0xe88] sm:$0xff] }
 0x643   :  { %v6621_v17 = vld [vmem:[#allocation10 + $0xea8] sm:$0xff] }
 0x644   :  { %v6625_v40 = vld [vmem:[#allocation10 + $0xec8] sm:$0xff] }
 0x645   :  { %7352 = vmatpush1.bf16.msra.mxu1 %v16010_v5  ;;  %7884 = vmatpush1.bf16.msra.mxu0 %v17624_v42  ;;  %v16050_v5 = vcombine.low %v6601_v35, %v6605_v10  ;;  %v17639_v42 = vld [vmem:[#allocation7 + $0x880] ss:$8 sps:$4 sm:$0xff]   ;;  %v6629_v1 = vld [vmem:[#allocation10 + $0xee8] sm:$0xff] }
 0x646   :  { %7353 = vmatprep.subr.bf16.mxu1 %v16019_v22  ;;  %7885 = vmatprep.subr.bf16.mxu0 %v17629_v62  ;;  %v16059_v22 = vcombine.high %v6609_v4, %v6613_v57  ;;  %v17644_v62 = vld [vmem:[#allocation7 + $0x894] ss:$8 sps:$4 sm:$0xff]  }
 0x647   :  { %v6633_v34 = vld [vmem:[#allocation10 + $0xf08] sm:$0xff] }
 0x648   :  { %v6637_v39 = vld [vmem:[#allocation10 + $0xf28] sm:$0xff] }
 0x649   :  { %7354 = vmatpush1.bf16.msra.mxu1 %v16018_v23  ;;  %7886 = vmatpush1.bf16.msra.mxu0 %v17627_v18  ;;  %v16058_v23 = vcombine.low %v6609_v4, %v6613_v57  ;;  %v17642_v18 = vld [vmem:[#allocation7 + $0x890] ss:$8 sps:$4 sm:$0xff]  }
 0x64a   :  { %7355 = vmatprep.subr.bf16.mxu1 %v16027_v21  ;;  %7887 = vmatprep.subr.bf16.mxu0 %v17632_v26  ;;  %v16067_v21 = vcombine.high %v6617_v28, %v6621_v17  ;;  %v17647_v26 = vld [vmem:[#allocation7 + $0x8a4] ss:$8 sps:$4 sm:$0xff]   ;;  %v6641_v35 = vld [vmem:[#allocation10 + $0xf48] sm:$0xff] }
 0x64b   :  { %v6645_v10 = vld [vmem:[#allocation10 + $0xf68] sm:$0xff] }
 0x64c   :  { %v6649_v4 = vld [vmem:[#allocation10 + $0xf88] sm:$0xff] }
 0x64d   :  { %7356 = vmatpush1.bf16.msra.mxu1 %v16026_v51  ;;  %7888 = vmatpush1.bf16.msra.mxu0 %v17630_v45  ;;  %v16066_v51 = vcombine.low %v6617_v28, %v6621_v17  ;;  %v17645_v45 = vld [vmem:[#allocation7 + $0x8a0] ss:$8 sps:$4 sm:$0xff]   ;;  %v6653_v57 = vld [vmem:[#allocation10 + $0xfa8] sm:$0xff]  ;;  %v17659_v28 = vld [vmem:[#allocation7 + $0x8e4] ss:$8 sps:$4 sm:$0xff]  }
 0x64e   :  { %7357 = vmatprep.subr.bf16.mxu1 %v16035_v55  ;;  %7889 = vmatprep.subr.bf16.mxu0 %v17635_v30  ;;  %v16075_v55 = vcombine.high %v6625_v40, %v6629_v1  ;;  %v17650_v30 = vld [vmem:[#allocation7 + $0x8b4] ss:$8 sps:$4 sm:$0xff]  }
 0x64f   :  { %v6657_v17 = vld [vmem:[#allocation10 + $0xfc8] sm:$0xff] }
 0x651   :  { %7358 = vmatpush1.bf16.msra.mxu1 %v16034_v0  ;;  %7890 = vmatpush1.bf16.msra.mxu0 %v17633_v58  ;;  %v16074_v0 = vcombine.low %v6625_v40, %v6629_v1  ;;  %v17648_v58 = vld [vmem:[#allocation7 + $0x8b0] ss:$8 sps:$4 sm:$0xff]   ;;  %v17662_v1 = vld [vmem:[#allocation7 + $0x8f4] ss:$8 sps:$4 sm:$0xff]  }
 0x652   :  { %7359 = vmatprep.subr.bf16.mxu1 %v16043_v52  ;;  %7891 = vmatprep.subr.bf16.mxu0 %v17638_v2  ;;  %v16083_v52 = vcombine.high %v6633_v34, %v6637_v39  ;;  %v17653_v2 = vld [vmem:[#allocation7 + $0x8c4] ss:$8 sps:$4 sm:$0xff]  }
 0x655   :  { %7360 = vmatpush1.bf16.msra.mxu1 %v16042_v60  ;;  %7892 = vmatpush1.bf16.msra.mxu0 %v17636_v32  ;;  %v16082_v60 = vcombine.low %v6633_v34, %v6637_v39  ;;  %v17651_v32 = vld [vmem:[#allocation7 + $0x8c0] ss:$8 sps:$4 sm:$0xff]   ;;  %v17665_v39 = vld [vmem:[#allocation7 + $0x904] ss:$8 sps:$4 sm:$0xff]  }
 0x656   :  { %7361 = vmatprep.subr.bf16.mxu1 %v16051_v12  ;;  %7893 = vmatprep.subr.bf16.mxu0 %v17641_v38  ;;  %v16091_v12 = vcombine.high %v6641_v35, %v6645_v10  ;;  %v17656_v38 = vld [vmem:[#allocation7 + $0x8d4] ss:$8 sps:$4 sm:$0xff]  }
 0x659   :  { %7362 = vmatpush1.bf16.msra.mxu1 %v16050_v5  ;;  %7894 = vmatpush1.bf16.msra.mxu0 %v17639_v42  ;;  %v16090_v5 = vcombine.low %v6641_v35, %v6645_v10  ;;  %v17654_v42 = vld [vmem:[#allocation7 + $0x8d0] ss:$8 sps:$4 sm:$0xff]   ;;  %v17663_v35 = vld [vmem:[#allocation7 + $0x900] ss:$8 sps:$4 sm:$0xff]  }
 0x65a   :  { %7363 = vmatprep.subr.bf16.mxu1 %v16059_v22  ;;  %7895 = vmatprep.subr.bf16.mxu0 %v17644_v62  ;;  %v357_v22 = vrot.slane %v19099_v33, %v18846_v14  ;;  %v16099_v62 = vcombine.high %v6649_v4, %v6653_v57 }
 0x65d   :  { %7364 = vmatpush1.bf16.msra.mxu1 %v16058_v23  ;;  %7896 = vmatpush1.bf16.msra.mxu0 %v17642_v18  ;;  %v6661_v23 = vld [vmem:[#allocation10 + $0xfe8] sm:$0xff]  ;;  %v16098_v18 = vcombine.low %v6649_v4, %v6653_v57 }
 0x65e   :  { %7365 = vmatprep.subr.bf16.mxu1 %v16067_v21  ;;  %7897 = vmatprep.subr.bf16.mxu0 %v17647_v26  ;;  %v17657_v21 = vld [vmem:[#allocation7 + $0x8e0] ss:$8 sps:$4 sm:$0xff]   ;;  %v1457_v26 = vadd.f32 %v18918_v43, %v357_v22  ;;  %v16107_v40 = vcombine.high %v6657_v17, %v6661_v23  ;;  %v16106_v33 = vcombine.low %v6657_v17, %v6661_v23  ;;  %v17666_v4 = vld [vmem:[#allocation7 + $0x910] ss:$8 sps:$4 sm:$0xff]   ;;  %v17674_v23 = vld [vmem:[#allocation7 + $0x934] ss:$8 sps:$4 sm:$0xff]  }
 0x65f   :  { %v6567_v22 = vld [vmem:[#allocation10 + $0xcf8] sm:$0xff] }
 0x661   :  { %7366 = vmatpush1.bf16.msra.mxu1 %v16066_v51  ;;  %7898 = vmatpush1.bf16.msra.mxu0 %v17645_v45  ;;  %v6539_v51 = vld [vmem:[#allocation10 + $0xc18] sm:$0xff] }
 0x662   :  { %7367 = vmatprep.subr.bf16.mxu1 %v16075_v55  ;;  %7899 = vmatprep.subr.bf16.mxu0 %v17650_v30  ;;  %v6543_v45 = vld [vmem:[#allocation10 + $0xc38] sm:$0xff]  ;;  %v17660_v55 = vld [vmem:[#allocation7 + $0x8f0] ss:$8 sps:$4 sm:$0xff]   ;;  %v1766_v30 = vmax.f32 %v1457_v26, 0.0 }
 0x663   :  { %v15991_v34 = vcombine.high %v6539_v51, %v6543_v45  ;;  %v15990_v43 = vcombine.low %v6539_v51, %v6543_v45  ;;  %v17672_v26 = vld [vmem:[#allocation7 + $0x930] ss:$8 sps:$4 sm:$0xff]   ;;  %v6579_v51 = vld [vmem:[#allocation10 + $0xd58] sm:$0xff] }
 0x664   :  { %v6583_v45 = vld [vmem:[#allocation10 + $0xd78] sm:$0xff] }
 0x665   :  { %7368 = vmatpush1.bf16.msra.mxu1 %v16074_v0  ;;  %7900 = vmatpush1.bf16.msra.mxu0 %v17648_v58  ;;  %v1769_v0 = vmax.f32 %v18928_v6, 0.0  ;;  %v6547_v58 = vld [vmem:[#allocation10 + $0xc58] sm:$0xff] }
 0x666   :  { %7369 = vmatprep.subr.bf16.mxu1 %v16083_v52  ;;  %7901 = vmatprep.subr.bf16.mxu0 %v17653_v2  ;;  %v6551_v52 = vld [vmem:[#allocation10 + $0xc78] sm:$0xff]  ;;  %v7476_v2 = vpack.c.bf16 %v1766_v30, %v1766_v30  ;;  %v16031_v30 = vcombine.high %v6579_v51, %v6583_v45 }
 0x667   :  { %v15999_v10 = vcombine.high %v6547_v58, %v6551_v52  ;;  %v15998_v6 = vcombine.low %v6547_v58, %v6551_v52  ;;  %v16030_v58 = vcombine.low %v6579_v51, %v6583_v45  ;;  %v17678_v52 = vld [vmem:[#allocation7 + $0x950] ss:$8 sps:$4 sm:$0xff]   ;;  %v17695_v45 = vld [vmem:[#allocation7 + $0x9a4] ss:$8 sps:$4 sm:$0xff]  }
 0x669   :  { %7370 = vmatpush1.bf16.msra.mxu1 %v16082_v60  ;;  %7902 = vmatpush1.bf16.msra.mxu0 %v17651_v32  ;;  %v17668_v60 = vld [vmem:[#allocation7 + $0x914] ss:$8 sps:$4 sm:$0xff]   ;;  %v6555_v32 = vld [vmem:[#allocation10 + $0xc98] sm:$0xff] }
 0x66a   :  { %7371 = vmatprep.subr.bf16.mxu1 %v16091_v12  ;;  %7903 = vmatprep.subr.bf16.mxu0 %v17656_v38  ;;  %v6559_v12 = vld [vmem:[#allocation10 + $0xcb8] sm:$0xff]  ;;  %v7479_v38 = vpack.c.bf16 %v1769_v0, %v1769_v0 }
 0x66b   :  { %v16007_v57 = vcombine.high %v6555_v32, %v6559_v12  ;;  %v6591_v0 = vld [vmem:[#allocation10 + $0xdb8] sm:$0xff] }
 0x66d   :  { %7372 = vmatpush1.bf16.msra.mxu1 %v16090_v5  ;;  %7904 = vmatpush1.bf16.msra.mxu0 %v17654_v42  ;;  %v17671_v5 = vld [vmem:[#allocation7 + $0x924] ss:$8 sps:$4 sm:$0xff]  }
 0x66e   :  { %7373 = vmatprep.subr.bf16.mxu1 %v16099_v62  ;;  %7905 = vmatprep.subr.bf16.mxu0 %v17659_v28  ;;  %v6563_v42 = vld [vmem:[#allocation10 + $0xcd8] sm:$0xff]  ;;  %v16006_v62 = vcombine.low %v6555_v32, %v6559_v12 }
 0x66f   :  { %v17669_v28 = vld [vmem:[#allocation7 + $0x920] ss:$8 sps:$4 sm:$0xff]   ;;  %v16015_v17 = vcombine.high %v6563_v42, %v6567_v22 }
 0x670   :  { %v17681_v32 = vld [vmem:[#allocation7 + $0x960] ss:$8 sps:$4 sm:$0xff]  }
 0x671   :  { %7374 = vmatpush1.bf16.msra.mxu1 %v16098_v18  ;;  %7906 = vmatpush1.bf16.msra.mxu0 %v17657_v21  ;;  %v6571_v18 = vld [vmem:[#allocation10 + $0xd18] sm:$0xff]  ;;  %v16014_v21 = vcombine.low %v6563_v42, %v6567_v22 }
 0x672   :  { %7375 = vmatprep.subr.bf16.mxu1 %v16107_v40  ;;  %7907 = vmatprep.subr.bf16.mxu0 %v17662_v1  ;;  %v17677_v1 = vld [vmem:[#allocation7 + $0x944] ss:$8 sps:$4 sm:$0xff]  }
 0x673   :  { %v17689_v22 = vld [vmem:[#allocation7 + $0x984] ss:$8 sps:$4 sm:$0xff]  }
 0x675   :  { %7376 = vmatpush1.bf16.msra.mxu1 %v16106_v33  ;;  %7908 = vmatpush1.bf16.msra.mxu0 %v17660_v55  ;;  %v17675_v55 = vld [vmem:[#allocation7 + $0x940] ss:$8 sps:$4 sm:$0xff]  }
 0x676   :  { %7427 = vmatprep.subr.bf16.mxu1 %v15991_v34  ;;  %7918 = vmatprep.subr.bf16.mxu0 %v17665_v39  ;;  %v17680_v34 = vld [vmem:[#allocation7 + $0x954] ss:$8 sps:$4 sm:$0xff]   ;;  %v6587_v39 = vld [vmem:[#allocation10 + $0xd98] sm:$0xff] }
 0x678   :  { %7378 = vmatmul.mubr.bf16.vlgmr.msra.gmra.mrb[68].mxu1 %v19114_v29  ;;  %7910 = vmatmul.mubr.bf16.vlgmr.msra.gmra.mrb[68].mxu0 %v7476_v2  ;;  %v17683_v2 = vld [vmem:[#allocation7 + $0x964] ss:$8 sps:$4 sm:$0xff]  }
 0x679   :  { %7428 = vmatpush1.bf16.msra.mxu1 %v15990_v43  ;;  %7459 = vmatprep.mubr.bf16.mxu1 %v19112_v36  ;;  %v6575_v36 = vld [vmem:[#allocation10 + $0xd38] sm:$0xff]  ;;  %v16039_v43 = vcombine.high %v6587_v39, %v6591_v0 }
 0x67a   :  { %7919 = vmatpush1.bf16.msra.mxu0 %v17663_v35  ;;  %7950 = vmatprep.mubr.bf16.mxu0 %v7479_v38  ;;  %v16023_v40 = vcombine.high %v6571_v18, %v6575_v36  ;;  %v16022_v33 = vcombine.low %v6571_v18, %v6575_v36  ;;  %v6595_v35 = vld [vmem:[#allocation10 + $0xdd8] sm:$0xff]  ;;  %v17686_v38 = vld [vmem:[#allocation7 + $0x974] ss:$8 sps:$4 sm:$0xff]  }
 0x67b   :  { %7429 = vmatprep.subr.bf16.mxu1 %v15999_v10  ;;  %7920 = vmatprep.subr.bf16.mxu0 %v17668_v60  ;;  %v6599_v10 = vld [vmem:[#allocation10 + $0xdf8] sm:$0xff]  ;;  %v16038_v60 = vcombine.low %v6587_v39, %v6591_v0  ;;  %v17692_v36 = vld [vmem:[#allocation7 + $0x994] ss:$8 sps:$4 sm:$0xff]  }
 0x67c   :  { %v16047_v12 = vcombine.high %v6595_v35, %v6599_v10  ;;  %v17698_v0 = vld [vmem:[#allocation7 + $0x9b4] ss:$8 sps:$4 sm:$0xff]  }
 0x67d   :  { %7430 = vmatpush1.bf16.msra.mxu1 %v15998_v6  ;;  %v6603_v6 = vld [vmem:[#allocation10 + $0xe18] sm:$0xff] }
 0x67e   :  { %7921 = vmatpush1.bf16.msra.mxu0 %v17666_v4  ;;  %7431 = vmatprep.subr.bf16.mxu1 %v16007_v57  ;;  %v6607_v4 = vld [vmem:[#allocation10 + $0xe38] sm:$0xff]  ;;  %v16046_v57 = vcombine.low %v6595_v35, %v6599_v10 }
 0x67f   :  { %7922 = vmatprep.subr.bf16.mxu0 %v17671_v5  ;;  %v17684_v5 = vld [vmem:[#allocation7 + $0x970] ss:$8 sps:$4 sm:$0xff]   ;;  %v16055_v42 = vcombine.high %v6603_v6, %v6607_v4  ;;  %v17701_v10 = vld [vmem:[#allocation7 + $0x9c4] ss:$8 sps:$4 sm:$0xff]  }
 0x681   :  { %7432 = vmatpush1.bf16.msra.mxu1 %v16006_v62  ;;  %v6611_v62 = vld [vmem:[#allocation10 + $0xe58] sm:$0xff] }
 0x682   :  { %7923 = vmatpush1.bf16.msra.mxu0 %v17669_v28  ;;  %7433 = vmatprep.subr.bf16.mxu1 %v16015_v17  ;;  %v6615_v28 = vld [vmem:[#allocation10 + $0xe78] sm:$0xff]  ;;  %v16054_v17 = vcombine.low %v6603_v6, %v6607_v4  ;;  %v17704_v4 = vld [vmem:[#allocation7 + $0x9d4] ss:$8 sps:$4 sm:$0xff]  }
 0x683   :  { %7924 = vmatprep.subr.bf16.mxu0 %v17674_v23  ;;  %v17687_v23 = vld [vmem:[#allocation7 + $0x980] ss:$8 sps:$4 sm:$0xff]   ;;  %v16063_v18 = vcombine.high %v6611_v62, %v6615_v28 }
 0x685   :  { %7434 = vmatpush1.bf16.msra.mxu1 %v16014_v21  ;;  %v6619_v21 = vld [vmem:[#allocation10 + $0xe98] sm:$0xff] }
 0x686   :  { %7925 = vmatpush1.bf16.msra.mxu0 %v17672_v26  ;;  %7435 = vmatprep.subr.bf16.mxu1 %v16023_v40  ;;  %v6623_v26 = vld [vmem:[#allocation10 + $0xeb8] sm:$0xff]  ;;  %v16062_v40 = vcombine.low %v6611_v62, %v6615_v28 }
 0x687   :  { %7926 = vmatprep.subr.bf16.mxu0 %v17677_v1  ;;  %v17690_v1 = vld [vmem:[#allocation7 + $0x990] ss:$8 sps:$4 sm:$0xff]   ;;  %v16071_v51 = vcombine.high %v6619_v21, %v6623_v26  ;;  %v17707_v28 = vld [vmem:[#allocation7 + $0x9e4] ss:$8 sps:$4 sm:$0xff]  }
 0x689   :  { %7436 = vmatpush1.bf16.msra.mxu1 %v16022_v33  ;;  %v6627_v33 = vld [vmem:[#allocation10 + $0xed8] sm:$0xff] }
 0x68a   :  { %7927 = vmatpush1.bf16.msra.mxu0 %v17675_v55  ;;  %7437 = vmatprep.subr.bf16.mxu1 %v16031_v30  ;;  %v6631_v55 = vld [vmem:[#allocation10 + $0xef8] sm:$0xff]  ;;  %v16070_v30 = vcombine.low %v6619_v21, %v6623_v26  ;;  %v17710_v26 = vld [vmem:[#allocation7 + $0x9f4] ss:$8 sps:$4 sm:$0xff]  }
 0x68b   :  { %7928 = vmatprep.subr.bf16.mxu0 %v17680_v34  ;;  %v17693_v34 = vld [vmem:[#allocation7 + $0x9a0] ss:$8 sps:$4 sm:$0xff]   ;;  %v16079_v39 = vcombine.high %v6627_v33, %v6631_v55 }
 0x68d   :  { %7438 = vmatpush1.bf16.msra.mxu1 %v16030_v58  ;;  %v6635_v58 = vld [vmem:[#allocation10 + $0xf18] sm:$0xff] }
 0x68e   :  { %7929 = vmatpush1.bf16.msra.mxu0 %v17678_v52  ;;  %7439 = vmatprep.subr.bf16.mxu1 %v16039_v43  ;;  %v6639_v52 = vld [vmem:[#allocation10 + $0xf38] sm:$0xff]  ;;  %v16078_v43 = vcombine.low %v6627_v33, %v6631_v55  ;;  %v7964_v33 = vld [vmem:[#allocation10 + $0x1000] sm:$0xff] }
 0x68f   :  { %7930 = vmatprep.subr.bf16.mxu0 %v17683_v2  ;;  %v17696_v2 = vld [vmem:[#allocation7 + $0x9b0] ss:$8 sps:$4 sm:$0xff]   ;;  %v16087_v35 = vcombine.high %v6635_v58, %v6639_v52 }
 0x690   :  { %v7968_v55 = vld [vmem:[#allocation10 + $0x1020] sm:$0xff] }
 0x691   :  { %7440 = vmatpush1.bf16.msra.mxu1 %v16038_v60  ;;  %v6643_v60 = vld [vmem:[#allocation10 + $0xf58] sm:$0xff] }
 0x692   :  { %7931 = vmatpush1.bf16.msra.mxu0 %v17681_v32  ;;  %7441 = vmatprep.subr.bf16.mxu1 %v16047_v12  ;;  %v6647_v32 = vld [vmem:[#allocation10 + $0xf78] sm:$0xff]  ;;  %v16086_v12 = vcombine.low %v6635_v58, %v6639_v52  ;;  %v7972_v58 = vld [vmem:[#allocation10 + $0x1040] sm:$0xff] }
 0x693   :  { %7932 = vmatprep.subr.bf16.mxu0 %v17686_v38  ;;  %v17699_v38 = vld [vmem:[#allocation7 + $0x9c0] ss:$8 sps:$4 sm:$0xff]   ;;  %v16095_v6 = vcombine.high %v6643_v60, %v6647_v32  ;;  %v7976_v52 = vld [vmem:[#allocation10 + $0x1060] sm:$0xff] }
 0x695   :  { %7442 = vmatpush1.bf16.msra.mxu1 %v16046_v57  ;;  %v6651_v57 = vld [vmem:[#allocation10 + $0xf98] sm:$0xff] }
 0x696   :  { %7933 = vmatpush1.bf16.msra.mxu0 %v17684_v5  ;;  %7443 = vmatprep.subr.bf16.mxu1 %v16055_v42  ;;  %v6655_v5 = vld [vmem:[#allocation10 + $0xfb8] sm:$0xff]  ;;  %v16094_v42 = vcombine.low %v6643_v60, %v6647_v32  ;;  %v7980_v60 = vld [vmem:[#allocation10 + $0x1080] sm:$0xff] }
 0x697   :  { %7934 = vmatprep.subr.bf16.mxu0 %v17689_v22  ;;  %v17702_v22 = vld [vmem:[#allocation7 + $0x9d0] ss:$8 sps:$4 sm:$0xff]   ;;  %v16103_v62 = vcombine.high %v6651_v57, %v6655_v5 }
 0x699   :  { %7444 = vmatpush1.bf16.msra.mxu1 %v16054_v17  ;;  %v6659_v17 = vld [vmem:[#allocation10 + $0xfd8] sm:$0xff] }
 0x69a   :  { %7935 = vmatpush1.bf16.msra.mxu0 %v17687_v23  ;;  %7445 = vmatprep.subr.bf16.mxu1 %v16063_v18  ;;  %v6663_v23 = vld [vmem:[#allocation10 + $0xff8] sm:$0xff]  ;;  %v16102_v18 = vcombine.low %v6651_v57, %v6655_v5 }
 0x69b   :  { %7936 = vmatprep.subr.bf16.mxu0 %v17692_v36  ;;  %v17705_v36 = vld [vmem:[#allocation7 + $0x9e0] ss:$8 sps:$4 sm:$0xff]   ;;  %v16111_v21 = vcombine.high %v6659_v17, %v6663_v23 }
 0x69d   :  { %7446 = vmatpush1.bf16.msra.mxu1 %v16062_v40  ;;  %v16110_v40 = vcombine.low %v6659_v17, %v6663_v23 }
 0x69e   :  { %7937 = vmatpush1.bf16.msra.mxu0 %v17690_v1  ;;  %7447 = vmatprep.subr.bf16.mxu1 %v16071_v51  ;;  %v17708_v1 = vld [vmem:[#allocation7 + $0x9f0] ss:$8 sps:$4 sm:$0xff]   ;;  %v1768_v51 = vmax.f32 %v18926_v63, 0.0  ;;  %v7978_v63 = vld [vmem:[#allocation10 + $0x1070] sm:$0xff] }
 0x69f   :  { %7938 = vmatprep.subr.bf16.mxu0 %v17695_v45 }
 0x6a0   :  { %v7478_v45 = vpack.c.bf16 %v1768_v51, %v1768_v51 }
 0x6a1   :  { %7448 = vmatpush1.bf16.msra.mxu1 %v16070_v30  ;;  %v7966_v30 = vld [vmem:[#allocation10 + $0x1010] sm:$0xff] }
 0x6a2   :  { %7939 = vmatpush1.bf16.msra.mxu0 %v17693_v34  ;;  %7449 = vmatprep.subr.bf16.mxu1 %v16079_v39  ;;  %v16176_v34 = vcombine.low %v7964_v33, %v7968_v55  ;;  %v16177_v39 = vcombine.high %v7964_v33, %v7968_v55 }
 0x6a3   :  { %7940 = vmatprep.subr.bf16.mxu0 %v17698_v0  ;;  %v7970_v0 = vld [vmem:[#allocation10 + $0x1030] sm:$0xff] }
 0x6a5   :  { %7450 = vmatpush1.bf16.msra.mxu1 %v16078_v43  ;;  %v16180_v43 = vcombine.low %v7966_v30, %v7970_v0 }
 0x6a6   :  { %7941 = vmatpush1.bf16.msra.mxu0 %v17696_v2  ;;  %7451 = vmatprep.subr.bf16.mxu1 %v16087_v35  ;;  %v16181_v2 = vcombine.high %v7966_v30, %v7970_v0  ;;  %v16185_v35 = vcombine.high %v7972_v58, %v7976_v52  ;;  %v8004_v30 = vld [vmem:[#allocation10 + $0x1140] sm:$0xff]  ;;  %v8010_v0 = vld [vmem:[#allocation10 + $0x1170] sm:$0xff] }
 0x6a7   :  { %7942 = vmatprep.subr.bf16.mxu0 %v17701_v10  ;;  %v7974_v10 = vld [vmem:[#allocation10 + $0x1050] sm:$0xff] }
 0x6a8   :  { %v16189_v32 = vcombine.high %v7974_v10, %v7978_v63 }
 0x6a9   :  { %7452 = vmatpush1.bf16.msra.mxu1 %v16086_v12  ;;  %v7984_v12 = vld [vmem:[#allocation10 + $0x10a0] sm:$0xff] }
 0x6aa   :  { %7943 = vmatpush1.bf16.msra.mxu0 %v17699_v38  ;;  %7453 = vmatprep.subr.bf16.mxu1 %v16095_v6  ;;  %v7982_v38 = vld [vmem:[#allocation10 + $0x1090] sm:$0xff]  ;;  %v16184_v6 = vcombine.low %v7972_v58, %v7976_v52  ;;  %v16193_v57 = vcombine.high %v7980_v60, %v7984_v12  ;;  %v16192_v17 = vcombine.low %v7980_v60, %v7984_v12 }
 0x6ab   :  { %7944 = vmatprep.subr.bf16.mxu0 %v17704_v4  ;;  %v16188_v4 = vcombine.low %v7974_v10, %v7978_v63  ;;  %v8016_v10 = vld [vmem:[#allocation10 + $0x11a0] sm:$0xff]  ;;  %v8014_v63 = vld [vmem:[#allocation10 + $0x1190] sm:$0xff] }
 0x6ac   :  { %v8018_v60 = vld [vmem:[#allocation10 + $0x11b0] sm:$0xff] }
 0x6ad   :  { %7454 = vmatpush1.bf16.msra.mxu1 %v16094_v42  ;;  %v7988_v42 = vld [vmem:[#allocation10 + $0x10c0] sm:$0xff] }
 0x6ae   :  { %7945 = vmatpush1.bf16.msra.mxu0 %v17702_v22  ;;  %7455 = vmatprep.subr.bf16.mxu1 %v16103_v62  ;;  %v7992_v22 = vld [vmem:[#allocation10 + $0x10e0] sm:$0xff]  ;;  %v7990_v62 = vld [vmem:[#allocation10 + $0x10d0] sm:$0xff] }
 0x6af   :  { %7946 = vmatprep.subr.bf16.mxu0 %v17707_v28  ;;  %v7994_v28 = vld [vmem:[#allocation10 + $0x10f0] sm:$0xff]  ;;  %v16200_v51 = vcombine.low %v7988_v42, %v7992_v22 }
 0x6b1   :  { %7456 = vmatpush1.bf16.msra.mxu1 %v16102_v18  ;;  %v16201_v18 = vcombine.high %v7988_v42, %v7992_v22  ;;  %v16228_v22 = vcombine.low %v8014_v63, %v8018_v60 }
 0x6b2   :  { %7947 = vmatpush1.bf16.msra.mxu0 %v17705_v36  ;;  %7457 = vmatprep.subr.bf16.mxu1 %v16111_v21  ;;  %v16205_v36 = vcombine.high %v7990_v62, %v7994_v28  ;;  %v7996_v21 = vld [vmem:[#allocation10 + $0x1100] sm:$0xff] }
 0x6b3   :  { %7948 = vmatprep.subr.bf16.mxu0 %v17710_v26  ;;  %v8000_v26 = vld [vmem:[#allocation10 + $0x1120] sm:$0xff] }
 0x6b4   :  { %v16209_v33 = vcombine.high %v7996_v21, %v8000_v26  ;;  %v16208_v58 = vcombine.low %v7996_v21, %v8000_v26 }
 0x6b5   :  { %7458 = vmatpush1.bf16.msra.mxu1 %v16110_v40  ;;  %v7998_v40 = vld [vmem:[#allocation10 + $0x1110] sm:$0xff] }
 0x6b6   :  { %7949 = vmatpush1.bf16.msra.mxu0 %v17708_v1  ;;  %8732 = vmatprep.subr.bf16.mxu1 %v16177_v39  ;;  %v8002_v1 = vld [vmem:[#allocation10 + $0x1130] sm:$0xff] }
 0x6b7   :  { %8814 = vmatprep.subr.bf16.mxu0 %v16181_v2  ;;  %v16213_v55 = vcombine.high %v7998_v40, %v8002_v1  ;;  %v8006_v39 = vld [vmem:[#allocation10 + $0x1150] sm:$0xff]  ;;  %v16212_v52 = vcombine.low %v7998_v40, %v8002_v1 }
 0x6b8   :  { %7460 = vmatmul.mubr.bf16.vlgmr.msra.gmra.mrb[72].mxu1 %v19114_v29  ;;  %v7986_v29 = vld [vmem:[#allocation10 + $0x10b0] sm:$0xff]  ;;  %v16221_v2 = vcombine.high %v8006_v39, %v8010_v0  ;;  %v16220_v12 = vcombine.low %v8006_v39, %v8010_v0 }
 0x6b9   :  { %7951 = vmatmul.mubr.bf16.vlgmr.msra.gmra.mrb[68].mxu0 %v7478_v45  ;;  %8733 = vmatpush1.bf16.msra.mxu1 %v16176_v34  ;;  %v16197_v5 = vcombine.high %v7982_v38, %v7986_v29  ;;  %v16196_v23 = vcombine.low %v7982_v38, %v7986_v29  ;;  %v16204_v45 = vcombine.low %v7990_v62, %v7994_v28  ;;  %v8008_v34 = vld [vmem:[#allocation10 + $0x1160] sm:$0xff] }
 0x6ba   :  { %8815 = vmatpush1.bf16.msra.mxu0 %v16180_v43  ;;  %8734 = vmatprep.subr.bf16.mxu1 %v16185_v35  ;;  %v16217_v43 = vcombine.high %v8004_v30, %v8008_v34  ;;  %v8012_v35 = vld [vmem:[#allocation10 + $0x1180] sm:$0xff]  ;;  %v16229_v29 = vcombine.high %v8014_v63, %v8018_v60 }
 0x6bb   :  { %8816 = vmatprep.subr.bf16.mxu0 %v16189_v32  ;;  %v16216_v32 = vcombine.low %v8004_v30, %v8008_v34  ;;  %v16225_v38 = vcombine.high %v8012_v35, %v8016_v10  ;;  %v16224_v42 = vcombine.low %v8012_v35, %v8016_v10 }
 0x6bd   :  { %8735 = vmatpush1.bf16.msra.mxu1 %v16184_v6  ;;  %v8020_v6 = vld [vmem:[#allocation10 + $0x11c0] sm:$0xff] }
 0x6be   :  { %8817 = vmatpush1.bf16.msra.mxu0 %v16188_v4  ;;  %8736 = vmatprep.subr.bf16.mxu1 %v16193_v57  ;;  %v8024_v4 = vld [vmem:[#allocation10 + $0x11e0] sm:$0xff]  ;;  %v8022_v57 = vld [vmem:[#allocation10 + $0x11d0] sm:$0xff] }
 0x6bf   :  { %8818 = vmatprep.subr.bf16.mxu0 %v16197_v5  ;;  %v8026_v5 = vld [vmem:[#allocation10 + $0x11f0] sm:$0xff]  ;;  %v16233_v62 = vcombine.high %v8020_v6, %v8024_v4  ;;  %v16232_v21 = vcombine.low %v8020_v6, %v8024_v4 }
 0x6c0   :  { %v16237_v28 = vcombine.high %v8022_v57, %v8026_v5  ;;  %v16236_v26 = vcombine.low %v8022_v57, %v8026_v5 }
 0x6c1   :  { %8737 = vmatpush1.bf16.msra.mxu1 %v16192_v17  ;;  %v8028_v17 = vld [vmem:[#allocation10 + $0x1200] sm:$0xff] }
 0x6c2   :  { %8819 = vmatpush1.bf16.msra.mxu0 %v16196_v23  ;;  %8738 = vmatprep.subr.bf16.mxu1 %v16201_v18  ;;  %v8032_v23 = vld [vmem:[#allocation10 + $0x1220] sm:$0xff]  ;;  %v8030_v18 = vld [vmem:[#allocation10 + $0x1210] sm:$0xff] }
 0x6c3   :  { %8820 = vmatprep.subr.bf16.mxu0 %v16205_v36  ;;  %v8034_v36 = vld [vmem:[#allocation10 + $0x1230] sm:$0xff]  ;;  %v16241_v40 = vcombine.high %v8028_v17, %v8032_v23  ;;  %v16240_v30 = vcombine.low %v8028_v17, %v8032_v23 }
 0x6c4   :  { %v16245_v1 = vcombine.high %v8030_v18, %v8034_v36  ;;  %v16244_v34 = vcombine.low %v8030_v18, %v8034_v36 }
 0x6c5   :  { %8739 = vmatpush1.bf16.msra.mxu1 %v16200_v51  ;;  %v8036_v51 = vld [vmem:[#allocation10 + $0x1240] sm:$0xff] }
 0x6c6   :  { %8821 = vmatpush1.bf16.msra.mxu0 %v16204_v45  ;;  %8740 = vmatprep.subr.bf16.mxu1 %v16209_v33  ;;  %v8040_v45 = vld [vmem:[#allocation10 + $0x1260] sm:$0xff]  ;;  %v8038_v33 = vld [vmem:[#allocation10 + $0x1250] sm:$0xff] }
 0x6c7   :  { %8822 = vmatprep.subr.bf16.mxu0 %v16213_v55  ;;  %v8042_v55 = vld [vmem:[#allocation10 + $0x1270] sm:$0xff]  ;;  %v16249_v39 = vcombine.high %v8036_v51, %v8040_v45  ;;  %v16248_v35 = vcombine.low %v8036_v51, %v8040_v45 }
 0x6c8   :  { %v16253_v0 = vcombine.high %v8038_v33, %v8042_v55  ;;  %v16252_v10 = vcombine.low %v8038_v33, %v8042_v55 }
 0x6c9   :  { %8741 = vmatpush1.bf16.msra.mxu1 %v16208_v58  ;;  %v8044_v58 = vld [vmem:[#allocation10 + $0x1280] sm:$0xff] }
 0x6ca   :  { %8823 = vmatpush1.bf16.msra.mxu0 %v16212_v52  ;;  %8742 = vmatprep.subr.bf16.mxu1 %v16217_v43  ;;  %v8048_v52 = vld [vmem:[#allocation10 + $0x12a0] sm:$0xff]  ;;  %v8046_v43 = vld [vmem:[#allocation10 + $0x1290] sm:$0xff] }
 0x6cb   :  { %8824 = vmatprep.subr.bf16.mxu0 %v16221_v2  ;;  %v8050_v2 = vld [vmem:[#allocation10 + $0x12b0] sm:$0xff]  ;;  %v16257_v63 = vcombine.high %v8044_v58, %v8048_v52  ;;  %v16256_v6 = vcombine.low %v8044_v58, %v8048_v52 }
 0x6cc   :  { %v16261_v60 = vcombine.high %v8046_v43, %v8050_v2  ;;  %v16260_v4 = vcombine.low %v8046_v43, %v8050_v2  ;;  %v8078_v58 = vld [vmem:[#allocation10 + $0x1390] sm:$0xff] }
 0x6cd   :  { %8743 = vmatpush1.bf16.msra.mxu1 %v16216_v32  ;;  %v8052_v32 = vld [vmem:[#allocation10 + $0x12c0] sm:$0xff]  ;;  %v8082_v43 = vld [vmem:[#allocation10 + $0x13b0] sm:$0xff] }
 0x6ce   :  { %8825 = vmatpush1.bf16.msra.mxu0 %v16220_v12  ;;  %8744 = vmatprep.subr.bf16.mxu1 %v16225_v38  ;;  %v8056_v12 = vld [vmem:[#allocation10 + $0x12e0] sm:$0xff]  ;;  %v8054_v38 = vld [vmem:[#allocation10 + $0x12d0] sm:$0xff] }
 0x6cf   :  { %8826 = vmatprep.subr.bf16.mxu0 %v16229_v29  ;;  %v8058_v29 = vld [vmem:[#allocation10 + $0x12f0] sm:$0xff]  ;;  %v16265_v57 = vcombine.high %v8052_v32, %v8056_v12  ;;  %v16264_v17 = vcombine.low %v8052_v32, %v8056_v12 }
 0x6d0   :  { %v16269_v5 = vcombine.high %v8054_v38, %v8058_v29  ;;  %v16268_v23 = vcombine.low %v8054_v38, %v8058_v29 }
 0x6d1   :  { %8745 = vmatpush1.bf16.msra.mxu1 %v16224_v42  ;;  %v8060_v42 = vld [vmem:[#allocation10 + $0x1300] sm:$0xff] }
 0x6d2   :  { %8827 = vmatpush1.bf16.msra.mxu0 %v16228_v22  ;;  %8746 = vmatprep.subr.bf16.mxu1 %v16233_v62  ;;  %v8064_v22 = vld [vmem:[#allocation10 + $0x1320] sm:$0xff]  ;;  %v8062_v62 = vld [vmem:[#allocation10 + $0x1310] sm:$0xff] }
 0x6d3   :  { %8828 = vmatprep.subr.bf16.mxu0 %v16237_v28  ;;  %v8066_v28 = vld [vmem:[#allocation10 + $0x1330] sm:$0xff]  ;;  %v16273_v18 = vcombine.high %v8060_v42, %v8064_v22  ;;  %v16272_v51 = vcombine.low %v8060_v42, %v8064_v22  ;;  %v8084_v42 = vld [vmem:[#allocation10 + $0x13c0] sm:$0xff] }
 0x6d4   :  { %v16277_v36 = vcombine.high %v8062_v62, %v8066_v28  ;;  %v16276_v45 = vcombine.low %v8062_v62, %v8066_v28  ;;  %v8088_v22 = vld [vmem:[#allocation10 + $0x13e0] sm:$0xff] }
 0x6d5   :  { %8747 = vmatpush1.bf16.msra.mxu1 %v16232_v21  ;;  %v8068_v21 = vld [vmem:[#allocation10 + $0x1340] sm:$0xff] }
 0x6d6   :  { %8829 = vmatpush1.bf16.msra.mxu0 %v16236_v26  ;;  %8748 = vmatprep.subr.bf16.mxu1 %v16241_v40  ;;  %v8072_v26 = vld [vmem:[#allocation10 + $0x1360] sm:$0xff]  ;;  %v8070_v40 = vld [vmem:[#allocation10 + $0x1350] sm:$0xff] }
 0x6d7   :  { %8830 = vmatprep.subr.bf16.mxu0 %v16245_v1  ;;  %v8074_v1 = vld [vmem:[#allocation10 + $0x1370] sm:$0xff]  ;;  %v16281_v33 = vcombine.high %v8068_v21, %v8072_v26 }
 0x6d8   :  { %v16285_v55 = vcombine.high %v8070_v40, %v8074_v1 }
 0x6d9   :  { %8749 = vmatpush1.bf16.msra.mxu1 %v16240_v30  ;;  %v16280_v30 = vcombine.low %v8068_v21, %v8072_v26  ;;  %v17713_v26 = vld [vmem:[#allocation7 + $0xa04] ss:$8 sps:$4 sm:$0xff]  }
 0x6da   :  { %8831 = vmatpush1.bf16.msra.mxu0 %v16244_v34  ;;  %8750 = vmatprep.subr.bf16.mxu1 %v16249_v39  ;;  %v16284_v34 = vcombine.low %v8070_v40, %v8074_v1  ;;  %v8076_v39 = vld [vmem:[#allocation10 + $0x1380] sm:$0xff] }
 0x6db   :  { %8832 = vmatprep.subr.bf16.mxu0 %v16253_v0  ;;  %v8080_v0 = vld [vmem:[#allocation10 + $0x13a0] sm:$0xff] }
 0x6dc   :  { %v16289_v52 = vcombine.high %v8076_v39, %v8080_v0 }
 0x6dd   :  { %8751 = vmatpush1.bf16.msra.mxu1 %v16248_v35 }
 0x6de   :  { %8833 = vmatpush1.bf16.msra.mxu0 %v16252_v10  ;;  %8752 = vmatprep.subr.bf16.mxu1 %v16257_v63  ;;  %v16288_v10 = vcombine.low %v8076_v39, %v8080_v0  ;;  %v16292_v63 = vcombine.low %v8078_v58, %v8082_v43 }
 0x6df   :  { %8834 = vmatprep.subr.bf16.mxu0 %v16261_v60  ;;  %v16293_v60 = vcombine.high %v8078_v58, %v8082_v43 }
 0x6e1   :  { %8753 = vmatpush1.bf16.msra.mxu1 %v16256_v6 }
 0x6e2   :  { %8835 = vmatpush1.bf16.msra.mxu0 %v16260_v4  ;;  %8754 = vmatprep.subr.bf16.mxu1 %v16265_v57 }
 0x6e3   :  { %8836 = vmatprep.subr.bf16.mxu0 %v16269_v5 }
 0x6e5   :  { %8755 = vmatpush1.bf16.msra.mxu1 %v16264_v17  ;;  %v8090_v17 = vld [vmem:[#allocation10 + $0x13f0] sm:$0xff] }
 0x6e6   :  { %8837 = vmatpush1.bf16.msra.mxu0 %v16268_v23  ;;  %8756 = vmatprep.subr.bf16.mxu1 %v16273_v18  ;;  %v16296_v23 = vcombine.low %v8084_v42, %v8088_v22 }
 0x6e7   :  { %8838 = vmatprep.subr.bf16.mxu0 %v16277_v36 }
 0x6e9   :  { %8757 = vmatpush1.bf16.msra.mxu1 %v16272_v51 }
 0x6ea   :  { %8839 = vmatpush1.bf16.msra.mxu0 %v16276_v45  ;;  %8758 = vmatprep.subr.bf16.mxu1 %v16281_v33 }
 0x6eb   :  { %8840 = vmatprep.subr.bf16.mxu0 %v16285_v55 }
 0x6ed   :  { %8759 = vmatpush1.bf16.msra.mxu1 %v16280_v30 }
 0x6ee   :  { %8841 = vmatpush1.bf16.msra.mxu0 %v16284_v34  ;;  %8760 = vmatprep.subr.bf16.mxu1 %v16289_v52  ;;  %v7545_v34 = vld [vmem:[#allocation8 + $0x8] sm:$0x3] }
 0x6ef   :  { %8842 = vmatprep.subr.bf16.mxu0 %v16293_v60  ;;  %v7550_v39 = vrot.slane %v7545_v34, %v18846_v14  ;;  %v7554_v0 = vrot.slane %v7545_v34, %v18849_v15  ;;  %v8001_v34 = vld [vmem:[#allocation10 + $0x1128] sm:$0xff] }
 0x6f1   :  { %8761 = vmatpush1.bf16.msra.mxu1 %v16288_v10 }
 0x6f2   :  { %8843 = vmatpush1.bf16.msra.mxu0 %v16292_v63 }
 0x70b   :  { %v7338_v2 = vpop.f32.mrb[64].mxu1  ;;  %v7420_v35 = vpop.f32.mrb[64].mxu0 }
 0x70c   :  { %v19130_v32 = vadd.f32 %v7338_v2, %v19082_v54  ;;  %v19133_v12 = vadd.f32 %v7420_v35, %v19085_v56  ;;  %v7340_v38 = vpop.f32.mrb[65].mxu1  ;;  %v7422_v29 = vpop.f32.mrb[65].mxu0  ;;  %v8086_v54 = vld [vmem:[#allocation10 + $0x13d0] sm:$0xff]  ;;  %v16297_v56 = vcombine.high %v8084_v42, %v8088_v22  ;;  %v1771_v42 = vmax.f32 %v18939_v31, 0.0  ;;  %v7973_v22 = vld [vmem:[#allocation10 + $0x1048] sm:$0xff] }
 0x70d   :  { %v19136_v6 = vadd.f32 %v7340_v38, %v19088_v59  ;;  %v19139_v4 = vadd.f32 %v7422_v29, %v19091_v24  ;;  %v7342_v57 = vpop.f32.mrb[66].mxu1  ;;  %v7424_v5 = vpop.f32.mrb[66].mxu0  ;;  %v16300_v18 = vcombine.low %v8086_v54, %v8090_v17  ;;  %v16301_v36 = vcombine.high %v8086_v54, %v8090_v17  ;;  %v7965_v59 = vld [vmem:[#allocation10 + $0x1008] sm:$0xff] }
 0x70e   :  { %v7343_v62 = vpop.f32.mrb[67].mxu1  ;;  %v7425_v28 = vpop.f32.mrb[67].mxu0  ;;  %8762 = vmatprep.subr.bf16.mxu1 %v16297_v56  ;;  %v7969_v24 = vld [vmem:[#allocation10 + $0x1028] sm:$0xff] }
 0x70f   :  { %8844 = vmatprep.subr.bf16.mxu0 %v16301_v36  ;;  %8763 = vmatpush1.bf16.msra.mxu1 %v16296_v23  ;;  %v16179_v21 = vcombine.high %v7965_v59, %v7969_v24  ;;  %v16178_v40 = vcombine.low %v7965_v59, %v7969_v24  ;;  %v7977_v54 = vld [vmem:[#allocation10 + $0x1068] sm:$0xff]  ;;  %v17711_v62 = vld [vmem:[#allocation7 + $0xa00] ss:$8 sps:$4 sm:$0xff]   ;;  %v17719_v24 = vld [vmem:[#allocation7 + $0xa24] ss:$8 sps:$4 sm:$0xff]  }
 0x710   :  { %8845 = vmatpush1.bf16.msra.mxu0 %v16300_v18  ;;  %v17716_v56 = vld [vmem:[#allocation7 + $0xa14] ss:$8 sps:$4 sm:$0xff]   ;;  %v8905_v18 = vpack.c.bf16 %v1771_v42, %v1771_v42  ;;  %v16186_v31 = vcombine.low %v7973_v22, %v7977_v54  ;;  %v17714_v36 = vld [vmem:[#allocation7 + $0xa10] ss:$8 sps:$4 sm:$0xff]  }
 0x711   :  { %8773 = vmatprep.subr.bf16.mxu1 %v16179_v21  ;;  %9305 = vmatprep.subr.bf16.mxu0 %v17713_v26  ;;  %v7981_v17 = vld [vmem:[#allocation10 + $0x1088] sm:$0xff] }
 0x712   :  { %v7985_v23 = vld [vmem:[#allocation10 + $0x10a8] sm:$0xff] }
 0x713   :  { %v16195_v59 = vcombine.high %v7981_v17, %v7985_v23  ;;  %v7989_v21 = vld [vmem:[#allocation10 + $0x10c8] sm:$0xff] }
 0x714   :  { %v7993_v26 = vld [vmem:[#allocation10 + $0x10e8] sm:$0xff] }
 0x74b   :  { %v7379_v1 = vpop.f32.mrb[68].mxu1 }
 0x74c   :  { %v19142_v51 = vadd.f32 %v7379_v1, %v19094_v13  ;;  %v7381_v45 = vpop.f32.mrb[69].mxu1  ;;  %v16194_v1 = vcombine.low %v7981_v17, %v7985_v23  ;;  %v17734_v23 = vld [vmem:[#allocation7 + $0xa74] ss:$8 sps:$4 sm:$0xff]  }
 0x74d   :  { %v19145_v33 = vadd.f32 %v7381_v45, %v19097_v25  ;;  %v7383_v55 = vpop.f32.mrb[70].mxu1  ;;  %v17717_v45 = vld [vmem:[#allocation7 + $0xa20] ss:$8 sps:$4 sm:$0xff]  }
 0x74e   :  { %v7384_v30 = vpop.f32.mrb[71].mxu1  ;;  %v16203_v55 = vcombine.high %v7989_v21, %v7993_v26 }
 0x74f   :  { %v7997_v30 = vld [vmem:[#allocation10 + $0x1108] sm:$0xff] }
 0x78b   :  { %v7461_v58 = vpop.f32.mrb[72].mxu1 }
 0x78c   :  { %v19150_v52 = vadd.f32 %v7461_v58, %v19106_v49  ;;  %v7952_v43 = vpop.f32.mrb[68].mxu0  ;;  %v7463_v2 = vpop.f32.mrb[73].mxu1  ;;  %v16211_v58 = vcombine.high %v7997_v30, %v8001_v34 }
 0x78d   :  { %v17146_v35 = vadd.f32 %v7952_v43, %v7550_v39  ;;  %v19153_v13 = vadd.f32 %v7463_v2, %v19110_v20  ;;  %v7954_v10 = vpop.f32.mrb[69].mxu0  ;;  %v7465_v25 = vpop.f32.mrb[74].mxu1  ;;  %v16187_v20 = vcombine.high %v7973_v22, %v7977_v54  ;;  %v16202_v39 = vcombine.low %v7989_v21, %v7993_v26  ;;  %v17725_v43 = vld [vmem:[#allocation7 + $0xa44] ss:$8 sps:$4 sm:$0xff]   ;;  %v8005_v2 = vld [vmem:[#allocation10 + $0x1148] sm:$0xff] }
 0x78e   :  { %v17147_v63 = vadd.f32 %v7954_v10, %v7554_v0  ;;  %v7956_v60 = vpop.f32.mrb[70].mxu0  ;;  %v7466_v38 = vpop.f32.mrb[75].mxu1  ;;  %v17720_v0 = vld [vmem:[#allocation7 + $0xa30] ss:$8 sps:$4 sm:$0xff]   ;;  %v16210_v10 = vcombine.low %v7997_v30, %v8001_v34  ;;  %v17723_v25 = vld [vmem:[#allocation7 + $0xa40] ss:$8 sps:$4 sm:$0xff]  }
 0x78f   :  { %v7959_v29 = vmax.f32 %v17146_v35, 0.0  ;;  %v7957_v57 = vpop.f32.mrb[71].mxu0  ;;  %v8009_v35 = vld [vmem:[#allocation10 + $0x1168] sm:$0xff]  ;;  %v17731_v22 = vld [vmem:[#allocation7 + $0xa64] ss:$8 sps:$4 sm:$0xff]  }
 0x790   :  { %v7960_v5 = vmax.f32 %v17147_v63, 0.0  ;;  %v16219_v63 = vcombine.high %v8005_v2, %v8009_v35  ;;  %v17728_v60 = vld [vmem:[#allocation7 + $0xa54] ss:$8 sps:$4 sm:$0xff]   ;;  %v16218_v57 = vcombine.low %v8005_v2, %v8009_v35  ;;  %v17737_v21 = vld [vmem:[#allocation7 + $0xa84] ss:$8 sps:$4 sm:$0xff]  }
 0x791   :  { %v19158_v28 = vpack.c.bf16 %v7959_v29, %v7959_v29  ;;  %v8013_v38 = vld [vmem:[#allocation10 + $0x1188] sm:$0xff]  ;;  %v17743_v2 = vld [vmem:[#allocation7 + $0xaa4] ss:$8 sps:$4 sm:$0xff]  }
 0x792   :  { %v19156_v49 = vpack.c.bf16 %v7960_v5, %v7960_v5  ;;  %v8017_v29 = vld [vmem:[#allocation10 + $0x11a8] sm:$0xff] }
 0x793   :  { %v17726_v5 = vld [vmem:[#allocation7 + $0xa50] ss:$8 sps:$4 sm:$0xff]   ;;  %v16227_v42 = vcombine.high %v8013_v38, %v8017_v29  ;;  %v17740_v30 = vld [vmem:[#allocation7 + $0xa94] ss:$8 sps:$4 sm:$0xff]  }
 0x794   :  { %8764 = vmatprep.mubr.bf16.mxu1 %v19156_v49  ;;  %8846 = vmatprep.mubr.bf16.mxu0 %v19156_v49  ;;  %v8021_v54 = vld [vmem:[#allocation10 + $0x11c8] sm:$0xff] }
 0x795   :  { %8765 = vmatmul.mubr.bf16.vlgmr.msra.gmra.mrb[76].mxu1 %v19158_v28  ;;  %8847 = vmatmul.mubr.bf16.vlgmr.msra.gmra.mrb[72].mxu0 %v19158_v28  ;;  %v8037_v26 = vld [vmem:[#allocation10 + $0x1248] sm:$0xff] }
 0x796   :  { %8774 = vmatpush1.bf16.msra.mxu1 %v16178_v40  ;;  %9306 = vmatpush1.bf16.msra.mxu0 %v17711_v62  ;;  %v17722_v40 = vld [vmem:[#allocation7 + $0xa34] ss:$8 sps:$4 sm:$0xff]  }
 0x797   :  { %8805 = vmatprep.mubr.bf16.mxu1 %v19156_v49  ;;  %9337 = vmatprep.mubr.bf16.mxu0 %v8905_v18  ;;  %v8025_v62 = vld [vmem:[#allocation10 + $0x11e8] sm:$0xff] }
 0x798   :  { %8775 = vmatprep.subr.bf16.mxu1 %v16187_v20  ;;  %9307 = vmatprep.subr.bf16.mxu0 %v17716_v56  ;;  %v16226_v20 = vcombine.low %v8013_v38, %v8017_v29  ;;  %v17729_v56 = vld [vmem:[#allocation7 + $0xa60] ss:$8 sps:$4 sm:$0xff]   ;;  %v16235_v17 = vcombine.high %v8021_v54, %v8025_v62  ;;  %v8029_v18 = vld [vmem:[#allocation10 + $0x1208] sm:$0xff] }
 0x799   :  { %v8045_v34 = vld [vmem:[#allocation10 + $0x1288] sm:$0xff] }
 0x79a   :  { %8776 = vmatpush1.bf16.msra.mxu1 %v16186_v31  ;;  %9308 = vmatpush1.bf16.msra.mxu0 %v17714_v36  ;;  %v8033_v31 = vld [vmem:[#allocation10 + $0x1228] sm:$0xff]  ;;  %v16234_v36 = vcombine.low %v8021_v54, %v8025_v62  ;;  %v17749_v54 = vld [vmem:[#allocation7 + $0xac4] ss:$8 sps:$4 sm:$0xff]  }
 0x79b   :  { %8777 = vmatprep.subr.bf16.mxu1 %v16195_v59  ;;  %9309 = vmatprep.subr.bf16.mxu0 %v17719_v24  ;;  %v17732_v59 = vld [vmem:[#allocation7 + $0xa70] ss:$8 sps:$4 sm:$0xff]   ;;  %v16243_v24 = vcombine.high %v8029_v18, %v8033_v31  ;;  %v17746_v38 = vld [vmem:[#allocation7 + $0xab4] ss:$8 sps:$4 sm:$0xff]  }
 0x79c   :  { %v8053_v35 = vld [vmem:[#allocation10 + $0x12c8] sm:$0xff] }
 0x79d   :  { %v8061_v29 = vld [vmem:[#allocation10 + $0x1308] sm:$0xff] }
 0x79e   :  { %8778 = vmatpush1.bf16.msra.mxu1 %v16194_v1  ;;  %9310 = vmatpush1.bf16.msra.mxu0 %v17717_v45  ;;  %v8041_v1 = vld [vmem:[#allocation10 + $0x1268] sm:$0xff]  ;;  %v16242_v45 = vcombine.low %v8029_v18, %v8033_v31 }
 0x79f   :  { %8779 = vmatprep.subr.bf16.mxu1 %v16203_v55  ;;  %9311 = vmatprep.subr.bf16.mxu0 %v17722_v40  ;;  %v17735_v55 = vld [vmem:[#allocation7 + $0xa80] ss:$8 sps:$4 sm:$0xff]   ;;  %v16251_v40 = vcombine.high %v8037_v26, %v8041_v1  ;;  %v8069_v62 = vld [vmem:[#allocation10 + $0x1348] sm:$0xff] }
 0x7a0   :  { %v17752_v18 = vld [vmem:[#allocation7 + $0xad4] ss:$8 sps:$4 sm:$0xff]  }
 0x7a1   :  { %v8077_v31 = vld [vmem:[#allocation10 + $0x1388] sm:$0xff] }
 0x7a2   :  { %8780 = vmatpush1.bf16.msra.mxu1 %v16202_v39  ;;  %9312 = vmatpush1.bf16.msra.mxu0 %v17720_v0  ;;  %v8049_v39 = vld [vmem:[#allocation10 + $0x12a8] sm:$0xff]  ;;  %v16250_v0 = vcombine.low %v8037_v26, %v8041_v1  ;;  %v17755_v26 = vld [vmem:[#allocation7 + $0xae4] ss:$8 sps:$4 sm:$0xff]  }
 0x7a3   :  { %8781 = vmatprep.subr.bf16.mxu1 %v16211_v58  ;;  %9313 = vmatprep.subr.bf16.mxu0 %v17725_v43  ;;  %v17738_v58 = vld [vmem:[#allocation7 + $0xa90] ss:$8 sps:$4 sm:$0xff]   ;;  %v16259_v43 = vcombine.high %v8045_v34, %v8049_v39 }
 0x7a4   :  { %v8085_v1 = vld [vmem:[#allocation10 + $0x13c8] sm:$0xff] }
 0x7a6   :  { %8782 = vmatpush1.bf16.msra.mxu1 %v16210_v10  ;;  %9314 = vmatpush1.bf16.msra.mxu0 %v17723_v25  ;;  %v8057_v10 = vld [vmem:[#allocation10 + $0x12e8] sm:$0xff]  ;;  %v16258_v25 = vcombine.low %v8045_v34, %v8049_v39  ;;  %v7967_v39 = vld [vmem:[#allocation10 + $0x1018] sm:$0xff] }
 0x7a7   :  { %8783 = vmatprep.subr.bf16.mxu1 %v16219_v63  ;;  %9315 = vmatprep.subr.bf16.mxu0 %v17728_v60  ;;  %v17741_v63 = vld [vmem:[#allocation7 + $0xaa0] ss:$8 sps:$4 sm:$0xff]   ;;  %v16267_v60 = vcombine.high %v8053_v35, %v8057_v10  ;;  %v17758_v34 = vld [vmem:[#allocation7 + $0xaf4] ss:$8 sps:$4 sm:$0xff]  }
 0x7aa   :  { %8784 = vmatpush1.bf16.msra.mxu1 %v16218_v57  ;;  %9316 = vmatpush1.bf16.msra.mxu0 %v17726_v5  ;;  %v8065_v57 = vld [vmem:[#allocation10 + $0x1328] sm:$0xff]  ;;  %v16266_v5 = vcombine.low %v8053_v35, %v8057_v10  ;;  %v17761_v10 = vld [vmem:[#allocation7 + $0xb04] ss:$8 sps:$4 sm:$0xff]  }
 0x7ab   :  { %8785 = vmatprep.subr.bf16.mxu1 %v16227_v42  ;;  %9317 = vmatprep.subr.bf16.mxu0 %v17731_v22  ;;  %v17744_v42 = vld [vmem:[#allocation7 + $0xab0] ss:$8 sps:$4 sm:$0xff]   ;;  %v16275_v22 = vcombine.high %v8061_v29, %v8065_v57 }
 0x7ae   :  { %8786 = vmatpush1.bf16.msra.mxu1 %v16226_v20  ;;  %9318 = vmatpush1.bf16.msra.mxu0 %v17729_v56  ;;  %v8073_v20 = vld [vmem:[#allocation10 + $0x1368] sm:$0xff]  ;;  %v16274_v56 = vcombine.low %v8061_v29, %v8065_v57  ;;  %v17759_v57 = vld [vmem:[#allocation7 + $0xb00] ss:$8 sps:$4 sm:$0xff]  }
 0x7af   :  { %8787 = vmatprep.subr.bf16.mxu1 %v16235_v17  ;;  %9319 = vmatprep.subr.bf16.mxu0 %v17734_v23  ;;  %v17747_v17 = vld [vmem:[#allocation7 + $0xac0] ss:$8 sps:$4 sm:$0xff]   ;;  %v16283_v23 = vcombine.high %v8069_v62, %v8073_v20 }
 0x7b2   :  { %8788 = vmatpush1.bf16.msra.mxu1 %v16234_v36  ;;  %9320 = vmatpush1.bf16.msra.mxu0 %v17732_v59  ;;  %v8081_v36 = vld [vmem:[#allocation10 + $0x13a8] sm:$0xff]  ;;  %v16282_v59 = vcombine.low %v8069_v62, %v8073_v20 }
 0x7b3   :  { %8789 = vmatprep.subr.bf16.mxu1 %v16243_v24  ;;  %9321 = vmatprep.subr.bf16.mxu0 %v17737_v21  ;;  %v17750_v24 = vld [vmem:[#allocation7 + $0xad0] ss:$8 sps:$4 sm:$0xff]   ;;  %v16291_v21 = vcombine.high %v8077_v31, %v8081_v36 }
 0x7b4   :  { %v17762_v62 = vld [vmem:[#allocation7 + $0xb10] ss:$8 sps:$4 sm:$0xff]  }
 0x7b6   :  { %8790 = vmatpush1.bf16.msra.mxu1 %v16242_v45  ;;  %9322 = vmatpush1.bf16.msra.mxu0 %v17735_v55  ;;  %v8089_v45 = vld [vmem:[#allocation10 + $0x13e8] sm:$0xff]  ;;  %v16290_v55 = vcombine.low %v8077_v31, %v8081_v36  ;;  %v17765_v31 = vld [vmem:[#allocation7 + $0xb20] ss:$8 sps:$4 sm:$0xff]  }
 0x7b7   :  { %8791 = vmatprep.subr.bf16.mxu1 %v16251_v40  ;;  %9323 = vmatprep.subr.bf16.mxu0 %v17740_v30  ;;  %v17753_v40 = vld [vmem:[#allocation7 + $0xae0] ss:$8 sps:$4 sm:$0xff]   ;;  %v16299_v30 = vcombine.high %v8085_v1, %v8089_v45 }
 0x7ba   :  { %8792 = vmatpush1.bf16.msra.mxu1 %v16250_v0  ;;  %9324 = vmatpush1.bf16.msra.mxu0 %v17738_v58  ;;  %v7971_v0 = vld [vmem:[#allocation10 + $0x1038] sm:$0xff]  ;;  %v16298_v58 = vcombine.low %v8085_v1, %v8089_v45 }
 0x7bb   :  { %8793 = vmatprep.subr.bf16.mxu1 %v16259_v43  ;;  %9325 = vmatprep.subr.bf16.mxu0 %v17743_v2  ;;  %v17756_v43 = vld [vmem:[#allocation7 + $0xaf0] ss:$8 sps:$4 sm:$0xff]   ;;  %v1770_v2 = vmax.f32 %v18937_v44, 0.0  ;;  %v16183_v35 = vcombine.high %v7967_v39, %v7971_v0  ;;  %v17773_v45 = vld [vmem:[#allocation7 + $0xb44] ss:$8 sps:$4 sm:$0xff]  }
 0x7bd   :  { %v8904_v29 = vpack.c.bf16 %v1770_v2, %v1770_v2 }
 0x7be   :  { %8794 = vmatpush1.bf16.msra.mxu1 %v16258_v25  ;;  %9326 = vmatpush1.bf16.msra.mxu0 %v17741_v63  ;;  %v1773_v25 = vmax.f32 %v18947_v11, 0.0  ;;  %v7975_v63 = vld [vmem:[#allocation10 + $0x1058] sm:$0xff] }
 0x7bf   :  { %8795 = vmatprep.subr.bf16.mxu1 %v16267_v60  ;;  %9327 = vmatprep.subr.bf16.mxu0 %v17746_v38  ;;  %v7979_v60 = vld [vmem:[#allocation10 + $0x1078] sm:$0xff]  ;;  %v16182_v38 = vcombine.low %v7967_v39, %v7971_v0  ;;  %v17776_v0 = vld [vmem:[#allocation7 + $0xb54] ss:$8 sps:$4 sm:$0xff]  }
 0x7c0   :  { %v8907_v44 = vpack.c.bf16 %v1773_v25, %v1773_v25  ;;  %v16190_v11 = vcombine.low %v7975_v63, %v7979_v60  ;;  %v17779_v25 = vld [vmem:[#allocation7 + $0xb64] ss:$8 sps:$4 sm:$0xff]  }
 0x7c2   :  { %8796 = vmatpush1.bf16.msra.mxu1 %v16266_v5  ;;  %9328 = vmatpush1.bf16.msra.mxu0 %v17744_v42  ;;  %v16191_v5 = vcombine.high %v7975_v63, %v7979_v60  ;;  %v17764_v42 = vld [vmem:[#allocation7 + $0xb14] ss:$8 sps:$4 sm:$0xff]   ;;  %v8023_v63 = vld [vmem:[#allocation10 + $0x11d8] sm:$0xff] }
 0x7c3   :  { %8797 = vmatprep.subr.bf16.mxu1 %v16275_v22  ;;  %9329 = vmatprep.subr.bf16.mxu0 %v17749_v54  ;;  %v7983_v22 = vld [vmem:[#allocation10 + $0x1098] sm:$0xff] }
 0x7c4   :  { %v7987_v54 = vld [vmem:[#allocation10 + $0x10b8] sm:$0xff] }
 0x7c5   :  { %v16199_v20 = vcombine.high %v7983_v22, %v7987_v54  ;;  %v8027_v60 = vld [vmem:[#allocation10 + $0x11f8] sm:$0xff] }
 0x7c6   :  { %8798 = vmatpush1.bf16.msra.mxu1 %v16274_v56  ;;  %9330 = vmatpush1.bf16.msra.mxu0 %v17747_v17  ;;  %v17767_v56 = vld [vmem:[#allocation7 + $0xb24] ss:$8 sps:$4 sm:$0xff]  }
 0x7c7   :  { %8799 = vmatprep.subr.bf16.mxu1 %v16283_v23  ;;  %9331 = vmatprep.subr.bf16.mxu0 %v17752_v18  ;;  %v7991_v17 = vld [vmem:[#allocation10 + $0x10d8] sm:$0xff]  ;;  %v16198_v18 = vcombine.low %v7983_v22, %v7987_v54  ;;  %v16238_v54 = vcombine.low %v8023_v63, %v8027_v60 }
 0x7c8   :  { %v7995_v23 = vld [vmem:[#allocation10 + $0x10f8] sm:$0xff] }
 0x7c9   :  { %v16207_v36 = vcombine.high %v7991_v17, %v7995_v23  ;;  %v8035_v22 = vld [vmem:[#allocation10 + $0x1238] sm:$0xff] }
 0x7ca   :  { %8800 = vmatpush1.bf16.msra.mxu1 %v16282_v59  ;;  %9332 = vmatpush1.bf16.msra.mxu0 %v17750_v24  ;;  %v17770_v59 = vld [vmem:[#allocation7 + $0xb34] ss:$8 sps:$4 sm:$0xff]   ;;  %v7999_v24 = vld [vmem:[#allocation10 + $0x1118] sm:$0xff] }
 0x7cb   :  { %8801 = vmatprep.subr.bf16.mxu1 %v16291_v21  ;;  %9333 = vmatprep.subr.bf16.mxu0 %v17755_v26  ;;  %v16206_v21 = vcombine.low %v7991_v17, %v7995_v23  ;;  %v17768_v26 = vld [vmem:[#allocation7 + $0xb30] ss:$8 sps:$4 sm:$0xff]   ;;  %v17783_v23 = vld [vmem:[#allocation7 + $0xb80] ss:$8 sps:$4 sm:$0xff]  }
 0x7ce   :  { %8802 = vmatpush1.bf16.msra.mxu1 %v16290_v55  ;;  %9334 = vmatpush1.bf16.msra.mxu0 %v17753_v40  ;;  %v8007_v55 = vld [vmem:[#allocation10 + $0x1158] sm:$0xff] }
 0x7cf   :  { %8803 = vmatprep.subr.bf16.mxu1 %v16299_v30  ;;  %9335 = vmatprep.subr.bf16.mxu0 %v17758_v34  ;;  %v8011_v40 = vld [vmem:[#allocation10 + $0x1178] sm:$0xff] }
 0x7d0   :  { %v17771_v34 = vld [vmem:[#allocation7 + $0xb40] ss:$8 sps:$4 sm:$0xff]   ;;  %v16223_v39 = vcombine.high %v8007_v55, %v8011_v40  ;;  %v16222_v2 = vcombine.low %v8007_v55, %v8011_v40 }
 0x7d1   :  { %v17789_v40 = vld [vmem:[#allocation7 + $0xba0] ss:$8 sps:$4 sm:$0xff]  }
 0x7d2   :  { %8804 = vmatpush1.bf16.msra.mxu1 %v16298_v58  ;;  %9336 = vmatpush1.bf16.msra.mxu0 %v17756_v43  ;;  %v8015_v58 = vld [vmem:[#allocation10 + $0x1198] sm:$0xff] }
 0x7d3   :  { %8855 = vmatprep.subr.bf16.mxu1 %v16183_v35  ;;  %9346 = vmatprep.subr.bf16.mxu0 %v17761_v10  ;;  %v8019_v43 = vld [vmem:[#allocation10 + $0x11b8] sm:$0xff]  ;;  %v17774_v35 = vld [vmem:[#allocation7 + $0xb50] ss:$8 sps:$4 sm:$0xff]  }
 0x7d4   :  { %v16231_v10 = vcombine.high %v8015_v58, %v8019_v43 }
 0x7d5   :  { %8806 = vmatmul.mubr.bf16.vlgmr.msra.gmra.mrb[80].mxu1 %v19158_v28  ;;  %9338 = vmatmul.mubr.bf16.vlgmr.msra.gmra.mrb[76].mxu0 %v8904_v29  ;;  %v17777_v29 = vld [vmem:[#allocation7 + $0xb60] ss:$8 sps:$4 sm:$0xff]  }
 0x7d6   :  { %8856 = vmatpush1.bf16.msra.mxu1 %v16182_v38  ;;  %8887 = vmatprep.mubr.bf16.mxu1 %v19156_v49  ;;  %v8003_v49 = vld [vmem:[#allocation10 + $0x1138] sm:$0xff]  ;;  %v16230_v38 = vcombine.low %v8015_v58, %v8019_v43  ;;  %v17792_v43 = vld [vmem:[#allocation7 + $0xbb0] ss:$8 sps:$4 sm:$0xff]  }
 0x7d7   :  { %9347 = vmatpush1.bf16.msra.mxu0 %v17759_v57  ;;  %9378 = vmatprep.mubr.bf16.mxu0 %v8907_v44  ;;  %v16215_v1 = vcombine.high %v7999_v24, %v8003_v49  ;;  %v16214_v30 = vcombine.low %v7999_v24, %v8003_v49  ;;  %v16239_v57 = vcombine.high %v8023_v63, %v8027_v60  ;;  %v17780_v44 = vld [vmem:[#allocation7 + $0xb70] ss:$8 sps:$4 sm:$0xff]   ;;  %v17795_v60 = vld [vmem:[#allocation7 + $0xbc0] ss:$8 sps:$4 sm:$0xff]  }
 0x7d8   :  { %8857 = vmatprep.subr.bf16.mxu1 %v16191_v5  ;;  %9348 = vmatprep.subr.bf16.mxu0 %v17764_v42  ;;  %v17782_v5 = vld [vmem:[#allocation7 + $0xb74] ss:$8 sps:$4 sm:$0xff]   ;;  %v8031_v42 = vld [vmem:[#allocation10 + $0x1218] sm:$0xff]  ;;  %v17786_v49 = vld [vmem:[#allocation7 + $0xb90] ss:$8 sps:$4 sm:$0xff]  }
 0x7d9   :  { %v16246_v17 = vcombine.low %v8031_v42, %v8035_v22 }
 0x7da   :  { %8858 = vmatpush1.bf16.msra.mxu1 %v16190_v11  ;;  %v16247_v11 = vcombine.high %v8031_v42, %v8035_v22  ;;  %v17798_v22 = vld [vmem:[#allocation7 + $0xbd0] ss:$8 sps:$4 sm:$0xff]  }
 0x7db   :  { %9349 = vmatpush1.bf16.msra.mxu0 %v17762_v62  ;;  %8859 = vmatprep.subr.bf16.mxu1 %v16199_v20  ;;  %v17785_v62 = vld [vmem:[#allocation7 + $0xb84] ss:$8 sps:$4 sm:$0xff]  }
 0x7dc   :  { %9350 = vmatprep.subr.bf16.mxu0 %v17767_v56  ;;  %v8039_v20 = vld [vmem:[#allocation10 + $0x1258] sm:$0xff] }
 0x7dd   :  { %v8043_v56 = vld [vmem:[#allocation10 + $0x1278] sm:$0xff] }
 0x7de   :  { %8860 = vmatpush1.bf16.msra.mxu1 %v16198_v18  ;;  %v16255_v18 = vcombine.high %v8039_v20, %v8043_v56  ;;  %v16254_v24 = vcombine.low %v8039_v20, %v8043_v56  ;;  %v17801_v56 = vld [vmem:[#allocation7 + $0xbe0] ss:$8 sps:$4 sm:$0xff]  }
 0x7df   :  { %9351 = vmatpush1.bf16.msra.mxu0 %v17765_v31  ;;  %8861 = vmatprep.subr.bf16.mxu1 %v16207_v36  ;;  %v17788_v31 = vld [vmem:[#allocation7 + $0xb94] ss:$8 sps:$4 sm:$0xff]   ;;  %v8047_v36 = vld [vmem:[#allocation10 + $0x1298] sm:$0xff] }
 0x7e0   :  { %9352 = vmatprep.subr.bf16.mxu0 %v17770_v59  ;;  %v8051_v59 = vld [vmem:[#allocation10 + $0x12b8] sm:$0xff] }
 0x7e1   :  { %v16262_v55 = vcombine.low %v8047_v36, %v8051_v59 }
 0x7e2   :  { %8862 = vmatpush1.bf16.msra.mxu1 %v16206_v21  ;;  %v16263_v21 = vcombine.high %v8047_v36, %v8051_v59  ;;  %v1772_v36 = vmax.f32 %v18945_v8, 0.0  ;;  %v9406_v8 = vld [vmem:[#allocation10 + $0x1470] sm:$0xff] }
 0x7e3   :  { %9353 = vmatpush1.bf16.msra.mxu0 %v17768_v26  ;;  %8863 = vmatprep.subr.bf16.mxu1 %v16215_v1  ;;  %v17791_v26 = vld [vmem:[#allocation7 + $0xba4] ss:$8 sps:$4 sm:$0xff]  }
 0x7e4   :  { %9354 = vmatprep.subr.bf16.mxu0 %v17773_v45  ;;  %v8055_v1 = vld [vmem:[#allocation10 + $0x12d8] sm:$0xff]  ;;  %v8906_v59 = vpack.c.bf16 %v1772_v36, %v1772_v36  ;;  %v9432_v36 = vld [vmem:[#allocation10 + $0x1540] sm:$0xff] }
 0x7e5   :  { %v8059_v45 = vld [vmem:[#allocation10 + $0x12f8] sm:$0xff] }
 0x7e6   :  { %8864 = vmatpush1.bf16.msra.mxu1 %v16214_v30  ;;  %v16271_v30 = vcombine.high %v8055_v1, %v8059_v45  ;;  %v16270_v58 = vcombine.low %v8055_v1, %v8059_v45  ;;  %v9398_v45 = vld [vmem:[#allocation10 + $0x1430] sm:$0xff] }
 0x7e7   :  { %9355 = vmatpush1.bf16.msra.mxu0 %v17771_v34  ;;  %8865 = vmatprep.subr.bf16.mxu1 %v16223_v39  ;;  %v17794_v34 = vld [vmem:[#allocation7 + $0xbb4] ss:$8 sps:$4 sm:$0xff]   ;;  %v8063_v39 = vld [vmem:[#allocation10 + $0x1318] sm:$0xff] }
 0x7e8   :  { %9356 = vmatprep.subr.bf16.mxu0 %v17776_v0  ;;  %v8067_v0 = vld [vmem:[#allocation10 + $0x1338] sm:$0xff] }
 0x7e9   :  { %v16278_v63 = vcombine.low %v8063_v39, %v8067_v0 }
 0x7ea   :  { %8866 = vmatpush1.bf16.msra.mxu1 %v16222_v2  ;;  %v16279_v2 = vcombine.high %v8063_v39, %v8067_v0  ;;  %v9402_v0 = vld [vmem:[#allocation10 + $0x1450] sm:$0xff] }
 0x7eb   :  { %9357 = vmatpush1.bf16.msra.mxu0 %v17774_v35  ;;  %8867 = vmatprep.subr.bf16.mxu1 %v16231_v10  ;;  %v17797_v35 = vld [vmem:[#allocation7 + $0xbc4] ss:$8 sps:$4 sm:$0xff]  }
 0x7ec   :  { %9358 = vmatprep.subr.bf16.mxu0 %v17779_v25  ;;  %v8071_v10 = vld [vmem:[#allocation10 + $0x1358] sm:$0xff] }
 0x7ed   :  { %v8075_v25 = vld [vmem:[#allocation10 + $0x1378] sm:$0xff] }
 0x7ee   :  { %8868 = vmatpush1.bf16.msra.mxu1 %v16230_v38  ;;  %v16287_v38 = vcombine.high %v8071_v10, %v8075_v25  ;;  %v16286_v42 = vcombine.low %v8071_v10, %v8075_v25  ;;  %v16380_v25 = vcombine.low %v9402_v0, %v9406_v8 }
 0x7ef   :  { %9359 = vmatpush1.bf16.msra.mxu0 %v17777_v29  ;;  %8869 = vmatprep.subr.bf16.mxu1 %v16239_v57  ;;  %v17800_v29 = vld [vmem:[#allocation7 + $0xbd4] ss:$8 sps:$4 sm:$0xff]   ;;  %v8079_v57 = vld [vmem:[#allocation10 + $0x1398] sm:$0xff] }
 0x7f0   :  { %9360 = vmatprep.subr.bf16.mxu0 %v17782_v5  ;;  %v8083_v5 = vld [vmem:[#allocation10 + $0x13b8] sm:$0xff] }
 0x7f1   :  { %v16294_v20 = vcombine.low %v8079_v57, %v8083_v5 }
 0x7f2   :  { %8870 = vmatpush1.bf16.msra.mxu1 %v16238_v54  ;;  %v16295_v54 = vcombine.high %v8079_v57, %v8083_v5  ;;  %v9418_v57 = vld [vmem:[#allocation10 + $0x14d0] sm:$0xff] }
 0x7f3   :  { %9361 = vmatpush1.bf16.msra.mxu0 %v17780_v44  ;;  %8871 = vmatprep.subr.bf16.mxu1 %v16247_v11  ;;  %v17803_v44 = vld [vmem:[#allocation7 + $0xbe4] ss:$8 sps:$4 sm:$0xff]  }
 0x7f4   :  { %9362 = vmatprep.subr.bf16.mxu0 %v17785_v62  ;;  %v8087_v11 = vld [vmem:[#allocation10 + $0x13d8] sm:$0xff]  ;;  %v9422_v5 = vld [vmem:[#allocation10 + $0x14f0] sm:$0xff] }
 0x7f5   :  { %v8091_v62 = vld [vmem:[#allocation10 + $0x13f8] sm:$0xff] }
 0x7f6   :  { %8872 = vmatpush1.bf16.msra.mxu1 %v16246_v17  ;;  %v16303_v17 = vcombine.high %v8087_v11, %v8091_v62 }
 0x7f7   :  { %9363 = vmatpush1.bf16.msra.mxu0 %v17783_v23  ;;  %8873 = vmatprep.subr.bf16.mxu1 %v16255_v18  ;;  %v17806_v23 = vld [vmem:[#allocation7 + $0xbf4] ss:$8 sps:$4 sm:$0xff]   ;;  %v16302_v18 = vcombine.low %v8087_v11, %v8091_v62 }
 0x7f8   :  { %9364 = vmatprep.subr.bf16.mxu0 %v17788_v31  ;;  %v17804_v31 = vld [vmem:[#allocation7 + $0xbf0] ss:$8 sps:$4 sm:$0xff]  }
 0x7f9   :  { %v9424_v11 = vld [vmem:[#allocation10 + $0x1500] sm:$0xff] }
 0x7fa   :  { %8874 = vmatpush1.bf16.msra.mxu1 %v16254_v24  ;;  %v9392_v24 = vld [vmem:[#allocation10 + $0x1400] sm:$0xff] }
 0x7fb   :  { %9365 = vmatpush1.bf16.msra.mxu0 %v17786_v49  ;;  %8875 = vmatprep.subr.bf16.mxu1 %v16263_v21  ;;  %v9396_v49 = vld [vmem:[#allocation10 + $0x1420] sm:$0xff]  ;;  %v9394_v21 = vld [vmem:[#allocation10 + $0x1410] sm:$0xff] }
 0x7fc   :  { %9366 = vmatprep.subr.bf16.mxu0 %v17791_v26  ;;  %v16368_v26 = vcombine.low %v9392_v24, %v9396_v49  ;;  %v16369_v1 = vcombine.high %v9392_v24, %v9396_v49  ;;  %v9428_v62 = vld [vmem:[#allocation10 + $0x1520] sm:$0xff]  ;;  %v9434_v24 = vld [vmem:[#allocation10 + $0x1550] sm:$0xff] }
 0x7fd   :  { %v9438_v49 = vld [vmem:[#allocation10 + $0x1570] sm:$0xff] }
 0x7fe   :  { %8876 = vmatpush1.bf16.msra.mxu1 %v16262_v55  ;;  %v9400_v55 = vld [vmem:[#allocation10 + $0x1440] sm:$0xff] }
 0x7ff   :  { %9367 = vmatpush1.bf16.msra.mxu0 %v17789_v40  ;;  %8877 = vmatprep.subr.bf16.mxu1 %v16271_v30  ;;  %v9404_v40 = vld [vmem:[#allocation10 + $0x1460] sm:$0xff]  ;;  %v16372_v30 = vcombine.low %v9394_v21, %v9398_v45 }
 0x800   :  { %9368 = vmatprep.subr.bf16.mxu0 %v17794_v34  ;;  %v16373_v34 = vcombine.high %v9394_v21, %v9398_v45  ;;  %v16377_v39 = vcombine.high %v9400_v55, %v9404_v40  ;;  %v16376_v10 = vcombine.low %v9400_v55, %v9404_v40  ;;  %v16400_v21 = vcombine.low %v9424_v11, %v9428_v62  ;;  %v9440_v55 = vld [vmem:[#allocation10 + $0x1580] sm:$0xff] }
 0x801   :  { %v16413_v45 = vcombine.high %v9434_v24, %v9438_v49  ;;  %v9444_v40 = vld [vmem:[#allocation10 + $0x15a0] sm:$0xff] }
 0x802   :  { %8878 = vmatpush1.bf16.msra.mxu1 %v16270_v58  ;;  %v9408_v58 = vld [vmem:[#allocation10 + $0x1480] sm:$0xff] }
 0x803   :  { %9369 = vmatpush1.bf16.msra.mxu0 %v17792_v43  ;;  %8879 = vmatprep.subr.bf16.mxu1 %v16279_v2  ;;  %v16381_v43 = vcombine.high %v9402_v0, %v9406_v8  ;;  %v9412_v2 = vld [vmem:[#allocation10 + $0x14a0] sm:$0xff]  ;;  %v16412_v0 = vcombine.low %v9434_v24, %v9438_v49  ;;  %v16417_v8 = vcombine.high %v9440_v55, %v9444_v40  ;;  %v9474_v24 = vld [vmem:[#allocation10 + $0x1690] sm:$0xff] }
 0x804   :  { %9370 = vmatprep.subr.bf16.mxu0 %v17797_v35  ;;  %v9410_v35 = vld [vmem:[#allocation10 + $0x1490] sm:$0xff] }
 0x805   :  { %v9478_v49 = vld [vmem:[#allocation10 + $0x16b0] sm:$0xff] }
 0x806   :  { %8880 = vmatpush1.bf16.msra.mxu1 %v16278_v63  ;;  %v16385_v63 = vcombine.high %v9408_v58, %v9412_v2 }
 0x807   :  { %9371 = vmatpush1.bf16.msra.mxu0 %v17795_v60  ;;  %8881 = vmatprep.subr.bf16.mxu1 %v16287_v38  ;;  %v9416_v38 = vld [vmem:[#allocation10 + $0x14c0] sm:$0xff] }
 0x808   :  { %9372 = vmatprep.subr.bf16.mxu0 %v17800_v29  ;;  %v9420_v29 = vld [vmem:[#allocation10 + $0x14e0] sm:$0xff] }
 0x80a   :  { %8882 = vmatpush1.bf16.msra.mxu1 %v16286_v42  ;;  %v16384_v42 = vcombine.low %v9408_v58, %v9412_v2  ;;  %v9452_v2 = vld [vmem:[#allocation10 + $0x15e0] sm:$0xff] }
 0x80b   :  { %9373 = vmatpush1.bf16.msra.mxu0 %v17798_v22  ;;  %8883 = vmatprep.subr.bf16.mxu1 %v16295_v54  ;;  %v16393_v54 = vcombine.high %v9416_v38, %v9420_v29 }
 0x80c   :  { %9374 = vmatprep.subr.bf16.mxu0 %v17803_v44  ;;  %v16397_v44 = vcombine.high %v9418_v57, %v9422_v5 }
 0x80e   :  { %8884 = vmatpush1.bf16.msra.mxu1 %v16294_v20  ;;  %v9426_v20 = vld [vmem:[#allocation10 + $0x1510] sm:$0xff] }
 0x80f   :  { %9375 = vmatpush1.bf16.msra.mxu0 %v17801_v56  ;;  %8885 = vmatprep.subr.bf16.mxu1 %v16303_v17  ;;  %v9430_v56 = vld [vmem:[#allocation10 + $0x1530] sm:$0xff]  ;;  %v16392_v17 = vcombine.low %v9416_v38, %v9420_v29  ;;  %v9456_v38 = vld [vmem:[#allocation10 + $0x1600] sm:$0xff] }
 0x810   :  { %9376 = vmatprep.subr.bf16.mxu0 %v17806_v23  ;;  %v16396_v23 = vcombine.low %v9418_v57, %v9422_v5  ;;  %v9460_v29 = vld [vmem:[#allocation10 + $0x1620] sm:$0xff]  ;;  %v9458_v57 = vld [vmem:[#allocation10 + $0x1610] sm:$0xff] }
 0x811   :  { %v9462_v5 = vld [vmem:[#allocation10 + $0x1630] sm:$0xff] }
 0x812   :  { %8886 = vmatpush1.bf16.msra.mxu1 %v16302_v18  ;;  %v16401_v18 = vcombine.high %v9424_v11, %v9428_v62  ;;  %v9464_v11 = vld [vmem:[#allocation10 + $0x1640] sm:$0xff] }
 0x813   :  { %9377 = vmatpush1.bf16.msra.mxu0 %v17804_v31  ;;  %10160 = vmatprep.subr.bf16.mxu1 %v16369_v1  ;;  %v16405_v31 = vcombine.high %v9426_v20, %v9430_v56  ;;  %v9468_v62 = vld [vmem:[#allocation10 + $0x1660] sm:$0xff] }
 0x814   :  { %10242 = vmatprep.subr.bf16.mxu0 %v16373_v34  ;;  %v9446_v34 = vld [vmem:[#allocation10 + $0x15b0] sm:$0xff] }
 0x815   :  { %8888 = vmatmul.mubr.bf16.vlgmr.msra.gmra.mrb[84].mxu1 %v19158_v28  ;;  %v9414_v28 = vld [vmem:[#allocation10 + $0x14b0] sm:$0xff] }
 0x816   :  { %9379 = vmatmul.mubr.bf16.vlgmr.msra.gmra.mrb[76].mxu0 %v8906_v59  ;;  %10161 = vmatpush1.bf16.msra.mxu1 %v16368_v26  ;;  %v16389_v60 = vcombine.high %v9410_v35, %v9414_v28  ;;  %v16388_v22 = vcombine.low %v9410_v35, %v9414_v28  ;;  %v9436_v59 = vld [vmem:[#allocation10 + $0x1560] sm:$0xff]  ;;  %v16404_v26 = vcombine.low %v9426_v20, %v9430_v56  ;;  %v9450_v35 = vld [vmem:[#allocation10 + $0x15d0] sm:$0xff] }
 0x817   :  { %10243 = vmatpush1.bf16.msra.mxu0 %v16372_v30  ;;  %10162 = vmatprep.subr.bf16.mxu1 %v16377_v39  ;;  %v16409_v1 = vcombine.high %v9432_v36, %v9436_v59  ;;  %v9442_v30 = vld [vmem:[#allocation10 + $0x1590] sm:$0xff]  ;;  %v16408_v39 = vcombine.low %v9432_v36, %v9436_v59  ;;  %v9472_v36 = vld [vmem:[#allocation10 + $0x1680] sm:$0xff] }
 0x818   :  { %10244 = vmatprep.subr.bf16.mxu0 %v16381_v43  ;;  %v16421_v58 = vcombine.high %v9442_v30, %v9446_v34  ;;  %v9448_v43 = vld [vmem:[#allocation10 + $0x15c0] sm:$0xff]  ;;  %v9454_v28 = vld [vmem:[#allocation10 + $0x15f0] sm:$0xff] }
 0x819   :  { %v9466_v20 = vld [vmem:[#allocation10 + $0x1650] sm:$0xff]  ;;  %v9476_v59 = vld [vmem:[#allocation10 + $0x16a0] sm:$0xff] }
 0x81a   :  { %10163 = vmatpush1.bf16.msra.mxu1 %v16376_v10  ;;  %v16416_v10 = vcombine.low %v9440_v55, %v9444_v40  ;;  %v9470_v56 = vld [vmem:[#allocation10 + $0x1670] sm:$0xff]  ;;  %v9480_v55 = vld [vmem:[#allocation10 + $0x16c0] sm:$0xff] }
 0x81b   :  { %10245 = vmatpush1.bf16.msra.mxu0 %v16380_v25  ;;  %10164 = vmatprep.subr.bf16.mxu1 %v16385_v63  ;;  %v16420_v25 = vcombine.low %v9442_v30, %v9446_v34  ;;  %v16425_v63 = vcombine.high %v9448_v43, %v9452_v2  ;;  %v9484_v40 = vld [vmem:[#allocation10 + $0x16e0] sm:$0xff]  ;;  %v9482_v30 = vld [vmem:[#allocation10 + $0x16d0] sm:$0xff] }
 0x81c   :  { %10246 = vmatprep.subr.bf16.mxu0 %v16389_v60  ;;  %v16429_v60 = vcombine.high %v9450_v35, %v9454_v28  ;;  %v9486_v34 = vld [vmem:[#allocation10 + $0x16f0] sm:$0xff] }
 0x81e   :  { %10165 = vmatpush1.bf16.msra.mxu1 %v16384_v42  ;;  %v16424_v42 = vcombine.low %v9448_v43, %v9452_v2  ;;  %v9488_v43 = vld [vmem:[#allocation10 + $0x1700] sm:$0xff] }
 0x81f   :  { %10247 = vmatpush1.bf16.msra.mxu0 %v16388_v22  ;;  %10166 = vmatprep.subr.bf16.mxu1 %v16393_v54  ;;  %v16428_v22 = vcombine.low %v9450_v35, %v9454_v28  ;;  %v16433_v54 = vcombine.high %v9456_v38, %v9460_v29  ;;  %v9492_v2 = vld [vmem:[#allocation10 + $0x1720] sm:$0xff]  ;;  %v9490_v35 = vld [vmem:[#allocation10 + $0x1710] sm:$0xff] }
 0x820   :  { %10248 = vmatprep.subr.bf16.mxu0 %v16397_v44  ;;  %v16437_v44 = vcombine.high %v9458_v57, %v9462_v5  ;;  %v9494_v28 = vld [vmem:[#allocation10 + $0x1730] sm:$0xff] }
 0x822   :  { %10167 = vmatpush1.bf16.msra.mxu1 %v16392_v17  ;;  %v16432_v17 = vcombine.low %v9456_v38, %v9460_v29  ;;  %v9496_v38 = vld [vmem:[#allocation10 + $0x1740] sm:$0xff] }
 0x823   :  { %10249 = vmatpush1.bf16.msra.mxu0 %v16396_v23  ;;  %10168 = vmatprep.subr.bf16.mxu1 %v16401_v18  ;;  %v16436_v23 = vcombine.low %v9458_v57, %v9462_v5  ;;  %v16441_v18 = vcombine.high %v9464_v11, %v9468_v62  ;;  %v9500_v29 = vld [vmem:[#allocation10 + $0x1760] sm:$0xff]  ;;  %v9498_v57 = vld [vmem:[#allocation10 + $0x1750] sm:$0xff] }
 0x824   :  { %10250 = vmatprep.subr.bf16.mxu0 %v16405_v31  ;;  %v16445_v31 = vcombine.high %v9466_v20, %v9470_v56  ;;  %v9502_v5 = vld [vmem:[#allocation10 + $0x1770] sm:$0xff] }
 0x826   :  { %10169 = vmatpush1.bf16.msra.mxu1 %v16400_v21  ;;  %v16440_v21 = vcombine.low %v9464_v11, %v9468_v62  ;;  %v16472_v11 = vcombine.low %v9496_v38, %v9500_v29  ;;  %v16476_v62 = vcombine.low %v9498_v57, %v9502_v5 }
 0x827   :  { %10251 = vmatpush1.bf16.msra.mxu0 %v16404_v26  ;;  %10170 = vmatprep.subr.bf16.mxu1 %v16409_v1  ;;  %v16444_v26 = vcombine.low %v9466_v20, %v9470_v56  ;;  %v16449_v1 = vcombine.high %v9472_v36, %v9476_v59  ;;  %v9504_v20 = vld [vmem:[#allocation10 + $0x1780] sm:$0xff] }
 0x828   :  { %10252 = vmatprep.subr.bf16.mxu0 %v16413_v45  ;;  %v16453_v45 = vcombine.high %v9474_v24, %v9478_v49  ;;  %v9508_v56 = vld [vmem:[#allocation10 + $0x17a0] sm:$0xff] }
 0x82a   :  { %10171 = vmatpush1.bf16.msra.mxu1 %v16408_v39  ;;  %v16448_v39 = vcombine.low %v9472_v36, %v9476_v59  ;;  %v16480_v59 = vcombine.low %v9504_v20, %v9508_v56 }
 0x82b   :  { %10253 = vmatpush1.bf16.msra.mxu0 %v16412_v0  ;;  %10172 = vmatprep.subr.bf16.mxu1 %v16417_v8  ;;  %v16452_v0 = vcombine.low %v9474_v24, %v9478_v49  ;;  %v16457_v8 = vcombine.high %v9480_v55, %v9484_v40 }
 0x82c   :  { %10254 = vmatprep.subr.bf16.mxu0 %v16421_v58  ;;  %v16461_v58 = vcombine.high %v9482_v30, %v9486_v34 }
 0x82e   :  { %10173 = vmatpush1.bf16.msra.mxu1 %v16416_v10  ;;  %v16456_v10 = vcombine.low %v9480_v55, %v9484_v40 }
 0x82f   :  { %10255 = vmatpush1.bf16.msra.mxu0 %v16420_v25  ;;  %10174 = vmatprep.subr.bf16.mxu1 %v16425_v63  ;;  %v16460_v25 = vcombine.low %v9482_v30, %v9486_v34  ;;  %v16465_v63 = vcombine.high %v9488_v43, %v9492_v2 }
 0x830   :  { %10256 = vmatprep.subr.bf16.mxu0 %v16429_v60  ;;  %v16469_v60 = vcombine.high %v9490_v35, %v9494_v28 }
 0x832   :  { %10175 = vmatpush1.bf16.msra.mxu1 %v16424_v42  ;;  %v16464_v42 = vcombine.low %v9488_v43, %v9492_v2  ;;  %v9518_v43 = vld [vmem:[#allocation10 + $0x17f0] sm:$0xff] }
 0x833   :  { %10257 = vmatpush1.bf16.msra.mxu0 %v16428_v22  ;;  %10176 = vmatprep.subr.bf16.mxu1 %v16433_v54  ;;  %v16468_v22 = vcombine.low %v9490_v35, %v9494_v28  ;;  %v16473_v54 = vcombine.high %v9496_v38, %v9500_v29 }
 0x834   :  { %10258 = vmatprep.subr.bf16.mxu0 %v16437_v44  ;;  %v16477_v44 = vcombine.high %v9498_v57, %v9502_v5 }
 0x836   :  { %10177 = vmatpush1.bf16.msra.mxu1 %v16432_v17  ;;  %v9506_v17 = vld [vmem:[#allocation10 + $0x1790] sm:$0xff] }
 0x837   :  { %10259 = vmatpush1.bf16.msra.mxu0 %v16436_v23  ;;  %10178 = vmatprep.subr.bf16.mxu1 %v16441_v18  ;;  %v16481_v23 = vcombine.high %v9504_v20, %v9508_v56  ;;  %v9510_v18 = vld [vmem:[#allocation10 + $0x17b0] sm:$0xff] }
 0x838   :  { %10260 = vmatprep.subr.bf16.mxu0 %v16445_v31  ;;  %v16484_v24 = vcombine.low %v9506_v17, %v9510_v18  ;;  %v16485_v49 = vcombine.high %v9506_v17, %v9510_v18 }
 0x83a   :  { %10179 = vmatpush1.bf16.msra.mxu1 %v16440_v21 }
 0x83b   :  { %10261 = vmatpush1.bf16.msra.mxu0 %v16444_v26  ;;  %10180 = vmatprep.subr.bf16.mxu1 %v16449_v1 }
 0x83c   :  { %10262 = vmatprep.subr.bf16.mxu0 %v16453_v45 }
 0x83e   :  { %10181 = vmatpush1.bf16.msra.mxu1 %v16448_v39  ;;  %v9512_v39 = vld [vmem:[#allocation10 + $0x17c0] sm:$0xff] }
 0x83f   :  { %10263 = vmatpush1.bf16.msra.mxu0 %v16452_v0  ;;  %10182 = vmatprep.subr.bf16.mxu1 %v16457_v8  ;;  %v9516_v0 = vld [vmem:[#allocation10 + $0x17e0] sm:$0xff] }
 0x840   :  { %10264 = vmatprep.subr.bf16.mxu0 %v16461_v58  ;;  %v16488_v2 = vcombine.low %v9512_v39, %v9516_v0 }
 0x842   :  { %10183 = vmatpush1.bf16.msra.mxu1 %v16456_v10 }
 0x843   :  { %10265 = vmatpush1.bf16.msra.mxu0 %v16460_v25  ;;  %10184 = vmatprep.subr.bf16.mxu1 %v16465_v63  ;;  %v17809_v25 = vld [vmem:[#allocation7 + $0xc04] ss:$8 sps:$4 sm:$0xff]  }
 0x844   :  { %10266 = vmatprep.subr.bf16.mxu0 %v16469_v60 }
 0x846   :  { %10185 = vmatpush1.bf16.msra.mxu1 %v16464_v42 }
 0x847   :  { %10267 = vmatpush1.bf16.msra.mxu0 %v16468_v22  ;;  %10186 = vmatprep.subr.bf16.mxu1 %v16473_v54  ;;  %v8973_v22 = vld [vmem:[#allocation8 + $0xa] sm:$0x3]  ;;  %v19189_v54 = vld [vmem:[#allocation5 + $0x18] sm:$0xff] }
 0x848   :  { %10268 = vmatprep.subr.bf16.mxu0 %v16477_v44  ;;  %v393_v44 = vrot.slane %v19189_v54, %v18849_v15 }
 0x84a   :  { %10187 = vmatpush1.bf16.msra.mxu1 %v16472_v11  ;;  %v8978_v11 = vrot.slane %v8973_v22, %v18846_v14 }
 0x84b   :  { %10269 = vmatpush1.bf16.msra.mxu0 %v16476_v62  ;;  %10188 = vmatprep.subr.bf16.mxu1 %v16481_v23  ;;  %v8982_v62 = vrot.slane %v8973_v22, %v18849_v15 }
 0x84c   :  { %10270 = vmatprep.subr.bf16.mxu0 %v16485_v49 }
 0x84e   :  { %10189 = vmatpush1.bf16.msra.mxu1 %v16480_v59 }
 0x84f   :  { %10271 = vmatpush1.bf16.msra.mxu0 %v16484_v24 }
 0x868   :  { %v8766_v31 = vpop.f32.mrb[76].mxu1  ;;  %v8848_v36 = vpop.f32.mrb[72].mxu0 }
 0x869   :  { %v19172_v21 = vadd.f32 %v8766_v31, %v19130_v32  ;;  %v19175_v26 = vadd.f32 %v8848_v36, %v19133_v12  ;;  %v8768_v1 = vpop.f32.mrb[77].mxu1  ;;  %v8850_v45 = vpop.f32.mrb[73].mxu0  ;;  %v9514_v32 = vld [vmem:[#allocation10 + $0x17d0] sm:$0xff]  ;;  %v16489_v12 = vcombine.high %v9512_v39, %v9516_v0  ;;  %v9401_v39 = vld [vmem:[#allocation10 + $0x1448] sm:$0xff] }
 0x86a   :  { %v19178_v55 = vadd.f32 %v8768_v1, %v19136_v6  ;;  %v19181_v40 = vadd.f32 %v8850_v45, %v19139_v4  ;;  %v8770_v30 = vpop.f32.mrb[78].mxu1  ;;  %v8852_v34 = vpop.f32.mrb[74].mxu0  ;;  %v16492_v35 = vcombine.low %v9514_v32, %v9518_v43  ;;  %v16493_v28 = vcombine.high %v9514_v32, %v9518_v43  ;;  %v9393_v6 = vld [vmem:[#allocation10 + $0x1408] sm:$0xff]  ;;  %v17807_v32 = vld [vmem:[#allocation7 + $0xc00] ss:$8 sps:$4 sm:$0xff]  }
 0x86b   :  { %v8771_v8 = vpop.f32.mrb[79].mxu1  ;;  %v8853_v58 = vpop.f32.mrb[75].mxu0  ;;  %10190 = vmatprep.subr.bf16.mxu1 %v16489_v12  ;;  %v9397_v4 = vld [vmem:[#allocation10 + $0x1428] sm:$0xff] }
 0x86c   :  { %10272 = vmatprep.subr.bf16.mxu0 %v16493_v28  ;;  %10191 = vmatpush1.bf16.msra.mxu1 %v16488_v2  ;;  %v16371_v10 = vcombine.high %v9393_v6, %v9397_v4  ;;  %v16370_v63 = vcombine.low %v9393_v6, %v9397_v4  ;;  %v9409_v58 = vld [vmem:[#allocation10 + $0x1488] sm:$0xff]  ;;  %v17815_v6 = vld [vmem:[#allocation7 + $0xc24] ss:$8 sps:$4 sm:$0xff]  }
 0x86d   :  { %10273 = vmatpush1.bf16.msra.mxu0 %v16492_v35  ;;  %v9413_v12 = vld [vmem:[#allocation10 + $0x14a8] sm:$0xff] }
 0x86e   :  { %10201 = vmatprep.subr.bf16.mxu1 %v16371_v10  ;;  %10733 = vmatprep.subr.bf16.mxu0 %v17809_v25  ;;  %v17810_v35 = vld [vmem:[#allocation7 + $0xc10] ss:$8 sps:$4 sm:$0xff]   ;;  %v16387_v28 = vcombine.high %v9409_v58, %v9413_v12  ;;  %v16386_v25 = vcombine.low %v9409_v58, %v9413_v12 }
 0x86f   :  { %v9417_v4 = vld [vmem:[#allocation10 + $0x14c8] sm:$0xff] }
 0x870   :  { %v9421_v10 = vld [vmem:[#allocation10 + $0x14e8] sm:$0xff] }
 0x871   :  { %v16394_v22 = vcombine.low %v9417_v4, %v9421_v10  ;;  %v9461_v58 = vld [vmem:[#allocation10 + $0x1628] sm:$0xff] }
 0x8a8   :  { %v8807_v60 = vpop.f32.mrb[80].mxu1 }
 0x8a9   :  { %v19184_v38 = vadd.f32 %v8807_v60, %v19142_v51  ;;  %v8809_v29 = vpop.f32.mrb[81].mxu1  ;;  %v17813_v60 = vld [vmem:[#allocation7 + $0xc20] ss:$8 sps:$4 sm:$0xff]  }
 0x8aa   :  { %v19187_v57 = vadd.f32 %v8809_v29, %v19145_v33  ;;  %v8811_v5 = vpop.f32.mrb[82].mxu1  ;;  %v1623_v33 = vadd.f32 %v18953_v48, %v393_v44  ;;  %v16395_v29 = vcombine.high %v9417_v4, %v9421_v10  ;;  %v17816_v44 = vld [vmem:[#allocation7 + $0xc30] ss:$8 sps:$4 sm:$0xff]   ;;  %v17831_v10 = vld [vmem:[#allocation7 + $0xc80] ss:$8 sps:$4 sm:$0xff]  }
 0x8ab   :  { %v8812_v42 = vpop.f32.mrb[83].mxu1  ;;  %v9425_v5 = vld [vmem:[#allocation10 + $0x1508] sm:$0xff] }
 0x8ac   :  { %v1775_v34 = vmax.f32 %v1623_v33, 0.0  ;;  %v9429_v42 = vld [vmem:[#allocation10 + $0x1528] sm:$0xff]  ;;  %v17819_v33 = vld [vmem:[#allocation7 + $0xc40] ss:$8 sps:$4 sm:$0xff]  }
 0x8ae   :  { %v10333_v43 = vpack.c.bf16 %v1775_v34, %v1775_v34  ;;  %v9453_v34 = vld [vmem:[#allocation10 + $0x15e8] sm:$0xff] }
 0x8e8   :  { %v8889_v20 = vpop.f32.mrb[84].mxu1 }
 0x8e9   :  { %v19196_v51 = vadd.f32 %v8889_v20, %v19150_v52  ;;  %v9380_v56 = vpop.f32.mrb[76].mxu0  ;;  %v8891_v17 = vpop.f32.mrb[85].mxu1  ;;  %v9405_v52 = vld [vmem:[#allocation10 + $0x1468] sm:$0xff] }
 0x8ea   :  { %v17148_v23 = vadd.f32 %v9380_v56, %v8978_v11  ;;  %v19200_v18 = vadd.f32 %v8891_v17, %v19153_v13  ;;  %v9382_v31 = vpop.f32.mrb[77].mxu0  ;;  %v8893_v36 = vpop.f32.mrb[86].mxu1  ;;  %v16379_v48 = vcombine.high %v9401_v39, %v9405_v52  ;;  %v17812_v13 = vld [vmem:[#allocation7 + $0xc14] ss:$8 sps:$4 sm:$0xff]   ;;  %v16378_v2 = vcombine.low %v9401_v39, %v9405_v52  ;;  %v17825_v52 = vld [vmem:[#allocation7 + $0xc60] ss:$8 sps:$4 sm:$0xff]  }
 0x8eb   :  { %v17149_v59 = vadd.f32 %v9382_v31, %v8982_v62  ;;  %v9384_v24 = vpop.f32.mrb[78].mxu0  ;;  %v8894_v49 = vpop.f32.mrb[87].mxu1  ;;  %v16403_v11 = vcombine.high %v9425_v5, %v9429_v42  ;;  %v17821_v62 = vld [vmem:[#allocation7 + $0xc44] ss:$8 sps:$4 sm:$0xff]   ;;  %v9433_v20 = vld [vmem:[#allocation10 + $0x1548] sm:$0xff]  ;;  %v16402_v17 = vcombine.low %v9425_v5, %v9429_v42 }
 0x8ec   :  { %v9387_v1 = vmax.f32 %v17148_v23, 0.0  ;;  %v9385_v45 = vpop.f32.mrb[79].mxu0  ;;  %v9437_v56 = vld [vmem:[#allocation10 + $0x1568] sm:$0xff] }
 0x8ed   :  { %v9388_v30 = vmax.f32 %v17149_v59, 0.0  ;;  %v16411_v23 = vcombine.high %v9433_v20, %v9437_v56  ;;  %v17824_v31 = vld [vmem:[#allocation7 + $0xc54] ss:$8 sps:$4 sm:$0xff]   ;;  %v16410_v24 = vcombine.low %v9433_v20, %v9437_v56  ;;  %v17822_v49 = vld [vmem:[#allocation7 + $0xc50] ss:$8 sps:$4 sm:$0xff]  }
 0x8ee   :  { %v19204_v8 = vpack.c.bf16 %v9387_v1, %v9387_v1  ;;  %v9441_v36 = vld [vmem:[#allocation10 + $0x1588] sm:$0xff]  ;;  %v17827_v45 = vld [vmem:[#allocation7 + $0xc64] ss:$8 sps:$4 sm:$0xff]   ;;  %v17837_v56 = vld [vmem:[#allocation7 + $0xca0] ss:$8 sps:$4 sm:$0xff]  }
 0x8ef   :  { %v19202_v0 = vpack.c.bf16 %v9388_v30, %v9388_v30  ;;  %v9445_v59 = vld [vmem:[#allocation10 + $0x15a8] sm:$0xff] }
 0x8f0   :  { %v16419_v1 = vcombine.high %v9441_v36, %v9445_v59  ;;  %v9449_v30 = vld [vmem:[#allocation10 + $0x15c8] sm:$0xff]  ;;  %v16418_v39 = vcombine.low %v9441_v36, %v9445_v59 }
 0x8f1   :  { %10192 = vmatprep.mubr.bf16.mxu1 %v19202_v0  ;;  %10274 = vmatprep.mubr.bf16.mxu0 %v19202_v0  ;;  %v16426_v12 = vcombine.low %v9449_v30, %v9453_v34  ;;  %v17834_v42 = vld [vmem:[#allocation7 + $0xc90] ss:$8 sps:$4 sm:$0xff]  }
 0x8f2   :  { %10193 = vmatmul.mubr.bf16.vlgmr.msra.gmra.mrb[88].mxu1 %v19204_v8  ;;  %10275 = vmatmul.mubr.bf16.vlgmr.msra.gmra.mrb[80].mxu0 %v19204_v8  ;;  %v17840_v59 = vld [vmem:[#allocation7 + $0xcb0] ss:$8 sps:$4 sm:$0xff]  }
 0x8f3   :  { %10202 = vmatpush1.bf16.msra.mxu1 %v16370_v63  ;;  %10734 = vmatpush1.bf16.msra.mxu0 %v17807_v32  ;;  %v17818_v63 = vld [vmem:[#allocation7 + $0xc34] ss:$8 sps:$4 sm:$0xff]   ;;  %v16427_v32 = vcombine.high %v9449_v30, %v9453_v34  ;;  %v17843_v34 = vld [vmem:[#allocation7 + $0xcc0] ss:$8 sps:$4 sm:$0xff]  }
 0x8f4   :  { %10233 = vmatprep.mubr.bf16.mxu1 %v19202_v0  ;;  %10765 = vmatprep.mubr.bf16.mxu0 %v10333_v43  ;;  %v17828_v43 = vld [vmem:[#allocation7 + $0xc70] ss:$8 sps:$4 sm:$0xff]  }
 0x8f5   :  { %10203 = vmatprep.subr.bf16.mxu1 %v16379_v48  ;;  %10735 = vmatprep.subr.bf16.mxu0 %v17812_v13  ;;  %v17830_v48 = vld [vmem:[#allocation7 + $0xc74] ss:$8 sps:$4 sm:$0xff]  }
 0x8f6   :  { %v9457_v13 = vld [vmem:[#allocation10 + $0x1608] sm:$0xff] }
 0x8f7   :  { %10204 = vmatpush1.bf16.msra.mxu1 %v16378_v2  ;;  %10736 = vmatpush1.bf16.msra.mxu0 %v17810_v35  ;;  %v16435_v2 = vcombine.high %v9457_v13, %v9461_v58  ;;  %v17833_v35 = vld [vmem:[#allocation7 + $0xc84] ss:$8 sps:$4 sm:$0xff]   ;;  %v16434_v4 = vcombine.low %v9457_v13, %v9461_v58  ;;  %v17846_v58 = vld [vmem:[#allocation7 + $0xcd0] ss:$8 sps:$4 sm:$0xff]  }
 0x8f8   :  { %10205 = vmatprep.subr.bf16.mxu1 %v16387_v28  ;;  %10737 = vmatprep.subr.bf16.mxu0 %v17815_v6  ;;  %v9465_v28 = vld [vmem:[#allocation10 + $0x1648] sm:$0xff] }
 0x8f9   :  { %v9469_v6 = vld [vmem:[#allocation10 + $0x1668] sm:$0xff] }
 0x8fa   :  { %v16442_v5 = vcombine.low %v9465_v28, %v9469_v6 }
 0x8fb   :  { %10206 = vmatpush1.bf16.msra.mxu1 %v16386_v25  ;;  %10738 = vmatpush1.bf16.msra.mxu0 %v17813_v60  ;;  %v16443_v25 = vcombine.high %v9465_v28, %v9469_v6  ;;  %v17836_v60 = vld [vmem:[#allocation7 + $0xc94] ss:$8 sps:$4 sm:$0xff]  }
 0x8fc   :  { %10207 = vmatprep.subr.bf16.mxu1 %v16395_v29  ;;  %10739 = vmatprep.subr.bf16.mxu0 %v17818_v63  ;;  %v9473_v29 = vld [vmem:[#allocation10 + $0x1688] sm:$0xff] }
 0x8fd   :  { %v9477_v63 = vld [vmem:[#allocation10 + $0x16a8] sm:$0xff] }
 0x8fe   :  { %v16450_v20 = vcombine.low %v9473_v29, %v9477_v63  ;;  %v9517_v28 = vld [vmem:[#allocation10 + $0x17e8] sm:$0xff] }
 0x8ff   :  { %10208 = vmatpush1.bf16.msra.mxu1 %v16394_v22  ;;  %10740 = vmatpush1.bf16.msra.mxu0 %v17816_v44  ;;  %v16451_v22 = vcombine.high %v9473_v29, %v9477_v63  ;;  %v17839_v44 = vld [vmem:[#allocation7 + $0xca4] ss:$8 sps:$4 sm:$0xff]  }
 0x900   :  { %10209 = vmatprep.subr.bf16.mxu1 %v16403_v11  ;;  %10741 = vmatprep.subr.bf16.mxu0 %v17821_v62  ;;  %v9481_v11 = vld [vmem:[#allocation10 + $0x16c8] sm:$0xff]  ;;  %v9395_v29 = vld [vmem:[#allocation10 + $0x1418] sm:$0xff] }
 0x901   :  { %v9485_v62 = vld [vmem:[#allocation10 + $0x16e8] sm:$0xff]  ;;  %v9399_v63 = vld [vmem:[#allocation10 + $0x1438] sm:$0xff] }
 0x902   :  { %v16458_v36 = vcombine.low %v9481_v11, %v9485_v62 }
 0x903   :  { %10210 = vmatpush1.bf16.msra.mxu1 %v16402_v17  ;;  %10742 = vmatpush1.bf16.msra.mxu0 %v17819_v33  ;;  %v16459_v17 = vcombine.high %v9481_v11, %v9485_v62  ;;  %v17842_v33 = vld [vmem:[#allocation7 + $0xcb4] ss:$8 sps:$4 sm:$0xff]   ;;  %v1777_v11 = vmax.f32 %v18961_v16, 0.0  ;;  %v9403_v62 = vld [vmem:[#allocation10 + $0x1458] sm:$0xff] }
 0x904   :  { %10211 = vmatprep.subr.bf16.mxu1 %v16411_v23  ;;  %10743 = vmatprep.subr.bf16.mxu0 %v17824_v31  ;;  %v9489_v23 = vld [vmem:[#allocation10 + $0x1708] sm:$0xff] }
 0x905   :  { %v9493_v31 = vld [vmem:[#allocation10 + $0x1728] sm:$0xff] }
 0x906   :  { %v16466_v30 = vcombine.low %v9489_v23, %v9493_v31 }
 0x907   :  { %10212 = vmatpush1.bf16.msra.mxu1 %v16410_v24  ;;  %10744 = vmatpush1.bf16.msra.mxu0 %v17822_v49  ;;  %v16467_v24 = vcombine.high %v9489_v23, %v9493_v31  ;;  %v17845_v49 = vld [vmem:[#allocation7 + $0xcc4] ss:$8 sps:$4 sm:$0xff]   ;;  %v17860_v23 = vld [vmem:[#allocation7 + $0xd14] ss:$8 sps:$4 sm:$0xff]  }
 0x908   :  { %10213 = vmatprep.subr.bf16.mxu1 %v16419_v1  ;;  %10745 = vmatprep.subr.bf16.mxu0 %v17827_v45  ;;  %v9497_v1 = vld [vmem:[#allocation10 + $0x1748] sm:$0xff]  ;;  %v9411_v31 = vld [vmem:[#allocation10 + $0x1498] sm:$0xff] }
 0x909   :  { %v9501_v45 = vld [vmem:[#allocation10 + $0x1768] sm:$0xff] }
 0x90a   :  { %v16474_v13 = vcombine.low %v9497_v1, %v9501_v45 }
 0x90b   :  { %10214 = vmatpush1.bf16.msra.mxu1 %v16418_v39  ;;  %10746 = vmatpush1.bf16.msra.mxu0 %v17825_v52  ;;  %v16475_v39 = vcombine.high %v9497_v1, %v9501_v45  ;;  %v17848_v52 = vld [vmem:[#allocation7 + $0xcd4] ss:$8 sps:$4 sm:$0xff]   ;;  %v17863_v1 = vld [vmem:[#allocation7 + $0xd24] ss:$8 sps:$4 sm:$0xff]  }
 0x90c   :  { %10215 = vmatprep.subr.bf16.mxu1 %v16427_v32  ;;  %10747 = vmatprep.subr.bf16.mxu0 %v17830_v48  ;;  %v9505_v32 = vld [vmem:[#allocation10 + $0x1788] sm:$0xff]  ;;  %v9419_v45 = vld [vmem:[#allocation10 + $0x14d8] sm:$0xff] }
 0x90d   :  { %v9509_v48 = vld [vmem:[#allocation10 + $0x17a8] sm:$0xff] }
 0x90e   :  { %v16482_v6 = vcombine.low %v9505_v32, %v9509_v48 }
 0x90f   :  { %10216 = vmatpush1.bf16.msra.mxu1 %v16426_v12  ;;  %10748 = vmatpush1.bf16.msra.mxu0 %v17828_v43  ;;  %v389_v12 = vrot.slane %v19189_v54, %v18846_v14  ;;  %v16483_v43 = vcombine.high %v9505_v32, %v9509_v48  ;;  %v17866_v32 = vld [vmem:[#allocation7 + $0xd34] ss:$8 sps:$4 sm:$0xff]   ;;  %v9427_v48 = vld [vmem:[#allocation10 + $0x1518] sm:$0xff] }
 0x910   :  { %10217 = vmatprep.subr.bf16.mxu1 %v16435_v2  ;;  %10749 = vmatprep.subr.bf16.mxu0 %v17833_v35  ;;  %v17851_v2 = vld [vmem:[#allocation7 + $0xce4] ss:$8 sps:$4 sm:$0xff]   ;;  %v9513_v35 = vld [vmem:[#allocation10 + $0x17c8] sm:$0xff] }
 0x911   :  { %v16490_v54 = vcombine.low %v9513_v35, %v9517_v28 }
 0x913   :  { %10218 = vmatpush1.bf16.msra.mxu1 %v16434_v4  ;;  %10750 = vmatpush1.bf16.msra.mxu0 %v17831_v10  ;;  %v17849_v4 = vld [vmem:[#allocation7 + $0xce0] ss:$8 sps:$4 sm:$0xff]   ;;  %v1621_v10 = vadd.f32 %v18951_v47, %v389_v12  ;;  %v16374_v47 = vcombine.low %v9395_v29, %v9399_v63 }
 0x914   :  { %10219 = vmatprep.subr.bf16.mxu1 %v16443_v25  ;;  %10751 = vmatprep.subr.bf16.mxu0 %v17836_v60  ;;  %v16491_v25 = vcombine.high %v9513_v35, %v9517_v28  ;;  %v17854_v60 = vld [vmem:[#allocation7 + $0xcf4] ss:$8 sps:$4 sm:$0xff]   ;;  %v9439_v35 = vld [vmem:[#allocation10 + $0x1578] sm:$0xff] }
 0x917   :  { %10220 = vmatpush1.bf16.msra.mxu1 %v16442_v5  ;;  %10752 = vmatpush1.bf16.msra.mxu0 %v17834_v42  ;;  %v17852_v5 = vld [vmem:[#allocation7 + $0xcf0] ss:$8 sps:$4 sm:$0xff]   ;;  %v1774_v42 = vmax.f32 %v1621_v10, 0.0  ;;  %v17872_v10 = vld [vmem:[#allocation7 + $0xd54] ss:$8 sps:$4 sm:$0xff]  }
 0x918   :  { %10221 = vmatprep.subr.bf16.mxu1 %v16451_v22  ;;  %10753 = vmatprep.subr.bf16.mxu0 %v17839_v44  ;;  %v16375_v22 = vcombine.high %v9395_v29, %v9399_v63  ;;  %v17857_v44 = vld [vmem:[#allocation7 + $0xd04] ss:$8 sps:$4 sm:$0xff]   ;;  %v17870_v63 = vld [vmem:[#allocation7 + $0xd50] ss:$8 sps:$4 sm:$0xff]  }
 0x91b   :  { %10222 = vmatpush1.bf16.msra.mxu1 %v16450_v20  ;;  %10754 = vmatpush1.bf16.msra.mxu0 %v17837_v56  ;;  %v9407_v20 = vld [vmem:[#allocation10 + $0x1478] sm:$0xff]  ;;  %v10332_v56 = vpack.c.bf16 %v1774_v42, %v1774_v42 }
 0x91c   :  { %10223 = vmatprep.subr.bf16.mxu1 %v16459_v17  ;;  %10755 = vmatprep.subr.bf16.mxu0 %v17842_v33  ;;  %v17855_v17 = vld [vmem:[#allocation7 + $0xd00] ss:$8 sps:$4 sm:$0xff]   ;;  %v16383_v33 = vcombine.high %v9403_v62, %v9407_v20  ;;  %v16382_v16 = vcombine.low %v9403_v62, %v9407_v20  ;;  %v17878_v20 = vld [vmem:[#allocation7 + $0xd74] ss:$8 sps:$4 sm:$0xff]  }
 0x91d   :  { %v9451_v42 = vld [vmem:[#allocation10 + $0x15d8] sm:$0xff] }
 0x91f   :  { %10224 = vmatpush1.bf16.msra.mxu1 %v16458_v36  ;;  %10756 = vmatpush1.bf16.msra.mxu0 %v17840_v59  ;;  %v9415_v36 = vld [vmem:[#allocation10 + $0x14b8] sm:$0xff]  ;;  %v10335_v59 = vpack.c.bf16 %v1777_v11, %v1777_v11 }
 0x920   :  { %10225 = vmatprep.subr.bf16.mxu1 %v16467_v24  ;;  %10757 = vmatprep.subr.bf16.mxu0 %v17845_v49  ;;  %v17858_v24 = vld [vmem:[#allocation7 + $0xd10] ss:$8 sps:$4 sm:$0xff]   ;;  %v16391_v49 = vcombine.high %v9411_v31, %v9415_v36  ;;  %v17873_v11 = vld [vmem:[#allocation7 + $0xd60] ss:$8 sps:$4 sm:$0xff]  }
 0x923   :  { %10226 = vmatpush1.bf16.msra.mxu1 %v16466_v30  ;;  %10758 = vmatpush1.bf16.msra.mxu0 %v17843_v34  ;;  %v9423_v30 = vld [vmem:[#allocation10 + $0x14f8] sm:$0xff]  ;;  %v16390_v34 = vcombine.low %v9411_v31, %v9415_v36 }
 0x924   :  { %10227 = vmatprep.subr.bf16.mxu1 %v16475_v39  ;;  %10759 = vmatprep.subr.bf16.mxu0 %v17848_v52  ;;  %v17861_v39 = vld [vmem:[#allocation7 + $0xd20] ss:$8 sps:$4 sm:$0xff]   ;;  %v16399_v52 = vcombine.high %v9419_v45, %v9423_v30  ;;  %v17881_v31 = vld [vmem:[#allocation7 + $0xd84] ss:$8 sps:$4 sm:$0xff]  }
 0x925   :  { %v9467_v36 = vld [vmem:[#allocation10 + $0x1658] sm:$0xff] }
 0x927   :  { %10228 = vmatpush1.bf16.msra.mxu1 %v16474_v13  ;;  %10760 = vmatpush1.bf16.msra.mxu0 %v17846_v58  ;;  %v16398_v13 = vcombine.low %v9419_v45, %v9423_v30  ;;  %v17864_v58 = vld [vmem:[#allocation7 + $0xd30] ss:$8 sps:$4 sm:$0xff]   ;;  %v9475_v45 = vld [vmem:[#allocation10 + $0x1698] sm:$0xff] }
 0x928   :  { %10229 = vmatprep.subr.bf16.mxu1 %v16483_v43  ;;  %10761 = vmatprep.subr.bf16.mxu0 %v17851_v2  ;;  %v17869_v43 = vld [vmem:[#allocation7 + $0xd44] ss:$8 sps:$4 sm:$0xff]  }
 0x929   :  { %v9435_v2 = vld [vmem:[#allocation10 + $0x1558] sm:$0xff] }
 0x92a   :  { %v16414_v29 = vcombine.low %v9435_v2, %v9439_v35  ;;  %v9479_v30 = vld [vmem:[#allocation10 + $0x16b8] sm:$0xff] }
 0x92b   :  { %10230 = vmatpush1.bf16.msra.mxu1 %v16482_v6  ;;  %10762 = vmatpush1.bf16.msra.mxu0 %v17849_v4  ;;  %v17867_v6 = vld [vmem:[#allocation7 + $0xd40] ss:$8 sps:$4 sm:$0xff]   ;;  %v16415_v4 = vcombine.high %v9435_v2, %v9439_v35 }
 0x92c   :  { %10231 = vmatprep.subr.bf16.mxu1 %v16491_v25  ;;  %10763 = vmatprep.subr.bf16.mxu0 %v17854_v60  ;;  %v9443_v25 = vld [vmem:[#allocation10 + $0x1598] sm:$0xff] }
 0x92d   :  { %v9447_v60 = vld [vmem:[#allocation10 + $0x15b8] sm:$0xff] }
 0x92e   :  { %v9491_v2 = vld [vmem:[#allocation10 + $0x1718] sm:$0xff] }
 0x92f   :  { %10232 = vmatpush1.bf16.msra.mxu1 %v16490_v54  ;;  %10764 = vmatpush1.bf16.msra.mxu0 %v17852_v5  ;;  %v16423_v54 = vcombine.high %v9443_v25, %v9447_v60  ;;  %v17875_v5 = vld [vmem:[#allocation7 + $0xd64] ss:$8 sps:$4 sm:$0xff]  }
 0x930   :  { %10283 = vmatprep.subr.bf16.mxu1 %v16375_v22  ;;  %10774 = vmatprep.subr.bf16.mxu0 %v17857_v44  ;;  %v9455_v22 = vld [vmem:[#allocation10 + $0x15f8] sm:$0xff]  ;;  %v16422_v44 = vcombine.low %v9443_v25, %v9447_v60 }
 0x931   :  { %v16431_v62 = vcombine.high %v9451_v42, %v9455_v22  ;;  %v9495_v35 = vld [vmem:[#allocation10 + $0x1738] sm:$0xff] }
 0x932   :  { %10234 = vmatmul.mubr.bf16.vlgmr.msra.gmra.mrb[92].mxu1 %v19204_v8  ;;  %10766 = vmatmul.mubr.bf16.vlgmr.msra.gmra.mrb[84].mxu0 %v10332_v56  ;;  %v9463_v56 = vld [vmem:[#allocation10 + $0x1638] sm:$0xff] }
 0x933   :  { %10284 = vmatpush1.bf16.msra.mxu1 %v16374_v47  ;;  %10315 = vmatprep.mubr.bf16.mxu1 %v19202_v0  ;;  %v9431_v0 = vld [vmem:[#allocation10 + $0x1538] sm:$0xff] }
 0x934   :  { %10775 = vmatpush1.bf16.msra.mxu0 %v17855_v17  ;;  %10806 = vmatprep.mubr.bf16.mxu0 %v10335_v59  ;;  %v16407_v12 = vcombine.high %v9427_v48, %v9431_v0  ;;  %v16406_v28 = vcombine.low %v9427_v48, %v9431_v0  ;;  %v9459_v47 = vld [vmem:[#allocation10 + $0x1618] sm:$0xff]  ;;  %v16430_v17 = vcombine.low %v9451_v42, %v9455_v22 }
 0x935   :  { %10285 = vmatprep.subr.bf16.mxu1 %v16383_v33  ;;  %10776 = vmatprep.subr.bf16.mxu0 %v17860_v23  ;;  %v17876_v33 = vld [vmem:[#allocation7 + $0xd70] ss:$8 sps:$4 sm:$0xff]   ;;  %v16439_v23 = vcombine.high %v9459_v47, %v9463_v56  ;;  %v9471_v59 = vld [vmem:[#allocation10 + $0x1678] sm:$0xff] }
 0x936   :  { %v9483_v48 = vld [vmem:[#allocation10 + $0x16d8] sm:$0xff] }
 0x937   :  { %10286 = vmatpush1.bf16.msra.mxu1 %v16382_v16  ;;  %v16438_v16 = vcombine.low %v9459_v47, %v9463_v56  ;;  %v9487_v0 = vld [vmem:[#allocation10 + $0x16f8] sm:$0xff] }
 0x938   :  { %10777 = vmatpush1.bf16.msra.mxu0 %v17858_v24  ;;  %10287 = vmatprep.subr.bf16.mxu1 %v16391_v49  ;;  %v17879_v24 = vld [vmem:[#allocation7 + $0xd80] ss:$8 sps:$4 sm:$0xff]   ;;  %v16447_v49 = vcombine.high %v9467_v36, %v9471_v59 }
 0x939   :  { %10778 = vmatprep.subr.bf16.mxu0 %v17863_v1  ;;  %v17884_v1 = vld [vmem:[#allocation7 + $0xd94] ss:$8 sps:$4 sm:$0xff]   ;;  %v9499_v25 = vld [vmem:[#allocation10 + $0x1758] sm:$0xff] }
 0x93a   :  { %v9503_v60 = vld [vmem:[#allocation10 + $0x1778] sm:$0xff] }
 0x93b   :  { %10288 = vmatpush1.bf16.msra.mxu1 %v16390_v34  ;;  %v16446_v34 = vcombine.low %v9467_v36, %v9471_v59  ;;  %v9507_v42 = vld [vmem:[#allocation10 + $0x1798] sm:$0xff]  ;;  %v17900_v59 = vld [vmem:[#allocation7 + $0xdf0] ss:$8 sps:$4 sm:$0xff]  }
 0x93c   :  { %10779 = vmatpush1.bf16.msra.mxu0 %v17861_v39  ;;  %10289 = vmatprep.subr.bf16.mxu1 %v16399_v52  ;;  %v17882_v39 = vld [vmem:[#allocation7 + $0xd90] ss:$8 sps:$4 sm:$0xff]   ;;  %v16455_v52 = vcombine.high %v9475_v45, %v9479_v30  ;;  %v9511_v22 = vld [vmem:[#allocation10 + $0x17b8] sm:$0xff] }
 0x93d   :  { %10780 = vmatprep.subr.bf16.mxu0 %v17866_v32  ;;  %v17887_v32 = vld [vmem:[#allocation7 + $0xda4] ss:$8 sps:$4 sm:$0xff]  }
 0x93e   :  { %v9515_v47 = vld [vmem:[#allocation10 + $0x17d8] sm:$0xff] }
 0x93f   :  { %10290 = vmatpush1.bf16.msra.mxu1 %v16398_v13  ;;  %v16454_v13 = vcombine.low %v9475_v45, %v9479_v30  ;;  %v9519_v56 = vld [vmem:[#allocation10 + $0x17f8] sm:$0xff]  ;;  %v10822_v45 = vld [vmem:[#allocation10 + $0x1810] sm:$0xff] }
 0x940   :  { %10781 = vmatpush1.bf16.msra.mxu0 %v17864_v58  ;;  %10291 = vmatprep.subr.bf16.mxu1 %v16407_v12  ;;  %v17885_v58 = vld [vmem:[#allocation7 + $0xda0] ss:$8 sps:$4 sm:$0xff]   ;;  %v16463_v12 = vcombine.high %v9483_v48, %v9487_v0  ;;  %v16494_v36 = vcombine.low %v9515_v47, %v9519_v56 }
 0x941   :  { %10782 = vmatprep.subr.bf16.mxu0 %v17869_v43  ;;  %v17890_v43 = vld [vmem:[#allocation7 + $0xdb4] ss:$8 sps:$4 sm:$0xff]  }
 0x943   :  { %10292 = vmatpush1.bf16.msra.mxu1 %v16406_v28  ;;  %v16462_v28 = vcombine.low %v9483_v48, %v9487_v0 }
 0x944   :  { %10783 = vmatpush1.bf16.msra.mxu0 %v17867_v6  ;;  %10293 = vmatprep.subr.bf16.mxu1 %v16415_v4  ;;  %v17888_v6 = vld [vmem:[#allocation7 + $0xdb0] ss:$8 sps:$4 sm:$0xff]   ;;  %v16471_v4 = vcombine.high %v9491_v2, %v9495_v35 }
 0x945   :  { %10784 = vmatprep.subr.bf16.mxu0 %v17872_v10  ;;  %v17893_v10 = vld [vmem:[#allocation7 + $0xdc4] ss:$8 sps:$4 sm:$0xff]  }
 0x947   :  { %10294 = vmatpush1.bf16.msra.mxu1 %v16414_v29  ;;  %v16470_v29 = vcombine.low %v9491_v2, %v9495_v35  ;;  %v10840_v2 = vld [vmem:[#allocation10 + $0x18a0] sm:$0xff]  ;;  %v10838_v35 = vld [vmem:[#allocation10 + $0x1890] sm:$0xff] }
 0x948   :  { %10785 = vmatpush1.bf16.msra.mxu0 %v17870_v63  ;;  %10295 = vmatprep.subr.bf16.mxu1 %v16423_v54  ;;  %v17891_v63 = vld [vmem:[#allocation7 + $0xdc0] ss:$8 sps:$4 sm:$0xff]   ;;  %v16479_v54 = vcombine.high %v9499_v25, %v9503_v60 }
 0x949   :  { %10786 = vmatprep.subr.bf16.mxu0 %v17875_v5  ;;  %v17896_v5 = vld [vmem:[#allocation7 + $0xdd4] ss:$8 sps:$4 sm:$0xff]  }
 0x94b   :  { %10296 = vmatpush1.bf16.msra.mxu1 %v16422_v44  ;;  %v16478_v44 = vcombine.low %v9499_v25, %v9503_v60  ;;  %v10844_v25 = vld [vmem:[#allocation10 + $0x18c0] sm:$0xff] }
 0x94c   :  { %10787 = vmatpush1.bf16.msra.mxu0 %v17873_v11  ;;  %10297 = vmatprep.subr.bf16.mxu1 %v16431_v62  ;;  %v17894_v11 = vld [vmem:[#allocation7 + $0xdd0] ss:$8 sps:$4 sm:$0xff]   ;;  %v16487_v62 = vcombine.high %v9507_v42, %v9511_v22 }
 0x94d   :  { %10788 = vmatprep.subr.bf16.mxu0 %v17878_v20  ;;  %v17899_v20 = vld [vmem:[#allocation7 + $0xde4] ss:$8 sps:$4 sm:$0xff]   ;;  %v10848_v60 = vld [vmem:[#allocation10 + $0x18e0] sm:$0xff] }
 0x94f   :  { %10298 = vmatpush1.bf16.msra.mxu1 %v16430_v17  ;;  %v16486_v17 = vcombine.low %v9507_v42, %v9511_v22  ;;  %v16585_v42 = vcombine.high %v10844_v25, %v10848_v60 }
 0x950   :  { %10789 = vmatpush1.bf16.msra.mxu0 %v17876_v33  ;;  %10299 = vmatprep.subr.bf16.mxu1 %v16439_v23  ;;  %v17897_v33 = vld [vmem:[#allocation7 + $0xde0] ss:$8 sps:$4 sm:$0xff]   ;;  %v16495_v23 = vcombine.high %v9515_v47, %v9519_v56  ;;  %v16584_v47 = vcombine.low %v10844_v25, %v10848_v60 }
 0x951   :  { %10790 = vmatprep.subr.bf16.mxu0 %v17881_v31  ;;  %v17902_v31 = vld [vmem:[#allocation7 + $0xdf4] ss:$8 sps:$4 sm:$0xff]  }
 0x953   :  { %10300 = vmatpush1.bf16.msra.mxu1 %v16438_v16  ;;  %v1776_v16 = vmax.f32 %v18959_v9, 0.0  ;;  %v10834_v9 = vld [vmem:[#allocation10 + $0x1870] sm:$0xff] }
 0x954   :  { %10791 = vmatpush1.bf16.msra.mxu0 %v17879_v24  ;;  %10301 = vmatprep.subr.bf16.mxu1 %v16447_v49  ;;  %v10820_v49 = vld [vmem:[#allocation10 + $0x1800] sm:$0xff] }
 0x955   :  { %10792 = vmatprep.subr.bf16.mxu0 %v17884_v1  ;;  %v10334_v24 = vpack.c.bf16 %v1776_v16, %v1776_v16  ;;  %v10824_v1 = vld [vmem:[#allocation10 + $0x1820] sm:$0xff] }
 0x956   :  { %v16560_v30 = vcombine.low %v10820_v49, %v10824_v1 }
 0x957   :  { %10302 = vmatpush1.bf16.msra.mxu1 %v16446_v34  ;;  %v16561_v34 = vcombine.high %v10820_v49, %v10824_v1 }
 0x958   :  { %10793 = vmatpush1.bf16.msra.mxu0 %v17882_v39  ;;  %10303 = vmatprep.subr.bf16.mxu1 %v16455_v52  ;;  %v10826_v39 = vld [vmem:[#allocation10 + $0x1830] sm:$0xff]  ;;  %v10828_v52 = vld [vmem:[#allocation10 + $0x1840] sm:$0xff] }
 0x959   :  { %10794 = vmatprep.subr.bf16.mxu0 %v17887_v32  ;;  %v10832_v32 = vld [vmem:[#allocation10 + $0x1860] sm:$0xff]  ;;  %v16564_v48 = vcombine.low %v10822_v45, %v10826_v39  ;;  %v16565_v0 = vcombine.high %v10822_v45, %v10826_v39  ;;  %v10874_v39 = vld [vmem:[#allocation10 + $0x19b0] sm:$0xff] }
 0x95a   :  { %v10868_v45 = vld [vmem:[#allocation10 + $0x1980] sm:$0xff] }
 0x95b   :  { %10304 = vmatpush1.bf16.msra.mxu1 %v16454_v13  ;;  %v16569_v13 = vcombine.high %v10828_v52, %v10832_v32 }
 0x95c   :  { %10795 = vmatpush1.bf16.msra.mxu0 %v17885_v58  ;;  %10305 = vmatprep.subr.bf16.mxu1 %v16463_v12  ;;  %v10830_v58 = vld [vmem:[#allocation10 + $0x1850] sm:$0xff]  ;;  %v10836_v12 = vld [vmem:[#allocation10 + $0x1880] sm:$0xff] }
 0x95d   :  { %10796 = vmatprep.subr.bf16.mxu0 %v17890_v43  ;;  %v16573_v43 = vcombine.high %v10830_v58, %v10834_v9 }
 0x95f   :  { %10306 = vmatpush1.bf16.msra.mxu1 %v16462_v28  ;;  %v16568_v28 = vcombine.low %v10828_v52, %v10832_v32 }
 0x960   :  { %10797 = vmatpush1.bf16.msra.mxu0 %v17888_v6  ;;  %10307 = vmatprep.subr.bf16.mxu1 %v16471_v4  ;;  %v16572_v6 = vcombine.low %v10830_v58, %v10834_v9  ;;  %v16577_v4 = vcombine.high %v10836_v12, %v10840_v2  ;;  %v10880_v58 = vld [vmem:[#allocation10 + $0x19e0] sm:$0xff]  ;;  %v10878_v9 = vld [vmem:[#allocation10 + $0x19d0] sm:$0xff] }
 0x961   :  { %10798 = vmatprep.subr.bf16.mxu0 %v17893_v10 }
 0x963   :  { %10308 = vmatpush1.bf16.msra.mxu1 %v16470_v29  ;;  %v10846_v29 = vld [vmem:[#allocation10 + $0x18d0] sm:$0xff] }
 0x964   :  { %10799 = vmatpush1.bf16.msra.mxu0 %v17891_v63  ;;  %10309 = vmatprep.subr.bf16.mxu1 %v16479_v54  ;;  %v10850_v63 = vld [vmem:[#allocation10 + $0x18f0] sm:$0xff]  ;;  %v16576_v54 = vcombine.low %v10836_v12, %v10840_v2 }
 0x965   :  { %10800 = vmatprep.subr.bf16.mxu0 %v17896_v5  ;;  %v16589_v22 = vcombine.high %v10846_v29, %v10850_v63  ;;  %v16588_v56 = vcombine.low %v10846_v29, %v10850_v63  ;;  %v10882_v12 = vld [vmem:[#allocation10 + $0x19f0] sm:$0xff] }
 0x966   :  { %v16620_v60 = vcombine.low %v10878_v9, %v10882_v12 }
 0x967   :  { %10310 = vmatpush1.bf16.msra.mxu1 %v16478_v44  ;;  %v10852_v44 = vld [vmem:[#allocation10 + $0x1900] sm:$0xff] }
 0x968   :  { %10801 = vmatpush1.bf16.msra.mxu0 %v17894_v11  ;;  %10311 = vmatprep.subr.bf16.mxu1 %v16487_v62  ;;  %v10856_v11 = vld [vmem:[#allocation10 + $0x1920] sm:$0xff]  ;;  %v10854_v62 = vld [vmem:[#allocation10 + $0x1910] sm:$0xff] }
 0x969   :  { %10802 = vmatprep.subr.bf16.mxu0 %v17899_v20  ;;  %v10858_v20 = vld [vmem:[#allocation10 + $0x1930] sm:$0xff]  ;;  %v16592_v16 = vcombine.low %v10852_v44, %v10856_v11 }
 0x96b   :  { %10312 = vmatpush1.bf16.msra.mxu1 %v16486_v17  ;;  %v16593_v17 = vcombine.high %v10852_v44, %v10856_v11 }
 0x96c   :  { %10803 = vmatpush1.bf16.msra.mxu0 %v17897_v33  ;;  %10313 = vmatprep.subr.bf16.mxu1 %v16495_v23  ;;  %v16597_v33 = vcombine.high %v10854_v62, %v10858_v20  ;;  %v10860_v23 = vld [vmem:[#allocation10 + $0x1940] sm:$0xff] }
 0x96d   :  { %10804 = vmatprep.subr.bf16.mxu0 %v17902_v31  ;;  %v10864_v31 = vld [vmem:[#allocation10 + $0x1960] sm:$0xff] }
 0x96e   :  { %v16601_v49 = vcombine.high %v10860_v23, %v10864_v31  ;;  %v16600_v52 = vcombine.low %v10860_v23, %v10864_v31 }
 0x96f   :  { %10314 = vmatpush1.bf16.msra.mxu1 %v16494_v36  ;;  %v10862_v36 = vld [vmem:[#allocation10 + $0x1950] sm:$0xff] }
 0x970   :  { %10805 = vmatpush1.bf16.msra.mxu0 %v17900_v59  ;;  %11588 = vmatprep.subr.bf16.mxu1 %v16561_v34  ;;  %v10866_v59 = vld [vmem:[#allocation10 + $0x1970] sm:$0xff] }
 0x971   :  { %11670 = vmatprep.subr.bf16.mxu0 %v16565_v0  ;;  %v16605_v1 = vcombine.high %v10862_v36, %v10866_v59  ;;  %v10870_v34 = vld [vmem:[#allocation10 + $0x1990] sm:$0xff]  ;;  %v16604_v32 = vcombine.low %v10862_v36, %v10866_v59 }
 0x972   :  { %10316 = vmatmul.mubr.bf16.vlgmr.msra.gmra.mrb[96].mxu1 %v19204_v8  ;;  %v10842_v8 = vld [vmem:[#allocation10 + $0x18b0] sm:$0xff]  ;;  %v16613_v0 = vcombine.high %v10870_v34, %v10874_v39  ;;  %v16612_v2 = vcombine.low %v10870_v34, %v10874_v39 }
 0x973   :  { %10807 = vmatmul.mubr.bf16.vlgmr.msra.gmra.mrb[84].mxu0 %v10334_v24  ;;  %11589 = vmatpush1.bf16.msra.mxu1 %v16560_v30  ;;  %v16581_v10 = vcombine.high %v10838_v35, %v10842_v8  ;;  %v16580_v5 = vcombine.low %v10838_v35, %v10842_v8  ;;  %v16596_v24 = vcombine.low %v10854_v62, %v10858_v20  ;;  %v10872_v30 = vld [vmem:[#allocation10 + $0x19a0] sm:$0xff] }
 0x974   :  { %11671 = vmatpush1.bf16.msra.mxu0 %v16564_v48  ;;  %11590 = vmatprep.subr.bf16.mxu1 %v16569_v13  ;;  %v16609_v48 = vcombine.high %v10868_v45, %v10872_v30  ;;  %v10876_v13 = vld [vmem:[#allocation10 + $0x19c0] sm:$0xff]  ;;  %v16621_v8 = vcombine.high %v10878_v9, %v10882_v12 }
 0x975   :  { %11672 = vmatprep.subr.bf16.mxu0 %v16573_v43  ;;  %v16608_v43 = vcombine.low %v10868_v45, %v10872_v30  ;;  %v16617_v35 = vcombine.high %v10876_v13, %v10880_v58  ;;  %v16616_v25 = vcombine.low %v10876_v13, %v10880_v58 }
 0x977   :  { %11591 = vmatpush1.bf16.msra.mxu1 %v16568_v28  ;;  %v10884_v28 = vld [vmem:[#allocation10 + $0x1a00] sm:$0xff] }
 0x978   :  { %11673 = vmatpush1.bf16.msra.mxu0 %v16572_v6  ;;  %11592 = vmatprep.subr.bf16.mxu1 %v16577_v4  ;;  %v10888_v6 = vld [vmem:[#allocation10 + $0x1a20] sm:$0xff]  ;;  %v10886_v4 = vld [vmem:[#allocation10 + $0x1a10] sm:$0xff] }
 0x979   :  { %11674 = vmatprep.subr.bf16.mxu0 %v16581_v10  ;;  %v10890_v10 = vld [vmem:[#allocation10 + $0x1a30] sm:$0xff]  ;;  %v16625_v29 = vcombine.high %v10884_v28, %v10888_v6  ;;  %v16624_v44 = vcombine.low %v10884_v28, %v10888_v6 }
 0x97a   :  { %v16629_v63 = vcombine.high %v10886_v4, %v10890_v10  ;;  %v16628_v11 = vcombine.low %v10886_v4, %v10890_v10 }
 0x97b   :  { %11593 = vmatpush1.bf16.msra.mxu1 %v16576_v54  ;;  %v10892_v54 = vld [vmem:[#allocation10 + $0x1a40] sm:$0xff] }
 0x97c   :  { %11675 = vmatpush1.bf16.msra.mxu0 %v16580_v5  ;;  %11594 = vmatprep.subr.bf16.mxu1 %v16585_v42  ;;  %v10896_v5 = vld [vmem:[#allocation10 + $0x1a60] sm:$0xff]  ;;  %v10894_v42 = vld [vmem:[#allocation10 + $0x1a50] sm:$0xff] }
 0x97d   :  { %11676 = vmatprep.subr.bf16.mxu0 %v16589_v22  ;;  %v10898_v22 = vld [vmem:[#allocation10 + $0x1a70] sm:$0xff]  ;;  %v16633_v62 = vcombine.high %v10892_v54, %v10896_v5  ;;  %v16632_v23 = vcombine.low %v10892_v54, %v10896_v5 }
 0x97e   :  { %v16637_v20 = vcombine.high %v10894_v42, %v10898_v22  ;;  %v16636_v31 = vcombine.low %v10894_v42, %v10898_v22  ;;  %v10934_v54 = vld [vmem:[#allocation10 + $0x1b90] sm:$0xff] }
 0x97f   :  { %11595 = vmatpush1.bf16.msra.mxu1 %v16584_v47  ;;  %v10900_v47 = vld [vmem:[#allocation10 + $0x1a80] sm:$0xff]  ;;  %v10938_v42 = vld [vmem:[#allocation10 + $0x1bb0] sm:$0xff] }
 0x980   :  { %11677 = vmatpush1.bf16.msra.mxu0 %v16588_v56  ;;  %11596 = vmatprep.subr.bf16.mxu1 %v16593_v17  ;;  %v10904_v56 = vld [vmem:[#allocation10 + $0x1aa0] sm:$0xff]  ;;  %v10902_v17 = vld [vmem:[#allocation10 + $0x1a90] sm:$0xff] }
 0x981   :  { %11678 = vmatprep.subr.bf16.mxu0 %v16597_v33  ;;  %v10906_v33 = vld [vmem:[#allocation10 + $0x1ab0] sm:$0xff]  ;;  %v16641_v36 = vcombine.high %v10900_v47, %v10904_v56  ;;  %v16640_v45 = vcombine.low %v10900_v47, %v10904_v56 }
 0x982   :  { %v16645_v59 = vcombine.high %v10902_v17, %v10906_v33  ;;  %v16644_v30 = vcombine.low %v10902_v17, %v10906_v33 }
 0x983   :  { %11597 = vmatpush1.bf16.msra.mxu1 %v16592_v16  ;;  %v10908_v16 = vld [vmem:[#allocation10 + $0x1ac0] sm:$0xff] }
 0x984   :  { %11679 = vmatpush1.bf16.msra.mxu0 %v16596_v24  ;;  %11598 = vmatprep.subr.bf16.mxu1 %v16601_v49  ;;  %v10912_v24 = vld [vmem:[#allocation10 + $0x1ae0] sm:$0xff]  ;;  %v10910_v49 = vld [vmem:[#allocation10 + $0x1ad0] sm:$0xff] }
 0x985   :  { %11680 = vmatprep.subr.bf16.mxu0 %v16605_v1  ;;  %v10914_v1 = vld [vmem:[#allocation10 + $0x1af0] sm:$0xff]  ;;  %v16649_v34 = vcombine.high %v10908_v16, %v10912_v24  ;;  %v16648_v13 = vcombine.low %v10908_v16, %v10912_v24  ;;  %v10940_v16 = vld [vmem:[#allocation10 + $0x1bc0] sm:$0xff] }
 0x986   :  { %v16653_v39 = vcombine.high %v10910_v49, %v10914_v1  ;;  %v16652_v58 = vcombine.low %v10910_v49, %v10914_v1  ;;  %v10944_v24 = vld [vmem:[#allocation10 + $0x1be0] sm:$0xff] }
 0x987   :  { %11599 = vmatpush1.bf16.msra.mxu1 %v16600_v52  ;;  %v10916_v52 = vld [vmem:[#allocation10 + $0x1b00] sm:$0xff] }
 0x988   :  { %11681 = vmatpush1.bf16.msra.mxu0 %v16604_v32  ;;  %11600 = vmatprep.subr.bf16.mxu1 %v16609_v48  ;;  %v10920_v32 = vld [vmem:[#allocation10 + $0x1b20] sm:$0xff]  ;;  %v10918_v48 = vld [vmem:[#allocation10 + $0x1b10] sm:$0xff] }
 0x989   :  { %11682 = vmatprep.subr.bf16.mxu0 %v16613_v0  ;;  %v10922_v0 = vld [vmem:[#allocation10 + $0x1b30] sm:$0xff]  ;;  %v16657_v9 = vcombine.high %v10916_v52, %v10920_v32  ;;  %v16656_v28 = vcombine.low %v10916_v52, %v10920_v32 }
 0x98a   :  { %v16661_v12 = vcombine.high %v10918_v48, %v10922_v0  ;;  %v16660_v6 = vcombine.low %v10918_v48, %v10922_v0  ;;  %v17905_v32 = vld [vmem:[#allocation7 + $0xe04] ss:$8 sps:$4 sm:$0xff]  }
 0x98b   :  { %11601 = vmatpush1.bf16.msra.mxu1 %v16608_v43  ;;  %v10924_v43 = vld [vmem:[#allocation10 + $0x1b40] sm:$0xff] }
 0x98c   :  { %11683 = vmatpush1.bf16.msra.mxu0 %v16612_v2  ;;  %11602 = vmatprep.subr.bf16.mxu1 %v16617_v35  ;;  %v10928_v2 = vld [vmem:[#allocation10 + $0x1b60] sm:$0xff]  ;;  %v10926_v35 = vld [vmem:[#allocation10 + $0x1b50] sm:$0xff] }
 0x98d   :  { %11684 = vmatprep.subr.bf16.mxu0 %v16621_v8  ;;  %v10930_v8 = vld [vmem:[#allocation10 + $0x1b70] sm:$0xff]  ;;  %v16665_v4 = vcombine.high %v10924_v43, %v10928_v2 }
 0x98e   :  { %v16669_v10 = vcombine.high %v10926_v35, %v10930_v8 }
 0x98f   :  { %11603 = vmatpush1.bf16.msra.mxu1 %v16616_v25  ;;  %v16664_v25 = vcombine.low %v10924_v43, %v10928_v2  ;;  %v10401_v2 = vld [vmem:[#allocation8 + $0xc] sm:$0x3] }
 0x990   :  { %11685 = vmatpush1.bf16.msra.mxu0 %v16620_v60  ;;  %11604 = vmatprep.subr.bf16.mxu1 %v16625_v29  ;;  %v16668_v60 = vcombine.low %v10926_v35, %v10930_v8  ;;  %v10932_v29 = vld [vmem:[#allocation10 + $0x1b80] sm:$0xff]  ;;  %v10406_v35 = vrot.slane %v10401_v2, %v18846_v14  ;;  %v10410_v8 = vrot.slane %v10401_v2, %v18849_v15  ;;  %v17915_v2 = vld [vmem:[#allocation7 + $0xe40] ss:$8 sps:$4 sm:$0xff]  }
 0x991   :  { %11686 = vmatprep.subr.bf16.mxu0 %v16629_v63  ;;  %v10936_v63 = vld [vmem:[#allocation10 + $0x1ba0] sm:$0xff] }
 0x992   :  { %v16673_v5 = vcombine.high %v10932_v29, %v10936_v63 }
 0x993   :  { %11605 = vmatpush1.bf16.msra.mxu1 %v16624_v44 }
 0x994   :  { %11687 = vmatpush1.bf16.msra.mxu0 %v16628_v11  ;;  %11606 = vmatprep.subr.bf16.mxu1 %v16633_v62  ;;  %v16672_v11 = vcombine.low %v10932_v29, %v10936_v63  ;;  %v16676_v62 = vcombine.low %v10934_v54, %v10938_v42 }
 0x995   :  { %11688 = vmatprep.subr.bf16.mxu0 %v16637_v20  ;;  %v16677_v20 = vcombine.high %v10934_v54, %v10938_v42 }
 0x997   :  { %11607 = vmatpush1.bf16.msra.mxu1 %v16632_v23 }
 0x998   :  { %11689 = vmatpush1.bf16.msra.mxu0 %v16636_v31  ;;  %11608 = vmatprep.subr.bf16.mxu1 %v16641_v36 }
 0x999   :  { %11690 = vmatprep.subr.bf16.mxu0 %v16645_v59 }
 0x99b   :  { %11609 = vmatpush1.bf16.msra.mxu1 %v16640_v45  ;;  %v10946_v45 = vld [vmem:[#allocation10 + $0x1bf0] sm:$0xff] }
 0x99c   :  { %11691 = vmatpush1.bf16.msra.mxu0 %v16644_v30  ;;  %11610 = vmatprep.subr.bf16.mxu1 %v16649_v34  ;;  %v16680_v30 = vcombine.low %v10940_v16, %v10944_v24 }
 0x99d   :  { %11692 = vmatprep.subr.bf16.mxu0 %v16653_v39 }
 0x99f   :  { %11611 = vmatpush1.bf16.msra.mxu1 %v16648_v13 }
 0x9a0   :  { %11693 = vmatpush1.bf16.msra.mxu0 %v16652_v58  ;;  %11612 = vmatprep.subr.bf16.mxu1 %v16657_v9 }
 0x9a1   :  { %11694 = vmatprep.subr.bf16.mxu0 %v16661_v12 }
 0x9a3   :  { %11613 = vmatpush1.bf16.msra.mxu1 %v16656_v28 }
 0x9a4   :  { %11695 = vmatpush1.bf16.msra.mxu0 %v16660_v6  ;;  %11614 = vmatprep.subr.bf16.mxu1 %v16665_v4 }
 0x9a5   :  { %11696 = vmatprep.subr.bf16.mxu0 %v16669_v10 }
 0x9a7   :  { %11615 = vmatpush1.bf16.msra.mxu1 %v16664_v25 }
 0x9a8   :  { %11697 = vmatpush1.bf16.msra.mxu0 %v16668_v60  ;;  %11616 = vmatprep.subr.bf16.mxu1 %v16673_v5 }
 0x9a9   :  { %11698 = vmatprep.subr.bf16.mxu0 %v16677_v20  ;;  %v17903_v20 = vld [vmem:[#allocation7 + $0xe00] ss:$8 sps:$4 sm:$0xff]  }
 0x9ab   :  { %11617 = vmatpush1.bf16.msra.mxu1 %v16672_v11  ;;  %v10829_v11 = vld [vmem:[#allocation10 + $0x1848] sm:$0xff] }
 0x9ac   :  { %11699 = vmatpush1.bf16.msra.mxu0 %v16676_v62  ;;  %v10833_v62 = vld [vmem:[#allocation10 + $0x1868] sm:$0xff] }
 0x9c5   :  { %v10194_v22 = vpop.f32.mrb[88].mxu1  ;;  %v10276_v44 = vpop.f32.mrb[80].mxu0 }
 0x9c6   :  { %v19220_v47 = vadd.f32 %v10194_v22, %v19172_v21  ;;  %v19223_v56 = vadd.f32 %v10276_v44, %v19175_v26  ;;  %v10196_v17 = vpop.f32.mrb[89].mxu1  ;;  %v10278_v33 = vpop.f32.mrb[81].mxu0  ;;  %v10942_v21 = vld [vmem:[#allocation10 + $0x1bd0] sm:$0xff]  ;;  %v16681_v26 = vcombine.high %v10940_v16, %v10944_v24  ;;  %v1779_v44 = vmax.f32 %v18969_v53, 0.0  ;;  %v17906_v24 = vld [vmem:[#allocation7 + $0xe10] ss:$8 sps:$4 sm:$0xff]  }
 0x9c7   :  { %v19226_v23 = vadd.f32 %v10196_v17, %v19178_v55  ;;  %v19229_v31 = vadd.f32 %v10278_v33, %v19181_v40  ;;  %v10198_v36 = vpop.f32.mrb[90].mxu1  ;;  %v10280_v59 = vpop.f32.mrb[82].mxu0  ;;  %v16684_v34 = vcombine.low %v10942_v21, %v10946_v45  ;;  %v16685_v39 = vcombine.high %v10942_v21, %v10946_v45  ;;  %v10821_v55 = vld [vmem:[#allocation10 + $0x1808] sm:$0xff] }
 0x9c8   :  { %v10199_v49 = vpop.f32.mrb[91].mxu1  ;;  %v10281_v1 = vpop.f32.mrb[83].mxu0  ;;  %11618 = vmatprep.subr.bf16.mxu1 %v16681_v26  ;;  %v10825_v40 = vld [vmem:[#allocation10 + $0x1828] sm:$0xff]  ;;  %v11761_v16 = vpack.c.bf16 %v1779_v44, %v1779_v44  ;;  %v16570_v53 = vcombine.low %v10829_v11, %v10833_v62 }
 0x9c9   :  { %11700 = vmatprep.subr.bf16.mxu0 %v16685_v39  ;;  %11619 = vmatpush1.bf16.msra.mxu1 %v16680_v30  ;;  %v16563_v52 = vcombine.high %v10821_v55, %v10825_v40  ;;  %v16562_v48 = vcombine.low %v10821_v55, %v10825_v40  ;;  %v17908_v33 = vld [vmem:[#allocation7 + $0xe14] ss:$8 sps:$4 sm:$0xff]   ;;  %v17911_v49 = vld [vmem:[#allocation7 + $0xe24] ss:$8 sps:$4 sm:$0xff]   ;;  %v17909_v30 = vld [vmem:[#allocation7 + $0xe20] ss:$8 sps:$4 sm:$0xff]  }
 0x9ca   :  { %11701 = vmatpush1.bf16.msra.mxu0 %v16684_v34  ;;  %v10837_v36 = vld [vmem:[#allocation10 + $0x1888] sm:$0xff] }
 0x9cb   :  { %11629 = vmatprep.subr.bf16.mxu1 %v16563_v52  ;;  %12161 = vmatprep.subr.bf16.mxu0 %v17905_v32  ;;  %v10841_v59 = vld [vmem:[#allocation10 + $0x18a8] sm:$0xff] }
 0x9cc   :  { %v16579_v21 = vcombine.high %v10837_v36, %v10841_v59  ;;  %v10845_v1 = vld [vmem:[#allocation10 + $0x18c8] sm:$0xff]  ;;  %v16578_v45 = vcombine.low %v10837_v36, %v10841_v59 }
 0x9cd   :  { %v10849_v26 = vld [vmem:[#allocation10 + $0x18e8] sm:$0xff] }
 0x9ce   :  { %v16587_v34 = vcombine.high %v10845_v1, %v10849_v26  ;;  %v17914_v39 = vld [vmem:[#allocation7 + $0xe34] ss:$8 sps:$4 sm:$0xff]   ;;  %v16586_v52 = vcombine.low %v10845_v1, %v10849_v26  ;;  %v17912_v32 = vld [vmem:[#allocation7 + $0xe30] ss:$8 sps:$4 sm:$0xff]  }
 0x9cf   :  { %v10853_v55 = vld [vmem:[#allocation10 + $0x1908] sm:$0xff] }
 0x9d0   :  { %v10857_v40 = vld [vmem:[#allocation10 + $0x1928] sm:$0xff] }
 0x9d1   :  { %v10885_v44 = vld [vmem:[#allocation10 + $0x1a08] sm:$0xff] }
 0x9d2   :  { %v10893_v36 = vld [vmem:[#allocation10 + $0x1a48] sm:$0xff] }
 0x9d3   :  { %v10897_v59 = vld [vmem:[#allocation10 + $0x1a68] sm:$0xff] }
 0x9d4   :  { %v10905_v1 = vld [vmem:[#allocation10 + $0x1aa8] sm:$0xff]  ;;  %v16634_v26 = vcombine.low %v10893_v36, %v10897_v59 }
 0xa05   :  { %v10235_v0 = vpop.f32.mrb[92].mxu1 }
 0xa06   :  { %v19232_v13 = vadd.f32 %v10235_v0, %v19184_v38  ;;  %v10237_v58 = vpop.f32.mrb[93].mxu1  ;;  %v17917_v0 = vld [vmem:[#allocation7 + $0xe44] ss:$8 sps:$4 sm:$0xff]  }
 0xa07   :  { %v19235_v9 = vadd.f32 %v10237_v58, %v19187_v57  ;;  %v10239_v12 = vpop.f32.mrb[94].mxu1  ;;  %v10861_v58 = vld [vmem:[#allocation10 + $0x1948] sm:$0xff] }
 0xa08   :  { %v10240_v43 = vpop.f32.mrb[95].mxu1  ;;  %v10865_v12 = vld [vmem:[#allocation10 + $0x1968] sm:$0xff] }
 0xa09   :  { %v16594_v43 = vcombine.low %v10853_v55, %v10857_v40 }
 0xa45   :  { %v10317_v28 = vpop.f32.mrb[96].mxu1 }
 0xa46   :  { %v19240_v6 = vadd.f32 %v10317_v28, %v19196_v51  ;;  %v10808_v4 = vpop.f32.mrb[84].mxu0  ;;  %v10319_v10 = vpop.f32.mrb[97].mxu1  ;;  %v10869_v28 = vld [vmem:[#allocation10 + $0x1988] sm:$0xff] }
 0xa47   :  { %v17150_v25 = vadd.f32 %v10808_v4, %v10406_v35  ;;  %v19243_v38 = vadd.f32 %v10319_v10, %v19200_v18  ;;  %v10810_v60 = vpop.f32.mrb[85].mxu0  ;;  %v10321_v57 = vpop.f32.mrb[98].mxu1  ;;  %v16571_v18 = vcombine.high %v10829_v11, %v10833_v62  ;;  %v16603_v35 = vcombine.high %v10861_v58, %v10865_v12  ;;  %v10873_v4 = vld [vmem:[#allocation10 + $0x19a8] sm:$0xff] }
 0xa48   :  { %v17151_v29 = vadd.f32 %v10810_v60, %v10410_v8  ;;  %v10812_v63 = vpop.f32.mrb[86].mxu0  ;;  %v10322_v54 = vpop.f32.mrb[99].mxu1  ;;  %v17920_v8 = vld [vmem:[#allocation7 + $0xe54] ss:$8 sps:$4 sm:$0xff]   ;;  %v16602_v10 = vcombine.low %v10861_v58, %v10865_v12  ;;  %v16611_v60 = vcombine.high %v10869_v28, %v10873_v4  ;;  %v17923_v57 = vld [vmem:[#allocation7 + $0xe64] ss:$8 sps:$4 sm:$0xff]  }
 0xa49   :  { %v10815_v5 = vmax.f32 %v17150_v25, 0.0  ;;  %v10813_v42 = vpop.f32.mrb[87].mxu0  ;;  %v17918_v25 = vld [vmem:[#allocation7 + $0xe50] ss:$8 sps:$4 sm:$0xff]   ;;  %v16610_v54 = vcombine.low %v10869_v28, %v10873_v4 }
 0xa4a   :  { %v10816_v22 = vmax.f32 %v17151_v29, 0.0  ;;  %v10877_v29 = vld [vmem:[#allocation10 + $0x19c8] sm:$0xff] }
 0xa4b   :  { %v19248_v17 = vpack.c.bf16 %v10815_v5, %v10815_v5  ;;  %v10881_v63 = vld [vmem:[#allocation10 + $0x19e8] sm:$0xff]  ;;  %v17921_v5 = vld [vmem:[#allocation7 + $0xe60] ss:$8 sps:$4 sm:$0xff]  }
 0xa4c   :  { %v19246_v51 = vpack.c.bf16 %v10816_v22, %v10816_v22  ;;  %v16619_v42 = vcombine.high %v10877_v29, %v10881_v63  ;;  %v17926_v22 = vld [vmem:[#allocation7 + $0xe74] ss:$8 sps:$4 sm:$0xff]   ;;  %v16618_v62 = vcombine.low %v10877_v29, %v10881_v63 }
 0xa4d   :  { %v10889_v11 = vld [vmem:[#allocation10 + $0x1a28] sm:$0xff] }
 0xa4e   :  { %11620 = vmatprep.mubr.bf16.mxu1 %v19246_v51  ;;  %11702 = vmatprep.mubr.bf16.mxu0 %v19246_v51  ;;  %v10921_v58 = vld [vmem:[#allocation10 + $0x1b28] sm:$0xff] }
 0xa4f   :  { %11621 = vmatmul.mubr.bf16.vlgmr.msra.gmra.mrb[100].mxu1 %v19248_v17  ;;  %11703 = vmatmul.mubr.bf16.vlgmr.msra.gmra.mrb[88].mxu0 %v19248_v17  ;;  %v10929_v28 = vld [vmem:[#allocation10 + $0x1b68] sm:$0xff] }
 0xa50   :  { %11630 = vmatpush1.bf16.msra.mxu1 %v16562_v48  ;;  %12162 = vmatpush1.bf16.msra.mxu0 %v17903_v20  ;;  %v16595_v48 = vcombine.high %v10853_v55, %v10857_v40  ;;  %v17924_v20 = vld [vmem:[#allocation7 + $0xe70] ss:$8 sps:$4 sm:$0xff]  }
 0xa51   :  { %11661 = vmatprep.mubr.bf16.mxu1 %v19246_v51  ;;  %12193 = vmatprep.mubr.bf16.mxu0 %v11761_v16  ;;  %v16626_v16 = vcombine.low %v10885_v44, %v10889_v11  ;;  %v10913_v55 = vld [vmem:[#allocation10 + $0x1ae8] sm:$0xff] }
 0xa52   :  { %11631 = vmatprep.subr.bf16.mxu1 %v16571_v18  ;;  %12163 = vmatprep.subr.bf16.mxu0 %v17908_v33  ;;  %v16627_v18 = vcombine.high %v10885_v44, %v10889_v11  ;;  %v17929_v33 = vld [vmem:[#allocation7 + $0xe84] ss:$8 sps:$4 sm:$0xff]   ;;  %v10937_v29 = vld [vmem:[#allocation10 + $0x1ba8] sm:$0xff] }
 0xa53   :  { %v10945_v44 = vld [vmem:[#allocation10 + $0x1be8] sm:$0xff] }
 0xa54   :  { %11632 = vmatpush1.bf16.msra.mxu1 %v16570_v53  ;;  %12164 = vmatpush1.bf16.msra.mxu0 %v17906_v24  ;;  %v17927_v53 = vld [vmem:[#allocation7 + $0xe80] ss:$8 sps:$4 sm:$0xff]   ;;  %v16635_v24 = vcombine.high %v10893_v36, %v10897_v59 }
 0xa55   :  { %11633 = vmatprep.subr.bf16.mxu1 %v16579_v21  ;;  %12165 = vmatprep.subr.bf16.mxu0 %v17911_v49  ;;  %v17932_v21 = vld [vmem:[#allocation7 + $0xe94] ss:$8 sps:$4 sm:$0xff]   ;;  %v10827_v36 = vld [vmem:[#allocation10 + $0x1838] sm:$0xff] }
 0xa56   :  { %v10901_v49 = vld [vmem:[#allocation10 + $0x1a88] sm:$0xff] }
 0xa57   :  { %v16642_v40 = vcombine.low %v10901_v49, %v10905_v1 }
 0xa58   :  { %11634 = vmatpush1.bf16.msra.mxu1 %v16578_v45  ;;  %12166 = vmatpush1.bf16.msra.mxu0 %v17909_v30  ;;  %v17930_v45 = vld [vmem:[#allocation7 + $0xe90] ss:$8 sps:$4 sm:$0xff]   ;;  %v16643_v30 = vcombine.high %v10901_v49, %v10905_v1  ;;  %v1781_v49 = vmax.f32 %v18977_v7, 0.0  ;;  %v10831_v1 = vld [vmem:[#allocation10 + $0x1858] sm:$0xff] }
 0xa59   :  { %11635 = vmatprep.subr.bf16.mxu1 %v16587_v34  ;;  %12167 = vmatprep.subr.bf16.mxu0 %v17914_v39  ;;  %v17935_v34 = vld [vmem:[#allocation7 + $0xea4] ss:$8 sps:$4 sm:$0xff]   ;;  %v10909_v39 = vld [vmem:[#allocation10 + $0x1ac8] sm:$0xff] }
 0xa5a   :  { %v16650_v12 = vcombine.low %v10909_v39, %v10913_v55 }
 0xa5c   :  { %11636 = vmatpush1.bf16.msra.mxu1 %v16586_v52  ;;  %12168 = vmatpush1.bf16.msra.mxu0 %v17912_v32  ;;  %v17933_v52 = vld [vmem:[#allocation7 + $0xea0] ss:$8 sps:$4 sm:$0xff]   ;;  %v16651_v32 = vcombine.high %v10909_v39, %v10913_v55  ;;  %v17956_v55 = vld [vmem:[#allocation7 + $0xf14] ss:$8 sps:$4 sm:$0xff]  }
 0xa5d   :  { %11637 = vmatprep.subr.bf16.mxu1 %v16595_v48  ;;  %12169 = vmatprep.subr.bf16.mxu0 %v17917_v0  ;;  %v17938_v48 = vld [vmem:[#allocation7 + $0xeb4] ss:$8 sps:$4 sm:$0xff]  }
 0xa5e   :  { %v10917_v0 = vld [vmem:[#allocation10 + $0x1b08] sm:$0xff] }
 0xa5f   :  { %v16658_v4 = vcombine.low %v10917_v0, %v10921_v58 }
 0xa60   :  { %11638 = vmatpush1.bf16.msra.mxu1 %v16594_v43  ;;  %12170 = vmatpush1.bf16.msra.mxu0 %v17915_v2  ;;  %v17936_v43 = vld [vmem:[#allocation7 + $0xeb0] ss:$8 sps:$4 sm:$0xff]   ;;  %v16659_v2 = vcombine.high %v10917_v0, %v10921_v58  ;;  %v17959_v0 = vld [vmem:[#allocation7 + $0xf24] ss:$8 sps:$4 sm:$0xff]  }
 0xa61   :  { %11639 = vmatprep.subr.bf16.mxu1 %v16603_v35  ;;  %12171 = vmatprep.subr.bf16.mxu0 %v17920_v8  ;;  %v17941_v35 = vld [vmem:[#allocation7 + $0xec4] ss:$8 sps:$4 sm:$0xff]   ;;  %v10925_v8 = vld [vmem:[#allocation10 + $0x1b48] sm:$0xff] }
 0xa62   :  { %v16666_v63 = vcombine.low %v10925_v8, %v10929_v28  ;;  %v10847_v58 = vld [vmem:[#allocation10 + $0x18d8] sm:$0xff] }
 0xa64   :  { %11640 = vmatpush1.bf16.msra.mxu1 %v16602_v10  ;;  %12172 = vmatpush1.bf16.msra.mxu0 %v17918_v25  ;;  %v17939_v10 = vld [vmem:[#allocation7 + $0xec0] ss:$8 sps:$4 sm:$0xff]   ;;  %v16667_v25 = vcombine.high %v10925_v8, %v10929_v28  ;;  %v17962_v8 = vld [vmem:[#allocation7 + $0xf34] ss:$8 sps:$4 sm:$0xff]  }
 0xa65   :  { %11641 = vmatprep.subr.bf16.mxu1 %v16611_v60  ;;  %12173 = vmatprep.subr.bf16.mxu0 %v17923_v57  ;;  %v17944_v60 = vld [vmem:[#allocation7 + $0xed4] ss:$8 sps:$4 sm:$0xff]   ;;  %v10855_v28 = vld [vmem:[#allocation10 + $0x1918] sm:$0xff] }
 0xa66   :  { %v10933_v57 = vld [vmem:[#allocation10 + $0x1b88] sm:$0xff] }
 0xa67   :  { %v16674_v11 = vcombine.low %v10933_v57, %v10937_v29 }
 0xa68   :  { %11642 = vmatpush1.bf16.msra.mxu1 %v16610_v54  ;;  %12174 = vmatpush1.bf16.msra.mxu0 %v17921_v5  ;;  %v17942_v54 = vld [vmem:[#allocation7 + $0xed0] ss:$8 sps:$4 sm:$0xff]   ;;  %v16675_v5 = vcombine.high %v10933_v57, %v10937_v29  ;;  %v10863_v57 = vld [vmem:[#allocation10 + $0x1958] sm:$0xff] }
 0xa69   :  { %11643 = vmatprep.subr.bf16.mxu1 %v16619_v42  ;;  %12175 = vmatprep.subr.bf16.mxu0 %v17926_v22  ;;  %v17947_v42 = vld [vmem:[#allocation7 + $0xee4] ss:$8 sps:$4 sm:$0xff]   ;;  %v10941_v22 = vld [vmem:[#allocation10 + $0x1bc8] sm:$0xff] }
 0xa6a   :  { %v16682_v59 = vcombine.low %v10941_v22, %v10945_v44  ;;  %v10867_v29 = vld [vmem:[#allocation10 + $0x1978] sm:$0xff] }
 0xa6c   :  { %11644 = vmatpush1.bf16.msra.mxu1 %v16618_v62  ;;  %12176 = vmatpush1.bf16.msra.mxu0 %v17924_v20  ;;  %v17945_v62 = vld [vmem:[#allocation7 + $0xee0] ss:$8 sps:$4 sm:$0xff]   ;;  %v16683_v20 = vcombine.high %v10941_v22, %v10945_v44 }
 0xa6d   :  { %11645 = vmatprep.subr.bf16.mxu1 %v16627_v18  ;;  %12177 = vmatprep.subr.bf16.mxu0 %v17929_v33  ;;  %v17950_v18 = vld [vmem:[#allocation7 + $0xef4] ss:$8 sps:$4 sm:$0xff]   ;;  %v10823_v33 = vld [vmem:[#allocation10 + $0x1818] sm:$0xff] }
 0xa6e   :  { %v10871_v22 = vld [vmem:[#allocation10 + $0x1998] sm:$0xff] }
 0xa6f   :  { %v10875_v44 = vld [vmem:[#allocation10 + $0x19b8] sm:$0xff] }
 0xa70   :  { %11646 = vmatpush1.bf16.msra.mxu1 %v16626_v16  ;;  %12178 = vmatpush1.bf16.msra.mxu0 %v17927_v53  ;;  %v17948_v16 = vld [vmem:[#allocation7 + $0xef0] ss:$8 sps:$4 sm:$0xff]   ;;  %v1778_v53 = vmax.f32 %v18967_v46, 0.0  ;;  %v11763_v46 = vpack.c.bf16 %v1781_v49, %v1781_v49  ;;  %v10891_v49 = vld [vmem:[#allocation10 + $0x1a38] sm:$0xff] }
 0xa71   :  { %11647 = vmatprep.subr.bf16.mxu1 %v16635_v24  ;;  %12179 = vmatprep.subr.bf16.mxu0 %v17932_v21  ;;  %v16567_v24 = vcombine.high %v10823_v33, %v10827_v36  ;;  %v17953_v21 = vld [vmem:[#allocation7 + $0xf04] ss:$8 sps:$4 sm:$0xff]  }
 0xa74   :  { %11648 = vmatpush1.bf16.msra.mxu1 %v16634_v26  ;;  %12180 = vmatpush1.bf16.msra.mxu0 %v17930_v45  ;;  %v10835_v26 = vld [vmem:[#allocation10 + $0x1878] sm:$0xff]  ;;  %v16566_v45 = vcombine.low %v10823_v33, %v10827_v36 }
 0xa75   :  { %11649 = vmatprep.subr.bf16.mxu1 %v16643_v30  ;;  %12181 = vmatprep.subr.bf16.mxu0 %v17935_v34  ;;  %v11760_v30 = vpack.c.bf16 %v1778_v53, %v1778_v53  ;;  %v17951_v34 = vld [vmem:[#allocation7 + $0xf00] ss:$8 sps:$4 sm:$0xff]   ;;  %v16575_v39 = vcombine.high %v10831_v1, %v10835_v26  ;;  %v16574_v7 = vcombine.low %v10831_v1, %v10835_v26  ;;  %v17972_v26 = vld [vmem:[#allocation7 + $0xf70] ss:$8 sps:$4 sm:$0xff]  }
 0xa76   :  { %v10879_v33 = vld [vmem:[#allocation10 + $0x19d8] sm:$0xff] }
 0xa77   :  { %v10883_v36 = vld [vmem:[#allocation10 + $0x19f8] sm:$0xff] }
 0xa78   :  { %11650 = vmatpush1.bf16.msra.mxu1 %v16642_v40  ;;  %12182 = vmatpush1.bf16.msra.mxu0 %v17933_v52  ;;  %v10839_v40 = vld [vmem:[#allocation10 + $0x1898] sm:$0xff]  ;;  %v16623_v53 = vcombine.high %v10879_v33, %v10883_v36  ;;  %v16622_v1 = vcombine.low %v10879_v33, %v10883_v36 }
 0xa79   :  { %11651 = vmatprep.subr.bf16.mxu1 %v16651_v32  ;;  %12183 = vmatprep.subr.bf16.mxu0 %v17938_v48  ;;  %v10843_v52 = vld [vmem:[#allocation10 + $0x18b8] sm:$0xff]  ;;  %v17954_v32 = vld [vmem:[#allocation7 + $0xf10] ss:$8 sps:$4 sm:$0xff]  }
 0xa7a   :  { %v16583_v48 = vcombine.high %v10839_v40, %v10843_v52  ;;  %v17995_v36 = vld [vmem:[#allocation7 + $0xfe4] ss:$8 sps:$4 sm:$0xff]  }
 0xa7c   :  { %11652 = vmatpush1.bf16.msra.mxu1 %v16650_v12  ;;  %12184 = vmatpush1.bf16.msra.mxu0 %v17936_v43  ;;  %v10851_v12 = vld [vmem:[#allocation10 + $0x18f8] sm:$0xff]  ;;  %v16582_v43 = vcombine.low %v10839_v40, %v10843_v52 }
 0xa7d   :  { %11653 = vmatprep.subr.bf16.mxu1 %v16659_v2  ;;  %12185 = vmatprep.subr.bf16.mxu0 %v17941_v35  ;;  %v17957_v2 = vld [vmem:[#allocation7 + $0xf20] ss:$8 sps:$4 sm:$0xff]   ;;  %v16591_v35 = vcombine.high %v10847_v58, %v10851_v12 }
 0xa7e   :  { %v17975_v40 = vld [vmem:[#allocation7 + $0xf80] ss:$8 sps:$4 sm:$0xff]  }
 0xa80   :  { %11654 = vmatpush1.bf16.msra.mxu1 %v16658_v4  ;;  %12186 = vmatpush1.bf16.msra.mxu0 %v17939_v10  ;;  %v16590_v4 = vcombine.low %v10847_v58, %v10851_v12  ;;  %v17960_v10 = vld [vmem:[#allocation7 + $0xf30] ss:$8 sps:$4 sm:$0xff]   ;;  %v17983_v12 = vld [vmem:[#allocation7 + $0xfa4] ss:$8 sps:$4 sm:$0xff]  }
 0xa81   :  { %11655 = vmatprep.subr.bf16.mxu1 %v16667_v25  ;;  %12187 = vmatprep.subr.bf16.mxu0 %v17944_v60  ;;  %v17965_v60 = vld [vmem:[#allocation7 + $0xf44] ss:$8 sps:$4 sm:$0xff]  }
 0xa84   :  { %11656 = vmatpush1.bf16.msra.mxu1 %v16666_v63  ;;  %12188 = vmatpush1.bf16.msra.mxu0 %v17942_v54  ;;  %v17963_v54 = vld [vmem:[#allocation7 + $0xf40] ss:$8 sps:$4 sm:$0xff]  }
 0xa85   :  { %11657 = vmatprep.subr.bf16.mxu1 %v16675_v5  ;;  %12189 = vmatprep.subr.bf16.mxu0 %v17947_v42  ;;  %v16607_v5 = vcombine.high %v10863_v57, %v10867_v29  ;;  %v17968_v42 = vld [vmem:[#allocation7 + $0xf54] ss:$8 sps:$4 sm:$0xff]  }
 0xa88   :  { %11658 = vmatpush1.bf16.msra.mxu1 %v16674_v11  ;;  %12190 = vmatpush1.bf16.msra.mxu0 %v17945_v62  ;;  %v16606_v11 = vcombine.low %v10863_v57, %v10867_v29  ;;  %v17966_v62 = vld [vmem:[#allocation7 + $0xf50] ss:$8 sps:$4 sm:$0xff]   ;;  %v17989_v29 = vld [vmem:[#allocation7 + $0xfc4] ss:$8 sps:$4 sm:$0xff]  }
 0xa89   :  { %11659 = vmatprep.subr.bf16.mxu1 %v16683_v20  ;;  %12191 = vmatprep.subr.bf16.mxu0 %v17950_v18  ;;  %v16615_v20 = vcombine.high %v10871_v22, %v10875_v44  ;;  %v17971_v18 = vld [vmem:[#allocation7 + $0xf64] ss:$8 sps:$4 sm:$0xff]  }
 0xa8c   :  { %11660 = vmatpush1.bf16.msra.mxu1 %v16682_v59  ;;  %12192 = vmatpush1.bf16.msra.mxu0 %v17948_v16  ;;  %v16614_v59 = vcombine.low %v10871_v22, %v10875_v44  ;;  %v17969_v16 = vld [vmem:[#allocation7 + $0xf60] ss:$8 sps:$4 sm:$0xff]   ;;  %v17992_v44 = vld [vmem:[#allocation7 + $0xfd4] ss:$8 sps:$4 sm:$0xff]  }
 0xa8d   :  { %11711 = vmatprep.subr.bf16.mxu1 %v16567_v24  ;;  %12202 = vmatprep.subr.bf16.mxu0 %v17953_v21  ;;  %v17974_v24 = vld [vmem:[#allocation7 + $0xf74] ss:$8 sps:$4 sm:$0xff]   ;;  %v10887_v21 = vld [vmem:[#allocation10 + $0x1a18] sm:$0xff] }
 0xa8f   :  { %11662 = vmatmul.mubr.bf16.vlgmr.msra.gmra.mrb[104].mxu1 %v19248_v17  ;;  %12194 = vmatmul.mubr.bf16.vlgmr.msra.gmra.mrb[92].mxu0 %v11760_v30  ;;  %v17977_v30 = vld [vmem:[#allocation7 + $0xf84] ss:$8 sps:$4 sm:$0xff]  }
 0xa90   :  { %11712 = vmatpush1.bf16.msra.mxu1 %v16566_v45  ;;  %11743 = vmatprep.mubr.bf16.mxu1 %v19246_v51  ;;  %v10859_v51 = vld [vmem:[#allocation10 + $0x1938] sm:$0xff]  ;;  %v16631_v45 = vcombine.high %v10887_v21, %v10891_v49 }
 0xa91   :  { %12203 = vmatpush1.bf16.msra.mxu0 %v17951_v34  ;;  %12234 = vmatprep.mubr.bf16.mxu0 %v11763_v46  ;;  %v16599_v25 = vcombine.high %v10855_v28, %v10859_v51  ;;  %v16598_v63 = vcombine.low %v10855_v28, %v10859_v51  ;;  %v10895_v34 = vld [vmem:[#allocation10 + $0x1a58] sm:$0xff]  ;;  %v17980_v46 = vld [vmem:[#allocation7 + $0xf94] ss:$8 sps:$4 sm:$0xff]  }
 0xa92   :  { %11713 = vmatprep.subr.bf16.mxu1 %v16575_v39  ;;  %12204 = vmatprep.subr.bf16.mxu0 %v17956_v55  ;;  %v10899_v39 = vld [vmem:[#allocation10 + $0x1a78] sm:$0xff]  ;;  %v16630_v55 = vcombine.low %v10887_v21, %v10891_v49  ;;  %v17986_v51 = vld [vmem:[#allocation7 + $0xfb4] ss:$8 sps:$4 sm:$0xff]  }
 0xa93   :  { %v16639_v52 = vcombine.high %v10895_v34, %v10899_v39  ;;  %v17998_v49 = vld [vmem:[#allocation7 + $0xff4] ss:$8 sps:$4 sm:$0xff]  }
 0xa94   :  { %11714 = vmatpush1.bf16.msra.mxu1 %v16574_v7  ;;  %v10903_v7 = vld [vmem:[#allocation10 + $0x1a98] sm:$0xff] }
 0xa95   :  { %12205 = vmatpush1.bf16.msra.mxu0 %v17954_v32  ;;  %11715 = vmatprep.subr.bf16.mxu1 %v16583_v48  ;;  %v10907_v32 = vld [vmem:[#allocation10 + $0x1ab8] sm:$0xff]  ;;  %v16638_v48 = vcombine.low %v10895_v34, %v10899_v39  ;;  %v12248_v34 = vld [vmem:[#allocation10 + $0x1c00] sm:$0xff] }
 0xa96   :  { %12206 = vmatprep.subr.bf16.mxu0 %v17959_v0  ;;  %v17978_v0 = vld [vmem:[#allocation7 + $0xf90] ss:$8 sps:$4 sm:$0xff]   ;;  %v16647_v58 = vcombine.high %v10903_v7, %v10907_v32 }
 0xa97   :  { %v12252_v39 = vld [vmem:[#allocation10 + $0x1c20] sm:$0xff] }
 0xa98   :  { %11716 = vmatpush1.bf16.msra.mxu1 %v16582_v43  ;;  %v10911_v43 = vld [vmem:[#allocation10 + $0x1ad8] sm:$0xff] }
 0xa99   :  { %12207 = vmatpush1.bf16.msra.mxu0 %v17957_v2  ;;  %11717 = vmatprep.subr.bf16.mxu1 %v16591_v35  ;;  %v10915_v2 = vld [vmem:[#allocation10 + $0x1af8] sm:$0xff]  ;;  %v16646_v35 = vcombine.low %v10903_v7, %v10907_v32  ;;  %v12256_v7 = vld [vmem:[#allocation10 + $0x1c40] sm:$0xff] }
 0xa9a   :  { %12208 = vmatprep.subr.bf16.mxu0 %v17962_v8  ;;  %v17981_v8 = vld [vmem:[#allocation7 + $0xfa0] ss:$8 sps:$4 sm:$0xff]   ;;  %v16655_v28 = vcombine.high %v10911_v43, %v10915_v2  ;;  %v12260_v32 = vld [vmem:[#allocation10 + $0x1c60] sm:$0xff] }
 0xa9c   :  { %11718 = vmatpush1.bf16.msra.mxu1 %v16590_v4  ;;  %v10919_v4 = vld [vmem:[#allocation10 + $0x1b18] sm:$0xff] }
 0xa9d   :  { %12209 = vmatpush1.bf16.msra.mxu0 %v17960_v10  ;;  %11719 = vmatprep.subr.bf16.mxu1 %v16599_v25  ;;  %v10923_v10 = vld [vmem:[#allocation10 + $0x1b38] sm:$0xff]  ;;  %v16654_v25 = vcombine.low %v10911_v43, %v10915_v2  ;;  %v12264_v43 = vld [vmem:[#allocation10 + $0x1c80] sm:$0xff] }
 0xa9e   :  { %12210 = vmatprep.subr.bf16.mxu0 %v17965_v60  ;;  %v17984_v60 = vld [vmem:[#allocation7 + $0xfb0] ss:$8 sps:$4 sm:$0xff]   ;;  %v16663_v57 = vcombine.high %v10919_v4, %v10923_v10 }
 0xaa0   :  { %11720 = vmatpush1.bf16.msra.mxu1 %v16598_v63  ;;  %v10927_v63 = vld [vmem:[#allocation10 + $0x1b58] sm:$0xff] }
 0xaa1   :  { %12211 = vmatpush1.bf16.msra.mxu0 %v17963_v54  ;;  %11721 = vmatprep.subr.bf16.mxu1 %v16607_v5  ;;  %v10931_v54 = vld [vmem:[#allocation10 + $0x1b78] sm:$0xff]  ;;  %v16662_v5 = vcombine.low %v10919_v4, %v10923_v10 }
 0xaa2   :  { %12212 = vmatprep.subr.bf16.mxu0 %v17968_v42  ;;  %v17987_v42 = vld [vmem:[#allocation7 + $0xfc0] ss:$8 sps:$4 sm:$0xff]   ;;  %v16671_v22 = vcombine.high %v10927_v63, %v10931_v54 }
 0xaa4   :  { %11722 = vmatpush1.bf16.msra.mxu1 %v16606_v11  ;;  %v10935_v11 = vld [vmem:[#allocation10 + $0x1b98] sm:$0xff] }
 0xaa5   :  { %12213 = vmatpush1.bf16.msra.mxu0 %v17966_v62  ;;  %11723 = vmatprep.subr.bf16.mxu1 %v16615_v20  ;;  %v10939_v62 = vld [vmem:[#allocation10 + $0x1bb8] sm:$0xff]  ;;  %v16670_v20 = vcombine.low %v10927_v63, %v10931_v54 }
 0xaa6   :  { %12214 = vmatprep.subr.bf16.mxu0 %v17971_v18  ;;  %v17990_v18 = vld [vmem:[#allocation7 + $0xfd0] ss:$8 sps:$4 sm:$0xff]   ;;  %v16679_v33 = vcombine.high %v10935_v11, %v10939_v62 }
 0xaa8   :  { %11724 = vmatpush1.bf16.msra.mxu1 %v16614_v59  ;;  %v10943_v59 = vld [vmem:[#allocation10 + $0x1bd8] sm:$0xff] }
 0xaa9   :  { %12215 = vmatpush1.bf16.msra.mxu0 %v17969_v16  ;;  %11725 = vmatprep.subr.bf16.mxu1 %v16623_v53  ;;  %v10947_v16 = vld [vmem:[#allocation10 + $0x1bf8] sm:$0xff]  ;;  %v16678_v53 = vcombine.low %v10935_v11, %v10939_v62  ;;  %v12282_v11 = vld [vmem:[#allocation10 + $0x1d10] sm:$0xff] }
 0xaaa   :  { %12216 = vmatprep.subr.bf16.mxu0 %v17974_v24  ;;  %v17993_v24 = vld [vmem:[#allocation7 + $0xfe0] ss:$8 sps:$4 sm:$0xff]   ;;  %v16687_v21 = vcombine.high %v10943_v59, %v10947_v16 }
 0xaab   :  { %v12286_v62 = vld [vmem:[#allocation10 + $0x1d30] sm:$0xff] }
 0xaac   :  { %11726 = vmatpush1.bf16.msra.mxu1 %v16622_v1  ;;  %v16686_v1 = vcombine.low %v10943_v59, %v10947_v16  ;;  %v12288_v59 = vld [vmem:[#allocation10 + $0x1d40] sm:$0xff] }
 0xaad   :  { %12217 = vmatpush1.bf16.msra.mxu0 %v17972_v26  ;;  %11727 = vmatprep.subr.bf16.mxu1 %v16631_v45  ;;  %v17996_v26 = vld [vmem:[#allocation7 + $0xff0] ss:$8 sps:$4 sm:$0xff]   ;;  %v1780_v45 = vmax.f32 %v18975_v3, 0.0  ;;  %v12262_v3 = vld [vmem:[#allocation10 + $0x1c70] sm:$0xff] }
 0xaae   :  { %12218 = vmatprep.subr.bf16.mxu0 %v17977_v30  ;;  %v12292_v16 = vld [vmem:[#allocation10 + $0x1d60] sm:$0xff] }
 0xaaf   :  { %v11762_v30 = vpack.c.bf16 %v1780_v45, %v1780_v45  ;;  %v12296_v45 = vld [vmem:[#allocation10 + $0x1d80] sm:$0xff] }
 0xab0   :  { %11728 = vmatpush1.bf16.msra.mxu1 %v16630_v55  ;;  %v12250_v55 = vld [vmem:[#allocation10 + $0x1c10] sm:$0xff] }
 0xab1   :  { %12219 = vmatpush1.bf16.msra.mxu0 %v17975_v40  ;;  %11729 = vmatprep.subr.bf16.mxu1 %v16639_v52  ;;  %v16752_v40 = vcombine.low %v12248_v34, %v12252_v39  ;;  %v16753_v52 = vcombine.high %v12248_v34, %v12252_v39  ;;  %v12298_v34 = vld [vmem:[#allocation10 + $0x1d90] sm:$0xff] }
 0xab2   :  { %12220 = vmatprep.subr.bf16.mxu0 %v17980_v46  ;;  %v12254_v46 = vld [vmem:[#allocation10 + $0x1c30] sm:$0xff] }
 0xab3   :  { %v12302_v39 = vld [vmem:[#allocation10 + $0x1db0] sm:$0xff] }
 0xab4   :  { %11730 = vmatpush1.bf16.msra.mxu1 %v16638_v48  ;;  %v16756_v48 = vcombine.low %v12250_v55, %v12254_v46 }
 0xab5   :  { %12221 = vmatpush1.bf16.msra.mxu0 %v17978_v0  ;;  %11731 = vmatprep.subr.bf16.mxu1 %v16647_v58  ;;  %v16757_v0 = vcombine.high %v12250_v55, %v12254_v46  ;;  %v16761_v58 = vcombine.high %v12256_v7, %v12260_v32  ;;  %v16792_v55 = vcombine.low %v12288_v59, %v12292_v16 }
 0xab6   :  { %12222 = vmatprep.subr.bf16.mxu0 %v17983_v12  ;;  %v12258_v12 = vld [vmem:[#allocation10 + $0x1c50] sm:$0xff]  ;;  %v16805_v46 = vcombine.high %v12298_v34, %v12302_v39 }
 0xab7   :  { %v16765_v2 = vcombine.high %v12258_v12, %v12262_v3 }
 0xab8   :  { %11732 = vmatpush1.bf16.msra.mxu1 %v16646_v35  ;;  %v12268_v35 = vld [vmem:[#allocation10 + $0x1ca0] sm:$0xff] }
 0xab9   :  { %12223 = vmatpush1.bf16.msra.mxu0 %v17981_v8  ;;  %11733 = vmatprep.subr.bf16.mxu1 %v16655_v28  ;;  %v12266_v8 = vld [vmem:[#allocation10 + $0x1c90] sm:$0xff]  ;;  %v16760_v28 = vcombine.low %v12256_v7, %v12260_v32  ;;  %v16769_v4 = vcombine.high %v12264_v43, %v12268_v35  ;;  %v16768_v63 = vcombine.low %v12264_v43, %v12268_v35  ;;  %v12304_v7 = vld [vmem:[#allocation10 + $0x1dc0] sm:$0xff] }
 0xaba   :  { %12224 = vmatprep.subr.bf16.mxu0 %v17986_v51  ;;  %v16764_v51 = vcombine.low %v12258_v12, %v12262_v3  ;;  %v12308_v32 = vld [vmem:[#allocation10 + $0x1de0] sm:$0xff]  ;;  %v16804_v12 = vcombine.low %v12298_v34, %v12302_v39  ;;  %v12346_v34 = vld [vmem:[#allocation10 + $0x1f10] sm:$0xff] }
 0xabb   :  { %v16809_v3 = vcombine.high %v12304_v7, %v12308_v32  ;;  %v12316_v35 = vld [vmem:[#allocation10 + $0x1e20] sm:$0xff]  ;;  %v12350_v39 = vld [vmem:[#allocation10 + $0x1f30] sm:$0xff] }
 0xabc   :  { %11734 = vmatpush1.bf16.msra.mxu1 %v16654_v25  ;;  %v12272_v25 = vld [vmem:[#allocation10 + $0x1cc0] sm:$0xff] }
 0xabd   :  { %12225 = vmatpush1.bf16.msra.mxu0 %v17984_v60  ;;  %11735 = vmatprep.subr.bf16.mxu1 %v16663_v57  ;;  %v12276_v60 = vld [vmem:[#allocation10 + $0x1ce0] sm:$0xff]  ;;  %v12274_v57 = vld [vmem:[#allocation10 + $0x1cd0] sm:$0xff] }
 0xabe   :  { %12226 = vmatprep.subr.bf16.mxu0 %v17989_v29  ;;  %v12278_v29 = vld [vmem:[#allocation10 + $0x1cf0] sm:$0xff] }
 0xac0   :  { %11736 = vmatpush1.bf16.msra.mxu1 %v16662_v5  ;;  %v16777_v5 = vcombine.high %v12272_v25, %v12276_v60 }
 0xac1   :  { %12227 = vmatpush1.bf16.msra.mxu0 %v17987_v42  ;;  %11737 = vmatprep.subr.bf16.mxu1 %v16671_v22  ;;  %v16781_v42 = vcombine.high %v12274_v57, %v12278_v29  ;;  %v12280_v22 = vld [vmem:[#allocation10 + $0x1d00] sm:$0xff] }
 0xac2   :  { %12228 = vmatprep.subr.bf16.mxu0 %v17992_v44  ;;  %v12284_v44 = vld [vmem:[#allocation10 + $0x1d20] sm:$0xff] }
 0xac4   :  { %11738 = vmatpush1.bf16.msra.mxu1 %v16670_v20  ;;  %v16776_v20 = vcombine.low %v12272_v25, %v12276_v60  ;;  %v12320_v25 = vld [vmem:[#allocation10 + $0x1e40] sm:$0xff] }
 0xac5   :  { %12229 = vmatpush1.bf16.msra.mxu0 %v17990_v18  ;;  %11739 = vmatprep.subr.bf16.mxu1 %v16679_v33  ;;  %v16780_v18 = vcombine.low %v12274_v57, %v12278_v29  ;;  %v16785_v33 = vcombine.high %v12280_v22, %v12284_v44  ;;  %v12324_v60 = vld [vmem:[#allocation10 + $0x1e60] sm:$0xff]  ;;  %v12322_v57 = vld [vmem:[#allocation10 + $0x1e50] sm:$0xff] }
 0xac6   :  { %12230 = vmatprep.subr.bf16.mxu0 %v17995_v36  ;;  %v16789_v36 = vcombine.high %v12282_v11, %v12286_v62  ;;  %v12326_v29 = vld [vmem:[#allocation10 + $0x1e70] sm:$0xff] }
 0xac8   :  { %11740 = vmatpush1.bf16.msra.mxu1 %v16678_v53  ;;  %v12290_v53 = vld [vmem:[#allocation10 + $0x1d50] sm:$0xff] }
 0xac9   :  { %12231 = vmatpush1.bf16.msra.mxu0 %v17993_v24  ;;  %11741 = vmatprep.subr.bf16.mxu1 %v16687_v21  ;;  %v12294_v24 = vld [vmem:[#allocation10 + $0x1d70] sm:$0xff]  ;;  %v16784_v21 = vcombine.low %v12280_v22, %v12284_v44  ;;  %v12328_v22 = vld [vmem:[#allocation10 + $0x1e80] sm:$0xff] }
 0xaca   :  { %12232 = vmatprep.subr.bf16.mxu0 %v17998_v49  ;;  %v16788_v49 = vcombine.low %v12282_v11, %v12286_v62  ;;  %v12332_v44 = vld [vmem:[#allocation10 + $0x1ea0] sm:$0xff]  ;;  %v12330_v11 = vld [vmem:[#allocation10 + $0x1e90] sm:$0xff] }
 0xacb   :  { %v12334_v62 = vld [vmem:[#allocation10 + $0x1eb0] sm:$0xff] }
 0xacc   :  { %11742 = vmatpush1.bf16.msra.mxu1 %v16686_v1  ;;  %v16793_v1 = vcombine.high %v12288_v59, %v12292_v16  ;;  %v12336_v59 = vld [vmem:[#allocation10 + $0x1ec0] sm:$0xff] }
 0xacd   :  { %12233 = vmatpush1.bf16.msra.mxu0 %v17996_v26  ;;  %13016 = vmatprep.subr.bf16.mxu1 %v16753_v52  ;;  %v16797_v26 = vcombine.high %v12290_v53, %v12294_v24  ;;  %v12340_v16 = vld [vmem:[#allocation10 + $0x1ee0] sm:$0xff] }
 0xace   :  { %13098 = vmatprep.subr.bf16.mxu0 %v16757_v0  ;;  %v12310_v0 = vld [vmem:[#allocation10 + $0x1df0] sm:$0xff] }
 0xacf   :  { %11744 = vmatmul.mubr.bf16.vlgmr.msra.gmra.mrb[108].mxu1 %v19248_v17  ;;  %v12270_v17 = vld [vmem:[#allocation10 + $0x1cb0] sm:$0xff] }
 0xad0   :  { %12235 = vmatmul.mubr.bf16.vlgmr.msra.gmra.mrb[92].mxu0 %v11762_v30  ;;  %13017 = vmatpush1.bf16.msra.mxu1 %v16752_v40  ;;  %v16773_v10 = vcombine.high %v12266_v8, %v12270_v17  ;;  %v16772_v54 = vcombine.low %v12266_v8, %v12270_v17  ;;  %v12300_v30 = vld [vmem:[#allocation10 + $0x1da0] sm:$0xff]  ;;  %v16796_v40 = vcombine.low %v12290_v53, %v12294_v24  ;;  %v12314_v8 = vld [vmem:[#allocation10 + $0x1e10] sm:$0xff] }
 0xad1   :  { %13099 = vmatpush1.bf16.msra.mxu0 %v16756_v48  ;;  %13018 = vmatprep.subr.bf16.mxu1 %v16761_v58  ;;  %v16801_v52 = vcombine.high %v12296_v45, %v12300_v30  ;;  %v12306_v48 = vld [vmem:[#allocation10 + $0x1dd0] sm:$0xff]  ;;  %v16800_v58 = vcombine.low %v12296_v45, %v12300_v30  ;;  %v12344_v45 = vld [vmem:[#allocation10 + $0x1f00] sm:$0xff] }
 0xad2   :  { %13100 = vmatprep.subr.bf16.mxu0 %v16765_v2  ;;  %v16813_v43 = vcombine.high %v12306_v48, %v12310_v0  ;;  %v12312_v2 = vld [vmem:[#allocation10 + $0x1e00] sm:$0xff]  ;;  %v12318_v17 = vld [vmem:[#allocation10 + $0x1e30] sm:$0xff] }
 0xad3   :  { %v12338_v53 = vld [vmem:[#allocation10 + $0x1ed0] sm:$0xff]  ;;  %v12348_v30 = vld [vmem:[#allocation10 + $0x1f20] sm:$0xff] }
 0xad4   :  { %13019 = vmatpush1.bf16.msra.mxu1 %v16760_v28  ;;  %v16808_v28 = vcombine.low %v12304_v7, %v12308_v32  ;;  %v12342_v24 = vld [vmem:[#allocation10 + $0x1ef0] sm:$0xff]  ;;  %v12352_v7 = vld [vmem:[#allocation10 + $0x1f40] sm:$0xff] }
 0xad5   :  { %13101 = vmatpush1.bf16.msra.mxu0 %v16764_v51  ;;  %13020 = vmatprep.subr.bf16.mxu1 %v16769_v4  ;;  %v16812_v51 = vcombine.low %v12306_v48, %v12310_v0  ;;  %v16817_v4 = vcombine.high %v12312_v2, %v12316_v35  ;;  %v12356_v32 = vld [vmem:[#allocation10 + $0x1f60] sm:$0xff]  ;;  %v12354_v48 = vld [vmem:[#allocation10 + $0x1f50] sm:$0xff] }
 0xad6   :  { %13102 = vmatprep.subr.bf16.mxu0 %v16773_v10  ;;  %v16821_v10 = vcombine.high %v12314_v8, %v12318_v17  ;;  %v12358_v0 = vld [vmem:[#allocation10 + $0x1f70] sm:$0xff] }
 0xad8   :  { %13021 = vmatpush1.bf16.msra.mxu1 %v16768_v63  ;;  %v16816_v63 = vcombine.low %v12312_v2, %v12316_v35  ;;  %v16856_v2 = vcombine.low %v12352_v7, %v12356_v32  ;;  %v16860_v35 = vcombine.low %v12354_v48, %v12358_v0 }
 0xad9   :  { %13103 = vmatpush1.bf16.msra.mxu0 %v16772_v54  ;;  %13022 = vmatprep.subr.bf16.mxu1 %v16777_v5  ;;  %v16820_v54 = vcombine.low %v12314_v8, %v12318_v17  ;;  %v16825_v5 = vcombine.high %v12320_v25, %v12324_v60  ;;  %v12360_v8 = vld [vmem:[#allocation10 + $0x1f80] sm:$0xff] }
 0xada   :  { %13104 = vmatprep.subr.bf16.mxu0 %v16781_v42  ;;  %v16829_v42 = vcombine.high %v12322_v57, %v12326_v29  ;;  %v12364_v17 = vld [vmem:[#allocation10 + $0x1fa0] sm:$0xff] }
 0xadc   :  { %13023 = vmatpush1.bf16.msra.mxu1 %v16776_v20  ;;  %v16824_v20 = vcombine.low %v12320_v25, %v12324_v60  ;;  %v16864_v60 = vcombine.low %v12360_v8, %v12364_v17 }
 0xadd   :  { %13105 = vmatpush1.bf16.msra.mxu0 %v16780_v18  ;;  %13024 = vmatprep.subr.bf16.mxu1 %v16785_v33  ;;  %v16828_v18 = vcombine.low %v12322_v57, %v12326_v29  ;;  %v16833_v33 = vcombine.high %v12328_v22, %v12332_v44 }
 0xade   :  { %13106 = vmatprep.subr.bf16.mxu0 %v16789_v36  ;;  %v16837_v36 = vcombine.high %v12330_v11, %v12334_v62 }
 0xae0   :  { %13025 = vmatpush1.bf16.msra.mxu1 %v16784_v21  ;;  %v16832_v21 = vcombine.low %v12328_v22, %v12332_v44 }
 0xae1   :  { %13107 = vmatpush1.bf16.msra.mxu0 %v16788_v49  ;;  %13026 = vmatprep.subr.bf16.mxu1 %v16793_v1  ;;  %v16836_v49 = vcombine.low %v12330_v11, %v12334_v62  ;;  %v16841_v1 = vcombine.high %v12336_v59, %v12340_v16 }
 0xae2   :  { %13108 = vmatprep.subr.bf16.mxu0 %v16797_v26  ;;  %v16845_v26 = vcombine.high %v12338_v53, %v12342_v24 }
 0xae4   :  { %13027 = vmatpush1.bf16.msra.mxu1 %v16792_v55  ;;  %v16840_v55 = vcombine.low %v12336_v59, %v12340_v16  ;;  %v12374_v59 = vld [vmem:[#allocation10 + $0x1ff0] sm:$0xff] }
 0xae5   :  { %13109 = vmatpush1.bf16.msra.mxu0 %v16796_v40  ;;  %13028 = vmatprep.subr.bf16.mxu1 %v16801_v52  ;;  %v16844_v40 = vcombine.low %v12338_v53, %v12342_v24  ;;  %v16849_v52 = vcombine.high %v12344_v45, %v12348_v30  ;;  %v12253_v24 = vld [vmem:[#allocation10 + $0x1c28] sm:$0xff] }
 0xae6   :  { %13110 = vmatprep.subr.bf16.mxu0 %v16805_v46  ;;  %v16853_v46 = vcombine.high %v12346_v34, %v12350_v39 }
 0xae8   :  { %13029 = vmatpush1.bf16.msra.mxu1 %v16800_v58  ;;  %v16848_v58 = vcombine.low %v12344_v45, %v12348_v30 }
 0xae9   :  { %13111 = vmatpush1.bf16.msra.mxu0 %v16804_v12  ;;  %13030 = vmatprep.subr.bf16.mxu1 %v16809_v3  ;;  %v16852_v12 = vcombine.low %v12346_v34, %v12350_v39  ;;  %v16857_v3 = vcombine.high %v12352_v7, %v12356_v32 }
 0xaea   :  { %13112 = vmatprep.subr.bf16.mxu0 %v16813_v43  ;;  %v16861_v43 = vcombine.high %v12354_v48, %v12358_v0 }
 0xaec   :  { %13031 = vmatpush1.bf16.msra.mxu1 %v16808_v28  ;;  %v16865_v28 = vcombine.high %v12360_v8, %v12364_v17  ;;  %v12257_v17 = vld [vmem:[#allocation10 + $0x1c48] sm:$0xff] }
 0xaed   :  { %13113 = vmatpush1.bf16.msra.mxu0 %v16812_v51  ;;  %13032 = vmatprep.subr.bf16.mxu1 %v16817_v4  ;;  %v12362_v51 = vld [vmem:[#allocation10 + $0x1f90] sm:$0xff] }
 0xaee   :  { %13114 = vmatprep.subr.bf16.mxu0 %v16821_v10  ;;  %v12366_v4 = vld [vmem:[#allocation10 + $0x1fb0] sm:$0xff] }
 0xaef   :  { %v16869_v57 = vcombine.high %v12362_v51, %v12366_v4 }
 0xaf0   :  { %13033 = vmatpush1.bf16.msra.mxu1 %v16816_v63 }
 0xaf1   :  { %13115 = vmatpush1.bf16.msra.mxu0 %v16820_v54  ;;  %13034 = vmatprep.subr.bf16.mxu1 %v16825_v5 }
 0xaf2   :  { %13116 = vmatprep.subr.bf16.mxu0 %v16829_v42  ;;  %v16868_v42 = vcombine.low %v12362_v51, %v12366_v4 }
 0xaf4   :  { %13035 = vmatpush1.bf16.msra.mxu1 %v16824_v20  ;;  %v12368_v20 = vld [vmem:[#allocation10 + $0x1fc0] sm:$0xff] }
 0xaf5   :  { %13117 = vmatpush1.bf16.msra.mxu0 %v16828_v18  ;;  %13036 = vmatprep.subr.bf16.mxu1 %v16833_v33 }
 0xaf6   :  { %13118 = vmatprep.subr.bf16.mxu0 %v16837_v36  ;;  %v12370_v36 = vld [vmem:[#allocation10 + $0x1fd0] sm:$0xff] }
 0xaf7   :  { %v16877_v53 = vcombine.high %v12370_v36, %v12374_v59 }
 0xaf8   :  { %13037 = vmatpush1.bf16.msra.mxu1 %v16832_v21 }
 0xaf9   :  { %13119 = vmatpush1.bf16.msra.mxu0 %v16836_v49  ;;  %13038 = vmatprep.subr.bf16.mxu1 %v16841_v1 }
 0xafa   :  { %13120 = vmatprep.subr.bf16.mxu0 %v16845_v26 }
 0xafc   :  { %13039 = vmatpush1.bf16.msra.mxu1 %v16840_v55  ;;  %v11829_v55 = vld [vmem:[#allocation8 + $0xe] sm:$0x3] }
 0xafd   :  { %13121 = vmatpush1.bf16.msra.mxu0 %v16844_v40  ;;  %13040 = vmatprep.subr.bf16.mxu1 %v16849_v52  ;;  %v11834_v40 = vrot.slane %v11829_v55, %v18846_v14  ;;  %v11838_v52 = vrot.slane %v11829_v55, %v18849_v15 }
 0xafe   :  { %13122 = vmatprep.subr.bf16.mxu0 %v16853_v46 }
 0xb00   :  { %13041 = vmatpush1.bf16.msra.mxu1 %v16848_v58 }
 0xb01   :  { %13123 = vmatpush1.bf16.msra.mxu0 %v16852_v12  ;;  %13042 = vmatprep.subr.bf16.mxu1 %v16857_v3 }
 0xb02   :  { %13124 = vmatprep.subr.bf16.mxu0 %v16861_v43 }
 0xb04   :  { %13043 = vmatpush1.bf16.msra.mxu1 %v16856_v2 }
 0xb05   :  { %13125 = vmatpush1.bf16.msra.mxu0 %v16860_v35  ;;  %13044 = vmatprep.subr.bf16.mxu1 %v16865_v28  ;;  %v12261_v28 = vld [vmem:[#allocation10 + $0x1c68] sm:$0xff] }
 0xb06   :  { %13126 = vmatprep.subr.bf16.mxu0 %v16869_v57  ;;  %v16763_v4 = vcombine.high %v12257_v17, %v12261_v28  ;;  %v16762_v57 = vcombine.low %v12257_v17, %v12261_v28  ;;  %v12321_v17 = vld [vmem:[#allocation10 + $0x1e48] sm:$0xff] }
 0xb07   :  { %v12325_v28 = vld [vmem:[#allocation10 + $0x1e68] sm:$0xff] }
 0xb08   :  { %13045 = vmatpush1.bf16.msra.mxu1 %v16864_v60  ;;  %v18001_v60 = vld [vmem:[#allocation13 + $0x4] ss:$16 sps:$4 sm:$0xff]  }
 0xb09   :  { %13127 = vmatpush1.bf16.msra.mxu0 %v16868_v42  ;;  %v12273_v42 = vld [vmem:[#allocation10 + $0x1cc8] sm:$0xff] }
 0xb0a   :  { %13128 = vmatprep.subr.bf16.mxu0 %v16877_v53 }
 0xb22   :  { %v11622_v10 = vpop.f32.mrb[100].mxu1  ;;  %v11704_v25 = vpop.f32.mrb[88].mxu0 }
 0xb23   :  { %v19262_v29 = vadd.f32 %v11622_v10, %v19220_v47  ;;  %v19265_v63 = vadd.f32 %v11704_v25, %v19223_v56  ;;  %v11624_v54 = vpop.f32.mrb[101].mxu1  ;;  %v11706_v5 = vpop.f32.mrb[89].mxu0  ;;  %v12372_v47 = vld [vmem:[#allocation10 + $0x1fe0] sm:$0xff]  ;;  %v12269_v10 = vld [vmem:[#allocation10 + $0x1ca8] sm:$0xff] }
 0xb24   :  { %v19268_v22 = vadd.f32 %v11624_v54, %v19226_v23  ;;  %v19271_v44 = vadd.f32 %v11706_v5, %v19229_v31  ;;  %v11626_v11 = vpop.f32.mrb[102].mxu1  ;;  %v11708_v62 = vpop.f32.mrb[90].mxu0  ;;  %v16873_v56 = vcombine.high %v12368_v20, %v12372_v47  ;;  %v16872_v16 = vcombine.low %v12368_v20, %v12372_v47  ;;  %v12249_v31 = vld [vmem:[#allocation10 + $0x1c08] sm:$0xff] }
 0xb25   :  { %v11627_v18 = vpop.f32.mrb[103].mxu1  ;;  %v11709_v33 = vpop.f32.mrb[91].mxu0  ;;  %v16876_v23 = vcombine.low %v12370_v36, %v12374_v59  ;;  %v16755_v21 = vcombine.high %v12249_v31, %v12253_v24  ;;  %v16754_v49 = vcombine.low %v12249_v31, %v12253_v24  ;;  %v17999_v25 = vld [vmem:[#allocation13] ss:$16 sps:$4 sm:$0xff]   ;;  %v18007_v54 = vld [vmem:[#allocation13 + $0x24] ss:$16 sps:$4 sm:$0xff]  }
 0xb26   :  { %13046 = vmatprep.subr.bf16.mxu1 %v16873_v56  ;;  %v12277_v11 = vld [vmem:[#allocation10 + $0x1ce8] sm:$0xff] }
 0xb27   :  { %13047 = vmatpush1.bf16.msra.mxu1 %v16872_v16  ;;  %13129 = vmatpush1.bf16.msra.mxu0 %v16876_v23  ;;  %v18005_v62 = vld [vmem:[#allocation13 + $0x20] ss:$16 sps:$4 sm:$0xff]   ;;  %v18013_v47 = vld [vmem:[#allocation13 + $0x44] ss:$16 sps:$4 sm:$0xff]   ;;  %v16779_v18 = vcombine.high %v12273_v42, %v12277_v11  ;;  %v16778_v59 = vcombine.low %v12273_v42, %v12277_v11 }
 0xb28   :  { %13057 = vmatprep.subr.bf16.mxu1 %v16755_v21  ;;  %14812 = vmatprep.subr.bf16.mxu0 %v18001_v60  ;;  %v12281_v33 = vld [vmem:[#allocation10 + $0x1d08] sm:$0xff] }
 0xb29   :  { %v12285_v56 = vld [vmem:[#allocation10 + $0x1d28] sm:$0xff] }
 0xb2a   :  { %v18011_v36 = vld [vmem:[#allocation13 + $0x40] ss:$16 sps:$4 sm:$0xff]   ;;  %v18019_v16 = vld [vmem:[#allocation13 + $0x64] ss:$16 sps:$4 sm:$0xff]   ;;  %v16787_v53 = vcombine.high %v12281_v33, %v12285_v56  ;;  %v16786_v21 = vcombine.low %v12281_v33, %v12285_v56 }
 0xb2b   :  { %v12289_v23 = vld [vmem:[#allocation10 + $0x1d48] sm:$0xff] }
 0xb2c   :  { %v12293_v31 = vld [vmem:[#allocation10 + $0x1d68] sm:$0xff] }
 0xb2d   :  { %v18017_v24 = vld [vmem:[#allocation13 + $0x60] ss:$16 sps:$4 sm:$0xff]   ;;  %v16794_v55 = vcombine.low %v12289_v23, %v12293_v31  ;;  %v18055_v42 = vld [vmem:[#allocation13 + $0x124] ss:$16 sps:$4 sm:$0xff]  }
 0xb2e   :  { %v12329_v60 = vld [vmem:[#allocation10 + $0x1e88] sm:$0xff] }
 0xb2f   :  { %v18061_v33 = vld [vmem:[#allocation13 + $0x144] ss:$16 sps:$4 sm:$0xff]  }
 0xb62   :  { %v11663_v1 = vpop.f32.mrb[104].mxu1 }
 0xb63   :  { %v19274_v26 = vadd.f32 %v11663_v1, %v19232_v13  ;;  %v11665_v45 = vpop.f32.mrb[105].mxu1  ;;  %v16795_v1 = vcombine.high %v12289_v23, %v12293_v31  ;;  %v18067_v23 = vld [vmem:[#allocation13 + $0x164] ss:$16 sps:$4 sm:$0xff]  }
 0xb64   :  { %v19277_v30 = vadd.f32 %v11665_v45, %v19235_v9  ;;  %v11667_v34 = vpop.f32.mrb[106].mxu1  ;;  %v12297_v45 = vld [vmem:[#allocation10 + $0x1d88] sm:$0xff] }
 0xb65   :  { %v11668_v39 = vpop.f32.mrb[107].mxu1  ;;  %v12301_v34 = vld [vmem:[#allocation10 + $0x1da8] sm:$0xff] }
 0xb66   :  { %v18023_v39 = vld [vmem:[#allocation13 + $0x80] ss:$16 sps:$4 sm:$0xff]  }
 0xba2   :  { %v11745_v46 = vpop.f32.mrb[108].mxu1 }
 0xba3   :  { %v19282_v7 = vadd.f32 %v11745_v46, %v19240_v6  ;;  %v12236_v32 = vpop.f32.mrb[92].mxu0  ;;  %v11747_v48 = vpop.f32.mrb[109].mxu1  ;;  %v12305_v46 = vld [vmem:[#allocation10 + $0x1dc8] sm:$0xff] }
 0xba4   :  { %v17152_v0 = vadd.f32 %v12236_v32, %v11834_v40  ;;  %v19285_v13 = vadd.f32 %v11747_v48, %v19243_v38  ;;  %v12238_v58 = vpop.f32.mrb[93].mxu0  ;;  %v11749_v9 = vpop.f32.mrb[110].mxu1  ;;  %v12265_v38 = vld [vmem:[#allocation10 + $0x1c88] sm:$0xff] }
 0xba5   :  { %v17153_v12 = vadd.f32 %v12238_v58, %v11838_v52  ;;  %v12240_v3 = vpop.f32.mrb[94].mxu0  ;;  %v11750_v43 = vpop.f32.mrb[111].mxu1  ;;  %v16771_v5 = vcombine.high %v12265_v38, %v12269_v10  ;;  %v16770_v20 = vcombine.low %v12265_v38, %v12269_v10  ;;  %v18031_v40 = vld [vmem:[#allocation13 + $0xa4] ss:$16 sps:$4 sm:$0xff]   ;;  %v16803_v52 = vcombine.high %v12297_v45, %v12301_v34  ;;  %v18029_v48 = vld [vmem:[#allocation13 + $0xa0] ss:$16 sps:$4 sm:$0xff]  }
 0xba6   :  { %v12243_v2 = vmax.f32 %v17152_v0, 0.0  ;;  %v12241_v35 = vpop.f32.mrb[95].mxu0  ;;  %v12309_v32 = vld [vmem:[#allocation10 + $0x1de8] sm:$0xff]  ;;  %v16802_v0 = vcombine.low %v12297_v45, %v12301_v34 }
 0xba7   :  { %v12244_v8 = vmax.f32 %v17153_v12, 0.0  ;;  %v18037_v58 = vld [vmem:[#allocation13 + $0xc4] ss:$16 sps:$4 sm:$0xff]   ;;  %v16811_v9 = vcombine.high %v12305_v46, %v12309_v32  ;;  %v18035_v43 = vld [vmem:[#allocation13 + $0xc0] ss:$16 sps:$4 sm:$0xff]  }
 0xba8   :  { %v19289_v6 = vpack.c.bf16 %v12243_v2, %v12243_v2  ;;  %v12313_v12 = vld [vmem:[#allocation10 + $0x1e08] sm:$0xff]  ;;  %v16810_v2 = vcombine.low %v12305_v46, %v12309_v32 }
 0xba9   :  { %v19287_v51 = vpack.c.bf16 %v12244_v8, %v12244_v8  ;;  %v12317_v3 = vld [vmem:[#allocation10 + $0x1e28] sm:$0xff] }
 0xbaa   :  { %v18043_v35 = vld [vmem:[#allocation13 + $0xe4] ss:$16 sps:$4 sm:$0xff]   ;;  %v16819_v8 = vcombine.high %v12313_v12, %v12317_v3  ;;  %v16818_v38 = vcombine.low %v12313_v12, %v12317_v3 }
 0xbab   :  { %13048 = vmatprep.mubr.bf16.mxu1 %v19287_v51  ;;  %13130 = vmatprep.mubr.bf16.mxu0 %v19287_v51  ;;  %v18049_v10 = vld [vmem:[#allocation13 + $0x104] ss:$16 sps:$4 sm:$0xff]  }
 0xbac   :  { %13049 = vmatmul.mubr.bf16.vlgmr.msra.gmra.mrb[112].mxu1 %v19289_v6  ;;  %13131 = vmatmul.mubr.bf16.vlgmr.msra.gmra.mrb[96].mxu0 %v19289_v6  ;;  %v18073_v45 = vld [vmem:[#allocation13 + $0x184] ss:$16 sps:$4 sm:$0xff]  }
 0xbad   :  { %13058 = vmatpush1.bf16.msra.mxu1 %v16754_v49  ;;  %13089 = vmatprep.mubr.bf16.mxu1 %v19287_v51  ;;  %v18025_v49 = vld [vmem:[#allocation13 + $0x84] ss:$16 sps:$4 sm:$0xff]  }
 0xbae   :  { %13059 = vmatprep.subr.bf16.mxu1 %v16763_v4  ;;  %14813 = vmatpush1.bf16.msra.mxu0 %v17999_v25  ;;  %v18041_v4 = vld [vmem:[#allocation13 + $0xe0] ss:$16 sps:$4 sm:$0xff]   ;;  %v16827_v25 = vcombine.high %v12321_v17, %v12325_v28  ;;  %v18079_v46 = vld [vmem:[#allocation13 + $0x1a4] ss:$16 sps:$4 sm:$0xff]  }
 0xbaf   :  { %14814 = vmatprep.subr.bf16.mxu0 %v18007_v54  ;;  %v18047_v54 = vld [vmem:[#allocation13 + $0x100] ss:$16 sps:$4 sm:$0xff]  }
 0xbb0   :  { %v12251_v3 = vld [vmem:[#allocation10 + $0x1c18] sm:$0xff] }
 0xbb1   :  { %13060 = vmatpush1.bf16.msra.mxu1 %v16762_v57  ;;  %v12333_v57 = vld [vmem:[#allocation10 + $0x1ea8] sm:$0xff] }
 0xbb2   :  { %13061 = vmatprep.subr.bf16.mxu1 %v16771_v5  ;;  %14815 = vmatpush1.bf16.msra.mxu0 %v18005_v62  ;;  %v16826_v5 = vcombine.low %v12321_v17, %v12325_v28  ;;  %v16835_v11 = vcombine.high %v12329_v60, %v12333_v57  ;;  %v12337_v62 = vld [vmem:[#allocation10 + $0x1ec8] sm:$0xff]  ;;  %v12263_v17 = vld [vmem:[#allocation10 + $0x1c78] sm:$0xff] }
 0xbb3   :  { %14816 = vmatprep.subr.bf16.mxu0 %v18013_v47  ;;  %v18053_v47 = vld [vmem:[#allocation13 + $0x120] ss:$16 sps:$4 sm:$0xff]  }
 0xbb5   :  { %13062 = vmatpush1.bf16.msra.mxu1 %v16770_v20  ;;  %v12341_v20 = vld [vmem:[#allocation10 + $0x1ee8] sm:$0xff] }
 0xbb6   :  { %13063 = vmatprep.subr.bf16.mxu1 %v16779_v18  ;;  %14817 = vmatpush1.bf16.msra.mxu0 %v18011_v36  ;;  %v16834_v18 = vcombine.low %v12329_v60, %v12333_v57  ;;  %v16843_v56 = vcombine.high %v12337_v62, %v12341_v20  ;;  %v12345_v36 = vld [vmem:[#allocation10 + $0x1f08] sm:$0xff]  ;;  %v12275_v57 = vld [vmem:[#allocation10 + $0x1cd8] sm:$0xff] }
 0xbb7   :  { %14818 = vmatprep.subr.bf16.mxu0 %v18019_v16  ;;  %v18059_v16 = vld [vmem:[#allocation13 + $0x140] ss:$16 sps:$4 sm:$0xff]  }
 0xbb9   :  { %13064 = vmatpush1.bf16.msra.mxu1 %v16778_v59  ;;  %v12349_v59 = vld [vmem:[#allocation10 + $0x1f28] sm:$0xff] }
 0xbba   :  { %13065 = vmatprep.subr.bf16.mxu1 %v16787_v53  ;;  %14819 = vmatpush1.bf16.msra.mxu0 %v18017_v24  ;;  %v16842_v53 = vcombine.low %v12337_v62, %v12341_v20  ;;  %v16851_v31 = vcombine.high %v12345_v36, %v12349_v59  ;;  %v12353_v24 = vld [vmem:[#allocation10 + $0x1f48] sm:$0xff]  ;;  %v12287_v62 = vld [vmem:[#allocation10 + $0x1d38] sm:$0xff] }
 0xbbb   :  { %14820 = vmatprep.subr.bf16.mxu0 %v18025_v49  ;;  %v18065_v49 = vld [vmem:[#allocation13 + $0x160] ss:$16 sps:$4 sm:$0xff]  }
 0xbbd   :  { %13066 = vmatpush1.bf16.msra.mxu1 %v16786_v21  ;;  %v12357_v21 = vld [vmem:[#allocation10 + $0x1f68] sm:$0xff] }
 0xbbe   :  { %13067 = vmatprep.subr.bf16.mxu1 %v16795_v1  ;;  %14821 = vmatpush1.bf16.msra.mxu0 %v18023_v39  ;;  %v16850_v1 = vcombine.low %v12345_v36, %v12349_v59  ;;  %v16859_v34 = vcombine.high %v12353_v24, %v12357_v21  ;;  %v12361_v39 = vld [vmem:[#allocation10 + $0x1f88] sm:$0xff]  ;;  %v12299_v36 = vld [vmem:[#allocation10 + $0x1d98] sm:$0xff] }
 0xbbf   :  { %14822 = vmatprep.subr.bf16.mxu0 %v18031_v40  ;;  %v18071_v40 = vld [vmem:[#allocation13 + $0x180] ss:$16 sps:$4 sm:$0xff]  }
 0xbc0   :  { %v12303_v59 = vld [vmem:[#allocation10 + $0x1db8] sm:$0xff] }
 0xbc1   :  { %13068 = vmatpush1.bf16.msra.mxu1 %v16794_v55  ;;  %v12365_v55 = vld [vmem:[#allocation10 + $0x1fa8] sm:$0xff] }
 0xbc2   :  { %13069 = vmatprep.subr.bf16.mxu1 %v16803_v52  ;;  %14823 = vmatpush1.bf16.msra.mxu0 %v18029_v48  ;;  %v16858_v52 = vcombine.low %v12353_v24, %v12357_v21  ;;  %v16867_v32 = vcombine.high %v12361_v39, %v12365_v55  ;;  %v12369_v48 = vld [vmem:[#allocation10 + $0x1fc8] sm:$0xff]  ;;  %v16806_v21 = vcombine.low %v12299_v36, %v12303_v59 }
 0xbc3   :  { %14824 = vmatprep.subr.bf16.mxu0 %v18037_v58  ;;  %v18077_v58 = vld [vmem:[#allocation13 + $0x1a0] ss:$16 sps:$4 sm:$0xff]   ;;  %v18085_v24 = vld [vmem:[#allocation13 + $0x1c4] ss:$16 sps:$4 sm:$0xff]  }
 0xbc5   :  { %13070 = vmatpush1.bf16.msra.mxu1 %v16802_v0  ;;  %v12373_v0 = vld [vmem:[#allocation10 + $0x1fe8] sm:$0xff] }
 0xbc6   :  { %13071 = vmatprep.subr.bf16.mxu1 %v16811_v9  ;;  %14825 = vmatpush1.bf16.msra.mxu0 %v18035_v43  ;;  %v16866_v9 = vcombine.low %v12361_v39, %v12365_v55  ;;  %v16875_v12 = vcombine.high %v12369_v48, %v12373_v0  ;;  %v12255_v43 = vld [vmem:[#allocation10 + $0x1c38] sm:$0xff] }
 0xbc7   :  { %14826 = vmatprep.subr.bf16.mxu0 %v18043_v35  ;;  %v16759_v35 = vcombine.high %v12251_v3, %v12255_v43  ;;  %v16758_v28 = vcombine.low %v12251_v3, %v12255_v43  ;;  %v18091_v39 = vld [vmem:[#allocation13 + $0x1e4] ss:$16 sps:$4 sm:$0xff]  }
 0xbc9   :  { %13072 = vmatpush1.bf16.msra.mxu1 %v16810_v2  ;;  %v16874_v2 = vcombine.low %v12369_v48, %v12373_v0  ;;  %v18097_v48 = vld [vmem:[#allocation13 + $0x204] ss:$16 sps:$4 sm:$0xff]  }
 0xbca   :  { %13073 = vmatprep.subr.bf16.mxu1 %v16819_v8  ;;  %14827 = vmatpush1.bf16.msra.mxu0 %v18041_v4  ;;  %v12259_v8 = vld [vmem:[#allocation10 + $0x1c58] sm:$0xff] }
 0xbcb   :  { %14828 = vmatprep.subr.bf16.mxu0 %v18049_v10  ;;  %v16767_v4 = vcombine.high %v12259_v8, %v12263_v17  ;;  %v12271_v10 = vld [vmem:[#allocation10 + $0x1cb8] sm:$0xff] }
 0xbcd   :  { %13074 = vmatpush1.bf16.msra.mxu1 %v16818_v38  ;;  %v12267_v38 = vld [vmem:[#allocation10 + $0x1c98] sm:$0xff] }
 0xbce   :  { %13075 = vmatprep.subr.bf16.mxu1 %v16827_v25  ;;  %14829 = vmatpush1.bf16.msra.mxu0 %v18047_v54  ;;  %v16766_v25 = vcombine.low %v12259_v8, %v12263_v17  ;;  %v16775_v60 = vcombine.high %v12267_v38, %v12271_v10  ;;  %v12279_v54 = vld [vmem:[#allocation10 + $0x1cf8] sm:$0xff] }
 0xbcf   :  { %14830 = vmatprep.subr.bf16.mxu0 %v18055_v42  ;;  %v16783_v42 = vcombine.high %v12275_v57, %v12279_v54  ;;  %v16782_v20 = vcombine.low %v12275_v57, %v12279_v54 }
 0xbd1   :  { %13076 = vmatpush1.bf16.msra.mxu1 %v16826_v5  ;;  %v16774_v5 = vcombine.low %v12267_v38, %v12271_v10 }
 0xbd2   :  { %13077 = vmatprep.subr.bf16.mxu1 %v16835_v11  ;;  %14831 = vmatpush1.bf16.msra.mxu0 %v18053_v47  ;;  %v12283_v11 = vld [vmem:[#allocation10 + $0x1d18] sm:$0xff] }
 0xbd3   :  { %14832 = vmatprep.subr.bf16.mxu0 %v18061_v33  ;;  %v16791_v47 = vcombine.high %v12283_v11, %v12287_v62  ;;  %v12295_v33 = vld [vmem:[#allocation10 + $0x1d78] sm:$0xff] }
 0xbd5   :  { %13078 = vmatpush1.bf16.msra.mxu1 %v16834_v18  ;;  %v12291_v18 = vld [vmem:[#allocation10 + $0x1d58] sm:$0xff] }
 0xbd6   :  { %13079 = vmatprep.subr.bf16.mxu1 %v16843_v56  ;;  %14833 = vmatpush1.bf16.msra.mxu0 %v18059_v16  ;;  %v16790_v56 = vcombine.low %v12283_v11, %v12287_v62  ;;  %v16798_v16 = vcombine.low %v12291_v18, %v12295_v33 }
 0xbd7   :  { %14834 = vmatprep.subr.bf16.mxu0 %v18067_v23  ;;  %v12307_v23 = vld [vmem:[#allocation10 + $0x1dd8] sm:$0xff] }
 0xbd9   :  { %13080 = vmatpush1.bf16.msra.mxu1 %v16842_v53  ;;  %v16807_v53 = vcombine.high %v12299_v36, %v12303_v59  ;;  %v18002_v36 = vld [vmem:[#allocation13 + $0x8] ss:$16 sps:$4 sm:$0xff]   ;;  %v18010_v59 = vld [vmem:[#allocation13 + $0x2c] ss:$16 sps:$4 sm:$0xff]  }
 0xbda   :  { %13081 = vmatprep.subr.bf16.mxu1 %v16851_v31  ;;  %14835 = vmatpush1.bf16.msra.mxu0 %v18065_v49  ;;  %v12311_v31 = vld [vmem:[#allocation10 + $0x1df8] sm:$0xff] }
 0xbdb   :  { %14836 = vmatprep.subr.bf16.mxu0 %v18073_v45  ;;  %v18083_v49 = vld [vmem:[#allocation13 + $0x1c0] ss:$16 sps:$4 sm:$0xff]   ;;  %v16814_v55 = vcombine.low %v12307_v23, %v12311_v31 }
 0xbdc   :  { %v12315_v45 = vld [vmem:[#allocation10 + $0x1e18] sm:$0xff] }
 0xbdd   :  { %13082 = vmatpush1.bf16.msra.mxu1 %v16850_v1  ;;  %v16815_v1 = vcombine.high %v12307_v23, %v12311_v31  ;;  %v18014_v23 = vld [vmem:[#allocation13 + $0x48] ss:$16 sps:$4 sm:$0xff]   ;;  %v18022_v31 = vld [vmem:[#allocation13 + $0x6c] ss:$16 sps:$4 sm:$0xff]  }
 0xbde   :  { %13083 = vmatprep.subr.bf16.mxu1 %v16859_v34  ;;  %14837 = vmatpush1.bf16.msra.mxu0 %v18071_v40  ;;  %v12319_v34 = vld [vmem:[#allocation10 + $0x1e38] sm:$0xff] }
 0xbdf   :  { %14838 = vmatprep.subr.bf16.mxu0 %v18079_v46  ;;  %v18089_v40 = vld [vmem:[#allocation13 + $0x1e0] ss:$16 sps:$4 sm:$0xff]   ;;  %v16822_v0 = vcombine.low %v12315_v45, %v12319_v34 }
 0xbe0   :  { %v12323_v46 = vld [vmem:[#allocation10 + $0x1e58] sm:$0xff] }
 0xbe1   :  { %13084 = vmatpush1.bf16.msra.mxu1 %v16858_v52  ;;  %v16823_v52 = vcombine.high %v12315_v45, %v12319_v34  ;;  %v18032_v45 = vld [vmem:[#allocation13 + $0xa8] ss:$16 sps:$4 sm:$0xff]  }
 0xbe2   :  { %13085 = vmatprep.subr.bf16.mxu1 %v16867_v32  ;;  %14839 = vmatpush1.bf16.msra.mxu0 %v18077_v58  ;;  %v12327_v32 = vld [vmem:[#allocation10 + $0x1e78] sm:$0xff]  ;;  %v18038_v34 = vld [vmem:[#allocation13 + $0xc8] ss:$16 sps:$4 sm:$0xff]  }
 0xbe3   :  { %14840 = vmatprep.subr.bf16.mxu0 %v18085_v24  ;;  %v16831_v58 = vcombine.high %v12323_v46, %v12327_v32  ;;  %v16830_v3 = vcombine.low %v12323_v46, %v12327_v32  ;;  %v18020_v24 = vld [vmem:[#allocation13 + $0x68] ss:$16 sps:$4 sm:$0xff]   ;;  %v18058_v46 = vld [vmem:[#allocation13 + $0x12c] ss:$16 sps:$4 sm:$0xff]  }
 0xbe4   :  { %v18056_v32 = vld [vmem:[#allocation13 + $0x128] ss:$16 sps:$4 sm:$0xff]  }
 0xbe5   :  { %13086 = vmatpush1.bf16.msra.mxu1 %v16866_v9  ;;  %v12331_v9 = vld [vmem:[#allocation10 + $0x1e98] sm:$0xff] }
 0xbe6   :  { %13087 = vmatprep.subr.bf16.mxu1 %v16875_v12  ;;  %14841 = vmatpush1.bf16.msra.mxu0 %v18083_v49  ;;  %v12335_v12 = vld [vmem:[#allocation10 + $0x1eb8] sm:$0xff]  ;;  %v18026_v49 = vld [vmem:[#allocation13 + $0x88] ss:$16 sps:$4 sm:$0xff]  }
 0xbe7   :  { %14842 = vmatprep.subr.bf16.mxu0 %v18091_v39  ;;  %v16839_v43 = vcombine.high %v12331_v9, %v12335_v12  ;;  %v16838_v8 = vcombine.low %v12331_v9, %v12335_v12  ;;  %v18046_v39 = vld [vmem:[#allocation13 + $0xec] ss:$16 sps:$4 sm:$0xff]   ;;  %v18068_v9 = vld [vmem:[#allocation13 + $0x168] ss:$16 sps:$4 sm:$0xff]  }
 0xbe8   :  { %v18076_v12 = vld [vmem:[#allocation13 + $0x18c] ss:$16 sps:$4 sm:$0xff]  }
 0xbe9   :  { %13088 = vmatpush1.bf16.msra.mxu1 %v16874_v2  ;;  %v12339_v2 = vld [vmem:[#allocation10 + $0x1ed8] sm:$0xff] }
 0xbea   :  { %13139 = vmatprep.subr.bf16.mxu1 %v16759_v35  ;;  %14843 = vmatpush1.bf16.msra.mxu0 %v18089_v40  ;;  %v12343_v35 = vld [vmem:[#allocation10 + $0x1ef8] sm:$0xff]  ;;  %v18052_v40 = vld [vmem:[#allocation13 + $0x10c] ss:$16 sps:$4 sm:$0xff]  }
 0xbeb   :  { %14853 = vmatprep.subr.bf16.mxu0 %v18097_v48  ;;  %v16847_v17 = vcombine.high %v12339_v2, %v12343_v35  ;;  %v16846_v38 = vcombine.low %v12339_v2, %v12343_v35  ;;  %v18064_v48 = vld [vmem:[#allocation13 + $0x14c] ss:$16 sps:$4 sm:$0xff]   ;;  %v18080_v2 = vld [vmem:[#allocation13 + $0x1a8] ss:$16 sps:$4 sm:$0xff]  }
 0xbec   :  { %13090 = vmatmul.mubr.bf16.vlgmr.msra.gmra.mrb[116].mxu1 %v19289_v6  ;;  %v18088_v35 = vld [vmem:[#allocation13 + $0x1cc] ss:$16 sps:$4 sm:$0xff]  }
 0xbed   :  { %13140 = vmatpush1.bf16.msra.mxu1 %v16758_v28  ;;  %13171 = vmatprep.mubr.bf16.mxu1 %v19287_v51  ;;  %v16799_v51 = vcombine.high %v12291_v18, %v12295_v33  ;;  %v12347_v28 = vld [vmem:[#allocation10 + $0x1f18] sm:$0xff] }
 0xbee   :  { %13141 = vmatprep.subr.bf16.mxu1 %v16767_v4  ;;  %v12351_v4 = vld [vmem:[#allocation10 + $0x1f38] sm:$0xff] }
 0xbef   :  { %v16855_v10 = vcombine.high %v12347_v28, %v12351_v4  ;;  %v16854_v57 = vcombine.low %v12347_v28, %v12351_v4  ;;  %v18092_v28 = vld [vmem:[#allocation13 + $0x1e8] ss:$16 sps:$4 sm:$0xff]   ;;  %v18100_v4 = vld [vmem:[#allocation13 + $0x20c] ss:$16 sps:$4 sm:$0xff]  }
 0xbf1   :  { %13142 = vmatpush1.bf16.msra.mxu1 %v16766_v25  ;;  %v12355_v25 = vld [vmem:[#allocation10 + $0x1f58] sm:$0xff] }
 0xbf2   :  { %13143 = vmatprep.subr.bf16.mxu1 %v16775_v60  ;;  %v12359_v60 = vld [vmem:[#allocation10 + $0x1f78] sm:$0xff] }
 0xbf3   :  { %v16863_v54 = vcombine.high %v12355_v25, %v12359_v60  ;;  %v16862_v11 = vcombine.low %v12355_v25, %v12359_v60 }
 0xbf5   :  { %13144 = vmatpush1.bf16.msra.mxu1 %v16774_v5  ;;  %v12363_v5 = vld [vmem:[#allocation10 + $0x1f98] sm:$0xff] }
 0xbf6   :  { %13145 = vmatprep.subr.bf16.mxu1 %v16783_v42  ;;  %v12367_v42 = vld [vmem:[#allocation10 + $0x1fb8] sm:$0xff] }
 0xbf7   :  { %v16871_v62 = vcombine.high %v12363_v5, %v12367_v42  ;;  %v16870_v18 = vcombine.low %v12363_v5, %v12367_v42 }
 0xbf9   :  { %13146 = vmatpush1.bf16.msra.mxu1 %v16782_v20  ;;  %v12371_v20 = vld [vmem:[#allocation10 + $0x1fd8] sm:$0xff] }
 0xbfa   :  { %13147 = vmatprep.subr.bf16.mxu1 %v16791_v47  ;;  %v12375_v47 = vld [vmem:[#allocation10 + $0x1ff8] sm:$0xff] }
 0xbfb   :  { %v16879_v33 = vcombine.high %v12371_v20, %v12375_v47 }
 0xbfd   :  { %13148 = vmatpush1.bf16.msra.mxu1 %v16790_v56  ;;  %v16878_v56 = vcombine.low %v12371_v20, %v12375_v47 }
 0xbfe   :  { %13149 = vmatprep.subr.bf16.mxu1 %v16799_v51  ;;  %v18004_v51 = vld [vmem:[#allocation13 + $0xc] ss:$16 sps:$4 sm:$0xff]  }
 0xc01   :  { %13150 = vmatpush1.bf16.msra.mxu1 %v16798_v16  ;;  %v18008_v16 = vld [vmem:[#allocation13 + $0x28] ss:$16 sps:$4 sm:$0xff]  }
 0xc02   :  { %13151 = vmatprep.subr.bf16.mxu1 %v16807_v53  ;;  %v18016_v53 = vld [vmem:[#allocation13 + $0x4c] ss:$16 sps:$4 sm:$0xff]  }
 0xc05   :  { %13152 = vmatpush1.bf16.msra.mxu1 %v16806_v21  ;;  %v18028_v21 = vld [vmem:[#allocation13 + $0x8c] ss:$16 sps:$4 sm:$0xff]  }
 0xc06   :  { %13153 = vmatprep.subr.bf16.mxu1 %v16815_v1  ;;  %v18034_v1 = vld [vmem:[#allocation13 + $0xac] ss:$16 sps:$4 sm:$0xff]  }
 0xc09   :  { %13154 = vmatpush1.bf16.msra.mxu1 %v16814_v55  ;;  %v18044_v55 = vld [vmem:[#allocation13 + $0xe8] ss:$16 sps:$4 sm:$0xff]  }
 0xc0a   :  { %13155 = vmatprep.subr.bf16.mxu1 %v16823_v52  ;;  %v18050_v52 = vld [vmem:[#allocation13 + $0x108] ss:$16 sps:$4 sm:$0xff]  }
 0xc0d   :  { %13156 = vmatpush1.bf16.msra.mxu1 %v16822_v0  ;;  %v18062_v0 = vld [vmem:[#allocation13 + $0x148] ss:$16 sps:$4 sm:$0xff]  }
 0xc0e   :  { %13157 = vmatprep.subr.bf16.mxu1 %v16831_v58  ;;  %v18070_v58 = vld [vmem:[#allocation13 + $0x16c] ss:$16 sps:$4 sm:$0xff]  }
 0xc11   :  { %13158 = vmatpush1.bf16.msra.mxu1 %v16830_v3  ;;  %v18074_v3 = vld [vmem:[#allocation13 + $0x188] ss:$16 sps:$4 sm:$0xff]  }
 0xc12   :  { %13159 = vmatprep.subr.bf16.mxu1 %v16839_v43  ;;  %v18082_v43 = vld [vmem:[#allocation13 + $0x1ac] ss:$16 sps:$4 sm:$0xff]  }
 0xc15   :  { %13160 = vmatpush1.bf16.msra.mxu1 %v16838_v8  ;;  %v18086_v8 = vld [vmem:[#allocation13 + $0x1c8] ss:$16 sps:$4 sm:$0xff]  }
 0xc16   :  { %13161 = vmatprep.subr.bf16.mxu1 %v16847_v17  ;;  %v18094_v17 = vld [vmem:[#allocation13 + $0x1ec] ss:$16 sps:$4 sm:$0xff]  }
 0xc19   :  { %13162 = vmatpush1.bf16.msra.mxu1 %v16846_v38  ;;  %v19299_v38 = vld [vmem:[#allocation11] sm:$0xff] }
 0xc1a   :  { %13163 = vmatprep.subr.bf16.mxu1 %v16855_v10  ;;  %v13193_v10 = vrot.slane %v19299_v38, %v18846_v14 }
 0xc1d   :  { %13164 = vmatpush1.bf16.msra.mxu1 %v16854_v57  ;;  %v13197_v57 = vrot.slane %v19299_v38, %v18849_v15 }
 0xc1e   :  { %13165 = vmatprep.subr.bf16.mxu1 %v16863_v54 }
 0xc21   :  { %13166 = vmatpush1.bf16.msra.mxu1 %v16862_v11 }
 0xc22   :  { %13167 = vmatprep.subr.bf16.mxu1 %v16871_v62 }
 0xc25   :  { %13168 = vmatpush1.bf16.msra.mxu1 %v16870_v18 }
 0xc26   :  { %13169 = vmatprep.subr.bf16.mxu1 %v16879_v33 }
 0xc29   :  { %13170 = vmatpush1.bf16.msra.mxu1 %v16878_v56 }
 0xc2a   :  { %14976 = vmatprep.subr.bf16.mxu1 %v18004_v51 }
 0xc2c   :  { %13172 = vmatmul.mubr.bf16.vlgmr.msra.gmra.mrb[120].mxu1 %v19289_v6  ;;  %v18040_v6 = vld [vmem:[#allocation13 + $0xcc] ss:$16 sps:$4 sm:$0xff]  }
 0xc2d   :  { %14977 = vmatpush1.bf16.msra.mxu1 %v18002_v36 }
 0xc2e   :  { %14978 = vmatprep.subr.bf16.mxu1 %v18010_v59 }
 0xc31   :  { %14979 = vmatpush1.bf16.msra.mxu1 %v18008_v16 }
 0xc32   :  { %14980 = vmatprep.subr.bf16.mxu1 %v18016_v53 }
 0xc35   :  { %14981 = vmatpush1.bf16.msra.mxu1 %v18014_v23  ;;  %v18098_v23 = vld [vmem:[#allocation13 + $0x208] ss:$16 sps:$4 sm:$0xff]  }
 0xc36   :  { %14982 = vmatprep.subr.bf16.mxu1 %v18022_v31  ;;  %v18103_v31 = vld [vmem:[#allocation13 + $0x224] ss:$16 sps:$4 sm:$0xff]  }
 0xc39   :  { %14983 = vmatpush1.bf16.msra.mxu1 %v18020_v24  ;;  %v18106_v24 = vld [vmem:[#allocation13 + $0x22c] ss:$16 sps:$4 sm:$0xff]  }
 0xc3a   :  { %14984 = vmatprep.subr.bf16.mxu1 %v18028_v21  ;;  %v18109_v21 = vld [vmem:[#allocation13 + $0x244] ss:$16 sps:$4 sm:$0xff]  }
 0xc3d   :  { %14985 = vmatpush1.bf16.msra.mxu1 %v18026_v49  ;;  %v18112_v49 = vld [vmem:[#allocation13 + $0x24c] ss:$16 sps:$4 sm:$0xff]  }
 0xc3e   :  { %14986 = vmatprep.subr.bf16.mxu1 %v18034_v1  ;;  %v18107_v1 = vld [vmem:[#allocation13 + $0x240] ss:$16 sps:$4 sm:$0xff]  }
 0xc41   :  { %14987 = vmatpush1.bf16.msra.mxu1 %v18032_v45  ;;  %v18110_v45 = vld [vmem:[#allocation13 + $0x248] ss:$16 sps:$4 sm:$0xff]  }
 0xc42   :  { %14988 = vmatprep.subr.bf16.mxu1 %v18040_v6  ;;  %v18115_v6 = vld [vmem:[#allocation13 + $0x264] ss:$16 sps:$4 sm:$0xff]  }
 0xc45   :  { %14989 = vmatpush1.bf16.msra.mxu1 %v18038_v34  ;;  %v18118_v34 = vld [vmem:[#allocation13 + $0x26c] ss:$16 sps:$4 sm:$0xff]  }
 0xc46   :  { %14990 = vmatprep.subr.bf16.mxu1 %v18046_v39  ;;  %v18113_v39 = vld [vmem:[#allocation13 + $0x260] ss:$16 sps:$4 sm:$0xff]  }
 0xc49   :  { %14991 = vmatpush1.bf16.msra.mxu1 %v18044_v55  ;;  %v18116_v55 = vld [vmem:[#allocation13 + $0x268] ss:$16 sps:$4 sm:$0xff]  }
 0xc4a   :  { %14992 = vmatprep.subr.bf16.mxu1 %v18052_v40  ;;  %v18121_v40 = vld [vmem:[#allocation13 + $0x284] ss:$16 sps:$4 sm:$0xff]  }
 0xc4d   :  { %14993 = vmatpush1.bf16.msra.mxu1 %v18050_v52  ;;  %v18124_v52 = vld [vmem:[#allocation13 + $0x28c] ss:$16 sps:$4 sm:$0xff]  }
 0xc4e   :  { %14994 = vmatprep.subr.bf16.mxu1 %v18058_v46  ;;  %v18119_v46 = vld [vmem:[#allocation13 + $0x280] ss:$16 sps:$4 sm:$0xff]  }
 0xc51   :  { %14995 = vmatpush1.bf16.msra.mxu1 %v18056_v32  ;;  %v18122_v32 = vld [vmem:[#allocation13 + $0x288] ss:$16 sps:$4 sm:$0xff]  }
 0xc52   :  { %14996 = vmatprep.subr.bf16.mxu1 %v18064_v48  ;;  %v18127_v48 = vld [vmem:[#allocation13 + $0x2a4] ss:$16 sps:$4 sm:$0xff]  }
 0xc55   :  { %14997 = vmatpush1.bf16.msra.mxu1 %v18062_v0  ;;  %v18130_v0 = vld [vmem:[#allocation13 + $0x2ac] ss:$16 sps:$4 sm:$0xff]  }
 0xc56   :  { %14998 = vmatprep.subr.bf16.mxu1 %v18070_v58  ;;  %v18125_v58 = vld [vmem:[#allocation13 + $0x2a0] ss:$16 sps:$4 sm:$0xff]  }
 0xc59   :  { %14999 = vmatpush1.bf16.msra.mxu1 %v18068_v9  ;;  %v18128_v9 = vld [vmem:[#allocation13 + $0x2a8] ss:$16 sps:$4 sm:$0xff]  }
 0xc5a   :  { %15000 = vmatprep.subr.bf16.mxu1 %v18076_v12  ;;  %v18133_v12 = vld [vmem:[#allocation13 + $0x2c4] ss:$16 sps:$4 sm:$0xff]  }
 0xc5d   :  { %15001 = vmatpush1.bf16.msra.mxu1 %v18074_v3  ;;  %v18136_v3 = vld [vmem:[#allocation13 + $0x2cc] ss:$16 sps:$4 sm:$0xff]  }
 0xc5e   :  { %15002 = vmatprep.subr.bf16.mxu1 %v18082_v43  ;;  %v18131_v43 = vld [vmem:[#allocation13 + $0x2c0] ss:$16 sps:$4 sm:$0xff]  }
 0xc61   :  { %15003 = vmatpush1.bf16.msra.mxu1 %v18080_v2  ;;  %v18134_v2 = vld [vmem:[#allocation13 + $0x2c8] ss:$16 sps:$4 sm:$0xff]  }
 0xc62   :  { %15004 = vmatprep.subr.bf16.mxu1 %v18088_v35  ;;  %v18139_v35 = vld [vmem:[#allocation13 + $0x2e4] ss:$16 sps:$4 sm:$0xff]  }
 0xc65   :  { %15005 = vmatpush1.bf16.msra.mxu1 %v18086_v8  ;;  %v18142_v8 = vld [vmem:[#allocation13 + $0x2ec] ss:$16 sps:$4 sm:$0xff]  }
 0xc66   :  { %15006 = vmatprep.subr.bf16.mxu1 %v18094_v17  ;;  %v18137_v17 = vld [vmem:[#allocation13 + $0x2e0] ss:$16 sps:$4 sm:$0xff]  }
 0xc69   :  { %15007 = vmatpush1.bf16.msra.mxu1 %v18092_v28  ;;  %v18140_v28 = vld [vmem:[#allocation13 + $0x2e8] ss:$16 sps:$4 sm:$0xff]  }
 0xc6a   :  { %15017 = vmatprep.subr.bf16.mxu1 %v18100_v4  ;;  %v18145_v4 = vld [vmem:[#allocation13 + $0x304] ss:$16 sps:$4 sm:$0xff]  }
 0xc7f   :  { %v13050_v25 = vpop.f32.mrb[112].mxu1  ;;  %v13132_v60 = vpop.f32.mrb[96].mxu0 }
 0xc80   :  { %v13180_v54 = vadd.f32 %v13050_v25, %v19262_v29  ;;  %v19307_v5 = vadd.f32 %v13132_v60, %v19265_v63  ;;  %v13052_v42 = vpop.f32.mrb[113].mxu1  ;;  %v13134_v11 = vpop.f32.mrb[97].mxu0  ;;  %v18095_v29 = vld [vmem:[#allocation13 + $0x200] ss:$16 sps:$4 sm:$0xff]   ;;  %v18146_v60 = vld [vmem:[#allocation13 + $0x308] ss:$16 sps:$4 sm:$0xff]  }
 0xc81   :  { %v13181_v62 = vadd.f32 %v13052_v42, %v19268_v22  ;;  %v19311_v20 = vadd.f32 %v13134_v11, %v19271_v44  ;;  %v13054_v47 = vpop.f32.mrb[114].mxu1  ;;  %v13136_v18 = vpop.f32.mrb[98].mxu0  ;;  %v18101_v22 = vld [vmem:[#allocation13 + $0x220] ss:$16 sps:$4 sm:$0xff]   ;;  %v18104_v44 = vld [vmem:[#allocation13 + $0x228] ss:$16 sps:$4 sm:$0xff]  }
 0xc82   :  { %v13230_v33 = vadd.f32 %v13193_v10, %v13180_v54  ;;  %v13055_v56 = vpop.f32.mrb[115].mxu1  ;;  %v13137_v51 = vpop.f32.mrb[99].mxu0  ;;  %v18148_v10 = vld [vmem:[#allocation13 + $0x30c] ss:$16 sps:$4 sm:$0xff]   ;;  %v18143_v25 = vld [vmem:[#allocation13 + $0x300] ss:$16 sps:$4 sm:$0xff]  }
 0xc83   :  { %v13231_v36 = vadd.f32 %v13197_v57, %v13181_v62  ;;  %v18151_v57 = vld [vmem:[#allocation13 + $0x324] ss:$16 sps:$4 sm:$0xff]   ;;  %v18154_v54 = vld [vmem:[#allocation13 + $0x32c] ss:$16 sps:$4 sm:$0xff]   ;;  %v18149_v42 = vld [vmem:[#allocation13 + $0x320] ss:$16 sps:$4 sm:$0xff]  }
 0xc84   :  { %v13238_v59 = vmax.f32 %v13230_v33, 0.0  ;;  %v18152_v11 = vld [vmem:[#allocation13 + $0x328] ss:$16 sps:$4 sm:$0xff]   ;;  %v18157_v62 = vld [vmem:[#allocation13 + $0x344] ss:$16 sps:$4 sm:$0xff]  }
 0xc85   :  { %v13239_v16 = vmax.f32 %v13231_v36, 0.0  ;;  %v18160_v47 = vld [vmem:[#allocation13 + $0x34c] ss:$16 sps:$4 sm:$0xff]   ;;  %v18155_v18 = vld [vmem:[#allocation13 + $0x340] ss:$16 sps:$4 sm:$0xff]  }
 0xc86   :  { %v13246_v63 = vpack.c.bf16 %v13238_v59, %v13238_v59  ;;  %v18158_v33 = vld [vmem:[#allocation13 + $0x348] ss:$16 sps:$4 sm:$0xff]   ;;  %v18163_v56 = vld [vmem:[#allocation13 + $0x364] ss:$16 sps:$4 sm:$0xff]   ;;  %v18166_v51 = vld [vmem:[#allocation13 + $0x36c] ss:$16 sps:$4 sm:$0xff]  }
 0xc87   :  { %v13247_v53 = vpack.c.bf16 %v13239_v16, %v13239_v16  ;;  %v18161_v36 = vld [vmem:[#allocation13 + $0x360] ss:$16 sps:$4 sm:$0xff]   ;;  %v18164_v59 = vld [vmem:[#allocation13 + $0x368] ss:$16 sps:$4 sm:$0xff]   ;;  %v18169_v16 = vld [vmem:[#allocation13 + $0x384] ss:$16 sps:$4 sm:$0xff]  }
 0xc89   :  { %14844 = vmatprep.mubr.bf16.mxu0 %v13247_v53  ;;  %15008 = vmatprep.mubr.bf16.mxu1 %v13247_v53  ;;  %v18172_v53 = vld [vmem:[#allocation13 + $0x38c] ss:$16 sps:$4 sm:$0xff]  }
 0xc8a   :  { %14845 = vmatmul.mubr.bf16.vlgmr.msra.gmra.mrb[100].mxu0 %v13246_v63  ;;  %15009 = vmatmul.mubr.bf16.vlgmr.msra.gmra.mrb[124].mxu1 %v13246_v63  ;;  %v18175_v63 = vld [vmem:[#allocation13 + $0x3a4] ss:$16 sps:$4 sm:$0xff]  }
 0xc8b   :  { %14854 = vmatpush1.bf16.msra.mxu0 %v18095_v29  ;;  %15018 = vmatpush1.bf16.msra.mxu1 %v18098_v23  ;;  %v18167_v29 = vld [vmem:[#allocation13 + $0x380] ss:$16 sps:$4 sm:$0xff]   ;;  %v18170_v23 = vld [vmem:[#allocation13 + $0x388] ss:$16 sps:$4 sm:$0xff]  }
 0xc8c   :  { %14855 = vmatprep.subr.bf16.mxu0 %v18103_v31  ;;  %15019 = vmatprep.subr.bf16.mxu1 %v18106_v24  ;;  %v18178_v31 = vld [vmem:[#allocation13 + $0x3ac] ss:$16 sps:$4 sm:$0xff]   ;;  %v18173_v24 = vld [vmem:[#allocation13 + $0x3a0] ss:$16 sps:$4 sm:$0xff]  }
 0xc8f   :  { %14856 = vmatpush1.bf16.msra.mxu0 %v18101_v22  ;;  %15020 = vmatpush1.bf16.msra.mxu1 %v18104_v44  ;;  %v18176_v22 = vld [vmem:[#allocation13 + $0x3a8] ss:$16 sps:$4 sm:$0xff]   ;;  %v18181_v44 = vld [vmem:[#allocation13 + $0x3c4] ss:$16 sps:$4 sm:$0xff]  }
 0xc90   :  { %14857 = vmatprep.subr.bf16.mxu0 %v18109_v21  ;;  %15021 = vmatprep.subr.bf16.mxu1 %v18112_v49  ;;  %v18184_v21 = vld [vmem:[#allocation13 + $0x3cc] ss:$16 sps:$4 sm:$0xff]   ;;  %v13213_v49 = vrot.slane %v19299_v38, %v18866_v41 }
 0xc92   :  { %v13235_v41 = vadd.f32 %v13213_v49, %v19311_v20  ;;  %v18191_v20 = vld [vmem:[#allocation13 + $0x400] ss:$16 sps:$4 sm:$0xff]   ;;  %v18238_v49 = vld [vmem:[#allocation13 + $0x4ec] ss:$16 sps:$4 sm:$0xff]  }
 0xc93   :  { %14858 = vmatpush1.bf16.msra.mxu0 %v18107_v1  ;;  %15022 = vmatpush1.bf16.msra.mxu1 %v18110_v45  ;;  %v13201_v1 = vrot.slane %v19299_v38, %v18884_v27 }
 0xc94   :  { %14859 = vmatprep.subr.bf16.mxu0 %v18115_v6  ;;  %15023 = vmatprep.subr.bf16.mxu1 %v18118_v34  ;;  %v13205_v6 = vrot.slane %v19299_v38, %v18856_v19  ;;  %v18179_v34 = vld [vmem:[#allocation13 + $0x3c0] ss:$16 sps:$4 sm:$0xff]  }
 0xc97   :  { %14860 = vmatpush1.bf16.msra.mxu0 %v18113_v39  ;;  %15024 = vmatpush1.bf16.msra.mxu1 %v18116_v55  ;;  %v18182_v39 = vld [vmem:[#allocation13 + $0x3c8] ss:$16 sps:$4 sm:$0xff]  }
 0xc98   :  { %14861 = vmatprep.subr.bf16.mxu0 %v18121_v40  ;;  %15025 = vmatprep.subr.bf16.mxu1 %v18124_v52  ;;  %v18187_v52 = vld [vmem:[#allocation13 + $0x3e4] ss:$16 sps:$4 sm:$0xff]  }
 0xc9b   :  { %14862 = vmatpush1.bf16.msra.mxu0 %v18119_v46  ;;  %15026 = vmatpush1.bf16.msra.mxu1 %v18122_v32  ;;  %v18190_v46 = vld [vmem:[#allocation13 + $0x3ec] ss:$16 sps:$4 sm:$0xff]  }
 0xc9c   :  { %14863 = vmatprep.subr.bf16.mxu0 %v18127_v48  ;;  %15027 = vmatprep.subr.bf16.mxu1 %v18130_v0 }
 0xc9f   :  { %14864 = vmatpush1.bf16.msra.mxu0 %v18125_v58  ;;  %15028 = vmatpush1.bf16.msra.mxu1 %v18128_v9 }
 0xca0   :  { %14865 = vmatprep.subr.bf16.mxu0 %v18133_v12  ;;  %15029 = vmatprep.subr.bf16.mxu1 %v18136_v3  ;;  %v18185_v12 = vld [vmem:[#allocation13 + $0x3e0] ss:$16 sps:$4 sm:$0xff]   ;;  %v18188_v3 = vld [vmem:[#allocation13 + $0x3e8] ss:$16 sps:$4 sm:$0xff]  }
 0xca3   :  { %14866 = vmatpush1.bf16.msra.mxu0 %v18131_v43  ;;  %15030 = vmatpush1.bf16.msra.mxu1 %v18134_v2  ;;  %v18196_v2 = vld [vmem:[#allocation13 + $0x40c] ss:$16 sps:$4 sm:$0xff]  }
 0xca4   :  { %14867 = vmatprep.subr.bf16.mxu0 %v18139_v35  ;;  %15031 = vmatprep.subr.bf16.mxu1 %v18142_v8  ;;  %v13243_v35 = vmax.f32 %v13235_v41, 0.0  ;;  %v18248_v41 = vld [vmem:[#allocation13 + $0x528] ss:$16 sps:$4 sm:$0xff]  }
 0xca7   :  { %14868 = vmatpush1.bf16.msra.mxu0 %v18137_v17  ;;  %15032 = vmatpush1.bf16.msra.mxu1 %v18140_v28  ;;  %v18194_v28 = vld [vmem:[#allocation13 + $0x408] ss:$16 sps:$4 sm:$0xff]  }
 0xca8   :  { %14869 = vmatprep.subr.bf16.mxu0 %v18145_v4  ;;  %15033 = vmatprep.subr.bf16.mxu1 %v18148_v10  ;;  %v13251_v4 = vpack.c.bf16 %v13243_v35, %v13243_v35  ;;  %v18199_v10 = vld [vmem:[#allocation13 + $0x424] ss:$16 sps:$4 sm:$0xff]   ;;  %v18263_v35 = vld [vmem:[#allocation13 + $0x580] ss:$16 sps:$4 sm:$0xff]  }
 0xcab   :  { %14870 = vmatpush1.bf16.msra.mxu0 %v18143_v25  ;;  %15034 = vmatpush1.bf16.msra.mxu1 %v18146_v60  ;;  %v18202_v25 = vld [vmem:[#allocation13 + $0x42c] ss:$16 sps:$4 sm:$0xff]   ;;  %v18197_v60 = vld [vmem:[#allocation13 + $0x420] ss:$16 sps:$4 sm:$0xff]  }
 0xcac   :  { %14871 = vmatprep.subr.bf16.mxu0 %v18151_v57  ;;  %15035 = vmatprep.subr.bf16.mxu1 %v18154_v54  ;;  %v18200_v57 = vld [vmem:[#allocation13 + $0x428] ss:$16 sps:$4 sm:$0xff]   ;;  %v18205_v54 = vld [vmem:[#allocation13 + $0x444] ss:$16 sps:$4 sm:$0xff]  }
 0xcaf   :  { %14872 = vmatpush1.bf16.msra.mxu0 %v18149_v42  ;;  %15036 = vmatpush1.bf16.msra.mxu1 %v18152_v11  ;;  %v18208_v42 = vld [vmem:[#allocation13 + $0x44c] ss:$16 sps:$4 sm:$0xff]   ;;  %v18203_v11 = vld [vmem:[#allocation13 + $0x440] ss:$16 sps:$4 sm:$0xff]  }
 0xcb0   :  { %14873 = vmatprep.subr.bf16.mxu0 %v18157_v62  ;;  %15037 = vmatprep.subr.bf16.mxu1 %v18160_v47  ;;  %v18206_v62 = vld [vmem:[#allocation13 + $0x448] ss:$16 sps:$4 sm:$0xff]   ;;  %v18211_v47 = vld [vmem:[#allocation13 + $0x464] ss:$16 sps:$4 sm:$0xff]  }
 0xcb3   :  { %14874 = vmatpush1.bf16.msra.mxu0 %v18155_v18  ;;  %15038 = vmatpush1.bf16.msra.mxu1 %v18158_v33  ;;  %v18214_v18 = vld [vmem:[#allocation13 + $0x46c] ss:$16 sps:$4 sm:$0xff]   ;;  %v18209_v33 = vld [vmem:[#allocation13 + $0x460] ss:$16 sps:$4 sm:$0xff]  }
 0xcb4   :  { %14875 = vmatprep.subr.bf16.mxu0 %v18163_v56  ;;  %15039 = vmatprep.subr.bf16.mxu1 %v18166_v51  ;;  %v18212_v56 = vld [vmem:[#allocation13 + $0x468] ss:$16 sps:$4 sm:$0xff]   ;;  %v18217_v51 = vld [vmem:[#allocation13 + $0x484] ss:$16 sps:$4 sm:$0xff]  }
 0xcb7   :  { %14876 = vmatpush1.bf16.msra.mxu0 %v18161_v36  ;;  %15040 = vmatpush1.bf16.msra.mxu1 %v18164_v59  ;;  %v18220_v36 = vld [vmem:[#allocation13 + $0x48c] ss:$16 sps:$4 sm:$0xff]   ;;  %v18215_v59 = vld [vmem:[#allocation13 + $0x480] ss:$16 sps:$4 sm:$0xff]  }
 0xcb8   :  { %14877 = vmatprep.subr.bf16.mxu0 %v18169_v16  ;;  %15041 = vmatprep.subr.bf16.mxu1 %v18172_v53  ;;  %v18218_v16 = vld [vmem:[#allocation13 + $0x488] ss:$16 sps:$4 sm:$0xff]   ;;  %v18223_v53 = vld [vmem:[#allocation13 + $0x4a4] ss:$16 sps:$4 sm:$0xff]  }
 0xcbb   :  { %14878 = vmatpush1.bf16.msra.mxu0 %v18167_v29  ;;  %15042 = vmatpush1.bf16.msra.mxu1 %v18170_v23  ;;  %v18226_v29 = vld [vmem:[#allocation13 + $0x4ac] ss:$16 sps:$4 sm:$0xff]   ;;  %v18221_v23 = vld [vmem:[#allocation13 + $0x4a0] ss:$16 sps:$4 sm:$0xff]  }
 0xcbc   :  { %14879 = vmatprep.subr.bf16.mxu0 %v18175_v63  ;;  %15043 = vmatprep.subr.bf16.mxu1 %v18178_v31  ;;  %v18224_v63 = vld [vmem:[#allocation13 + $0x4a8] ss:$16 sps:$4 sm:$0xff]   ;;  %v18229_v31 = vld [vmem:[#allocation13 + $0x4c4] ss:$16 sps:$4 sm:$0xff]  }
 0xcbf   :  { %v13091_v45 = vpop.f32.mrb[116].mxu1  ;;  %14880 = vmatpush1.bf16.msra.mxu0 %v18173_v24  ;;  %15044 = vmatpush1.bf16.msra.mxu1 %v18176_v22  ;;  %v18232_v24 = vld [vmem:[#allocation13 + $0x4cc] ss:$16 sps:$4 sm:$0xff]   ;;  %v18227_v22 = vld [vmem:[#allocation13 + $0x4c0] ss:$16 sps:$4 sm:$0xff]  }
 0xcc0   :  { %v13182_v55 = vadd.f32 %v13091_v45, %v19274_v26  ;;  %v13093_v40 = vpop.f32.mrb[117].mxu1  ;;  %14881 = vmatprep.subr.bf16.mxu0 %v18181_v44  ;;  %15045 = vmatprep.subr.bf16.mxu1 %v18184_v21  ;;  %v18193_v26 = vld [vmem:[#allocation13 + $0x404] ss:$16 sps:$4 sm:$0xff]   ;;  %v18230_v44 = vld [vmem:[#allocation13 + $0x4c8] ss:$16 sps:$4 sm:$0xff]  }
 0xcc1   :  { %v13183_v32 = vadd.f32 %v13093_v40, %v19277_v30  ;;  %v13095_v48 = vpop.f32.mrb[118].mxu1  ;;  %v18235_v21 = vld [vmem:[#allocation13 + $0x4e4] ss:$16 sps:$4 sm:$0xff]   ;;  %v18236_v45 = vld [vmem:[#allocation13 + $0x4e8] ss:$16 sps:$4 sm:$0xff]  }
 0xcc2   :  { %v13232_v0 = vadd.f32 %v13201_v1, %v13182_v55  ;;  %v13096_v58 = vpop.f32.mrb[119].mxu1  ;;  %v18233_v1 = vld [vmem:[#allocation13 + $0x4e0] ss:$16 sps:$4 sm:$0xff]   ;;  %v18242_v55 = vld [vmem:[#allocation13 + $0x508] ss:$16 sps:$4 sm:$0xff]  }
 0xcc3   :  { %v13233_v9 = vadd.f32 %v13205_v6, %v13183_v32  ;;  %14882 = vmatpush1.bf16.msra.mxu0 %v18179_v34  ;;  %15046 = vmatpush1.bf16.msra.mxu1 %v18182_v39  ;;  %v18241_v6 = vld [vmem:[#allocation13 + $0x504] ss:$16 sps:$4 sm:$0xff]   ;;  %v18244_v34 = vld [vmem:[#allocation13 + $0x50c] ss:$16 sps:$4 sm:$0xff]   ;;  %v18239_v39 = vld [vmem:[#allocation13 + $0x500] ss:$16 sps:$4 sm:$0xff]  }
 0xcc4   :  { %v13240_v43 = vmax.f32 %v13232_v0, 0.0  ;;  %14883 = vmatprep.subr.bf16.mxu0 %v18187_v52  ;;  %15047 = vmatprep.subr.bf16.mxu1 %v18190_v46  ;;  %v18247_v40 = vld [vmem:[#allocation13 + $0x524] ss:$16 sps:$4 sm:$0xff]   ;;  %v18250_v52 = vld [vmem:[#allocation13 + $0x52c] ss:$16 sps:$4 sm:$0xff]  }
 0xcc5   :  { %v13241_v8 = vmax.f32 %v13233_v9, 0.0  ;;  %v18245_v46 = vld [vmem:[#allocation13 + $0x520] ss:$16 sps:$4 sm:$0xff]   ;;  %v18253_v32 = vld [vmem:[#allocation13 + $0x544] ss:$16 sps:$4 sm:$0xff]  }
 0xcc6   :  { %v13248_v30 = vpack.c.bf16 %v13240_v43, %v13240_v43  ;;  %v18256_v48 = vld [vmem:[#allocation13 + $0x54c] ss:$16 sps:$4 sm:$0xff]   ;;  %v18251_v0 = vld [vmem:[#allocation13 + $0x540] ss:$16 sps:$4 sm:$0xff]   ;;  %v18254_v58 = vld [vmem:[#allocation13 + $0x548] ss:$16 sps:$4 sm:$0xff]  }
 0xcc7   :  { %v13249_v17 = vpack.c.bf16 %v13241_v8, %v13241_v8  ;;  %14884 = vmatpush1.bf16.msra.mxu0 %v18185_v12  ;;  %15048 = vmatpush1.bf16.msra.mxu1 %v18188_v3  ;;  %v18259_v9 = vld [vmem:[#allocation13 + $0x564] ss:$16 sps:$4 sm:$0xff]   ;;  %v18262_v12 = vld [vmem:[#allocation13 + $0x56c] ss:$16 sps:$4 sm:$0xff]   ;;  %v18257_v3 = vld [vmem:[#allocation13 + $0x560] ss:$16 sps:$4 sm:$0xff]  }
 0xcc8   :  { %14894 = vmatprep.subr.bf16.mxu0 %v18193_v26  ;;  %15058 = vmatprep.subr.bf16.mxu1 %v18196_v2  ;;  %v18260_v43 = vld [vmem:[#allocation13 + $0x568] ss:$16 sps:$4 sm:$0xff]   ;;  %v18265_v26 = vld [vmem:[#allocation13 + $0x584] ss:$16 sps:$4 sm:$0xff]   ;;  %v18268_v2 = vld [vmem:[#allocation13 + $0x58c] ss:$16 sps:$4 sm:$0xff]  }
 0xcc9   :  { %14885 = vmatprep.mubr.bf16.mxu0 %v13249_v17  ;;  %15049 = vmatprep.mubr.bf16.mxu1 %v13249_v17  ;;  %v18266_v8 = vld [vmem:[#allocation13 + $0x588] ss:$16 sps:$4 sm:$0xff]   ;;  %v18271_v17 = vld [vmem:[#allocation13 + $0x5a4] ss:$16 sps:$4 sm:$0xff]  }
 0xcca   :  { %14886 = vmatmul.mubr.bf16.vlgmr.msra.gmra.mrb[100].mxu0 %v13248_v30  ;;  %15050 = vmatmul.mubr.bf16.vlgmr.msra.gmra.mrb[124].mxu1 %v13248_v30  ;;  %v18269_v30 = vld [vmem:[#allocation13 + $0x5a0] ss:$16 sps:$4 sm:$0xff]  }
 0xccb   :  { %14895 = vmatpush1.bf16.msra.mxu0 %v18191_v20  ;;  %14926 = vmatprep.mubr.bf16.mxu0 %v13251_v4  ;;  %v18274_v20 = vld [vmem:[#allocation13 + $0x5ac] ss:$16 sps:$4 sm:$0xff]  }
 0xccc   :  { %15059 = vmatpush1.bf16.msra.mxu1 %v18194_v28  ;;  %15090 = vmatprep.mubr.bf16.mxu1 %v13251_v4  ;;  %v13209_v28 = vrot.slane %v19299_v38, %v18863_v37  ;;  %v18272_v4 = vld [vmem:[#allocation13 + $0x5a8] ss:$16 sps:$4 sm:$0xff]  }
 0xccd   :  { %14896 = vmatprep.subr.bf16.mxu0 %v18199_v10  ;;  %15060 = vmatprep.subr.bf16.mxu1 %v18202_v25  ;;  %v18277_v10 = vld [vmem:[#allocation13 + $0x5c4] ss:$16 sps:$4 sm:$0xff]   ;;  %v18280_v25 = vld [vmem:[#allocation13 + $0x5cc] ss:$16 sps:$4 sm:$0xff]   ;;  %v18278_v37 = vld [vmem:[#allocation13 + $0x5c8] ss:$16 sps:$4 sm:$0xff]  }
 0xccf   :  { %14897 = vmatpush1.bf16.msra.mxu0 %v18197_v60 }
 0xcd0   :  { %15061 = vmatpush1.bf16.msra.mxu1 %v18200_v57  ;;  %14898 = vmatprep.subr.bf16.mxu0 %v18205_v54  ;;  %v13221_v57 = vrot.slane %v19299_v38, %v18873_v50  ;;  %v18275_v54 = vld [vmem:[#allocation13 + $0x5c0] ss:$16 sps:$4 sm:$0xff]  }
 0xcd1   :  { %15062 = vmatprep.subr.bf16.mxu1 %v18208_v42  ;;  %v13234_v42 = vadd.f32 %v13209_v28, %v19307_v5  ;;  %v18281_v50 = vld [vmem:[#allocation13 + $0x5e0] ss:$16 sps:$4 sm:$0xff]   ;;  %v18284_v5 = vld [vmem:[#allocation13 + $0x5e8] ss:$16 sps:$4 sm:$0xff]  }
 0xcd2   :  { %v18338_v28 = vld [vmem:[#allocation13 + $0x708] ss:$16 sps:$4 sm:$0xff]  }
 0xcd3   :  { %14899 = vmatpush1.bf16.msra.mxu0 %v18203_v11 }
 0xcd4   :  { %15063 = vmatpush1.bf16.msra.mxu1 %v18206_v62  ;;  %14900 = vmatprep.subr.bf16.mxu0 %v18211_v47  ;;  %v18283_v47 = vld [vmem:[#allocation13 + $0x5e4] ss:$16 sps:$4 sm:$0xff]  }
 0xcd5   :  { %15064 = vmatprep.subr.bf16.mxu1 %v18214_v18 }
 0xcd7   :  { %14901 = vmatpush1.bf16.msra.mxu0 %v18209_v33 }
 0xcd8   :  { %15065 = vmatpush1.bf16.msra.mxu1 %v18212_v56  ;;  %14902 = vmatprep.subr.bf16.mxu0 %v18217_v51  ;;  %v18286_v56 = vld [vmem:[#allocation13 + $0x5ec] ss:$16 sps:$4 sm:$0xff]  }
 0xcd9   :  { %15066 = vmatprep.subr.bf16.mxu1 %v18220_v36 }
 0xcdb   :  { %14903 = vmatpush1.bf16.msra.mxu0 %v18215_v59  ;;  %v13242_v59 = vmax.f32 %v13234_v42, 0.0  ;;  %v18347_v42 = vld [vmem:[#allocation13 + $0x740] ss:$16 sps:$4 sm:$0xff]  }
 0xcdc   :  { %15067 = vmatpush1.bf16.msra.mxu1 %v18218_v16  ;;  %14904 = vmatprep.subr.bf16.mxu0 %v18223_v53  ;;  %v18292_v16 = vld [vmem:[#allocation13 + $0x60c] ss:$16 sps:$4 sm:$0xff]  }
 0xcdd   :  { %15068 = vmatprep.subr.bf16.mxu1 %v18226_v29  ;;  %v18287_v29 = vld [vmem:[#allocation13 + $0x600] ss:$16 sps:$4 sm:$0xff]  }
 0xcdf   :  { %14905 = vmatpush1.bf16.msra.mxu0 %v18221_v23  ;;  %v13250_v23 = vpack.c.bf16 %v13242_v59, %v13242_v59  ;;  %v18367_v59 = vld [vmem:[#allocation13 + $0x7a4] ss:$16 sps:$4 sm:$0xff]  }
 0xce0   :  { %15069 = vmatpush1.bf16.msra.mxu1 %v18224_v63  ;;  %14906 = vmatprep.subr.bf16.mxu0 %v18229_v31  ;;  %v18295_v63 = vld [vmem:[#allocation13 + $0x624] ss:$16 sps:$4 sm:$0xff]  }
 0xce1   :  { %15070 = vmatprep.subr.bf16.mxu1 %v18232_v24  ;;  %v18298_v24 = vld [vmem:[#allocation13 + $0x62c] ss:$16 sps:$4 sm:$0xff]  }
 0xce3   :  { %14907 = vmatpush1.bf16.msra.mxu0 %v18227_v22  ;;  %v18293_v22 = vld [vmem:[#allocation13 + $0x620] ss:$16 sps:$4 sm:$0xff]  }
 0xce4   :  { %15071 = vmatpush1.bf16.msra.mxu1 %v18230_v44  ;;  %14908 = vmatprep.subr.bf16.mxu0 %v18235_v21  ;;  %v18296_v44 = vld [vmem:[#allocation13 + $0x628] ss:$16 sps:$4 sm:$0xff]   ;;  %v18301_v21 = vld [vmem:[#allocation13 + $0x644] ss:$16 sps:$4 sm:$0xff]  }
 0xce5   :  { %15072 = vmatprep.subr.bf16.mxu1 %v18238_v49  ;;  %v18304_v49 = vld [vmem:[#allocation13 + $0x64c] ss:$16 sps:$4 sm:$0xff]  }
 0xce7   :  { %14909 = vmatpush1.bf16.msra.mxu0 %v18233_v1  ;;  %v18299_v1 = vld [vmem:[#allocation13 + $0x640] ss:$16 sps:$4 sm:$0xff]  }
 0xce8   :  { %15073 = vmatpush1.bf16.msra.mxu1 %v18236_v45  ;;  %14910 = vmatprep.subr.bf16.mxu0 %v18241_v6  ;;  %v18302_v45 = vld [vmem:[#allocation13 + $0x648] ss:$16 sps:$4 sm:$0xff]   ;;  %v18307_v6 = vld [vmem:[#allocation13 + $0x664] ss:$16 sps:$4 sm:$0xff]  }
 0xce9   :  { %15074 = vmatprep.subr.bf16.mxu1 %v18244_v34  ;;  %v18310_v34 = vld [vmem:[#allocation13 + $0x66c] ss:$16 sps:$4 sm:$0xff]  }
 0xceb   :  { %14911 = vmatpush1.bf16.msra.mxu0 %v18239_v39  ;;  %v18305_v39 = vld [vmem:[#allocation13 + $0x660] ss:$16 sps:$4 sm:$0xff]  }
 0xcec   :  { %15075 = vmatpush1.bf16.msra.mxu1 %v18242_v55  ;;  %14912 = vmatprep.subr.bf16.mxu0 %v18247_v40  ;;  %v18308_v55 = vld [vmem:[#allocation13 + $0x668] ss:$16 sps:$4 sm:$0xff]   ;;  %v18313_v40 = vld [vmem:[#allocation13 + $0x684] ss:$16 sps:$4 sm:$0xff]  }
 0xced   :  { %15076 = vmatprep.subr.bf16.mxu1 %v18250_v52  ;;  %v18316_v52 = vld [vmem:[#allocation13 + $0x68c] ss:$16 sps:$4 sm:$0xff]  }
 0xcef   :  { %14913 = vmatpush1.bf16.msra.mxu0 %v18245_v46  ;;  %v18311_v46 = vld [vmem:[#allocation13 + $0x680] ss:$16 sps:$4 sm:$0xff]  }
 0xcf0   :  { %15077 = vmatpush1.bf16.msra.mxu1 %v18248_v41  ;;  %14914 = vmatprep.subr.bf16.mxu0 %v18253_v32  ;;  %v18314_v41 = vld [vmem:[#allocation13 + $0x688] ss:$16 sps:$4 sm:$0xff]   ;;  %v18319_v32 = vld [vmem:[#allocation13 + $0x6a4] ss:$16 sps:$4 sm:$0xff]  }
 0xcf1   :  { %15078 = vmatprep.subr.bf16.mxu1 %v18256_v48  ;;  %v18322_v48 = vld [vmem:[#allocation13 + $0x6ac] ss:$16 sps:$4 sm:$0xff]  }
 0xcf3   :  { %14915 = vmatpush1.bf16.msra.mxu0 %v18251_v0  ;;  %v18317_v0 = vld [vmem:[#allocation13 + $0x6a0] ss:$16 sps:$4 sm:$0xff]  }
 0xcf4   :  { %15079 = vmatpush1.bf16.msra.mxu1 %v18254_v58  ;;  %14916 = vmatprep.subr.bf16.mxu0 %v18259_v9  ;;  %v18320_v58 = vld [vmem:[#allocation13 + $0x6a8] ss:$16 sps:$4 sm:$0xff]   ;;  %v18325_v9 = vld [vmem:[#allocation13 + $0x6c4] ss:$16 sps:$4 sm:$0xff]  }
 0xcf5   :  { %15080 = vmatprep.subr.bf16.mxu1 %v18262_v12  ;;  %v18328_v12 = vld [vmem:[#allocation13 + $0x6cc] ss:$16 sps:$4 sm:$0xff]  }
 0xcf7   :  { %14917 = vmatpush1.bf16.msra.mxu0 %v18257_v3  ;;  %v18323_v3 = vld [vmem:[#allocation13 + $0x6c0] ss:$16 sps:$4 sm:$0xff]  }
 0xcf8   :  { %15081 = vmatpush1.bf16.msra.mxu1 %v18260_v43  ;;  %14918 = vmatprep.subr.bf16.mxu0 %v18265_v26  ;;  %v18326_v43 = vld [vmem:[#allocation13 + $0x6c8] ss:$16 sps:$4 sm:$0xff]   ;;  %v18331_v26 = vld [vmem:[#allocation13 + $0x6e4] ss:$16 sps:$4 sm:$0xff]  }
 0xcf9   :  { %15082 = vmatprep.subr.bf16.mxu1 %v18268_v2  ;;  %v18334_v2 = vld [vmem:[#allocation13 + $0x6ec] ss:$16 sps:$4 sm:$0xff]  }
 0xcfb   :  { %14919 = vmatpush1.bf16.msra.mxu0 %v18263_v35  ;;  %v18329_v35 = vld [vmem:[#allocation13 + $0x6e0] ss:$16 sps:$4 sm:$0xff]  }
 0xcfc   :  { %15083 = vmatpush1.bf16.msra.mxu1 %v18266_v8  ;;  %14920 = vmatprep.subr.bf16.mxu0 %v18271_v17  ;;  %v18332_v8 = vld [vmem:[#allocation13 + $0x6e8] ss:$16 sps:$4 sm:$0xff]   ;;  %v18337_v17 = vld [vmem:[#allocation13 + $0x704] ss:$16 sps:$4 sm:$0xff]  }
 0xcfd   :  { %15084 = vmatprep.subr.bf16.mxu1 %v18274_v20  ;;  %v18340_v20 = vld [vmem:[#allocation13 + $0x70c] ss:$16 sps:$4 sm:$0xff]  }
 0xcff   :  { %v13173_v60 = vpop.f32.mrb[120].mxu1  ;;  %14921 = vmatpush1.bf16.msra.mxu0 %v18269_v30  ;;  %v18335_v30 = vld [vmem:[#allocation13 + $0x700] ss:$16 sps:$4 sm:$0xff]  }
 0xd00   :  { %v19328_v11 = vadd.f32 %v13173_v60, %v19282_v7  ;;  %15085 = vmatpush1.bf16.msra.mxu1 %v18272_v4  ;;  %v13175_v62 = vpop.f32.mrb[121].mxu1  ;;  %14922 = vmatprep.subr.bf16.mxu0 %v18277_v10  ;;  %v18289_v7 = vld [vmem:[#allocation13 + $0x604] ss:$16 sps:$4 sm:$0xff]   ;;  %v18346_v10 = vld [vmem:[#allocation13 + $0x72c] ss:$16 sps:$4 sm:$0xff]  }
 0xd01   :  { %v13187_v18 = vadd.f32 %v13175_v62, %v19285_v13  ;;  %v13177_v33 = vpop.f32.mrb[122].mxu1  ;;  %15086 = vmatprep.subr.bf16.mxu1 %v18280_v25  ;;  %v18290_v13 = vld [vmem:[#allocation13 + $0x608] ss:$16 sps:$4 sm:$0xff]   ;;  %v18343_v4 = vld [vmem:[#allocation13 + $0x724] ss:$16 sps:$4 sm:$0xff]  }
 0xd02   :  { %v13178_v51 = vpop.f32.mrb[123].mxu1  ;;  %v18341_v25 = vld [vmem:[#allocation13 + $0x720] ss:$16 sps:$4 sm:$0xff]   ;;  %v18344_v60 = vld [vmem:[#allocation13 + $0x728] ss:$16 sps:$4 sm:$0xff]  }
 0xd03   :  { %v13237_v36 = vadd.f32 %v13221_v57, %v13187_v18  ;;  %14923 = vmatpush1.bf16.msra.mxu0 %v18275_v54  ;;  %v18349_v57 = vld [vmem:[#allocation13 + $0x744] ss:$16 sps:$4 sm:$0xff]   ;;  %v18352_v54 = vld [vmem:[#allocation13 + $0x74c] ss:$16 sps:$4 sm:$0xff]   ;;  %v18350_v62 = vld [vmem:[#allocation13 + $0x748] ss:$16 sps:$4 sm:$0xff]  }
 0xd04   :  { %15087 = vmatpush1.bf16.msra.mxu1 %v18278_v37  ;;  %14924 = vmatprep.subr.bf16.mxu0 %v18283_v47  ;;  %v18355_v37 = vld [vmem:[#allocation13 + $0x764] ss:$16 sps:$4 sm:$0xff]   ;;  %v18358_v47 = vld [vmem:[#allocation13 + $0x76c] ss:$16 sps:$4 sm:$0xff]   ;;  %v18353_v18 = vld [vmem:[#allocation13 + $0x760] ss:$16 sps:$4 sm:$0xff]  }
 0xd05   :  { %15088 = vmatprep.subr.bf16.mxu1 %v18286_v56  ;;  %v13245_v53 = vmax.f32 %v13237_v36, 0.0  ;;  %v18356_v33 = vld [vmem:[#allocation13 + $0x768] ss:$16 sps:$4 sm:$0xff]   ;;  %v18361_v56 = vld [vmem:[#allocation13 + $0x784] ss:$16 sps:$4 sm:$0xff]  }
 0xd06   :  { %v18364_v51 = vld [vmem:[#allocation13 + $0x78c] ss:$16 sps:$4 sm:$0xff]   ;;  %v18359_v36 = vld [vmem:[#allocation13 + $0x780] ss:$16 sps:$4 sm:$0xff]  }
 0xd07   :  { %14925 = vmatpush1.bf16.msra.mxu0 %v18281_v50  ;;  %v13253_v31 = vpack.c.bf16 %v13245_v53, %v13245_v53  ;;  %v18362_v50 = vld [vmem:[#allocation13 + $0x788] ss:$16 sps:$4 sm:$0xff]  }
 0xd08   :  { %15089 = vmatpush1.bf16.msra.mxu1 %v18284_v5  ;;  %14935 = vmatprep.subr.bf16.mxu0 %v18289_v7  ;;  %v18370_v5 = vld [vmem:[#allocation13 + $0x7ac] ss:$16 sps:$4 sm:$0xff]   ;;  %v18365_v7 = vld [vmem:[#allocation13 + $0x7a0] ss:$16 sps:$4 sm:$0xff]   ;;  %v18368_v53 = vld [vmem:[#allocation13 + $0x7a8] ss:$16 sps:$4 sm:$0xff]  }
 0xd09   :  { %15099 = vmatprep.subr.bf16.mxu1 %v18292_v16  ;;  %v13217_v16 = vrot.slane %v19299_v38, %v18899_v61  ;;  %v18380_v61 = vld [vmem:[#allocation13 + $0x7e8] ss:$16 sps:$4 sm:$0xff]  }
 0xd0a   :  { %14927 = vmatmul.mubr.bf16.vlgmr.msra.gmra.mrb[100].mxu0 %v13250_v23 }
 0xd0b   :  { %15091 = vmatmul.mubr.bf16.vlgmr.msra.gmra.mrb[124].mxu1 %v13250_v23  ;;  %14936 = vmatpush1.bf16.msra.mxu0 %v18287_v29  ;;  %v18373_v29 = vld [vmem:[#allocation13 + $0x7c4] ss:$16 sps:$4 sm:$0xff]   ;;  %v18376_v23 = vld [vmem:[#allocation13 + $0x7cc] ss:$16 sps:$4 sm:$0xff]  }
 0xd0c   :  { %14967 = vmatprep.mubr.bf16.mxu0 %v13253_v31  ;;  %15100 = vmatpush1.bf16.msra.mxu1 %v18290_v13  ;;  %v18371_v13 = vld [vmem:[#allocation13 + $0x7c0] ss:$16 sps:$4 sm:$0xff]  }
 0xd0d   :  { %15131 = vmatprep.mubr.bf16.mxu1 %v13253_v31  ;;  %14937 = vmatprep.subr.bf16.mxu0 %v18295_v63  ;;  %v13236_v63 = vadd.f32 %v13217_v16, %v19328_v11  ;;  %v18374_v31 = vld [vmem:[#allocation13 + $0x7c8] ss:$16 sps:$4 sm:$0xff]  }
 0xd0e   :  { %15101 = vmatprep.subr.bf16.mxu1 %v18298_v24  ;;  %v18379_v24 = vld [vmem:[#allocation13 + $0x7e4] ss:$16 sps:$4 sm:$0xff]  }
 0xd0f   :  { %14938 = vmatpush1.bf16.msra.mxu0 %v18293_v22  ;;  %v18382_v22 = vld [vmem:[#allocation13 + $0x7ec] ss:$16 sps:$4 sm:$0xff]  }
 0xd10   :  { %15102 = vmatpush1.bf16.msra.mxu1 %v18296_v44  ;;  %14939 = vmatprep.subr.bf16.mxu0 %v18301_v21  ;;  %v18377_v44 = vld [vmem:[#allocation13 + $0x7e0] ss:$16 sps:$4 sm:$0xff]   ;;  %v13244_v21 = vmax.f32 %v13236_v63, 0.0 }
 0xd11   :  { %15103 = vmatprep.subr.bf16.mxu1 %v18304_v49  ;;  %v13510_v49 = vld [vmem:[#allocation14] sm:$0xf] }
 0xd12   :  { %v13252_v38 = vpack.c.bf16 %v13244_v21, %v13244_v21  ;;  %v13515_v11 = vrot.slane %v13510_v49, %v18846_v14 }
 0xd13   :  { %14940 = vmatpush1.bf16.msra.mxu0 %v18299_v1  ;;  %v15144_v1 = vld [vmem:[#allocation16] sm:$0xf] }
 0xd14   :  { %15104 = vmatpush1.bf16.msra.mxu1 %v18302_v45  ;;  %14941 = vmatprep.subr.bf16.mxu0 %v18307_v6  ;;  %v13523_v45 = vrot.slane %v13510_v49, %v18884_v27  ;;  %v13519_v6 = vrot.slane %v13510_v49, %v18849_v15 }
 0xd15   :  { %15105 = vmatprep.subr.bf16.mxu1 %v18310_v34  ;;  %v13527_v34 = vrot.slane %v13510_v49, %v18856_v19 }
 0xd17   :  { %14942 = vmatpush1.bf16.msra.mxu0 %v18305_v39 }
 0xd18   :  { %15106 = vmatpush1.bf16.msra.mxu1 %v18308_v55  ;;  %14943 = vmatprep.subr.bf16.mxu0 %v18313_v40  ;;  %v15149_v40 = vrot.slane %v15144_v1, %v18846_v14 }
 0xd19   :  { %15107 = vmatprep.subr.bf16.mxu1 %v18316_v52 }
 0xd1b   :  { %14944 = vmatpush1.bf16.msra.mxu0 %v18311_v46 }
 0xd1c   :  { %15108 = vmatpush1.bf16.msra.mxu1 %v18314_v41  ;;  %14945 = vmatprep.subr.bf16.mxu0 %v18319_v32 }
 0xd1d   :  { %15109 = vmatprep.subr.bf16.mxu1 %v18322_v48  ;;  %v15153_v48 = vrot.slane %v15144_v1, %v18849_v15 }
 0xd1f   :  { %14946 = vmatpush1.bf16.msra.mxu0 %v18317_v0 }
 0xd20   :  { %15110 = vmatpush1.bf16.msra.mxu1 %v18320_v58  ;;  %14947 = vmatprep.subr.bf16.mxu0 %v18325_v9 }
 0xd21   :  { %15111 = vmatprep.subr.bf16.mxu1 %v18328_v12 }
 0xd23   :  { %14948 = vmatpush1.bf16.msra.mxu0 %v18323_v3 }
 0xd24   :  { %15112 = vmatpush1.bf16.msra.mxu1 %v18326_v43  ;;  %14949 = vmatprep.subr.bf16.mxu0 %v18331_v26 }
 0xd25   :  { %15113 = vmatprep.subr.bf16.mxu1 %v18334_v2  ;;  %v15157_v2 = vrot.slane %v15144_v1, %v18884_v27 }
 0xd27   :  { %14950 = vmatpush1.bf16.msra.mxu0 %v18329_v35 }
 0xd28   :  { %15114 = vmatpush1.bf16.msra.mxu1 %v18332_v8  ;;  %14951 = vmatprep.subr.bf16.mxu0 %v18337_v17 }
 0xd29   :  { %15115 = vmatprep.subr.bf16.mxu1 %v18340_v20 }
 0xd2b   :  { %14952 = vmatpush1.bf16.msra.mxu0 %v18335_v30  ;;  %v15161_v30 = vrot.slane %v15144_v1, %v18856_v19 }
 0xd2c   :  { %15116 = vmatpush1.bf16.msra.mxu1 %v18338_v28  ;;  %14953 = vmatprep.subr.bf16.mxu0 %v18343_v4 }
 0xd2d   :  { %15117 = vmatprep.subr.bf16.mxu1 %v18346_v10 }
 0xd2f   :  { %14954 = vmatpush1.bf16.msra.mxu0 %v18341_v25 }
 0xd30   :  { %15118 = vmatpush1.bf16.msra.mxu1 %v18344_v60  ;;  %14955 = vmatprep.subr.bf16.mxu0 %v18349_v57  ;;  %v17136_v60 = vld [vmem:[#allocation2] ss:$0 sm:$0xff] }
 0xd31   :  { %15119 = vmatprep.subr.bf16.mxu1 %v18352_v54 }
 0xd33   :  { %14956 = vmatpush1.bf16.msra.mxu0 %v18347_v42 }
 0xd34   :  { %15120 = vmatpush1.bf16.msra.mxu1 %v18350_v62  ;;  %14957 = vmatprep.subr.bf16.mxu0 %v18355_v37 }
 0xd35   :  { %15121 = vmatprep.subr.bf16.mxu1 %v18358_v47 }
 0xd37   :  { %14958 = vmatpush1.bf16.msra.mxu0 %v18353_v18 }
 0xd38   :  { %15122 = vmatpush1.bf16.msra.mxu1 %v18356_v33  ;;  %14959 = vmatprep.subr.bf16.mxu0 %v18361_v56 }
 0xd39   :  { %15123 = vmatprep.subr.bf16.mxu1 %v18364_v51 }
 0xd3b   :  { %14960 = vmatpush1.bf16.msra.mxu0 %v18359_v36 }
 0xd3c   :  { %15124 = vmatpush1.bf16.msra.mxu1 %v18362_v50  ;;  %14961 = vmatprep.subr.bf16.mxu0 %v18367_v59 }
 0xd3d   :  { %15125 = vmatprep.subr.bf16.mxu1 %v18370_v5 }
 0xd3f   :  { %14962 = vmatpush1.bf16.msra.mxu0 %v18365_v7 }
 0xd40   :  { %15126 = vmatpush1.bf16.msra.mxu1 %v18368_v53  ;;  %14963 = vmatprep.subr.bf16.mxu0 %v18373_v29 }
 0xd41   :  { %15127 = vmatprep.subr.bf16.mxu1 %v18376_v23 }
 0xd43   :  { %14964 = vmatpush1.bf16.msra.mxu0 %v18371_v13 }
 0xd44   :  { %15128 = vmatpush1.bf16.msra.mxu1 %v18374_v31  ;;  %14965 = vmatprep.subr.bf16.mxu0 %v18379_v24 }
 0xd45   :  { %15129 = vmatprep.subr.bf16.mxu1 %v18382_v22 }
 0xd47   :  { %14966 = vmatpush1.bf16.msra.mxu0 %v18377_v44 }
 0xd48   :  { %15130 = vmatpush1.bf16.msra.mxu1 %v18380_v61 }
 0xd4a   :  { %14968 = vmatmul.mubr.bf16.vlgmr.msra.gmra.mrb[100].mxu0 %v13252_v38 }
 0xd4b   :  { %15132 = vmatmul.mubr.bf16.vlgmr.msra.gmra.mrb[124].mxu1 %v13252_v38 }
 0xe1d   :  { %v14969_v39 = vpop.f32.mrb[100].mxu0 }
 0xe1e   :  { %v17154_v55 = vadd.f32 %v14969_v39, %v13515_v11  ;;  %v15133_v52 = vpop.f32.mrb[124].mxu1  ;;  %v14971_v46 = vpop.f32.mrb[101].mxu0 }
 0xe1f   :  { %v17156_v41 = vadd.f32 %v15133_v52, %v13523_v45  ;;  %v17155_v32 = vadd.f32 %v14971_v46, %v13519_v6  ;;  %v15135_v0 = vpop.f32.mrb[125].mxu1  ;;  %v14973_v58 = vpop.f32.mrb[102].mxu0 }
 0xe20   :  { %v15140_v9 = vmax.f32 %v17154_v55, 0.0  ;;  %v17157_v12 = vadd.f32 %v15135_v0, %v13527_v34  ;;  %v15137_v3 = vpop.f32.mrb[126].mxu1  ;;  %v14974_v43 = vpop.f32.mrb[103].mxu0 }
 0xe21   :  { %v15142_v26 = vmax.f32 %v17156_v41, 0.0  ;;  %v15141_v35 = vmax.f32 %v17155_v32, 0.0  ;;  %v15138_v8 = vpop.f32.mrb[127].mxu1 }
 0xe22   :  { %v15166_v17 = vmul.f32 %v15149_v40, %v15140_v9  ;;  %v15143_v14 = vmax.f32 %v17157_v12, 0.0 }
 0xe23   :  { %v15167_v20 = vmul.f32 %v15153_v48, %v15141_v35  ;;  %v15168_v28 = vmul.f32 %v15157_v2, %v15142_v26 }
 0xe24   :  { %v15169_v10 = vmul.f32 %v15161_v30, %v15143_v14 }
 0xe25   :  { %v15170_v4 = vadd.f32 %v15167_v20, %v15166_v17 }
 0xe27   :  { %v15171_v15 = vadd.f32 %v15170_v4, %v15168_v28 }
 0xe29   :  { %v15172_v25 = vadd.f32 %v15171_v15, %v15169_v10 }
 0xe2b   :  { %15173 = vadd.xlane.f32.xlu0 %v15172_v25 }
 0xeb8   :  { %v15174_v57 = vpop.xlane.xlu0 %15173 }
 0xeb9   :  { %v15182_v54 = vadd.f32 %v17136_v60, %v15174_v57 }
 0xebb   :  { %v17137_v42 = vmul.f32 -1.442695, %v15182_v54 }
 0xebd   :  { %18383 = vpow2.f32 %v17137_v42 }
 0xec7   :  { %v18384_v62 = vpop.eup %18383 }
 0xec8   :  { %v15186_v27 = vadd.f32 1.0, %v18384_v62 }
 0xeca   :  { %18385 = vrcp.f32 %v15186_v27 }
 0xed4   :  { %v18386_v37 = vpop.eup %18385 }
 0xed5   :  { %15190 = vst.msk [vmem:[%s19356_s11] sm:$0xff] %vm15189_vm1, %v18386_v37 }
 0xed6   :  { %15195 = vsyncpa [#allocation4], 1 }
 0xed7   :  { %15196 = vsyncpa [#allocation6], 1 }
 0xed8   :  { %15197 = vsyncpa [#allocation9], 1 }
 0xed9   :  { %15198 = vsyncpa [#allocation12], 1 }
 0xeda   :  { %15199 = vsyncpa [#allocation15], 1 }

</bundles_post_ra>
